<compile_context>
chip_gen: v6e
topology: v6e:2x2x1
jax: 0.10.0
libtpu: 0.0.40
codegen_flags: <defaults>
</compile_context>

<pallas_src>
import jax
import jax.numpy as jnp
from jax.experimental import pallas as pl


LEVEL = 3  # matches the PyTorch module default


def _avg_pool_2x2(x):
    """AvgPool2d(kernel=2, stride=2) on NCHW (drops odd trailing row/col)."""
    n, c, h, w = x.shape
    h2, w2 = h // 2, w // 2
    x = x[:, :, : h2 * 2, : w2 * 2]
    return x.reshape(n, c, h2, 2, w2, 2).mean(axis=(3, 5))


def _exclusion_kernel(*refs):
    """Fused exclusion-loss kernel.

    refs = (img1_lvl0, img2_lvl0, img1_lvl1, img2_lvl1, ..., out)
    Each image ref is a full (N, 3, H_l, W_l) f32 block in VMEM; out is (1, 1).
    """
    *img_refs, out_ref = refs
    level = len(img_refs) // 2

    total = jnp.zeros((1, 1), jnp.float32)

    for l in range(level):
        x1 = img_refs[2 * l][...]
        x2 = img_refs[2 * l + 1][...]
        n, c, h, w = x1.shape

        # Finite-difference gradients (exactly the torch slicing).
        gx1 = x1[:, :, 1:, :] - x1[:, :, :-1, :]   # (N, C, H-1, W)
        gy1 = x1[:, :, :, 1:] - x1[:, :, :, :-1]   # (N, C, H, W-1)
        gx2 = x2[:, :, 1:, :] - x2[:, :, :-1, :]
        gy2 = x2[:, :, :, 1:] - x2[:, :, :, :-1]

        # sigmoid(g) * 2 - 1 == tanh(g / 2); then square once, reuse 3x below.
        sx1 = jnp.tanh(0.5 * gx1); sx1 = sx1 * sx1
        sy1 = jnp.tanh(0.5 * gy1); sy1 = sy1 * sy1
        sx2 = jnp.tanh(0.5 * gx2); sx2 = sx2 * sx2
        sy2 = jnp.tanh(0.5 * gy2); sy2 = sy2 * sy2

        inv_nx = 1.0 / float(n * (h - 1) * w)
        inv_ny = 1.0 / float(n * h * (w - 1))

        for i in range(3):          # channel of img2
            for j in range(3):      # channel of img1
                px = (sx1[:, j] * sx2[:, i]).reshape(n * (h - 1), w)
                py = (sy1[:, j] * sy2[:, i]).reshape(n * h, w - 1)
                # Lane reduce then sublane reduce -> (1, 1); stays vectorized.
                mx = jnp.sum(jnp.sum(px, axis=1, keepdims=True),
                             axis=0, keepdims=True) * inv_nx
                my = jnp.sum(jnp.sum(py, axis=1, keepdims=True),
                             axis=0, keepdims=True) * inv_ny
                # mean ** 0.25  (mean >= 0 by construction)
                total = total + jnp.sqrt(jnp.sqrt(mx)) + jnp.sqrt(jnp.sqrt(my))

    # (sum_x + sum_y) / (level * 9) / 2
    out_ref[...] = total * (1.0 / (level * 9.0)) * 0.5


def exclusion_loss_official(img1, img2, level=LEVEL):
    """Pallas forward pass equivalent to ExclusionLoss_Official(level)(img1, img2)."""
    assert img1.shape == img2.shape and img1.shape[1] == 3, "expects NCHW with C=3"
    a = img1.astype(jnp.float32)
    b = img2.astype(jnp.float32)

    # TODO(synk): fold the 2x2 avg-pool pyramid into the kernel itself
    # (needs strided sublane/lane slicing or matmul-based pooling in Mosaic).
    pyramid = []
    for l in range(level):
        pyramid += [a, b]
        if l + 1 < level:
            a, b = _avg_pool_2x2(a), _avg_pool_2x2(b)

    out = pl.pallas_call(
        _exclusion_kernel,
        out_shape=jax.ShapeDtypeStruct((1, 1), jnp.float32),
    )(*pyramid)
    return out[0, 0]


def _exclusion_loss_ref(img1, img2, level=LEVEL):
    """Pure-JAX reference mirroring the PyTorch module op-for-op."""
    a = img1.astype(jnp.float32)
    b = img2.astype(jnp.float32)
    gradx_loss, grady_loss = [], []
    for _ in range(level):
        gx1 = a[:, :, 1:, :] - a[:, :, :-1, :]
        gy1 = a[:, :, :, 1:] - a[:, :, :, :-1]
        gx2 = b[:, :, 1:, :] - b[:, :, :-1, :]
        gy2 = b[:, :, :, 1:] - b[:, :, :, :-1]
        sx1 = jax.nn.sigmoid(gx1) * 2 - 1
        sy1 = jax.nn.sigmoid(gy1) * 2 - 1
        sx2 = jax.nn.sigmoid(gx2) * 2 - 1
        sy2 = jax.nn.sigmoid(gy2) * 2 - 1
        for i in range(3):
            for j in range(3):
                gradx_loss.append(jnp.mean((sx1[:, j] ** 2) * (sx2[:, i] ** 2)) ** 0.25)
                grady_loss.append(jnp.mean((sy1[:, j] ** 2) * (sy2[:, i] ** 2)) ** 0.25)
        a = _avg_pool_2x2(a)
        b = _avg_pool_2x2(b)
    loss = sum(gradx_loss) / (level * 9) + sum(grady_loss) / (level * 9)
    return loss / 2.0


if __name__ == "__main__":
    key = jax.random.PRNGKey(0)
    k1, k2 = jax.random.split(key)

    # NCHW, 3-channel images (the loss hard-codes 3 channels).
    N, C, H, W = 2, 3, 16, 16
    img1 = jax.random.normal(k1, (N, C, H, W), jnp.float32)
    img2 = jax.random.normal(k2, (N, C, H, W), jnp.float32)

    loss = jax.jit(exclusion_loss_official)(img1, img2)
    loss = jax.block_until_ready(loss)

    ref = jax.jit(_exclusion_loss_ref)(img1, img2)
    ref = jax.block_until_ready(ref)

    assert loss.shape == ()
    assert bool(jnp.isfinite(loss))
    assert abs(float(loss) - float(ref)) <= 5e-3 * abs(float(ref)) + 1e-5, (loss, ref)
    print("KERNEL_OK")
</pallas_src>

<mosaic_0001>
module attributes {stable_mosaic.version = 11 : i64} {
  func.func @_exclusion_kernel(%arg0: memref<2x3x16x16xf32, #tpu.memory_space<vmem>>, %arg1: memref<2x3x16x16xf32, #tpu.memory_space<vmem>>, %arg2: memref<2x3x8x8xf32, #tpu.memory_space<vmem>>, %arg3: memref<2x3x8x8xf32, #tpu.memory_space<vmem>>, %arg4: memref<2x3x4x4xf32, #tpu.memory_space<vmem>>, %arg5: memref<2x3x4x4xf32, #tpu.memory_space<vmem>>, %arg6: memref<1x1xf32, #tpu.memory_space<vmem>>) attributes {dimension_semantics = [], scalar_prefetch = 0 : i64, scratch_operands = 0 : i64, tpu.core_type = #tpu.core_type<tc>} {
    %cst = arith.constant 0.000000e+00 : f32
    %0 = vector.broadcast %cst : f32 to vector<1x1xf32>
    %c0 = arith.constant 0 : index
    %c0_0 = arith.constant 0 : index
    %c0_1 = arith.constant 0 : index
    %c0_2 = arith.constant 0 : index
    %1 = vector.load %arg0[%c0, %c0_0, %c0_1, %c0_2] : memref<2x3x16x16xf32, #tpu.memory_space<vmem>>, vector<2x3x16x16xf32>
    %c0_3 = arith.constant 0 : index
    %c0_4 = arith.constant 0 : index
    %c0_5 = arith.constant 0 : index
    %c0_6 = arith.constant 0 : index
    %2 = vector.load %arg1[%c0_3, %c0_4, %c0_5, %c0_6] : memref<2x3x16x16xf32, #tpu.memory_space<vmem>>, vector<2x3x16x16xf32>
    %3 = vector.extract_strided_slice %1 {offsets = [0, 0, 1, 0], sizes = [2, 3, 15, 16], strides = [1, 1, 1, 1]} : vector<2x3x16x16xf32> to vector<2x3x15x16xf32>
    %4 = vector.extract_strided_slice %1 {offsets = [0, 0, 0, 0], sizes = [2, 3, 15, 16], strides = [1, 1, 1, 1]} : vector<2x3x16x16xf32> to vector<2x3x15x16xf32>
    %5 = arith.subf %3, %4 : vector<2x3x15x16xf32>
    %6 = vector.extract_strided_slice %1 {offsets = [0, 0, 0, 1], sizes = [2, 3, 16, 15], strides = [1, 1, 1, 1]} : vector<2x3x16x16xf32> to vector<2x3x16x15xf32>
    %7 = vector.extract_strided_slice %1 {offsets = [0, 0, 0, 0], sizes = [2, 3, 16, 15], strides = [1, 1, 1, 1]} : vector<2x3x16x16xf32> to vector<2x3x16x15xf32>
    %8 = arith.subf %6, %7 : vector<2x3x16x15xf32>
    %9 = vector.extract_strided_slice %2 {offsets = [0, 0, 1, 0], sizes = [2, 3, 15, 16], strides = [1, 1, 1, 1]} : vector<2x3x16x16xf32> to vector<2x3x15x16xf32>
    %10 = vector.extract_strided_slice %2 {offsets = [0, 0, 0, 0], sizes = [2, 3, 15, 16], strides = [1, 1, 1, 1]} : vector<2x3x16x16xf32> to vector<2x3x15x16xf32>
    %11 = arith.subf %9, %10 : vector<2x3x15x16xf32>
    %12 = vector.extract_strided_slice %2 {offsets = [0, 0, 0, 1], sizes = [2, 3, 16, 15], strides = [1, 1, 1, 1]} : vector<2x3x16x16xf32> to vector<2x3x16x15xf32>
    %13 = vector.extract_strided_slice %2 {offsets = [0, 0, 0, 0], sizes = [2, 3, 16, 15], strides = [1, 1, 1, 1]} : vector<2x3x16x16xf32> to vector<2x3x16x15xf32>
    %14 = arith.subf %12, %13 : vector<2x3x16x15xf32>
    %cst_7 = arith.constant 5.000000e-01 : f32
    %15 = vector.broadcast %cst_7 : f32 to vector<2x3x15x16xf32>
    %16 = arith.mulf %15, %5 : vector<2x3x15x16xf32>
    %17 = math.tanh %16 : vector<2x3x15x16xf32>
    %18 = arith.mulf %17, %17 : vector<2x3x15x16xf32>
    %cst_8 = arith.constant 5.000000e-01 : f32
    %19 = vector.broadcast %cst_8 : f32 to vector<2x3x16x15xf32>
    %20 = arith.mulf %19, %8 : vector<2x3x16x15xf32>
    %21 = math.tanh %20 : vector<2x3x16x15xf32>
    %22 = arith.mulf %21, %21 : vector<2x3x16x15xf32>
    %cst_9 = arith.constant 5.000000e-01 : f32
    %23 = vector.broadcast %cst_9 : f32 to vector<2x3x15x16xf32>
    %24 = arith.mulf %23, %11 : vector<2x3x15x16xf32>
    %25 = math.tanh %24 : vector<2x3x15x16xf32>
    %26 = arith.mulf %25, %25 : vector<2x3x15x16xf32>
    %cst_10 = arith.constant 5.000000e-01 : f32
    %27 = vector.broadcast %cst_10 : f32 to vector<2x3x16x15xf32>
    %28 = arith.mulf %27, %14 : vector<2x3x16x15xf32>
    %29 = math.tanh %28 : vector<2x3x16x15xf32>
    %30 = arith.mulf %29, %29 : vector<2x3x16x15xf32>
    %31 = vector.extract_strided_slice %18 {offsets = [0, 0, 0, 0], sizes = [2, 1, 15, 16], strides = [1, 1, 1, 1]} : vector<2x3x15x16xf32> to vector<2x1x15x16xf32>
    %32 = vector.shape_cast %31 : vector<2x1x15x16xf32> to vector<2x15x16xf32>
    %33 = vector.extract_strided_slice %26 {offsets = [0, 0, 0, 0], sizes = [2, 1, 15, 16], strides = [1, 1, 1, 1]} : vector<2x3x15x16xf32> to vector<2x1x15x16xf32>
    %34 = vector.shape_cast %33 : vector<2x1x15x16xf32> to vector<2x15x16xf32>
    %35 = arith.mulf %32, %34 : vector<2x15x16xf32>
    %36 = vector.shape_cast %35 : vector<2x15x16xf32> to vector<30x16xf32>
    %37 = vector.extract_strided_slice %22 {offsets = [0, 0, 0, 0], sizes = [2, 1, 16, 15], strides = [1, 1, 1, 1]} : vector<2x3x16x15xf32> to vector<2x1x16x15xf32>
    %38 = vector.shape_cast %37 : vector<2x1x16x15xf32> to vector<2x16x15xf32>
    %39 = vector.extract_strided_slice %30 {offsets = [0, 0, 0, 0], sizes = [2, 1, 16, 15], strides = [1, 1, 1, 1]} : vector<2x3x16x15xf32> to vector<2x1x16x15xf32>
    %40 = vector.shape_cast %39 : vector<2x1x16x15xf32> to vector<2x16x15xf32>
    %41 = arith.mulf %38, %40 : vector<2x16x15xf32>
    %42 = vector.shape_cast %41 : vector<2x16x15xf32> to vector<32x15xf32>
    %cst_11 = arith.constant dense<0.000000e+00> : vector<30xf32>
    %43 = vector.multi_reduction <add>, %36, %cst_11 [1] : vector<30x16xf32> to vector<30xf32>
    %44 = vector.shape_cast %43 : vector<30xf32> to vector<30x1xf32>
    %cst_12 = arith.constant dense<0.000000e+00> : vector<1xf32>
    %45 = vector.multi_reduction <add>, %44, %cst_12 [0] : vector<30x1xf32> to vector<1xf32>
    %46 = vector.shape_cast %45 : vector<1xf32> to vector<1x1xf32>
    %cst_13 = arith.constant 0.00208333344 : f32
    %47 = vector.broadcast %cst_13 : f32 to vector<1x1xf32>
    %48 = arith.mulf %46, %47 : vector<1x1xf32>
    %cst_14 = arith.constant dense<0.000000e+00> : vector<32xf32>
    %49 = vector.multi_reduction <add>, %42, %cst_14 [1] : vector<32x15xf32> to vector<32xf32>
    %50 = vector.shape_cast %49 : vector<32xf32> to vector<32x1xf32>
    %cst_15 = arith.constant dense<0.000000e+00> : vector<1xf32>
    %51 = vector.multi_reduction <add>, %50, %cst_15 [0] : vector<32x1xf32> to vector<1xf32>
    %52 = vector.shape_cast %51 : vector<1xf32> to vector<1x1xf32>
    %cst_16 = arith.constant 0.00208333344 : f32
    %53 = vector.broadcast %cst_16 : f32 to vector<1x1xf32>
    %54 = arith.mulf %52, %53 : vector<1x1xf32>
    %55 = math.sqrt %48 : vector<1x1xf32>
    %56 = math.sqrt %55 : vector<1x1xf32>
    %57 = arith.addf %0, %56 : vector<1x1xf32>
    %58 = math.sqrt %54 : vector<1x1xf32>
    %59 = math.sqrt %58 : vector<1x1xf32>
    %60 = arith.addf %57, %59 : vector<1x1xf32>
    %61 = vector.extract_strided_slice %18 {offsets = [0, 1, 0, 0], sizes = [2, 1, 15, 16], strides = [1, 1, 1, 1]} : vector<2x3x15x16xf32> to vector<2x1x15x16xf32>
    %62 = vector.shape_cast %61 : vector<2x1x15x16xf32> to vector<2x15x16xf32>
    %63 = vector.extract_strided_slice %26 {offsets = [0, 0, 0, 0], sizes = [2, 1, 15, 16], strides = [1, 1, 1, 1]} : vector<2x3x15x16xf32> to vector<2x1x15x16xf32>
    %64 = vector.shape_cast %63 : vector<2x1x15x16xf32> to vector<2x15x16xf32>
    %65 = arith.mulf %62, %64 : vector<2x15x16xf32>
    %66 = vector.shape_cast %65 : vector<2x15x16xf32> to vector<30x16xf32>
    %67 = vector.extract_strided_slice %22 {offsets = [0, 1, 0, 0], sizes = [2, 1, 16, 15], strides = [1, 1, 1, 1]} : vector<2x3x16x15xf32> to vector<2x1x16x15xf32>
    %68 = vector.shape_cast %67 : vector<2x1x16x15xf32> to vector<2x16x15xf32>
    %69 = vector.extract_strided_slice %30 {offsets = [0, 0, 0, 0], sizes = [2, 1, 16, 15], strides = [1, 1, 1, 1]} : vector<2x3x16x15xf32> to vector<2x1x16x15xf32>
    %70 = vector.shape_cast %69 : vector<2x1x16x15xf32> to vector<2x16x15xf32>
    %71 = arith.mulf %68, %70 : vector<2x16x15xf32>
    %72 = vector.shape_cast %71 : vector<2x16x15xf32> to vector<32x15xf32>
    %cst_17 = arith.constant dense<0.000000e+00> : vector<30xf32>
    %73 = vector.multi_reduction <add>, %66, %cst_17 [1] : vector<30x16xf32> to vector<30xf32>
    %74 = vector.shape_cast %73 : vector<30xf32> to vector<30x1xf32>
    %cst_18 = arith.constant dense<0.000000e+00> : vector<1xf32>
    %75 = vector.multi_reduction <add>, %74, %cst_18 [0] : vector<30x1xf32> to vector<1xf32>
    %76 = vector.shape_cast %75 : vector<1xf32> to vector<1x1xf32>
    %cst_19 = arith.constant 0.00208333344 : f32
    %77 = vector.broadcast %cst_19 : f32 to vector<1x1xf32>
    %78 = arith.mulf %76, %77 : vector<1x1xf32>
    %cst_20 = arith.constant dense<0.000000e+00> : vector<32xf32>
    %79 = vector.multi_reduction <add>, %72, %cst_20 [1] : vector<32x15xf32> to vector<32xf32>
    %80 = vector.shape_cast %79 : vector<32xf32> to vector<32x1xf32>
    %cst_21 = arith.constant dense<0.000000e+00> : vector<1xf32>
    %81 = vector.multi_reduction <add>, %80, %cst_21 [0] : vector<32x1xf32> to vector<1xf32>
    %82 = vector.shape_cast %81 : vector<1xf32> to vector<1x1xf32>
    %cst_22 = arith.constant 0.00208333344 : f32
    %83 = vector.broadcast %cst_22 : f32 to vector<1x1xf32>
    %84 = arith.mulf %82, %83 : vector<1x1xf32>
    %85 = math.sqrt %78 : vector<1x1xf32>
    %86 = math.sqrt %85 : vector<1x1xf32>
    %87 = arith.addf %60, %86 : vector<1x1xf32>
    %88 = math.sqrt %84 : vector<1x1xf32>
    %89 = math.sqrt %88 : vector<1x1xf32>
    %90 = arith.addf %87, %89 : vector<1x1xf32>
    %91 = vector.extract_strided_slice %18 {offsets = [0, 2, 0, 0], sizes = [2, 1, 15, 16], strides = [1, 1, 1, 1]} : vector<2x3x15x16xf32> to vector<2x1x15x16xf32>
    %92 = vector.shape_cast %91 : vector<2x1x15x16xf32> to vector<2x15x16xf32>
    %93 = vector.extract_strided_slice %26 {offsets = [0, 0, 0, 0], sizes = [2, 1, 15, 16], strides = [1, 1, 1, 1]} : vector<2x3x15x16xf32> to vector<2x1x15x16xf32>
    %94 = vector.shape_cast %93 : vector<2x1x15x16xf32> to vector<2x15x16xf32>
    %95 = arith.mulf %92, %94 : vector<2x15x16xf32>
    %96 = vector.shape_cast %95 : vector<2x15x16xf32> to vector<30x16xf32>
    %97 = vector.extract_strided_slice %22 {offsets = [0, 2, 0, 0], sizes = [2, 1, 16, 15], strides = [1, 1, 1, 1]} : vector<2x3x16x15xf32> to vector<2x1x16x15xf32>
    %98 = vector.shape_cast %97 : vector<2x1x16x15xf32> to vector<2x16x15xf32>
    %99 = vector.extract_strided_slice %30 {offsets = [0, 0, 0, 0], sizes = [2, 1, 16, 15], strides = [1, 1, 1, 1]} : vector<2x3x16x15xf32> to vector<2x1x16x15xf32>
    %100 = vector.shape_cast %99 : vector<2x1x16x15xf32> to vector<2x16x15xf32>
    %101 = arith.mulf %98, %100 : vector<2x16x15xf32>
    %102 = vector.shape_cast %101 : vector<2x16x15xf32> to vector<32x15xf32>
    %cst_23 = arith.constant dense<0.000000e+00> : vector<30xf32>
    %103 = vector.multi_reduction <add>, %96, %cst_23 [1] : vector<30x16xf32> to vector<30xf32>
    %104 = vector.shape_cast %103 : vector<30xf32> to vector<30x1xf32>
    %cst_24 = arith.constant dense<0.000000e+00> : vector<1xf32>
    %105 = vector.multi_reduction <add>, %104, %cst_24 [0] : vector<30x1xf32> to vector<1xf32>
    %106 = vector.shape_cast %105 : vector<1xf32> to vector<1x1xf32>
    %cst_25 = arith.constant 0.00208333344 : f32
    %107 = vector.broadcast %cst_25 : f32 to vector<1x1xf32>
    %108 = arith.mulf %106, %107 : vector<1x1xf32>
    %cst_26 = arith.constant dense<0.000000e+00> : vector<32xf32>
    %109 = vector.multi_reduction <add>, %102, %cst_26 [1] : vector<32x15xf32> to vector<32xf32>
    %110 = vector.shape_cast %109 : vector<32xf32> to vector<32x1xf32>
    %cst_27 = arith.constant dense<0.000000e+00> : vector<1xf32>
    %111 = vector.multi_reduction <add>, %110, %cst_27 [0] : vector<32x1xf32> to vector<1xf32>
    %112 = vector.shape_cast %111 : vector<1xf32> to vector<1x1xf32>
    %cst_28 = arith.constant 0.00208333344 : f32
    %113 = vector.broadcast %cst_28 : f32 to vector<1x1xf32>
    %114 = arith.mulf %112, %113 : vector<1x1xf32>
    %115 = math.sqrt %108 : vector<1x1xf32>
    %116 = math.sqrt %115 : vector<1x1xf32>
    %117 = arith.addf %90, %116 : vector<1x1xf32>
    %118 = math.sqrt %114 : vector<1x1xf32>
    %119 = math.sqrt %118 : vector<1x1xf32>
    %120 = arith.addf %117, %119 : vector<1x1xf32>
    %121 = vector.extract_strided_slice %18 {offsets = [0, 0, 0, 0], sizes = [2, 1, 15, 16], strides = [1, 1, 1, 1]} : vector<2x3x15x16xf32> to vector<2x1x15x16xf32>
    %122 = vector.shape_cast %121 : vector<2x1x15x16xf32> to vector<2x15x16xf32>
    %123 = vector.extract_strided_slice %26 {offsets = [0, 1, 0, 0], sizes = [2, 1, 15, 16], strides = [1, 1, 1, 1]} : vector<2x3x15x16xf32> to vector<2x1x15x16xf32>
    %124 = vector.shape_cast %123 : vector<2x1x15x16xf32> to vector<2x15x16xf32>
    %125 = arith.mulf %122, %124 : vector<2x15x16xf32>
    %126 = vector.shape_cast %125 : vector<2x15x16xf32> to vector<30x16xf32>
    %127 = vector.extract_strided_slice %22 {offsets = [0, 0, 0, 0], sizes = [2, 1, 16, 15], strides = [1, 1, 1, 1]} : vector<2x3x16x15xf32> to vector<2x1x16x15xf32>
    %128 = vector.shape_cast %127 : vector<2x1x16x15xf32> to vector<2x16x15xf32>
    %129 = vector.extract_strided_slice %30 {offsets = [0, 1, 0, 0], sizes = [2, 1, 16, 15], strides = [1, 1, 1, 1]} : vector<2x3x16x15xf32> to vector<2x1x16x15xf32>
    %130 = vector.shape_cast %129 : vector<2x1x16x15xf32> to vector<2x16x15xf32>
    %131 = arith.mulf %128, %130 : vector<2x16x15xf32>
    %132 = vector.shape_cast %131 : vector<2x16x15xf32> to vector<32x15xf32>
    %cst_29 = arith.constant dense<0.000000e+00> : vector<30xf32>
    %133 = vector.multi_reduction <add>, %126, %cst_29 [1] : vector<30x16xf32> to vector<30xf32>
    %134 = vector.shape_cast %133 : vector<30xf32> to vector<30x1xf32>
    %cst_30 = arith.constant dense<0.000000e+00> : vector<1xf32>
    %135 = vector.multi_reduction <add>, %134, %cst_30 [0] : vector<30x1xf32> to vector<1xf32>
    %136 = vector.shape_cast %135 : vector<1xf32> to vector<1x1xf32>
    %cst_31 = arith.constant 0.00208333344 : f32
    %137 = vector.broadcast %cst_31 : f32 to vector<1x1xf32>
    %138 = arith.mulf %136, %137 : vector<1x1xf32>
    %cst_32 = arith.constant dense<0.000000e+00> : vector<32xf32>
    %139 = vector.multi_reduction <add>, %132, %cst_32 [1] : vector<32x15xf32> to vector<32xf32>
    %140 = vector.shape_cast %139 : vector<32xf32> to vector<32x1xf32>
    %cst_33 = arith.constant dense<0.000000e+00> : vector<1xf32>
    %141 = vector.multi_reduction <add>, %140, %cst_33 [0] : vector<32x1xf32> to vector<1xf32>
    %142 = vector.shape_cast %141 : vector<1xf32> to vector<1x1xf32>
    %cst_34 = arith.constant 0.00208333344 : f32
    %143 = vector.broadcast %cst_34 : f32 to vector<1x1xf32>
    %144 = arith.mulf %142, %143 : vector<1x1xf32>
    %145 = math.sqrt %138 : vector<1x1xf32>
    %146 = math.sqrt %145 : vector<1x1xf32>
    %147 = arith.addf %120, %146 : vector<1x1xf32>
    %148 = math.sqrt %144 : vector<1x1xf32>
    %149 = math.sqrt %148 : vector<1x1xf32>
    %150 = arith.addf %147, %149 : vector<1x1xf32>
    %151 = vector.extract_strided_slice %18 {offsets = [0, 1, 0, 0], sizes = [2, 1, 15, 16], strides = [1, 1, 1, 1]} : vector<2x3x15x16xf32> to vector<2x1x15x16xf32>
    %152 = vector.shape_cast %151 : vector<2x1x15x16xf32> to vector<2x15x16xf32>
    %153 = vector.extract_strided_slice %26 {offsets = [0, 1, 0, 0], sizes = [2, 1, 15, 16], strides = [1, 1, 1, 1]} : vector<2x3x15x16xf32> to vector<2x1x15x16xf32>
    %154 = vector.shape_cast %153 : vector<2x1x15x16xf32> to vector<2x15x16xf32>
    %155 = arith.mulf %152, %154 : vector<2x15x16xf32>
    %156 = vector.shape_cast %155 : vector<2x15x16xf32> to vector<30x16xf32>
    %157 = vector.extract_strided_slice %22 {offsets = [0, 1, 0, 0], sizes = [2, 1, 16, 15], strides = [1, 1, 1, 1]} : vector<2x3x16x15xf32> to vector<2x1x16x15xf32>
    %158 = vector.shape_cast %157 : vector<2x1x16x15xf32> to vector<2x16x15xf32>
    %159 = vector.extract_strided_slice %30 {offsets = [0, 1, 0, 0], sizes = [2, 1, 16, 15], strides = [1, 1, 1, 1]} : vector<2x3x16x15xf32> to vector<2x1x16x15xf32>
    %160 = vector.shape_cast %159 : vector<2x1x16x15xf32> to vector<2x16x15xf32>
    %161 = arith.mulf %158, %160 : vector<2x16x15xf32>
    %162 = vector.shape_cast %161 : vector<2x16x15xf32> to vector<32x15xf32>
    %cst_35 = arith.constant dense<0.000000e+00> : vector<30xf32>
    %163 = vector.multi_reduction <add>, %156, %cst_35 [1] : vector<30x16xf32> to vector<30xf32>
    %164 = vector.shape_cast %163 : vector<30xf32> to vector<30x1xf32>
    %cst_36 = arith.constant dense<0.000000e+00> : vector<1xf32>
    %165 = vector.multi_reduction <add>, %164, %cst_36 [0] : vector<30x1xf32> to vector<1xf32>
    %166 = vector.shape_cast %165 : vector<1xf32> to vector<1x1xf32>
    %cst_37 = arith.constant 0.00208333344 : f32
    %167 = vector.broadcast %cst_37 : f32 to vector<1x1xf32>
    %168 = arith.mulf %166, %167 : vector<1x1xf32>
    %cst_38 = arith.constant dense<0.000000e+00> : vector<32xf32>
    %169 = vector.multi_reduction <add>, %162, %cst_38 [1] : vector<32x15xf32> to vector<32xf32>
    %170 = vector.shape_cast %169 : vector<32xf32> to vector<32x1xf32>
    %cst_39 = arith.constant dense<0.000000e+00> : vector<1xf32>
    %171 = vector.multi_reduction <add>, %170, %cst_39 [0] : vector<32x1xf32> to vector<1xf32>
    %172 = vector.shape_cast %171 : vector<1xf32> to vector<1x1xf32>
    %cst_40 = arith.constant 0.00208333344 : f32
    %173 = vector.broadcast %cst_40 : f32 to vector<1x1xf32>
    %174 = arith.mulf %172, %173 : vector<1x1xf32>
    %175 = math.sqrt %168 : vector<1x1xf32>
    %176 = math.sqrt %175 : vector<1x1xf32>
    %177 = arith.addf %150, %176 : vector<1x1xf32>
    %178 = math.sqrt %174 : vector<1x1xf32>
    %179 = math.sqrt %178 : vector<1x1xf32>
    %180 = arith.addf %177, %179 : vector<1x1xf32>
    %181 = vector.extract_strided_slice %18 {offsets = [0, 2, 0, 0], sizes = [2, 1, 15, 16], strides = [1, 1, 1, 1]} : vector<2x3x15x16xf32> to vector<2x1x15x16xf32>
    %182 = vector.shape_cast %181 : vector<2x1x15x16xf32> to vector<2x15x16xf32>
    %183 = vector.extract_strided_slice %26 {offsets = [0, 1, 0, 0], sizes = [2, 1, 15, 16], strides = [1, 1, 1, 1]} : vector<2x3x15x16xf32> to vector<2x1x15x16xf32>
    %184 = vector.shape_cast %183 : vector<2x1x15x16xf32> to vector<2x15x16xf32>
    %185 = arith.mulf %182, %184 : vector<2x15x16xf32>
    %186 = vector.shape_cast %185 : vector<2x15x16xf32> to vector<30x16xf32>
    %187 = vector.extract_strided_slice %22 {offsets = [0, 2, 0, 0], sizes = [2, 1, 16, 15], strides = [1, 1, 1, 1]} : vector<2x3x16x15xf32> to vector<2x1x16x15xf32>
    %188 = vector.shape_cast %187 : vector<2x1x16x15xf32> to vector<2x16x15xf32>
    %189 = vector.extract_strided_slice %30 {offsets = [0, 1, 0, 0], sizes = [2, 1, 16, 15], strides = [1, 1, 1, 1]} : vector<2x3x16x15xf32> to vector<2x1x16x15xf32>
    %190 = vector.shape_cast %189 : vector<2x1x16x15xf32> to vector<2x16x15xf32>
    %191 = arith.mulf %188, %190 : vector<2x16x15xf32>
    %192 = vector.shape_cast %191 : vector<2x16x15xf32> to vector<32x15xf32>
    %cst_41 = arith.constant dense<0.000000e+00> : vector<30xf32>
    %193 = vector.multi_reduction <add>, %186, %cst_41 [1] : vector<30x16xf32> to vector<30xf32>
    %194 = vector.shape_cast %193 : vector<30xf32> to vector<30x1xf32>
    %cst_42 = arith.constant dense<0.000000e+00> : vector<1xf32>
    %195 = vector.multi_reduction <add>, %194, %cst_42 [0] : vector<30x1xf32> to vector<1xf32>
    %196 = vector.shape_cast %195 : vector<1xf32> to vector<1x1xf32>
    %cst_43 = arith.constant 0.00208333344 : f32
    %197 = vector.broadcast %cst_43 : f32 to vector<1x1xf32>
    %198 = arith.mulf %196, %197 : vector<1x1xf32>
    %cst_44 = arith.constant dense<0.000000e+00> : vector<32xf32>
    %199 = vector.multi_reduction <add>, %192, %cst_44 [1] : vector<32x15xf32> to vector<32xf32>
    %200 = vector.shape_cast %199 : vector<32xf32> to vector<32x1xf32>
    %cst_45 = arith.constant dense<0.000000e+00> : vector<1xf32>
    %201 = vector.multi_reduction <add>, %200, %cst_45 [0] : vector<32x1xf32> to vector<1xf32>
    %202 = vector.shape_cast %201 : vector<1xf32> to vector<1x1xf32>
    %cst_46 = arith.constant 0.00208333344 : f32
    %203 = vector.broadcast %cst_46 : f32 to vector<1x1xf32>
    %204 = arith.mulf %202, %203 : vector<1x1xf32>
    %205 = math.sqrt %198 : vector<1x1xf32>
    %206 = math.sqrt %205 : vector<1x1xf32>
    %207 = arith.addf %180, %206 : vector<1x1xf32>
    %208 = math.sqrt %204 : vector<1x1xf32>
    %209 = math.sqrt %208 : vector<1x1xf32>
    %210 = arith.addf %207, %209 : vector<1x1xf32>
    %211 = vector.extract_strided_slice %18 {offsets = [0, 0, 0, 0], sizes = [2, 1, 15, 16], strides = [1, 1, 1, 1]} : vector<2x3x15x16xf32> to vector<2x1x15x16xf32>
    %212 = vector.shape_cast %211 : vector<2x1x15x16xf32> to vector<2x15x16xf32>
    %213 = vector.extract_strided_slice %26 {offsets = [0, 2, 0, 0], sizes = [2, 1, 15, 16], strides = [1, 1, 1, 1]} : vector<2x3x15x16xf32> to vector<2x1x15x16xf32>
    %214 = vector.shape_cast %213 : vector<2x1x15x16xf32> to vector<2x15x16xf32>
    %215 = arith.mulf %212, %214 : vector<2x15x16xf32>
    %216 = vector.shape_cast %215 : vector<2x15x16xf32> to vector<30x16xf32>
    %217 = vector.extract_strided_slice %22 {offsets = [0, 0, 0, 0], sizes = [2, 1, 16, 15], strides = [1, 1, 1, 1]} : vector<2x3x16x15xf32> to vector<2x1x16x15xf32>
    %218 = vector.shape_cast %217 : vector<2x1x16x15xf32> to vector<2x16x15xf32>
    %219 = vector.extract_strided_slice %30 {offsets = [0, 2, 0, 0], sizes = [2, 1, 16, 15], strides = [1, 1, 1, 1]} : vector<2x3x16x15xf32> to vector<2x1x16x15xf32>
    %220 = vector.shape_cast %219 : vector<2x1x16x15xf32> to vector<2x16x15xf32>
    %221 = arith.mulf %218, %220 : vector<2x16x15xf32>
    %222 = vector.shape_cast %221 : vector<2x16x15xf32> to vector<32x15xf32>
    %cst_47 = arith.constant dense<0.000000e+00> : vector<30xf32>
    %223 = vector.multi_reduction <add>, %216, %cst_47 [1] : vector<30x16xf32> to vector<30xf32>
    %224 = vector.shape_cast %223 : vector<30xf32> to vector<30x1xf32>
    %cst_48 = arith.constant dense<0.000000e+00> : vector<1xf32>
    %225 = vector.multi_reduction <add>, %224, %cst_48 [0] : vector<30x1xf32> to vector<1xf32>
    %226 = vector.shape_cast %225 : vector<1xf32> to vector<1x1xf32>
    %cst_49 = arith.constant 0.00208333344 : f32
    %227 = vector.broadcast %cst_49 : f32 to vector<1x1xf32>
    %228 = arith.mulf %226, %227 : vector<1x1xf32>
    %cst_50 = arith.constant dense<0.000000e+00> : vector<32xf32>
    %229 = vector.multi_reduction <add>, %222, %cst_50 [1] : vector<32x15xf32> to vector<32xf32>
    %230 = vector.shape_cast %229 : vector<32xf32> to vector<32x1xf32>
    %cst_51 = arith.constant dense<0.000000e+00> : vector<1xf32>
    %231 = vector.multi_reduction <add>, %230, %cst_51 [0] : vector<32x1xf32> to vector<1xf32>
    %232 = vector.shape_cast %231 : vector<1xf32> to vector<1x1xf32>
    %cst_52 = arith.constant 0.00208333344 : f32
    %233 = vector.broadcast %cst_52 : f32 to vector<1x1xf32>
    %234 = arith.mulf %232, %233 : vector<1x1xf32>
    %235 = math.sqrt %228 : vector<1x1xf32>
    %236 = math.sqrt %235 : vector<1x1xf32>
    %237 = arith.addf %210, %236 : vector<1x1xf32>
    %238 = math.sqrt %234 : vector<1x1xf32>
    %239 = math.sqrt %238 : vector<1x1xf32>
    %240 = arith.addf %237, %239 : vector<1x1xf32>
    %241 = vector.extract_strided_slice %18 {offsets = [0, 1, 0, 0], sizes = [2, 1, 15, 16], strides = [1, 1, 1, 1]} : vector<2x3x15x16xf32> to vector<2x1x15x16xf32>
    %242 = vector.shape_cast %241 : vector<2x1x15x16xf32> to vector<2x15x16xf32>
    %243 = vector.extract_strided_slice %26 {offsets = [0, 2, 0, 0], sizes = [2, 1, 15, 16], strides = [1, 1, 1, 1]} : vector<2x3x15x16xf32> to vector<2x1x15x16xf32>
    %244 = vector.shape_cast %243 : vector<2x1x15x16xf32> to vector<2x15x16xf32>
    %245 = arith.mulf %242, %244 : vector<2x15x16xf32>
    %246 = vector.shape_cast %245 : vector<2x15x16xf32> to vector<30x16xf32>
    %247 = vector.extract_strided_slice %22 {offsets = [0, 1, 0, 0], sizes = [2, 1, 16, 15], strides = [1, 1, 1, 1]} : vector<2x3x16x15xf32> to vector<2x1x16x15xf32>
    %248 = vector.shape_cast %247 : vector<2x1x16x15xf32> to vector<2x16x15xf32>
    %249 = vector.extract_strided_slice %30 {offsets = [0, 2, 0, 0], sizes = [2, 1, 16, 15], strides = [1, 1, 1, 1]} : vector<2x3x16x15xf32> to vector<2x1x16x15xf32>
    %250 = vector.shape_cast %249 : vector<2x1x16x15xf32> to vector<2x16x15xf32>
    %251 = arith.mulf %248, %250 : vector<2x16x15xf32>
    %252 = vector.shape_cast %251 : vector<2x16x15xf32> to vector<32x15xf32>
    %cst_53 = arith.constant dense<0.000000e+00> : vector<30xf32>
    %253 = vector.multi_reduction <add>, %246, %cst_53 [1] : vector<30x16xf32> to vector<30xf32>
    %254 = vector.shape_cast %253 : vector<30xf32> to vector<30x1xf32>
    %cst_54 = arith.constant dense<0.000000e+00> : vector<1xf32>
    %255 = vector.multi_reduction <add>, %254, %cst_54 [0] : vector<30x1xf32> to vector<1xf32>
    %256 = vector.shape_cast %255 : vector<1xf32> to vector<1x1xf32>
    %cst_55 = arith.constant 0.00208333344 : f32
    %257 = vector.broadcast %cst_55 : f32 to vector<1x1xf32>
    %258 = arith.mulf %256, %257 : vector<1x1xf32>
    %cst_56 = arith.constant dense<0.000000e+00> : vector<32xf32>
    %259 = vector.multi_reduction <add>, %252, %cst_56 [1] : vector<32x15xf32> to vector<32xf32>
    %260 = vector.shape_cast %259 : vector<32xf32> to vector<32x1xf32>
    %cst_57 = arith.constant dense<0.000000e+00> : vector<1xf32>
    %261 = vector.multi_reduction <add>, %260, %cst_57 [0] : vector<32x1xf32> to vector<1xf32>
    %262 = vector.shape_cast %261 : vector<1xf32> to vector<1x1xf32>
    %cst_58 = arith.constant 0.00208333344 : f32
    %263 = vector.broadcast %cst_58 : f32 to vector<1x1xf32>
    %264 = arith.mulf %262, %263 : vector<1x1xf32>
    %265 = math.sqrt %258 : vector<1x1xf32>
    %266 = math.sqrt %265 : vector<1x1xf32>
    %267 = arith.addf %240, %266 : vector<1x1xf32>
    %268 = math.sqrt %264 : vector<1x1xf32>
    %269 = math.sqrt %268 : vector<1x1xf32>
    %270 = arith.addf %267, %269 : vector<1x1xf32>
    %271 = vector.extract_strided_slice %18 {offsets = [0, 2, 0, 0], sizes = [2, 1, 15, 16], strides = [1, 1, 1, 1]} : vector<2x3x15x16xf32> to vector<2x1x15x16xf32>
    %272 = vector.shape_cast %271 : vector<2x1x15x16xf32> to vector<2x15x16xf32>
    %273 = vector.extract_strided_slice %26 {offsets = [0, 2, 0, 0], sizes = [2, 1, 15, 16], strides = [1, 1, 1, 1]} : vector<2x3x15x16xf32> to vector<2x1x15x16xf32>
    %274 = vector.shape_cast %273 : vector<2x1x15x16xf32> to vector<2x15x16xf32>
    %275 = arith.mulf %272, %274 : vector<2x15x16xf32>
    %276 = vector.shape_cast %275 : vector<2x15x16xf32> to vector<30x16xf32>
    %277 = vector.extract_strided_slice %22 {offsets = [0, 2, 0, 0], sizes = [2, 1, 16, 15], strides = [1, 1, 1, 1]} : vector<2x3x16x15xf32> to vector<2x1x16x15xf32>
    %278 = vector.shape_cast %277 : vector<2x1x16x15xf32> to vector<2x16x15xf32>
    %279 = vector.extract_strided_slice %30 {offsets = [0, 2, 0, 0], sizes = [2, 1, 16, 15], strides = [1, 1, 1, 1]} : vector<2x3x16x15xf32> to vector<2x1x16x15xf32>
    %280 = vector.shape_cast %279 : vector<2x1x16x15xf32> to vector<2x16x15xf32>
    %281 = arith.mulf %278, %280 : vector<2x16x15xf32>
    %282 = vector.shape_cast %281 : vector<2x16x15xf32> to vector<32x15xf32>
    %cst_59 = arith.constant dense<0.000000e+00> : vector<30xf32>
    %283 = vector.multi_reduction <add>, %276, %cst_59 [1] : vector<30x16xf32> to vector<30xf32>
    %284 = vector.shape_cast %283 : vector<30xf32> to vector<30x1xf32>
    %cst_60 = arith.constant dense<0.000000e+00> : vector<1xf32>
    %285 = vector.multi_reduction <add>, %284, %cst_60 [0] : vector<30x1xf32> to vector<1xf32>
    %286 = vector.shape_cast %285 : vector<1xf32> to vector<1x1xf32>
    %cst_61 = arith.constant 0.00208333344 : f32
    %287 = vector.broadcast %cst_61 : f32 to vector<1x1xf32>
    %288 = arith.mulf %286, %287 : vector<1x1xf32>
    %cst_62 = arith.constant dense<0.000000e+00> : vector<32xf32>
    %289 = vector.multi_reduction <add>, %282, %cst_62 [1] : vector<32x15xf32> to vector<32xf32>
    %290 = vector.shape_cast %289 : vector<32xf32> to vector<32x1xf32>
    %cst_63 = arith.constant dense<0.000000e+00> : vector<1xf32>
    %291 = vector.multi_reduction <add>, %290, %cst_63 [0] : vector<32x1xf32> to vector<1xf32>
    %292 = vector.shape_cast %291 : vector<1xf32> to vector<1x1xf32>
    %cst_64 = arith.constant 0.00208333344 : f32
    %293 = vector.broadcast %cst_64 : f32 to vector<1x1xf32>
    %294 = arith.mulf %292, %293 : vector<1x1xf32>
    %295 = math.sqrt %288 : vector<1x1xf32>
    %296 = math.sqrt %295 : vector<1x1xf32>
    %297 = arith.addf %270, %296 : vector<1x1xf32>
    %298 = math.sqrt %294 : vector<1x1xf32>
    %299 = math.sqrt %298 : vector<1x1xf32>
    %300 = arith.addf %297, %299 : vector<1x1xf32>
    %c0_65 = arith.constant 0 : index
    %c0_66 = arith.constant 0 : index
    %c0_67 = arith.constant 0 : index
    %c0_68 = arith.constant 0 : index
    %301 = vector.load %arg2[%c0_65, %c0_66, %c0_67, %c0_68] : memref<2x3x8x8xf32, #tpu.memory_space<vmem>>, vector<2x3x8x8xf32>
    %c0_69 = arith.constant 0 : index
    %c0_70 = arith.constant 0 : index
    %c0_71 = arith.constant 0 : index
    %c0_72 = arith.constant 0 : index
    %302 = vector.load %arg3[%c0_69, %c0_70, %c0_71, %c0_72] : memref<2x3x8x8xf32, #tpu.memory_space<vmem>>, vector<2x3x8x8xf32>
    %303 = vector.extract_strided_slice %301 {offsets = [0, 0, 1, 0], sizes = [2, 3, 7, 8], strides = [1, 1, 1, 1]} : vector<2x3x8x8xf32> to vector<2x3x7x8xf32>
    %304 = vector.extract_strided_slice %301 {offsets = [0, 0, 0, 0], sizes = [2, 3, 7, 8], strides = [1, 1, 1, 1]} : vector<2x3x8x8xf32> to vector<2x3x7x8xf32>
    %305 = arith.subf %303, %304 : vector<2x3x7x8xf32>
    %306 = vector.extract_strided_slice %301 {offsets = [0, 0, 0, 1], sizes = [2, 3, 8, 7], strides = [1, 1, 1, 1]} : vector<2x3x8x8xf32> to vector<2x3x8x7xf32>
    %307 = vector.extract_strided_slice %301 {offsets = [0, 0, 0, 0], sizes = [2, 3, 8, 7], strides = [1, 1, 1, 1]} : vector<2x3x8x8xf32> to vector<2x3x8x7xf32>
    %308 = arith.subf %306, %307 : vector<2x3x8x7xf32>
    %309 = vector.extract_strided_slice %302 {offsets = [0, 0, 1, 0], sizes = [2, 3, 7, 8], strides = [1, 1, 1, 1]} : vector<2x3x8x8xf32> to vector<2x3x7x8xf32>
    %310 = vector.extract_strided_slice %302 {offsets = [0, 0, 0, 0], sizes = [2, 3, 7, 8], strides = [1, 1, 1, 1]} : vector<2x3x8x8xf32> to vector<2x3x7x8xf32>
    %311 = arith.subf %309, %310 : vector<2x3x7x8xf32>
    %312 = vector.extract_strided_slice %302 {offsets = [0, 0, 0, 1], sizes = [2, 3, 8, 7], strides = [1, 1, 1, 1]} : vector<2x3x8x8xf32> to vector<2x3x8x7xf32>
    %313 = vector.extract_strided_slice %302 {offsets = [0, 0, 0, 0], sizes = [2, 3, 8, 7], strides = [1, 1, 1, 1]} : vector<2x3x8x8xf32> to vector<2x3x8x7xf32>
    %314 = arith.subf %312, %313 : vector<2x3x8x7xf32>
    %cst_73 = arith.constant 5.000000e-01 : f32
    %315 = vector.broadcast %cst_73 : f32 to vector<2x3x7x8xf32>
    %316 = arith.mulf %315, %305 : vector<2x3x7x8xf32>
    %317 = math.tanh %316 : vector<2x3x7x8xf32>
    %318 = arith.mulf %317, %317 : vector<2x3x7x8xf32>
    %cst_74 = arith.constant 5.000000e-01 : f32
    %319 = vector.broadcast %cst_74 : f32 to vector<2x3x8x7xf32>
    %320 = arith.mulf %319, %308 : vector<2x3x8x7xf32>
    %321 = math.tanh %320 : vector<2x3x8x7xf32>
    %322 = arith.mulf %321, %321 : vector<2x3x8x7xf32>
    %cst_75 = arith.constant 5.000000e-01 : f32
    %323 = vector.broadcast %cst_75 : f32 to vector<2x3x7x8xf32>
    %324 = arith.mulf %323, %311 : vector<2x3x7x8xf32>
    %325 = math.tanh %324 : vector<2x3x7x8xf32>
    %326 = arith.mulf %325, %325 : vector<2x3x7x8xf32>
    %cst_76 = arith.constant 5.000000e-01 : f32
    %327 = vector.broadcast %cst_76 : f32 to vector<2x3x8x7xf32>
    %328 = arith.mulf %327, %314 : vector<2x3x8x7xf32>
    %329 = math.tanh %328 : vector<2x3x8x7xf32>
    %330 = arith.mulf %329, %329 : vector<2x3x8x7xf32>
    %331 = vector.extract_strided_slice %318 {offsets = [0, 0, 0, 0], sizes = [2, 1, 7, 8], strides = [1, 1, 1, 1]} : vector<2x3x7x8xf32> to vector<2x1x7x8xf32>
    %332 = vector.shape_cast %331 : vector<2x1x7x8xf32> to vector<2x7x8xf32>
    %333 = vector.extract_strided_slice %326 {offsets = [0, 0, 0, 0], sizes = [2, 1, 7, 8], strides = [1, 1, 1, 1]} : vector<2x3x7x8xf32> to vector<2x1x7x8xf32>
    %334 = vector.shape_cast %333 : vector<2x1x7x8xf32> to vector<2x7x8xf32>
    %335 = arith.mulf %332, %334 : vector<2x7x8xf32>
    %336 = vector.shape_cast %335 : vector<2x7x8xf32> to vector<14x8xf32>
    %337 = vector.extract_strided_slice %322 {offsets = [0, 0, 0, 0], sizes = [2, 1, 8, 7], strides = [1, 1, 1, 1]} : vector<2x3x8x7xf32> to vector<2x1x8x7xf32>
    %338 = vector.shape_cast %337 : vector<2x1x8x7xf32> to vector<2x8x7xf32>
    %339 = vector.extract_strided_slice %330 {offsets = [0, 0, 0, 0], sizes = [2, 1, 8, 7], strides = [1, 1, 1, 1]} : vector<2x3x8x7xf32> to vector<2x1x8x7xf32>
    %340 = vector.shape_cast %339 : vector<2x1x8x7xf32> to vector<2x8x7xf32>
    %341 = arith.mulf %338, %340 : vector<2x8x7xf32>
    %342 = vector.shape_cast %341 : vector<2x8x7xf32> to vector<16x7xf32>
    %cst_77 = arith.constant dense<0.000000e+00> : vector<14xf32>
    %343 = vector.multi_reduction <add>, %336, %cst_77 [1] : vector<14x8xf32> to vector<14xf32>
    %344 = vector.shape_cast %343 : vector<14xf32> to vector<14x1xf32>
    %cst_78 = arith.constant dense<0.000000e+00> : vector<1xf32>
    %345 = vector.multi_reduction <add>, %344, %cst_78 [0] : vector<14x1xf32> to vector<1xf32>
    %346 = vector.shape_cast %345 : vector<1xf32> to vector<1x1xf32>
    %cst_79 = arith.constant 0.00892857183 : f32
    %347 = vector.broadcast %cst_79 : f32 to vector<1x1xf32>
    %348 = arith.mulf %346, %347 : vector<1x1xf32>
    %cst_80 = arith.constant dense<0.000000e+00> : vector<16xf32>
    %349 = vector.multi_reduction <add>, %342, %cst_80 [1] : vector<16x7xf32> to vector<16xf32>
    %350 = vector.shape_cast %349 : vector<16xf32> to vector<16x1xf32>
    %cst_81 = arith.constant dense<0.000000e+00> : vector<1xf32>
    %351 = vector.multi_reduction <add>, %350, %cst_81 [0] : vector<16x1xf32> to vector<1xf32>
    %352 = vector.shape_cast %351 : vector<1xf32> to vector<1x1xf32>
    %cst_82 = arith.constant 0.00892857183 : f32
    %353 = vector.broadcast %cst_82 : f32 to vector<1x1xf32>
    %354 = arith.mulf %352, %353 : vector<1x1xf32>
    %355 = math.sqrt %348 : vector<1x1xf32>
    %356 = math.sqrt %355 : vector<1x1xf32>
    %357 = arith.addf %300, %356 : vector<1x1xf32>
    %358 = math.sqrt %354 : vector<1x1xf32>
    %359 = math.sqrt %358 : vector<1x1xf32>
    %360 = arith.addf %357, %359 : vector<1x1xf32>
    %361 = vector.extract_strided_slice %318 {offsets = [0, 1, 0, 0], sizes = [2, 1, 7, 8], strides = [1, 1, 1, 1]} : vector<2x3x7x8xf32> to vector<2x1x7x8xf32>
    %362 = vector.shape_cast %361 : vector<2x1x7x8xf32> to vector<2x7x8xf32>
    %363 = vector.extract_strided_slice %326 {offsets = [0, 0, 0, 0], sizes = [2, 1, 7, 8], strides = [1, 1, 1, 1]} : vector<2x3x7x8xf32> to vector<2x1x7x8xf32>
    %364 = vector.shape_cast %363 : vector<2x1x7x8xf32> to vector<2x7x8xf32>
    %365 = arith.mulf %362, %364 : vector<2x7x8xf32>
    %366 = vector.shape_cast %365 : vector<2x7x8xf32> to vector<14x8xf32>
    %367 = vector.extract_strided_slice %322 {offsets = [0, 1, 0, 0], sizes = [2, 1, 8, 7], strides = [1, 1, 1, 1]} : vector<2x3x8x7xf32> to vector<2x1x8x7xf32>
    %368 = vector.shape_cast %367 : vector<2x1x8x7xf32> to vector<2x8x7xf32>
    %369 = vector.extract_strided_slice %330 {offsets = [0, 0, 0, 0], sizes = [2, 1, 8, 7], strides = [1, 1, 1, 1]} : vector<2x3x8x7xf32> to vector<2x1x8x7xf32>
    %370 = vector.shape_cast %369 : vector<2x1x8x7xf32> to vector<2x8x7xf32>
    %371 = arith.mulf %368, %370 : vector<2x8x7xf32>
    %372 = vector.shape_cast %371 : vector<2x8x7xf32> to vector<16x7xf32>
    %cst_83 = arith.constant dense<0.000000e+00> : vector<14xf32>
    %373 = vector.multi_reduction <add>, %366, %cst_83 [1] : vector<14x8xf32> to vector<14xf32>
    %374 = vector.shape_cast %373 : vector<14xf32> to vector<14x1xf32>
    %cst_84 = arith.constant dense<0.000000e+00> : vector<1xf32>
    %375 = vector.multi_reduction <add>, %374, %cst_84 [0] : vector<14x1xf32> to vector<1xf32>
    %376 = vector.shape_cast %375 : vector<1xf32> to vector<1x1xf32>
    %cst_85 = arith.constant 0.00892857183 : f32
    %377 = vector.broadcast %cst_85 : f32 to vector<1x1xf32>
    %378 = arith.mulf %376, %377 : vector<1x1xf32>
    %cst_86 = arith.constant dense<0.000000e+00> : vector<16xf32>
    %379 = vector.multi_reduction <add>, %372, %cst_86 [1] : vector<16x7xf32> to vector<16xf32>
    %380 = vector.shape_cast %379 : vector<16xf32> to vector<16x1xf32>
    %cst_87 = arith.constant dense<0.000000e+00> : vector<1xf32>
    %381 = vector.multi_reduction <add>, %380, %cst_87 [0] : vector<16x1xf32> to vector<1xf32>
    %382 = vector.shape_cast %381 : vector<1xf32> to vector<1x1xf32>
    %cst_88 = arith.constant 0.00892857183 : f32
    %383 = vector.broadcast %cst_88 : f32 to vector<1x1xf32>
    %384 = arith.mulf %382, %383 : vector<1x1xf32>
    %385 = math.sqrt %378 : vector<1x1xf32>
    %386 = math.sqrt %385 : vector<1x1xf32>
    %387 = arith.addf %360, %386 : vector<1x1xf32>
    %388 = math.sqrt %384 : vector<1x1xf32>
    %389 = math.sqrt %388 : vector<1x1xf32>
    %390 = arith.addf %387, %389 : vector<1x1xf32>
    %391 = vector.extract_strided_slice %318 {offsets = [0, 2, 0, 0], sizes = [2, 1, 7, 8], strides = [1, 1, 1, 1]} : vector<2x3x7x8xf32> to vector<2x1x7x8xf32>
    %392 = vector.shape_cast %391 : vector<2x1x7x8xf32> to vector<2x7x8xf32>
    %393 = vector.extract_strided_slice %326 {offsets = [0, 0, 0, 0], sizes = [2, 1, 7, 8], strides = [1, 1, 1, 1]} : vector<2x3x7x8xf32> to vector<2x1x7x8xf32>
    %394 = vector.shape_cast %393 : vector<2x1x7x8xf32> to vector<2x7x8xf32>
    %395 = arith.mulf %392, %394 : vector<2x7x8xf32>
    %396 = vector.shape_cast %395 : vector<2x7x8xf32> to vector<14x8xf32>
    %397 = vector.extract_strided_slice %322 {offsets = [0, 2, 0, 0], sizes = [2, 1, 8, 7], strides = [1, 1, 1, 1]} : vector<2x3x8x7xf32> to vector<2x1x8x7xf32>
    %398 = vector.shape_cast %397 : vector<2x1x8x7xf32> to vector<2x8x7xf32>
    %399 = vector.extract_strided_slice %330 {offsets = [0, 0, 0, 0], sizes = [2, 1, 8, 7], strides = [1, 1, 1, 1]} : vector<2x3x8x7xf32> to vector<2x1x8x7xf32>
    %400 = vector.shape_cast %399 : vector<2x1x8x7xf32> to vector<2x8x7xf32>
    %401 = arith.mulf %398, %400 : vector<2x8x7xf32>
    %402 = vector.shape_cast %401 : vector<2x8x7xf32> to vector<16x7xf32>
    %cst_89 = arith.constant dense<0.000000e+00> : vector<14xf32>
    %403 = vector.multi_reduction <add>, %396, %cst_89 [1] : vector<14x8xf32> to vector<14xf32>
    %404 = vector.shape_cast %403 : vector<14xf32> to vector<14x1xf32>
    %cst_90 = arith.constant dense<0.000000e+00> : vector<1xf32>
    %405 = vector.multi_reduction <add>, %404, %cst_90 [0] : vector<14x1xf32> to vector<1xf32>
    %406 = vector.shape_cast %405 : vector<1xf32> to vector<1x1xf32>
    %cst_91 = arith.constant 0.00892857183 : f32
    %407 = vector.broadcast %cst_91 : f32 to vector<1x1xf32>
    %408 = arith.mulf %406, %407 : vector<1x1xf32>
    %cst_92 = arith.constant dense<0.000000e+00> : vector<16xf32>
    %409 = vector.multi_reduction <add>, %402, %cst_92 [1] : vector<16x7xf32> to vector<16xf32>
    %410 = vector.shape_cast %409 : vector<16xf32> to vector<16x1xf32>
    %cst_93 = arith.constant dense<0.000000e+00> : vector<1xf32>
    %411 = vector.multi_reduction <add>, %410, %cst_93 [0] : vector<16x1xf32> to vector<1xf32>
    %412 = vector.shape_cast %411 : vector<1xf32> to vector<1x1xf32>
    %cst_94 = arith.constant 0.00892857183 : f32
    %413 = vector.broadcast %cst_94 : f32 to vector<1x1xf32>
    %414 = arith.mulf %412, %413 : vector<1x1xf32>
    %415 = math.sqrt %408 : vector<1x1xf32>
    %416 = math.sqrt %415 : vector<1x1xf32>
    %417 = arith.addf %390, %416 : vector<1x1xf32>
    %418 = math.sqrt %414 : vector<1x1xf32>
    %419 = math.sqrt %418 : vector<1x1xf32>
    %420 = arith.addf %417, %419 : vector<1x1xf32>
    %421 = vector.extract_strided_slice %318 {offsets = [0, 0, 0, 0], sizes = [2, 1, 7, 8], strides = [1, 1, 1, 1]} : vector<2x3x7x8xf32> to vector<2x1x7x8xf32>
    %422 = vector.shape_cast %421 : vector<2x1x7x8xf32> to vector<2x7x8xf32>
    %423 = vector.extract_strided_slice %326 {offsets = [0, 1, 0, 0], sizes = [2, 1, 7, 8], strides = [1, 1, 1, 1]} : vector<2x3x7x8xf32> to vector<2x1x7x8xf32>
    %424 = vector.shape_cast %423 : vector<2x1x7x8xf32> to vector<2x7x8xf32>
    %425 = arith.mulf %422, %424 : vector<2x7x8xf32>
    %426 = vector.shape_cast %425 : vector<2x7x8xf32> to vector<14x8xf32>
    %427 = vector.extract_strided_slice %322 {offsets = [0, 0, 0, 0], sizes = [2, 1, 8, 7], strides = [1, 1, 1, 1]} : vector<2x3x8x7xf32> to vector<2x1x8x7xf32>
    %428 = vector.shape_cast %427 : vector<2x1x8x7xf32> to vector<2x8x7xf32>
    %429 = vector.extract_strided_slice %330 {offsets = [0, 1, 0, 0], sizes = [2, 1, 8, 7], strides = [1, 1, 1, 1]} : vector<2x3x8x7xf32> to vector<2x1x8x7xf32>
    %430 = vector.shape_cast %429 : vector<2x1x8x7xf32> to vector<2x8x7xf32>
    %431 = arith.mulf %428, %430 : vector<2x8x7xf32>
    %432 = vector.shape_cast %431 : vector<2x8x7xf32> to vector<16x7xf32>
    %cst_95 = arith.constant dense<0.000000e+00> : vector<14xf32>
    %433 = vector.multi_reduction <add>, %426, %cst_95 [1] : vector<14x8xf32> to vector<14xf32>
    %434 = vector.shape_cast %433 : vector<14xf32> to vector<14x1xf32>
    %cst_96 = arith.constant dense<0.000000e+00> : vector<1xf32>
    %435 = vector.multi_reduction <add>, %434, %cst_96 [0] : vector<14x1xf32> to vector<1xf32>
    %436 = vector.shape_cast %435 : vector<1xf32> to vector<1x1xf32>
    %cst_97 = arith.constant 0.00892857183 : f32
    %437 = vector.broadcast %cst_97 : f32 to vector<1x1xf32>
    %438 = arith.mulf %436, %437 : vector<1x1xf32>
    %cst_98 = arith.constant dense<0.000000e+00> : vector<16xf32>
    %439 = vector.multi_reduction <add>, %432, %cst_98 [1] : vector<16x7xf32> to vector<16xf32>
    %440 = vector.shape_cast %439 : vector<16xf32> to vector<16x1xf32>
    %cst_99 = arith.constant dense<0.000000e+00> : vector<1xf32>
    %441 = vector.multi_reduction <add>, %440, %cst_99 [0] : vector<16x1xf32> to vector<1xf32>
    %442 = vector.shape_cast %441 : vector<1xf32> to vector<1x1xf32>
    %cst_100 = arith.constant 0.00892857183 : f32
    %443 = vector.broadcast %cst_100 : f32 to vector<1x1xf32>
    %444 = arith.mulf %442, %443 : vector<1x1xf32>
    %445 = math.sqrt %438 : vector<1x1xf32>
    %446 = math.sqrt %445 : vector<1x1xf32>
    %447 = arith.addf %420, %446 : vector<1x1xf32>
    %448 = math.sqrt %444 : vector<1x1xf32>
    %449 = math.sqrt %448 : vector<1x1xf32>
    %450 = arith.addf %447, %449 : vector<1x1xf32>
    %451 = vector.extract_strided_slice %318 {offsets = [0, 1, 0, 0], sizes = [2, 1, 7, 8], strides = [1, 1, 1, 1]} : vector<2x3x7x8xf32> to vector<2x1x7x8xf32>
    %452 = vector.shape_cast %451 : vector<2x1x7x8xf32> to vector<2x7x8xf32>
    %453 = vector.extract_strided_slice %326 {offsets = [0, 1, 0, 0], sizes = [2, 1, 7, 8], strides = [1, 1, 1, 1]} : vector<2x3x7x8xf32> to vector<2x1x7x8xf32>
    %454 = vector.shape_cast %453 : vector<2x1x7x8xf32> to vector<2x7x8xf32>
    %455 = arith.mulf %452, %454 : vector<2x7x8xf32>
    %456 = vector.shape_cast %455 : vector<2x7x8xf32> to vector<14x8xf32>
    %457 = vector.extract_strided_slice %322 {offsets = [0, 1, 0, 0], sizes = [2, 1, 8, 7], strides = [1, 1, 1, 1]} : vector<2x3x8x7xf32> to vector<2x1x8x7xf32>
    %458 = vector.shape_cast %457 : vector<2x1x8x7xf32> to vector<2x8x7xf32>
    %459 = vector.extract_strided_slice %330 {offsets = [0, 1, 0, 0], sizes = [2, 1, 8, 7], strides = [1, 1, 1, 1]} : vector<2x3x8x7xf32> to vector<2x1x8x7xf32>
    %460 = vector.shape_cast %459 : vector<2x1x8x7xf32> to vector<2x8x7xf32>
    %461 = arith.mulf %458, %460 : vector<2x8x7xf32>
    %462 = vector.shape_cast %461 : vector<2x8x7xf32> to vector<16x7xf32>
    %cst_101 = arith.constant dense<0.000000e+00> : vector<14xf32>
    %463 = vector.multi_reduction <add>, %456, %cst_101 [1] : vector<14x8xf32> to vector<14xf32>
    %464 = vector.shape_cast %463 : vector<14xf32> to vector<14x1xf32>
    %cst_102 = arith.constant dense<0.000000e+00> : vector<1xf32>
    %465 = vector.multi_reduction <add>, %464, %cst_102 [0] : vector<14x1xf32> to vector<1xf32>
    %466 = vector.shape_cast %465 : vector<1xf32> to vector<1x1xf32>
    %cst_103 = arith.constant 0.00892857183 : f32
    %467 = vector.broadcast %cst_103 : f32 to vector<1x1xf32>
    %468 = arith.mulf %466, %467 : vector<1x1xf32>
    %cst_104 = arith.constant dense<0.000000e+00> : vector<16xf32>
    %469 = vector.multi_reduction <add>, %462, %cst_104 [1] : vector<16x7xf32> to vector<16xf32>
    %470 = vector.shape_cast %469 : vector<16xf32> to vector<16x1xf32>
    %cst_105 = arith.constant dense<0.000000e+00> : vector<1xf32>
    %471 = vector.multi_reduction <add>, %470, %cst_105 [0] : vector<16x1xf32> to vector<1xf32>
    %472 = vector.shape_cast %471 : vector<1xf32> to vector<1x1xf32>
    %cst_106 = arith.constant 0.00892857183 : f32
    %473 = vector.broadcast %cst_106 : f32 to vector<1x1xf32>
    %474 = arith.mulf %472, %473 : vector<1x1xf32>
    %475 = math.sqrt %468 : vector<1x1xf32>
    %476 = math.sqrt %475 : vector<1x1xf32>
    %477 = arith.addf %450, %476 : vector<1x1xf32>
    %478 = math.sqrt %474 : vector<1x1xf32>
    %479 = math.sqrt %478 : vector<1x1xf32>
    %480 = arith.addf %477, %479 : vector<1x1xf32>
    %481 = vector.extract_strided_slice %318 {offsets = [0, 2, 0, 0], sizes = [2, 1, 7, 8], strides = [1, 1, 1, 1]} : vector<2x3x7x8xf32> to vector<2x1x7x8xf32>
    %482 = vector.shape_cast %481 : vector<2x1x7x8xf32> to vector<2x7x8xf32>
    %483 = vector.extract_strided_slice %326 {offsets = [0, 1, 0, 0], sizes = [2, 1, 7, 8], strides = [1, 1, 1, 1]} : vector<2x3x7x8xf32> to vector<2x1x7x8xf32>
    %484 = vector.shape_cast %483 : vector<2x1x7x8xf32> to vector<2x7x8xf32>
    %485 = arith.mulf %482, %484 : vector<2x7x8xf32>
    %486 = vector.shape_cast %485 : vector<2x7x8xf32> to vector<14x8xf32>
    %487 = vector.extract_strided_slice %322 {offsets = [0, 2, 0, 0], sizes = [2, 1, 8, 7], strides = [1, 1, 1, 1]} : vector<2x3x8x7xf32> to vector<2x1x8x7xf32>
    %488 = vector.shape_cast %487 : vector<2x1x8x7xf32> to vector<2x8x7xf32>
    %489 = vector.extract_strided_slice %330 {offsets = [0, 1, 0, 0], sizes = [2, 1, 8, 7], strides = [1, 1, 1, 1]} : vector<2x3x8x7xf32> to vector<2x1x8x7xf32>
    %490 = vector.shape_cast %489 : vector<2x1x8x7xf32> to vector<2x8x7xf32>
    %491 = arith.mulf %488, %490 : vector<2x8x7xf32>
    %492 = vector.shape_cast %491 : vector<2x8x7xf32> to vector<16x7xf32>
    %cst_107 = arith.constant dense<0.000000e+00> : vector<14xf32>
    %493 = vector.multi_reduction <add>, %486, %cst_107 [1] : vector<14x8xf32> to vector<14xf32>
    %494 = vector.shape_cast %493 : vector<14xf32> to vector<14x1xf32>
    %cst_108 = arith.constant dense<0.000000e+00> : vector<1xf32>
    %495 = vector.multi_reduction <add>, %494, %cst_108 [0] : vector<14x1xf32> to vector<1xf32>
    %496 = vector.shape_cast %495 : vector<1xf32> to vector<1x1xf32>
    %cst_109 = arith.constant 0.00892857183 : f32
    %497 = vector.broadcast %cst_109 : f32 to vector<1x1xf32>
    %498 = arith.mulf %496, %497 : vector<1x1xf32>
    %cst_110 = arith.constant dense<0.000000e+00> : vector<16xf32>
    %499 = vector.multi_reduction <add>, %492, %cst_110 [1] : vector<16x7xf32> to vector<16xf32>
    %500 = vector.shape_cast %499 : vector<16xf32> to vector<16x1xf32>
    %cst_111 = arith.constant dense<0.000000e+00> : vector<1xf32>
    %501 = vector.multi_reduction <add>, %500, %cst_111 [0] : vector<16x1xf32> to vector<1xf32>
    %502 = vector.shape_cast %501 : vector<1xf32> to vector<1x1xf32>
    %cst_112 = arith.constant 0.00892857183 : f32
    %503 = vector.broadcast %cst_112 : f32 to vector<1x1xf32>
    %504 = arith.mulf %502, %503 : vector<1x1xf32>
    %505 = math.sqrt %498 : vector<1x1xf32>
    %506 = math.sqrt %505 : vector<1x1xf32>
    %507 = arith.addf %480, %506 : vector<1x1xf32>
    %508 = math.sqrt %504 : vector<1x1xf32>
    %509 = math.sqrt %508 : vector<1x1xf32>
    %510 = arith.addf %507, %509 : vector<1x1xf32>
    %511 = vector.extract_strided_slice %318 {offsets = [0, 0, 0, 0], sizes = [2, 1, 7, 8], strides = [1, 1, 1, 1]} : vector<2x3x7x8xf32> to vector<2x1x7x8xf32>
    %512 = vector.shape_cast %511 : vector<2x1x7x8xf32> to vector<2x7x8xf32>
    %513 = vector.extract_strided_slice %326 {offsets = [0, 2, 0, 0], sizes = [2, 1, 7, 8], strides = [1, 1, 1, 1]} : vector<2x3x7x8xf32> to vector<2x1x7x8xf32>
    %514 = vector.shape_cast %513 : vector<2x1x7x8xf32> to vector<2x7x8xf32>
    %515 = arith.mulf %512, %514 : vector<2x7x8xf32>
    %516 = vector.shape_cast %515 : vector<2x7x8xf32> to vector<14x8xf32>
    %517 = vector.extract_strided_slice %322 {offsets = [0, 0, 0, 0], sizes = [2, 1, 8, 7], strides = [1, 1, 1, 1]} : vector<2x3x8x7xf32> to vector<2x1x8x7xf32>
    %518 = vector.shape_cast %517 : vector<2x1x8x7xf32> to vector<2x8x7xf32>
    %519 = vector.extract_strided_slice %330 {offsets = [0, 2, 0, 0], sizes = [2, 1, 8, 7], strides = [1, 1, 1, 1]} : vector<2x3x8x7xf32> to vector<2x1x8x7xf32>
    %520 = vector.shape_cast %519 : vector<2x1x8x7xf32> to vector<2x8x7xf32>
    %521 = arith.mulf %518, %520 : vector<2x8x7xf32>
    %522 = vector.shape_cast %521 : vector<2x8x7xf32> to vector<16x7xf32>
    %cst_113 = arith.constant dense<0.000000e+00> : vector<14xf32>
    %523 = vector.multi_reduction <add>, %516, %cst_113 [1] : vector<14x8xf32> to vector<14xf32>
    %524 = vector.shape_cast %523 : vector<14xf32> to vector<14x1xf32>
    %cst_114 = arith.constant dense<0.000000e+00> : vector<1xf32>
    %525 = vector.multi_reduction <add>, %524, %cst_114 [0] : vector<14x1xf32> to vector<1xf32>
    %526 = vector.shape_cast %525 : vector<1xf32> to vector<1x1xf32>
    %cst_115 = arith.constant 0.00892857183 : f32
    %527 = vector.broadcast %cst_115 : f32 to vector<1x1xf32>
    %528 = arith.mulf %526, %527 : vector<1x1xf32>
    %cst_116 = arith.constant dense<0.000000e+00> : vector<16xf32>
    %529 = vector.multi_reduction <add>, %522, %cst_116 [1] : vector<16x7xf32> to vector<16xf32>
    %530 = vector.shape_cast %529 : vector<16xf32> to vector<16x1xf32>
    %cst_117 = arith.constant dense<0.000000e+00> : vector<1xf32>
    %531 = vector.multi_reduction <add>, %530, %cst_117 [0] : vector<16x1xf32> to vector<1xf32>
    %532 = vector.shape_cast %531 : vector<1xf32> to vector<1x1xf32>
    %cst_118 = arith.constant 0.00892857183 : f32
    %533 = vector.broadcast %cst_118 : f32 to vector<1x1xf32>
    %534 = arith.mulf %532, %533 : vector<1x1xf32>
    %535 = math.sqrt %528 : vector<1x1xf32>
    %536 = math.sqrt %535 : vector<1x1xf32>
    %537 = arith.addf %510, %536 : vector<1x1xf32>
    %538 = math.sqrt %534 : vector<1x1xf32>
    %539 = math.sqrt %538 : vector<1x1xf32>
    %540 = arith.addf %537, %539 : vector<1x1xf32>
    %541 = vector.extract_strided_slice %318 {offsets = [0, 1, 0, 0], sizes = [2, 1, 7, 8], strides = [1, 1, 1, 1]} : vector<2x3x7x8xf32> to vector<2x1x7x8xf32>
    %542 = vector.shape_cast %541 : vector<2x1x7x8xf32> to vector<2x7x8xf32>
    %543 = vector.extract_strided_slice %326 {offsets = [0, 2, 0, 0], sizes = [2, 1, 7, 8], strides = [1, 1, 1, 1]} : vector<2x3x7x8xf32> to vector<2x1x7x8xf32>
    %544 = vector.shape_cast %543 : vector<2x1x7x8xf32> to vector<2x7x8xf32>
    %545 = arith.mulf %542, %544 : vector<2x7x8xf32>
    %546 = vector.shape_cast %545 : vector<2x7x8xf32> to vector<14x8xf32>
    %547 = vector.extract_strided_slice %322 {offsets = [0, 1, 0, 0], sizes = [2, 1, 8, 7], strides = [1, 1, 1, 1]} : vector<2x3x8x7xf32> to vector<2x1x8x7xf32>
    %548 = vector.shape_cast %547 : vector<2x1x8x7xf32> to vector<2x8x7xf32>
    %549 = vector.extract_strided_slice %330 {offsets = [0, 2, 0, 0], sizes = [2, 1, 8, 7], strides = [1, 1, 1, 1]} : vector<2x3x8x7xf32> to vector<2x1x8x7xf32>
    %550 = vector.shape_cast %549 : vector<2x1x8x7xf32> to vector<2x8x7xf32>
    %551 = arith.mulf %548, %550 : vector<2x8x7xf32>
    %552 = vector.shape_cast %551 : vector<2x8x7xf32> to vector<16x7xf32>
    %cst_119 = arith.constant dense<0.000000e+00> : vector<14xf32>
    %553 = vector.multi_reduction <add>, %546, %cst_119 [1] : vector<14x8xf32> to vector<14xf32>
    %554 = vector.shape_cast %553 : vector<14xf32> to vector<14x1xf32>
    %cst_120 = arith.constant dense<0.000000e+00> : vector<1xf32>
    %555 = vector.multi_reduction <add>, %554, %cst_120 [0] : vector<14x1xf32> to vector<1xf32>
    %556 = vector.shape_cast %555 : vector<1xf32> to vector<1x1xf32>
    %cst_121 = arith.constant 0.00892857183 : f32
    %557 = vector.broadcast %cst_121 : f32 to vector<1x1xf32>
    %558 = arith.mulf %556, %557 : vector<1x1xf32>
    %cst_122 = arith.constant dense<0.000000e+00> : vector<16xf32>
    %559 = vector.multi_reduction <add>, %552, %cst_122 [1] : vector<16x7xf32> to vector<16xf32>
    %560 = vector.shape_cast %559 : vector<16xf32> to vector<16x1xf32>
    %cst_123 = arith.constant dense<0.000000e+00> : vector<1xf32>
    %561 = vector.multi_reduction <add>, %560, %cst_123 [0] : vector<16x1xf32> to vector<1xf32>
    %562 = vector.shape_cast %561 : vector<1xf32> to vector<1x1xf32>
    %cst_124 = arith.constant 0.00892857183 : f32
    %563 = vector.broadcast %cst_124 : f32 to vector<1x1xf32>
    %564 = arith.mulf %562, %563 : vector<1x1xf32>
    %565 = math.sqrt %558 : vector<1x1xf32>
    %566 = math.sqrt %565 : vector<1x1xf32>
    %567 = arith.addf %540, %566 : vector<1x1xf32>
    %568 = math.sqrt %564 : vector<1x1xf32>
    %569 = math.sqrt %568 : vector<1x1xf32>
    %570 = arith.addf %567, %569 : vector<1x1xf32>
    %571 = vector.extract_strided_slice %318 {offsets = [0, 2, 0, 0], sizes = [2, 1, 7, 8], strides = [1, 1, 1, 1]} : vector<2x3x7x8xf32> to vector<2x1x7x8xf32>
    %572 = vector.shape_cast %571 : vector<2x1x7x8xf32> to vector<2x7x8xf32>
    %573 = vector.extract_strided_slice %326 {offsets = [0, 2, 0, 0], sizes = [2, 1, 7, 8], strides = [1, 1, 1, 1]} : vector<2x3x7x8xf32> to vector<2x1x7x8xf32>
    %574 = vector.shape_cast %573 : vector<2x1x7x8xf32> to vector<2x7x8xf32>
    %575 = arith.mulf %572, %574 : vector<2x7x8xf32>
    %576 = vector.shape_cast %575 : vector<2x7x8xf32> to vector<14x8xf32>
    %577 = vector.extract_strided_slice %322 {offsets = [0, 2, 0, 0], sizes = [2, 1, 8, 7], strides = [1, 1, 1, 1]} : vector<2x3x8x7xf32> to vector<2x1x8x7xf32>
    %578 = vector.shape_cast %577 : vector<2x1x8x7xf32> to vector<2x8x7xf32>
    %579 = vector.extract_strided_slice %330 {offsets = [0, 2, 0, 0], sizes = [2, 1, 8, 7], strides = [1, 1, 1, 1]} : vector<2x3x8x7xf32> to vector<2x1x8x7xf32>
    %580 = vector.shape_cast %579 : vector<2x1x8x7xf32> to vector<2x8x7xf32>
    %581 = arith.mulf %578, %580 : vector<2x8x7xf32>
    %582 = vector.shape_cast %581 : vector<2x8x7xf32> to vector<16x7xf32>
    %cst_125 = arith.constant dense<0.000000e+00> : vector<14xf32>
    %583 = vector.multi_reduction <add>, %576, %cst_125 [1] : vector<14x8xf32> to vector<14xf32>
    %584 = vector.shape_cast %583 : vector<14xf32> to vector<14x1xf32>
    %cst_126 = arith.constant dense<0.000000e+00> : vector<1xf32>
    %585 = vector.multi_reduction <add>, %584, %cst_126 [0] : vector<14x1xf32> to vector<1xf32>
    %586 = vector.shape_cast %585 : vector<1xf32> to vector<1x1xf32>
    %cst_127 = arith.constant 0.00892857183 : f32
    %587 = vector.broadcast %cst_127 : f32 to vector<1x1xf32>
    %588 = arith.mulf %586, %587 : vector<1x1xf32>
    %cst_128 = arith.constant dense<0.000000e+00> : vector<16xf32>
    %589 = vector.multi_reduction <add>, %582, %cst_128 [1] : vector<16x7xf32> to vector<16xf32>
    %590 = vector.shape_cast %589 : vector<16xf32> to vector<16x1xf32>
    %cst_129 = arith.constant dense<0.000000e+00> : vector<1xf32>
    %591 = vector.multi_reduction <add>, %590, %cst_129 [0] : vector<16x1xf32> to vector<1xf32>
    %592 = vector.shape_cast %591 : vector<1xf32> to vector<1x1xf32>
    %cst_130 = arith.constant 0.00892857183 : f32
    %593 = vector.broadcast %cst_130 : f32 to vector<1x1xf32>
    %594 = arith.mulf %592, %593 : vector<1x1xf32>
    %595 = math.sqrt %588 : vector<1x1xf32>
    %596 = math.sqrt %595 : vector<1x1xf32>
    %597 = arith.addf %570, %596 : vector<1x1xf32>
    %598 = math.sqrt %594 : vector<1x1xf32>
    %599 = math.sqrt %598 : vector<1x1xf32>
    %600 = arith.addf %597, %599 : vector<1x1xf32>
    %c0_131 = arith.constant 0 : index
    %c0_132 = arith.constant 0 : index
    %c0_133 = arith.constant 0 : index
    %c0_134 = arith.constant 0 : index
    %601 = vector.load %arg4[%c0_131, %c0_132, %c0_133, %c0_134] : memref<2x3x4x4xf32, #tpu.memory_space<vmem>>, vector<2x3x4x4xf32>
    %c0_135 = arith.constant 0 : index
    %c0_136 = arith.constant 0 : index
    %c0_137 = arith.constant 0 : index
    %c0_138 = arith.constant 0 : index
    %602 = vector.load %arg5[%c0_135, %c0_136, %c0_137, %c0_138] : memref<2x3x4x4xf32, #tpu.memory_space<vmem>>, vector<2x3x4x4xf32>
    %603 = vector.extract_strided_slice %601 {offsets = [0, 0, 1, 0], sizes = [2, 3, 3, 4], strides = [1, 1, 1, 1]} : vector<2x3x4x4xf32> to vector<2x3x3x4xf32>
    %604 = vector.extract_strided_slice %601 {offsets = [0, 0, 0, 0], sizes = [2, 3, 3, 4], strides = [1, 1, 1, 1]} : vector<2x3x4x4xf32> to vector<2x3x3x4xf32>
    %605 = arith.subf %603, %604 : vector<2x3x3x4xf32>
    %606 = vector.extract_strided_slice %601 {offsets = [0, 0, 0, 1], sizes = [2, 3, 4, 3], strides = [1, 1, 1, 1]} : vector<2x3x4x4xf32> to vector<2x3x4x3xf32>
    %607 = vector.extract_strided_slice %601 {offsets = [0, 0, 0, 0], sizes = [2, 3, 4, 3], strides = [1, 1, 1, 1]} : vector<2x3x4x4xf32> to vector<2x3x4x3xf32>
    %608 = arith.subf %606, %607 : vector<2x3x4x3xf32>
    %609 = vector.extract_strided_slice %602 {offsets = [0, 0, 1, 0], sizes = [2, 3, 3, 4], strides = [1, 1, 1, 1]} : vector<2x3x4x4xf32> to vector<2x3x3x4xf32>
    %610 = vector.extract_strided_slice %602 {offsets = [0, 0, 0, 0], sizes = [2, 3, 3, 4], strides = [1, 1, 1, 1]} : vector<2x3x4x4xf32> to vector<2x3x3x4xf32>
    %611 = arith.subf %609, %610 : vector<2x3x3x4xf32>
    %612 = vector.extract_strided_slice %602 {offsets = [0, 0, 0, 1], sizes = [2, 3, 4, 3], strides = [1, 1, 1, 1]} : vector<2x3x4x4xf32> to vector<2x3x4x3xf32>
    %613 = vector.extract_strided_slice %602 {offsets = [0, 0, 0, 0], sizes = [2, 3, 4, 3], strides = [1, 1, 1, 1]} : vector<2x3x4x4xf32> to vector<2x3x4x3xf32>
    %614 = arith.subf %612, %613 : vector<2x3x4x3xf32>
    %cst_139 = arith.constant 5.000000e-01 : f32
    %615 = vector.broadcast %cst_139 : f32 to vector<2x3x3x4xf32>
    %616 = arith.mulf %615, %605 : vector<2x3x3x4xf32>
    %617 = math.tanh %616 : vector<2x3x3x4xf32>
    %618 = arith.mulf %617, %617 : vector<2x3x3x4xf32>
    %cst_140 = arith.constant 5.000000e-01 : f32
    %619 = vector.broadcast %cst_140 : f32 to vector<2x3x4x3xf32>
    %620 = arith.mulf %619, %608 : vector<2x3x4x3xf32>
    %621 = math.tanh %620 : vector<2x3x4x3xf32>
    %622 = arith.mulf %621, %621 : vector<2x3x4x3xf32>
    %cst_141 = arith.constant 5.000000e-01 : f32
    %623 = vector.broadcast %cst_141 : f32 to vector<2x3x3x4xf32>
    %624 = arith.mulf %623, %611 : vector<2x3x3x4xf32>
    %625 = math.tanh %624 : vector<2x3x3x4xf32>
    %626 = arith.mulf %625, %625 : vector<2x3x3x4xf32>
    %cst_142 = arith.constant 5.000000e-01 : f32
    %627 = vector.broadcast %cst_142 : f32 to vector<2x3x4x3xf32>
    %628 = arith.mulf %627, %614 : vector<2x3x4x3xf32>
    %629 = math.tanh %628 : vector<2x3x4x3xf32>
    %630 = arith.mulf %629, %629 : vector<2x3x4x3xf32>
    %631 = vector.extract_strided_slice %618 {offsets = [0, 0, 0, 0], sizes = [2, 1, 3, 4], strides = [1, 1, 1, 1]} : vector<2x3x3x4xf32> to vector<2x1x3x4xf32>
    %632 = vector.shape_cast %631 : vector<2x1x3x4xf32> to vector<2x3x4xf32>
    %633 = vector.extract_strided_slice %626 {offsets = [0, 0, 0, 0], sizes = [2, 1, 3, 4], strides = [1, 1, 1, 1]} : vector<2x3x3x4xf32> to vector<2x1x3x4xf32>
    %634 = vector.shape_cast %633 : vector<2x1x3x4xf32> to vector<2x3x4xf32>
    %635 = arith.mulf %632, %634 : vector<2x3x4xf32>
    %636 = vector.shape_cast %635 : vector<2x3x4xf32> to vector<6x4xf32>
    %637 = vector.extract_strided_slice %622 {offsets = [0, 0, 0, 0], sizes = [2, 1, 4, 3], strides = [1, 1, 1, 1]} : vector<2x3x4x3xf32> to vector<2x1x4x3xf32>
    %638 = vector.shape_cast %637 : vector<2x1x4x3xf32> to vector<2x4x3xf32>
    %639 = vector.extract_strided_slice %630 {offsets = [0, 0, 0, 0], sizes = [2, 1, 4, 3], strides = [1, 1, 1, 1]} : vector<2x3x4x3xf32> to vector<2x1x4x3xf32>
    %640 = vector.shape_cast %639 : vector<2x1x4x3xf32> to vector<2x4x3xf32>
    %641 = arith.mulf %638, %640 : vector<2x4x3xf32>
    %642 = vector.shape_cast %641 : vector<2x4x3xf32> to vector<8x3xf32>
    %cst_143 = arith.constant dense<0.000000e+00> : vector<6xf32>
    %643 = vector.multi_reduction <add>, %636, %cst_143 [1] : vector<6x4xf32> to vector<6xf32>
    %644 = vector.shape_cast %643 : vector<6xf32> to vector<6x1xf32>
    %cst_144 = arith.constant dense<0.000000e+00> : vector<1xf32>
    %645 = vector.multi_reduction <add>, %644, %cst_144 [0] : vector<6x1xf32> to vector<1xf32>
    %646 = vector.shape_cast %645 : vector<1xf32> to vector<1x1xf32>
    %cst_145 = arith.constant 0.0416666679 : f32
    %647 = vector.broadcast %cst_145 : f32 to vector<1x1xf32>
    %648 = arith.mulf %646, %647 : vector<1x1xf32>
    %cst_146 = arith.constant dense<0.000000e+00> : vector<8xf32>
    %649 = vector.multi_reduction <add>, %642, %cst_146 [1] : vector<8x3xf32> to vector<8xf32>
    %650 = vector.shape_cast %649 : vector<8xf32> to vector<8x1xf32>
    %cst_147 = arith.constant dense<0.000000e+00> : vector<1xf32>
    %651 = vector.multi_reduction <add>, %650, %cst_147 [0] : vector<8x1xf32> to vector<1xf32>
    %652 = vector.shape_cast %651 : vector<1xf32> to vector<1x1xf32>
    %cst_148 = arith.constant 0.0416666679 : f32
    %653 = vector.broadcast %cst_148 : f32 to vector<1x1xf32>
    %654 = arith.mulf %652, %653 : vector<1x1xf32>
    %655 = math.sqrt %648 : vector<1x1xf32>
    %656 = math.sqrt %655 : vector<1x1xf32>
    %657 = arith.addf %600, %656 : vector<1x1xf32>
    %658 = math.sqrt %654 : vector<1x1xf32>
    %659 = math.sqrt %658 : vector<1x1xf32>
    %660 = arith.addf %657, %659 : vector<1x1xf32>
    %661 = vector.extract_strided_slice %618 {offsets = [0, 1, 0, 0], sizes = [2, 1, 3, 4], strides = [1, 1, 1, 1]} : vector<2x3x3x4xf32> to vector<2x1x3x4xf32>
    %662 = vector.shape_cast %661 : vector<2x1x3x4xf32> to vector<2x3x4xf32>
    %663 = vector.extract_strided_slice %626 {offsets = [0, 0, 0, 0], sizes = [2, 1, 3, 4], strides = [1, 1, 1, 1]} : vector<2x3x3x4xf32> to vector<2x1x3x4xf32>
    %664 = vector.shape_cast %663 : vector<2x1x3x4xf32> to vector<2x3x4xf32>
    %665 = arith.mulf %662, %664 : vector<2x3x4xf32>
    %666 = vector.shape_cast %665 : vector<2x3x4xf32> to vector<6x4xf32>
    %667 = vector.extract_strided_slice %622 {offsets = [0, 1, 0, 0], sizes = [2, 1, 4, 3], strides = [1, 1, 1, 1]} : vector<2x3x4x3xf32> to vector<2x1x4x3xf32>
    %668 = vector.shape_cast %667 : vector<2x1x4x3xf32> to vector<2x4x3xf32>
    %669 = vector.extract_strided_slice %630 {offsets = [0, 0, 0, 0], sizes = [2, 1, 4, 3], strides = [1, 1, 1, 1]} : vector<2x3x4x3xf32> to vector<2x1x4x3xf32>
    %670 = vector.shape_cast %669 : vector<2x1x4x3xf32> to vector<2x4x3xf32>
    %671 = arith.mulf %668, %670 : vector<2x4x3xf32>
    %672 = vector.shape_cast %671 : vector<2x4x3xf32> to vector<8x3xf32>
    %cst_149 = arith.constant dense<0.000000e+00> : vector<6xf32>
    %673 = vector.multi_reduction <add>, %666, %cst_149 [1] : vector<6x4xf32> to vector<6xf32>
    %674 = vector.shape_cast %673 : vector<6xf32> to vector<6x1xf32>
    %cst_150 = arith.constant dense<0.000000e+00> : vector<1xf32>
    %675 = vector.multi_reduction <add>, %674, %cst_150 [0] : vector<6x1xf32> to vector<1xf32>
    %676 = vector.shape_cast %675 : vector<1xf32> to vector<1x1xf32>
    %cst_151 = arith.constant 0.0416666679 : f32
    %677 = vector.broadcast %cst_151 : f32 to vector<1x1xf32>
    %678 = arith.mulf %676, %677 : vector<1x1xf32>
    %cst_152 = arith.constant dense<0.000000e+00> : vector<8xf32>
    %679 = vector.multi_reduction <add>, %672, %cst_152 [1] : vector<8x3xf32> to vector<8xf32>
    %680 = vector.shape_cast %679 : vector<8xf32> to vector<8x1xf32>
    %cst_153 = arith.constant dense<0.000000e+00> : vector<1xf32>
    %681 = vector.multi_reduction <add>, %680, %cst_153 [0] : vector<8x1xf32> to vector<1xf32>
    %682 = vector.shape_cast %681 : vector<1xf32> to vector<1x1xf32>
    %cst_154 = arith.constant 0.0416666679 : f32
    %683 = vector.broadcast %cst_154 : f32 to vector<1x1xf32>
    %684 = arith.mulf %682, %683 : vector<1x1xf32>
    %685 = math.sqrt %678 : vector<1x1xf32>
    %686 = math.sqrt %685 : vector<1x1xf32>
    %687 = arith.addf %660, %686 : vector<1x1xf32>
    %688 = math.sqrt %684 : vector<1x1xf32>
    %689 = math.sqrt %688 : vector<1x1xf32>
    %690 = arith.addf %687, %689 : vector<1x1xf32>
    %691 = vector.extract_strided_slice %618 {offsets = [0, 2, 0, 0], sizes = [2, 1, 3, 4], strides = [1, 1, 1, 1]} : vector<2x3x3x4xf32> to vector<2x1x3x4xf32>
    %692 = vector.shape_cast %691 : vector<2x1x3x4xf32> to vector<2x3x4xf32>
    %693 = vector.extract_strided_slice %626 {offsets = [0, 0, 0, 0], sizes = [2, 1, 3, 4], strides = [1, 1, 1, 1]} : vector<2x3x3x4xf32> to vector<2x1x3x4xf32>
    %694 = vector.shape_cast %693 : vector<2x1x3x4xf32> to vector<2x3x4xf32>
    %695 = arith.mulf %692, %694 : vector<2x3x4xf32>
    %696 = vector.shape_cast %695 : vector<2x3x4xf32> to vector<6x4xf32>
    %697 = vector.extract_strided_slice %622 {offsets = [0, 2, 0, 0], sizes = [2, 1, 4, 3], strides = [1, 1, 1, 1]} : vector<2x3x4x3xf32> to vector<2x1x4x3xf32>
    %698 = vector.shape_cast %697 : vector<2x1x4x3xf32> to vector<2x4x3xf32>
    %699 = vector.extract_strided_slice %630 {offsets = [0, 0, 0, 0], sizes = [2, 1, 4, 3], strides = [1, 1, 1, 1]} : vector<2x3x4x3xf32> to vector<2x1x4x3xf32>
    %700 = vector.shape_cast %699 : vector<2x1x4x3xf32> to vector<2x4x3xf32>
    %701 = arith.mulf %698, %700 : vector<2x4x3xf32>
    %702 = vector.shape_cast %701 : vector<2x4x3xf32> to vector<8x3xf32>
    %cst_155 = arith.constant dense<0.000000e+00> : vector<6xf32>
    %703 = vector.multi_reduction <add>, %696, %cst_155 [1] : vector<6x4xf32> to vector<6xf32>
    %704 = vector.shape_cast %703 : vector<6xf32> to vector<6x1xf32>
    %cst_156 = arith.constant dense<0.000000e+00> : vector<1xf32>
    %705 = vector.multi_reduction <add>, %704, %cst_156 [0] : vector<6x1xf32> to vector<1xf32>
    %706 = vector.shape_cast %705 : vector<1xf32> to vector<1x1xf32>
    %cst_157 = arith.constant 0.0416666679 : f32
    %707 = vector.broadcast %cst_157 : f32 to vector<1x1xf32>
    %708 = arith.mulf %706, %707 : vector<1x1xf32>
    %cst_158 = arith.constant dense<0.000000e+00> : vector<8xf32>
    %709 = vector.multi_reduction <add>, %702, %cst_158 [1] : vector<8x3xf32> to vector<8xf32>
    %710 = vector.shape_cast %709 : vector<8xf32> to vector<8x1xf32>
    %cst_159 = arith.constant dense<0.000000e+00> : vector<1xf32>
    %711 = vector.multi_reduction <add>, %710, %cst_159 [0] : vector<8x1xf32> to vector<1xf32>
    %712 = vector.shape_cast %711 : vector<1xf32> to vector<1x1xf32>
    %cst_160 = arith.constant 0.0416666679 : f32
    %713 = vector.broadcast %cst_160 : f32 to vector<1x1xf32>
    %714 = arith.mulf %712, %713 : vector<1x1xf32>
    %715 = math.sqrt %708 : vector<1x1xf32>
    %716 = math.sqrt %715 : vector<1x1xf32>
    %717 = arith.addf %690, %716 : vector<1x1xf32>
    %718 = math.sqrt %714 : vector<1x1xf32>
    %719 = math.sqrt %718 : vector<1x1xf32>
    %720 = arith.addf %717, %719 : vector<1x1xf32>
    %721 = vector.extract_strided_slice %618 {offsets = [0, 0, 0, 0], sizes = [2, 1, 3, 4], strides = [1, 1, 1, 1]} : vector<2x3x3x4xf32> to vector<2x1x3x4xf32>
    %722 = vector.shape_cast %721 : vector<2x1x3x4xf32> to vector<2x3x4xf32>
    %723 = vector.extract_strided_slice %626 {offsets = [0, 1, 0, 0], sizes = [2, 1, 3, 4], strides = [1, 1, 1, 1]} : vector<2x3x3x4xf32> to vector<2x1x3x4xf32>
    %724 = vector.shape_cast %723 : vector<2x1x3x4xf32> to vector<2x3x4xf32>
    %725 = arith.mulf %722, %724 : vector<2x3x4xf32>
    %726 = vector.shape_cast %725 : vector<2x3x4xf32> to vector<6x4xf32>
    %727 = vector.extract_strided_slice %622 {offsets = [0, 0, 0, 0], sizes = [2, 1, 4, 3], strides = [1, 1, 1, 1]} : vector<2x3x4x3xf32> to vector<2x1x4x3xf32>
    %728 = vector.shape_cast %727 : vector<2x1x4x3xf32> to vector<2x4x3xf32>
    %729 = vector.extract_strided_slice %630 {offsets = [0, 1, 0, 0], sizes = [2, 1, 4, 3], strides = [1, 1, 1, 1]} : vector<2x3x4x3xf32> to vector<2x1x4x3xf32>
    %730 = vector.shape_cast %729 : vector<2x1x4x3xf32> to vector<2x4x3xf32>
    %731 = arith.mulf %728, %730 : vector<2x4x3xf32>
    %732 = vector.shape_cast %731 : vector<2x4x3xf32> to vector<8x3xf32>
    %cst_161 = arith.constant dense<0.000000e+00> : vector<6xf32>
    %733 = vector.multi_reduction <add>, %726, %cst_161 [1] : vector<6x4xf32> to vector<6xf32>
    %734 = vector.shape_cast %733 : vector<6xf32> to vector<6x1xf32>
    %cst_162 = arith.constant dense<0.000000e+00> : vector<1xf32>
    %735 = vector.multi_reduction <add>, %734, %cst_162 [0] : vector<6x1xf32> to vector<1xf32>
    %736 = vector.shape_cast %735 : vector<1xf32> to vector<1x1xf32>
    %cst_163 = arith.constant 0.0416666679 : f32
    %737 = vector.broadcast %cst_163 : f32 to vector<1x1xf32>
    %738 = arith.mulf %736, %737 : vector<1x1xf32>
    %cst_164 = arith.constant dense<0.000000e+00> : vector<8xf32>
    %739 = vector.multi_reduction <add>, %732, %cst_164 [1] : vector<8x3xf32> to vector<8xf32>
    %740 = vector.shape_cast %739 : vector<8xf32> to vector<8x1xf32>
    %cst_165 = arith.constant dense<0.000000e+00> : vector<1xf32>
    %741 = vector.multi_reduction <add>, %740, %cst_165 [0] : vector<8x1xf32> to vector<1xf32>
    %742 = vector.shape_cast %741 : vector<1xf32> to vector<1x1xf32>
    %cst_166 = arith.constant 0.0416666679 : f32
    %743 = vector.broadcast %cst_166 : f32 to vector<1x1xf32>
    %744 = arith.mulf %742, %743 : vector<1x1xf32>
    %745 = math.sqrt %738 : vector<1x1xf32>
    %746 = math.sqrt %745 : vector<1x1xf32>
    %747 = arith.addf %720, %746 : vector<1x1xf32>
    %748 = math.sqrt %744 : vector<1x1xf32>
    %749 = math.sqrt %748 : vector<1x1xf32>
    %750 = arith.addf %747, %749 : vector<1x1xf32>
    %751 = vector.extract_strided_slice %618 {offsets = [0, 1, 0, 0], sizes = [2, 1, 3, 4], strides = [1, 1, 1, 1]} : vector<2x3x3x4xf32> to vector<2x1x3x4xf32>
    %752 = vector.shape_cast %751 : vector<2x1x3x4xf32> to vector<2x3x4xf32>
    %753 = vector.extract_strided_slice %626 {offsets = [0, 1, 0, 0], sizes = [2, 1, 3, 4], strides = [1, 1, 1, 1]} : vector<2x3x3x4xf32> to vector<2x1x3x4xf32>
    %754 = vector.shape_cast %753 : vector<2x1x3x4xf32> to vector<2x3x4xf32>
    %755 = arith.mulf %752, %754 : vector<2x3x4xf32>
    %756 = vector.shape_cast %755 : vector<2x3x4xf32> to vector<6x4xf32>
    %757 = vector.extract_strided_slice %622 {offsets = [0, 1, 0, 0], sizes = [2, 1, 4, 3], strides = [1, 1, 1, 1]} : vector<2x3x4x3xf32> to vector<2x1x4x3xf32>
    %758 = vector.shape_cast %757 : vector<2x1x4x3xf32> to vector<2x4x3xf32>
    %759 = vector.extract_strided_slice %630 {offsets = [0, 1, 0, 0], sizes = [2, 1, 4, 3], strides = [1, 1, 1, 1]} : vector<2x3x4x3xf32> to vector<2x1x4x3xf32>
    %760 = vector.shape_cast %759 : vector<2x1x4x3xf32> to vector<2x4x3xf32>
    %761 = arith.mulf %758, %760 : vector<2x4x3xf32>
    %762 = vector.shape_cast %761 : vector<2x4x3xf32> to vector<8x3xf32>
    %cst_167 = arith.constant dense<0.000000e+00> : vector<6xf32>
    %763 = vector.multi_reduction <add>, %756, %cst_167 [1] : vector<6x4xf32> to vector<6xf32>
    %764 = vector.shape_cast %763 : vector<6xf32> to vector<6x1xf32>
    %cst_168 = arith.constant dense<0.000000e+00> : vector<1xf32>
    %765 = vector.multi_reduction <add>, %764, %cst_168 [0] : vector<6x1xf32> to vector<1xf32>
    %766 = vector.shape_cast %765 : vector<1xf32> to vector<1x1xf32>
    %cst_169 = arith.constant 0.0416666679 : f32
    %767 = vector.broadcast %cst_169 : f32 to vector<1x1xf32>
    %768 = arith.mulf %766, %767 : vector<1x1xf32>
    %cst_170 = arith.constant dense<0.000000e+00> : vector<8xf32>
    %769 = vector.multi_reduction <add>, %762, %cst_170 [1] : vector<8x3xf32> to vector<8xf32>
    %770 = vector.shape_cast %769 : vector<8xf32> to vector<8x1xf32>
    %cst_171 = arith.constant dense<0.000000e+00> : vector<1xf32>
    %771 = vector.multi_reduction <add>, %770, %cst_171 [0] : vector<8x1xf32> to vector<1xf32>
    %772 = vector.shape_cast %771 : vector<1xf32> to vector<1x1xf32>
    %cst_172 = arith.constant 0.0416666679 : f32
    %773 = vector.broadcast %cst_172 : f32 to vector<1x1xf32>
    %774 = arith.mulf %772, %773 : vector<1x1xf32>
    %775 = math.sqrt %768 : vector<1x1xf32>
    %776 = math.sqrt %775 : vector<1x1xf32>
    %777 = arith.addf %750, %776 : vector<1x1xf32>
    %778 = math.sqrt %774 : vector<1x1xf32>
    %779 = math.sqrt %778 : vector<1x1xf32>
    %780 = arith.addf %777, %779 : vector<1x1xf32>
    %781 = vector.extract_strided_slice %618 {offsets = [0, 2, 0, 0], sizes = [2, 1, 3, 4], strides = [1, 1, 1, 1]} : vector<2x3x3x4xf32> to vector<2x1x3x4xf32>
    %782 = vector.shape_cast %781 : vector<2x1x3x4xf32> to vector<2x3x4xf32>
    %783 = vector.extract_strided_slice %626 {offsets = [0, 1, 0, 0], sizes = [2, 1, 3, 4], strides = [1, 1, 1, 1]} : vector<2x3x3x4xf32> to vector<2x1x3x4xf32>
    %784 = vector.shape_cast %783 : vector<2x1x3x4xf32> to vector<2x3x4xf32>
    %785 = arith.mulf %782, %784 : vector<2x3x4xf32>
    %786 = vector.shape_cast %785 : vector<2x3x4xf32> to vector<6x4xf32>
    %787 = vector.extract_strided_slice %622 {offsets = [0, 2, 0, 0], sizes = [2, 1, 4, 3], strides = [1, 1, 1, 1]} : vector<2x3x4x3xf32> to vector<2x1x4x3xf32>
    %788 = vector.shape_cast %787 : vector<2x1x4x3xf32> to vector<2x4x3xf32>
    %789 = vector.extract_strided_slice %630 {offsets = [0, 1, 0, 0], sizes = [2, 1, 4, 3], strides = [1, 1, 1, 1]} : vector<2x3x4x3xf32> to vector<2x1x4x3xf32>
    %790 = vector.shape_cast %789 : vector<2x1x4x3xf32> to vector<2x4x3xf32>
    %791 = arith.mulf %788, %790 : vector<2x4x3xf32>
    %792 = vector.shape_cast %791 : vector<2x4x3xf32> to vector<8x3xf32>
    %cst_173 = arith.constant dense<0.000000e+00> : vector<6xf32>
    %793 = vector.multi_reduction <add>, %786, %cst_173 [1] : vector<6x4xf32> to vector<6xf32>
    %794 = vector.shape_cast %793 : vector<6xf32> to vector<6x1xf32>
    %cst_174 = arith.constant dense<0.000000e+00> : vector<1xf32>
    %795 = vector.multi_reduction <add>, %794, %cst_174 [0] : vector<6x1xf32> to vector<1xf32>
    %796 = vector.shape_cast %795 : vector<1xf32> to vector<1x1xf32>
    %cst_175 = arith.constant 0.0416666679 : f32
    %797 = vector.broadcast %cst_175 : f32 to vector<1x1xf32>
    %798 = arith.mulf %796, %797 : vector<1x1xf32>
    %cst_176 = arith.constant dense<0.000000e+00> : vector<8xf32>
    %799 = vector.multi_reduction <add>, %792, %cst_176 [1] : vector<8x3xf32> to vector<8xf32>
    %800 = vector.shape_cast %799 : vector<8xf32> to vector<8x1xf32>
    %cst_177 = arith.constant dense<0.000000e+00> : vector<1xf32>
    %801 = vector.multi_reduction <add>, %800, %cst_177 [0] : vector<8x1xf32> to vector<1xf32>
    %802 = vector.shape_cast %801 : vector<1xf32> to vector<1x1xf32>
    %cst_178 = arith.constant 0.0416666679 : f32
    %803 = vector.broadcast %cst_178 : f32 to vector<1x1xf32>
    %804 = arith.mulf %802, %803 : vector<1x1xf32>
    %805 = math.sqrt %798 : vector<1x1xf32>
    %806 = math.sqrt %805 : vector<1x1xf32>
    %807 = arith.addf %780, %806 : vector<1x1xf32>
    %808 = math.sqrt %804 : vector<1x1xf32>
    %809 = math.sqrt %808 : vector<1x1xf32>
    %810 = arith.addf %807, %809 : vector<1x1xf32>
    %811 = vector.extract_strided_slice %618 {offsets = [0, 0, 0, 0], sizes = [2, 1, 3, 4], strides = [1, 1, 1, 1]} : vector<2x3x3x4xf32> to vector<2x1x3x4xf32>
    %812 = vector.shape_cast %811 : vector<2x1x3x4xf32> to vector<2x3x4xf32>
    %813 = vector.extract_strided_slice %626 {offsets = [0, 2, 0, 0], sizes = [2, 1, 3, 4], strides = [1, 1, 1, 1]} : vector<2x3x3x4xf32> to vector<2x1x3x4xf32>
    %814 = vector.shape_cast %813 : vector<2x1x3x4xf32> to vector<2x3x4xf32>
    %815 = arith.mulf %812, %814 : vector<2x3x4xf32>
    %816 = vector.shape_cast %815 : vector<2x3x4xf32> to vector<6x4xf32>
    %817 = vector.extract_strided_slice %622 {offsets = [0, 0, 0, 0], sizes = [2, 1, 4, 3], strides = [1, 1, 1, 1]} : vector<2x3x4x3xf32> to vector<2x1x4x3xf32>
    %818 = vector.shape_cast %817 : vector<2x1x4x3xf32> to vector<2x4x3xf32>
    %819 = vector.extract_strided_slice %630 {offsets = [0, 2, 0, 0], sizes = [2, 1, 4, 3], strides = [1, 1, 1, 1]} : vector<2x3x4x3xf32> to vector<2x1x4x3xf32>
    %820 = vector.shape_cast %819 : vector<2x1x4x3xf32> to vector<2x4x3xf32>
    %821 = arith.mulf %818, %820 : vector<2x4x3xf32>
    %822 = vector.shape_cast %821 : vector<2x4x3xf32> to vector<8x3xf32>
    %cst_179 = arith.constant dense<0.000000e+00> : vector<6xf32>
    %823 = vector.multi_reduction <add>, %816, %cst_179 [1] : vector<6x4xf32> to vector<6xf32>
    %824 = vector.shape_cast %823 : vector<6xf32> to vector<6x1xf32>
    %cst_180 = arith.constant dense<0.000000e+00> : vector<1xf32>
    %825 = vector.multi_reduction <add>, %824, %cst_180 [0] : vector<6x1xf32> to vector<1xf32>
    %826 = vector.shape_cast %825 : vector<1xf32> to vector<1x1xf32>
    %cst_181 = arith.constant 0.0416666679 : f32
    %827 = vector.broadcast %cst_181 : f32 to vector<1x1xf32>
    %828 = arith.mulf %826, %827 : vector<1x1xf32>
    %cst_182 = arith.constant dense<0.000000e+00> : vector<8xf32>
    %829 = vector.multi_reduction <add>, %822, %cst_182 [1] : vector<8x3xf32> to vector<8xf32>
    %830 = vector.shape_cast %829 : vector<8xf32> to vector<8x1xf32>
    %cst_183 = arith.constant dense<0.000000e+00> : vector<1xf32>
    %831 = vector.multi_reduction <add>, %830, %cst_183 [0] : vector<8x1xf32> to vector<1xf32>
    %832 = vector.shape_cast %831 : vector<1xf32> to vector<1x1xf32>
    %cst_184 = arith.constant 0.0416666679 : f32
    %833 = vector.broadcast %cst_184 : f32 to vector<1x1xf32>
    %834 = arith.mulf %832, %833 : vector<1x1xf32>
    %835 = math.sqrt %828 : vector<1x1xf32>
    %836 = math.sqrt %835 : vector<1x1xf32>
    %837 = arith.addf %810, %836 : vector<1x1xf32>
    %838 = math.sqrt %834 : vector<1x1xf32>
    %839 = math.sqrt %838 : vector<1x1xf32>
    %840 = arith.addf %837, %839 : vector<1x1xf32>
    %841 = vector.extract_strided_slice %618 {offsets = [0, 1, 0, 0], sizes = [2, 1, 3, 4], strides = [1, 1, 1, 1]} : vector<2x3x3x4xf32> to vector<2x1x3x4xf32>
    %842 = vector.shape_cast %841 : vector<2x1x3x4xf32> to vector<2x3x4xf32>
    %843 = vector.extract_strided_slice %626 {offsets = [0, 2, 0, 0], sizes = [2, 1, 3, 4], strides = [1, 1, 1, 1]} : vector<2x3x3x4xf32> to vector<2x1x3x4xf32>
    %844 = vector.shape_cast %843 : vector<2x1x3x4xf32> to vector<2x3x4xf32>
    %845 = arith.mulf %842, %844 : vector<2x3x4xf32>
    %846 = vector.shape_cast %845 : vector<2x3x4xf32> to vector<6x4xf32>
    %847 = vector.extract_strided_slice %622 {offsets = [0, 1, 0, 0], sizes = [2, 1, 4, 3], strides = [1, 1, 1, 1]} : vector<2x3x4x3xf32> to vector<2x1x4x3xf32>
    %848 = vector.shape_cast %847 : vector<2x1x4x3xf32> to vector<2x4x3xf32>
    %849 = vector.extract_strided_slice %630 {offsets = [0, 2, 0, 0], sizes = [2, 1, 4, 3], strides = [1, 1, 1, 1]} : vector<2x3x4x3xf32> to vector<2x1x4x3xf32>
    %850 = vector.shape_cast %849 : vector<2x1x4x3xf32> to vector<2x4x3xf32>
    %851 = arith.mulf %848, %850 : vector<2x4x3xf32>
    %852 = vector.shape_cast %851 : vector<2x4x3xf32> to vector<8x3xf32>
    %cst_185 = arith.constant dense<0.000000e+00> : vector<6xf32>
    %853 = vector.multi_reduction <add>, %846, %cst_185 [1] : vector<6x4xf32> to vector<6xf32>
    %854 = vector.shape_cast %853 : vector<6xf32> to vector<6x1xf32>
    %cst_186 = arith.constant dense<0.000000e+00> : vector<1xf32>
    %855 = vector.multi_reduction <add>, %854, %cst_186 [0] : vector<6x1xf32> to vector<1xf32>
    %856 = vector.shape_cast %855 : vector<1xf32> to vector<1x1xf32>
    %cst_187 = arith.constant 0.0416666679 : f32
    %857 = vector.broadcast %cst_187 : f32 to vector<1x1xf32>
    %858 = arith.mulf %856, %857 : vector<1x1xf32>
    %cst_188 = arith.constant dense<0.000000e+00> : vector<8xf32>
    %859 = vector.multi_reduction <add>, %852, %cst_188 [1] : vector<8x3xf32> to vector<8xf32>
    %860 = vector.shape_cast %859 : vector<8xf32> to vector<8x1xf32>
    %cst_189 = arith.constant dense<0.000000e+00> : vector<1xf32>
    %861 = vector.multi_reduction <add>, %860, %cst_189 [0] : vector<8x1xf32> to vector<1xf32>
    %862 = vector.shape_cast %861 : vector<1xf32> to vector<1x1xf32>
    %cst_190 = arith.constant 0.0416666679 : f32
    %863 = vector.broadcast %cst_190 : f32 to vector<1x1xf32>
    %864 = arith.mulf %862, %863 : vector<1x1xf32>
    %865 = math.sqrt %858 : vector<1x1xf32>
    %866 = math.sqrt %865 : vector<1x1xf32>
    %867 = arith.addf %840, %866 : vector<1x1xf32>
    %868 = math.sqrt %864 : vector<1x1xf32>
    %869 = math.sqrt %868 : vector<1x1xf32>
    %870 = arith.addf %867, %869 : vector<1x1xf32>
    %871 = vector.extract_strided_slice %618 {offsets = [0, 2, 0, 0], sizes = [2, 1, 3, 4], strides = [1, 1, 1, 1]} : vector<2x3x3x4xf32> to vector<2x1x3x4xf32>
    %872 = vector.shape_cast %871 : vector<2x1x3x4xf32> to vector<2x3x4xf32>
    %873 = vector.extract_strided_slice %626 {offsets = [0, 2, 0, 0], sizes = [2, 1, 3, 4], strides = [1, 1, 1, 1]} : vector<2x3x3x4xf32> to vector<2x1x3x4xf32>
    %874 = vector.shape_cast %873 : vector<2x1x3x4xf32> to vector<2x3x4xf32>
    %875 = arith.mulf %872, %874 : vector<2x3x4xf32>
    %876 = vector.shape_cast %875 : vector<2x3x4xf32> to vector<6x4xf32>
    %877 = vector.extract_strided_slice %622 {offsets = [0, 2, 0, 0], sizes = [2, 1, 4, 3], strides = [1, 1, 1, 1]} : vector<2x3x4x3xf32> to vector<2x1x4x3xf32>
    %878 = vector.shape_cast %877 : vector<2x1x4x3xf32> to vector<2x4x3xf32>
    %879 = vector.extract_strided_slice %630 {offsets = [0, 2, 0, 0], sizes = [2, 1, 4, 3], strides = [1, 1, 1, 1]} : vector<2x3x4x3xf32> to vector<2x1x4x3xf32>
    %880 = vector.shape_cast %879 : vector<2x1x4x3xf32> to vector<2x4x3xf32>
    %881 = arith.mulf %878, %880 : vector<2x4x3xf32>
    %882 = vector.shape_cast %881 : vector<2x4x3xf32> to vector<8x3xf32>
    %cst_191 = arith.constant dense<0.000000e+00> : vector<6xf32>
    %883 = vector.multi_reduction <add>, %876, %cst_191 [1] : vector<6x4xf32> to vector<6xf32>
    %884 = vector.shape_cast %883 : vector<6xf32> to vector<6x1xf32>
    %cst_192 = arith.constant dense<0.000000e+00> : vector<1xf32>
    %885 = vector.multi_reduction <add>, %884, %cst_192 [0] : vector<6x1xf32> to vector<1xf32>
    %886 = vector.shape_cast %885 : vector<1xf32> to vector<1x1xf32>
    %cst_193 = arith.constant 0.0416666679 : f32
    %887 = vector.broadcast %cst_193 : f32 to vector<1x1xf32>
    %888 = arith.mulf %886, %887 : vector<1x1xf32>
    %cst_194 = arith.constant dense<0.000000e+00> : vector<8xf32>
    %889 = vector.multi_reduction <add>, %882, %cst_194 [1] : vector<8x3xf32> to vector<8xf32>
    %890 = vector.shape_cast %889 : vector<8xf32> to vector<8x1xf32>
    %cst_195 = arith.constant dense<0.000000e+00> : vector<1xf32>
    %891 = vector.multi_reduction <add>, %890, %cst_195 [0] : vector<8x1xf32> to vector<1xf32>
    %892 = vector.shape_cast %891 : vector<1xf32> to vector<1x1xf32>
    %cst_196 = arith.constant 0.0416666679 : f32
    %893 = vector.broadcast %cst_196 : f32 to vector<1x1xf32>
    %894 = arith.mulf %892, %893 : vector<1x1xf32>
    %895 = math.sqrt %888 : vector<1x1xf32>
    %896 = math.sqrt %895 : vector<1x1xf32>
    %897 = arith.addf %870, %896 : vector<1x1xf32>
    %898 = math.sqrt %894 : vector<1x1xf32>
    %899 = math.sqrt %898 : vector<1x1xf32>
    %900 = arith.addf %897, %899 : vector<1x1xf32>
    %cst_197 = arith.constant 0.0370370373 : f32
    %901 = vector.broadcast %cst_197 : f32 to vector<1x1xf32>
    %902 = arith.mulf %900, %901 : vector<1x1xf32>
    %cst_198 = arith.constant 5.000000e-01 : f32
    %903 = vector.broadcast %cst_198 : f32 to vector<1x1xf32>
    %904 = arith.mulf %902, %903 : vector<1x1xf32>
    %c0_199 = arith.constant 0 : index
    %c0_200 = arith.constant 0 : index
    %905 = vector.load %arg6[%c0_199, %c0_200] : memref<1x1xf32, #tpu.memory_space<vmem>>, vector<1x1xf32>
    tpu.vector_store %arg6[%c0_199, %c0_200], %904 {strides = array<i32>} : memref<1x1xf32, #tpu.memory_space<vmem>>, vector<1x1xf32>,
    return
  }
}

</mosaic_0001>

<bundles_post_ra>
// kernel: exclusion_loss_official.1
= control target key start
LH: loop header
LB: loop body
LE: loop exit
PB: predicated region body
PF: predicated region fallthrough
CT: control target
= control target key end

     0   :  { %s9422_s27 = smov 1   ;;  %vm60_vm0 = vcmask 1040384   ;;  %s12606_s0 = inlined_call_operand.vmem [shape: f32[2,3,16,16], index: 0, kind: input, shape index: {}]   ;;  %s12607_s1 = inlined_call_operand.vmem [shape: f32[2,3,16,16], index: 1, kind: input, shape index: {}]   ;;  %s12608_s2 = inlined_call_operand.vmem [shape: f32[2,3,8,8], index: 2, kind: input, shape index: {}]   ;;  %s12609_s3 = inlined_call_operand.vmem [shape: f32[2,3,8,8], index: 3, kind: input, shape index: {}]   ;;  %s12610_s4 = inlined_call_operand.vmem [shape: f32[2,3,4,4], index: 4, kind: input, shape index: {}]   ;;  %s12611_s5 = inlined_call_operand.vmem [shape: f32[2,3,4,4], index: 5, kind: input, shape index: {}]   ;;  %s12612_s6 = inlined_call_operand.hbm [shape: f32[1,1], index: 6, kind: output, shape index: {}]  }
   0x1   :  { %v9464_v0 = vld [vmem:[%s12606_s0 + $0x10] sm:$0xff]  ;;  %v9469_v1 = vld [vmem:[%s12606_s0] sm:$0xff]  ;;  %v9474_v2 = vld [vmem:[%s12606_s0 + $0x18] sm:$0xff] }
   0x2   :  { %107 = vrot.lane.b32.xlu1 %v9464_v0, %s9422_s27  ;;  %v64_v3 = vrot.slane %v9464_v0, 7  ;;  %103 = vrot.lane.b32.xlu0 %v9469_v1, %s9422_s27  ;;  %v61_v4 = vrot.slane %v9469_v1, 7  ;;  %v65_v5 = vrot.slane %v9474_v2, 7  ;;  %v9486_v6 = vld [vmem:[%s12606_s0 + $0x8] sm:$0xff]  ;;  %v9498_v10 = vld [vmem:[%s12606_s0 + $0x20] sm:$0xff] }
   0x3   :  { %v9491_v7 = vld [vmem:[%s12606_s0 + $0x28] sm:$0xff]  ;;  %v62_v8 = vrot.slane %v9486_v6, 7  ;;  %v67_v14 = vrot.slane %v9498_v10, 7  ;;  %v9507_v15 = vld [vmem:[%s12606_s0 + $0x38] sm:$0xff]  ;;  %v9512_v16 = vld [vmem:[%s12606_s0 + $0x30] sm:$0xff] }
   0x4   :  { %v68_v9 = vrot.slane %v9491_v7, 7  ;;  %v93_v11 = vsub.f32 %v9464_v0, %v64_v3  ;;  %v91_v12 = vsub.f32 %v9469_v1, %v61_v4  ;;  %v66_v13 = vsel %vm60_vm0, %v64_v3, %v65_v5  ;;  %v9530_v28 = vld [vmem:[%s12606_s0 + $0x48] sm:$0xff]  ;;  %v9537_v32 = vld [vmem:[%s12606_s0 + $0x40] sm:$0xff] }
   0x5   :  { %v94_v17 = vsub.f32 %v9474_v2, %v66_v13  ;;  %v63_v18 = vsel %vm60_vm0, %v61_v4, %v62_v8  ;;  %v71_v19 = vrot.slane %v9507_v15, 7  ;;  %v70_v20 = vrot.slane %v9512_v16, 7  ;;  %v9547_v35 = vld [vmem:[%s12607_s1 + $0x8] sm:$0xff] }
   0x6   :  { %v255_v21 = vmul.f32 0.5, %v93_v11  ;;  %109 = vrot.lane.b32.xlu1 %v9474_v2, %s9422_s27  ;;  %105 = vrot.lane.b32.xlu0 %v9486_v6, %s9422_s27  ;;  %v92_v22 = vsub.f32 %v9486_v6, %v63_v18  ;;  %v69_v23 = vsel %vm60_vm0, %v67_v14, %v68_v9  ;;  %v253_v24 = vmul.f32 0.5, %v91_v12 }
   0x7   :  { %v95_v25 = vsub.f32 %v9498_v10, %v67_v14  ;;  %v96_v26 = vsub.f32 %v9491_v7, %v69_v23  ;;  %v72_v27 = vsel %vm60_vm0, %v70_v20, %v71_v19  ;;  %v256_v29 = vmul.f32 0.5, %v94_v17 }
   0x8   :  { %v97_v30 = vsub.f32 %v9512_v16, %v70_v20  ;;  %v74_v31 = vrot.slane %v9530_v28, 7  ;;  %8987 = vtanh.f32 %v255_v21  ;;  %v254_v33 = vmul.f32 0.5, %v92_v22 }
   0x9   :  { %v73_v34 = vrot.slane %v9537_v32, 7 }
   0xa   :  { %113 = vrot.lane.b32.xlu1 %v9491_v7, %s9422_s27  ;;  %111 = vrot.lane.b32.xlu0 %v9498_v10, %s9422_s27 }
   0xb   :  { %11 = vsyncpa [#allocation3], 0  ;;  %8989 = vtanh.f32 %v253_v24  ;;  %v257_v36 = vmul.f32 0.5, %v95_v25  ;;  %v98_v37 = vsub.f32 %v9507_v15, %v72_v27  ;;  %v9553_v38 = vld [vmem:[%s12606_s0 + $0x58] sm:$0xff]  ;;  %v9558_v39 = vld [vmem:[%s12606_s0 + $0x50] sm:$0xff]  ;;  %v164_v40 = vrot.slane %v9547_v35, 7 }
   0xc   :  { %v9564_v41 = vld [vmem:[%s12607_s1] sm:$0xff]  ;;  %v258_v42 = vmul.f32 0.5, %v96_v26  ;;  %v77_v43 = vrot.slane %v9553_v38, 7  ;;  %v76_v44 = vrot.slane %v9558_v39, 7  ;;  %8991 = vtanh.f32 %v256_v29  ;;  %v9583_v55 = vld [vmem:[%s12607_s1 + $0x10] sm:$0xff]  ;;  %v9595_v60 = vld [vmem:[%s12607_s1 + $0x38] sm:$0xff] }
   0xd   :  { %v163_v45 = vrot.slane %v9564_v41, 7  ;;  %v259_v46 = vmul.f32 0.5, %v97_v30  ;;  %v75_v47 = vsel %vm60_vm0, %v73_v34, %v74_v31  ;;  %8993 = vtanh.f32 %v254_v33  ;;  %v9590_v59 = vld [vmem:[%s12607_s1 + $0x20] sm:$0xff]  ;;  %v9606_v4 = vld [vmem:[%s12607_s1 + $0x30] sm:$0xff]  ;;  %v9636_v31 = vld [vmem:[%s12607_s1 + $0x18] sm:$0xff]  ;;  %s9424_s22 = smov 127  }
   0xe   :  { %117 = vrot.lane.b32.xlu1 %v9507_v15, %s9422_s27  ;;  %115 = vrot.lane.b32.xlu0 %v9512_v16, %s9422_s27  ;;  %v99_v48 = vsub.f32 %v9537_v32, %v73_v34  ;;  %8995 = vtanh.f32 %v257_v36  ;;  %v260_v50 = vmul.f32 0.5, %v98_v37  ;;  %v100_v52 = vsub.f32 %v9530_v28, %v75_v47  ;;  %v9626_v26 = vld [vmem:[%s12607_s1 + $0x50] sm:$0xff] }
   0xf   :  { %v165_v49 = vsel %vm60_vm0, %v163_v45, %v164_v40  ;;  %v193_v51 = vsub.f32 %v9564_v41, %v163_v45  ;;  %8997 = vtanh.f32 %v258_v42  ;;  %v78_v53 = vsel %vm60_vm0, %v76_v44, %v77_v43  ;;  %v9648_v42 = vld [vmem:[%s12607_s1 + $0x28] sm:$0xff] }
  0x10   :  { %v194_v54 = vsub.f32 %v9547_v35, %v165_v49  ;;  %8999 = vtanh.f32 %v259_v46  ;;  %v101_v56 = vsub.f32 %v9558_v39, %v76_v44  ;;  %v12615_v58 = vrot.slane %v9583_v55, 7 }
  0x11   :  { %v325_v57 = vmul.f32 0.5, %v193_v51  ;;  %v261_v61 = vmul.f32 0.5, %v99_v48  ;;  %v12614_v63 = vrot.slane %v9590_v59, 7  ;;  %v173_v3 = vrot.slane %v9595_v60, 7 }
  0x12   :  { %121 = vrot.lane.b32.xlu1 %v9530_v28, %s9422_s27  ;;  %119 = vrot.lane.b32.xlu0 %v9537_v32, %s9422_s27  ;;  %v326_v62 = vmul.f32 0.5, %v194_v54  ;;  %9001 = vtanh.f32 %v260_v50  ;;  %v195_v5 = vsub.f32 %v9583_v55, %v12615_v58  ;;  %v172_v8 = vrot.slane %v9606_v4, 7 }
  0x13   :  { %v262_v9 = vmul.f32 0.5, %v100_v52  ;;  %9003 = vtanh.f32 %v325_v57  ;;  %v197_v11 = vsub.f32 %v9590_v59, %v12614_v63  ;;  %v102_v12 = vsub.f32 %v9553_v38, %v78_v53 }
  0x14   :  { %9005 = vtanh.f32 %v326_v62  ;;  %v327_v13 = vmul.f32 0.5, %v195_v5  ;;  %v174_v14 = vsel %vm60_vm0, %v172_v8, %v173_v3  ;;  %v263_v17 = vmul.f32 0.5, %v101_v56 }
  0x15   :  { %9007 = vtanh.f32 %v261_v61  ;;  %v329_v18 = vmul.f32 0.5, %v197_v11  ;;  %v199_v19 = vsub.f32 %v9606_v4, %v172_v8  ;;  %v8988_v20 = vpop.eup %8987  ;;  %v200_v21 = vsub.f32 %v9595_v60, %v174_v14 }
  0x16   :  { %125 = vrot.lane.b32.xlu1 %v9553_v38, %s9422_s27  ;;  %123 = vrot.lane.b32.xlu0 %v9558_v39, %s9422_s27  ;;  %9009 = vtanh.f32 %v327_v13  ;;  %v264_v24 = vmul.f32 0.5, %v102_v12  ;;  %v12613_v29 = vrot.slane %v9626_v26, 7  ;;  %v409_v34 = vlaneseq }
  0x17   :  { %9011 = vtanh.f32 %v262_v9  ;;  %v331_v23 = vmul.f32 0.5, %v199_v19  ;;  %v332_v25 = vmul.f32 0.5, %v200_v21  ;;  %v9423_v46 = vmov 1966171168  }
  0x18   :  { %v8990_v22 = vpop.eup %8989  ;;  %9013 = vtanh.f32 %v329_v18  ;;  %v203_v37 = vsub.f32 %v9626_v26, %v12613_v29  ;;  %v407_v47 = vunpack.c.l.s4 %v9423_v46  ;;  %v410_v48 = vshrl.u32 %v409_v34, 7 }
  0x19   :  { %v8992_v27 = vpop.eup %8991  ;;  %9015 = vtanh.f32 %v263_v17  ;;  %v9650_v45 = vmul.f32 %v8990_v22, %v8990_v22  ;;  %v279_v54 = vmul.f32 %v8988_v20, %v8988_v20  ;;  %vm796_vm1 = vcmask 130048  }
  0x1a   :  { %207 = vrot.lane.b32.xlu1 %v9547_v35, %s9422_s27  ;;  %205 = vrot.lane.b32.xlu0 %v9564_v41, %s9422_s27  ;;  %v8994_v30 = vpop.eup %8993  ;;  %9017 = vtanh.f32 %v331_v23  ;;  %v335_v43 = vmul.f32 0.5, %v203_v37  ;;  %v408_v52 = vunpack.c.0.s8 %v407_v47  ;;  %v9663_v8 = vmul.f32 %v8992_v27, %v8992_v27 }
  0x1b   :  { %v8996_v33 = vpop.eup %8995  ;;  %9019 = vtanh.f32 %v332_v25  ;;  %12654 = vst [vmem:[#allocation5_spill] sm:$0xff] %v9650_v45  ;;  %v9656_v57 = vmul.f32 %v8994_v30, %v8994_v30  ;;  %v9694_v25 = vld [vmem:[%s12607_s1 + $0x40] sm:$0xff]  ;;  %vm806_vm2 = vcmask 128000   ;;  %vm838_vm3 = vcmask 121856  }
  0x1c   :  { %v8998_v36 = vpop.eup %8997  ;;  %9021 = vtanh.f32 %v264_v24  ;;  %v9661_v3 = vsub.s32 %v408_v52, %v410_v48  ;;  %12656 = vst [vmem:[#allocation7_spill] sm:$0xff] %v9663_v8  ;;  %v281_v9 = vmul.f32 %v8996_v33, %v8996_v33  ;;  %v9689_v24 = vld [vmem:[%s12607_s1 + $0x48] sm:$0xff]  ;;  %vm5190_vm4 = vcmask 62464  }
  0x1d   :  { %v9000_v40 = vpop.eup %8999  ;;  %9023 = vtanh.f32 %v335_v43  ;;  %12655 = vst [vmem:[#allocation6_spill] sm:$0xff] %v9656_v57  ;;  %v9665_v11 = vmul.f32 %v8998_v36, %v8998_v36  ;;  %vm5186_vm5 = vcmask 64512   ;;  %vm5211_vm6 = vcmask 56320  }
  0x1e   :  { %211 = vrot.lane.b32.xlu1 %v9636_v31, %s9422_s27  ;;  %209 = vrot.lane.b32.xlu0 %v9583_v55, %s9422_s27  ;;  %v9669_v14 = vmul.f32 %v9000_v40, %v9000_v40  ;;  %vm812_vm7 = vcmask 1045504  }
  0x1f   :  { %v9002_v44 = vpop.eup %9001 }
  0x20   :  { %v9004_v49 = vpop.eup %9003  ;;  %12658 = vst [vmem:[#allocation9_spill] sm:$0xff] %v9669_v14  ;;  %v9676_v20 = vmul.f32 %v9002_v44, %v9002_v44 }
  0x21   :  { %v9006_v50 = vpop.eup %9005  ;;  %v349_v51 = vmul.f32 %v9004_v49, %v9004_v49 }
  0x22   :  { %215 = vrot.lane.b32.xlu1 %v9648_v42, %s9422_s27  ;;  %213 = vrot.lane.b32.xlu0 %v9590_v59, %s9422_s27  ;;  %v9008_v53 = vpop.eup %9007  ;;  %v9658_v61 = vmul.f32 %v9006_v50, %v9006_v50  ;;  %12659 = vst [vmem:[#allocation10_spill] sm:$0xff] %v9676_v20 }
  0x23   :  { %v9010_v56 = vpop.eup %9009  ;;  %v397_v62 = vmul.f32 %v349_v51, %v9650_v45  ;;  %v9702_v40 = vmul.f32 %v9008_v53, %v9008_v53  ;;  %v9735_v58 = vmul.f32 %v349_v51, %v281_v9 }
  0x24   :  { %v9012_v5 = vpop.eup %9011  ;;  %v9667_v12 = vmul.f32 %v9010_v56, %v9010_v56  ;;  %v9698_v30 = vmul.f32 %v9658_v61, %v9656_v57  ;;  %v9724_v56 = vld [vmem:[%s12607_s1 + $0x58] sm:$0xff] }
  0x25   :  { %v9014_v13 = vpop.eup %9013  ;;  %v405_v17 = vcombine.high %v397_v62, %v397_v62  ;;  %v412_v18 = vrot.slane %v397_v62, %v9661_v3  ;;  %12663 = vst [vmem:[#allocation14_spill] sm:$0xff] %v9702_v40  ;;  %v9710_v48 = vmul.f32 %v9012_v5, %v9012_v5 }
  0x26   :  { %12657 = vst [vmem:[#allocation8_spill] sm:$0xff] %v9667_v12  ;;  %219 = vrot.lane.b32.xlu1 %v9595_v60, %s9422_s27  ;;  %217 = vrot.lane.b32.xlu0 %v9606_v4, %s9422_s27  ;;  %v9016_v19 = vpop.eup %9015  ;;  %v9679_v21 = vmul.f32 %v9667_v12, %v279_v54  ;;  %v9682_v22 = vmul.f32 %v9667_v12, %v281_v9 }
  0x27   :  { %v9684_v23 = vmul.f32 %v9014_v13, %v9014_v13  ;;  %v9018_v27 = vpop.eup %9017  ;;  %v419_v33 = vrot.slane %v405_v17, %v9661_v3  ;;  %v420_v34 = vcombine.high %v412_v18, %v412_v18  ;;  %v428_v36 = vrot.slane %v412_v18, %v9661_v3 }
  0x28   :  { %12660 = vst [vmem:[#allocation11_spill] sm:$0xff] %v9679_v21  ;;  %12661 = vst [vmem:[#allocation12_spill] sm:$0xff] %v9682_v22  ;;  %v9020_v37 = vpop.eup %9019  ;;  %v355_v46 = vmul.f32 %v9018_v27, %v9018_v27  ;;  %v9717_v52 = vmul.f32 %v9016_v19, %v9016_v19  ;;  %v461_v18 = vrot.slane %v9698_v30, %v9661_v3 }
  0x29   :  { %12662 = vst [vmem:[#allocation13_spill] sm:$0xff] %v9684_v23  ;;  %v9705_v43 = vmul.f32 %v9684_v23, %v279_v54  ;;  %v9708_v44 = vmul.f32 %v9684_v23, %v281_v9  ;;  %v9022_v47 = vpop.eup %9021  ;;  %v421_v49 = vcombine.high %v419_v33, %v419_v33  ;;  %v435_v50 = vrot.slane %v419_v33, %v9661_v3 }
  0x2a   :  { %223 = vrot.lane.b32.xlu1 %v9689_v24, %s9422_s27  ;;  %221 = vrot.lane.b32.xlu0 %v9694_v25, %s9422_s27  ;;  %12666 = vst [vmem:[#allocation17_spill] sm:$0xff] %v9717_v52  ;;  %v9719_v53 = vmul.f32 %v9020_v37, %v9020_v37  ;;  %v442_v62 = vrot.slane %v420_v34, %v9661_v3  ;;  %v9024_v63 = vpop.eup %9023 }
  0x2b   :  { %12664 = vst [vmem:[#allocation15_spill] sm:$0xff] %v9705_v43  ;;  %12665 = vst [vmem:[#allocation16_spill] sm:$0xff] %v9708_v44  ;;  %v450_v5 = vcombine.high %v428_v36, %v428_v36  ;;  %v449_v13 = vrot.slane %v421_v49, %v9661_v3  ;;  %v451_v17 = vcombine.high %v435_v50, %v435_v50 }
  0x2c   :  { %v399_v27 = vmul.f32 %v355_v46, %v9669_v14  ;;  %v9731_v19 = vmul.f32 %v9022_v47, %v9022_v47  ;;  %v9733_v33 = vmul.f32 %v349_v51, %v279_v54  ;;  %v452_v37 = vcombine.high %v442_v62, %v442_v62 }
  0x2d   :  { %v605_v29 = vcombine.low %v442_v62, %v450_v5  ;;  %v453_v34 = vcombine.high %v449_v13, %v449_v13  ;;  %v477_v36 = vrot.slane %v461_v18, %v9661_v3  ;;  %v9742_v49 = vmul.f32 %v9024_v63, %v9024_v63 }
  0x2e   :  { %227 = vrot.lane.b32.xlu1 %v9724_v56, %s9422_s27  ;;  %225 = vrot.lane.b32.xlu0 %v9626_v26, %s9422_s27  ;;  %v606_v47 = vcombine.low %v452_v37, %v435_v50  ;;  %v607_v44 = vcombine.low %v449_v13, %v451_v17  ;;  %v400_v54 = vmul.f32 %v9719_v53, %v9676_v20 }
  0x2f   :  { %12667 = vst [vmem:[#allocation18_spill] sm:$0xff] %v9742_v49  ;;  %v608_v62 = vcombine.low %v453_v34, %v477_v36  ;;  %v615_v51 = vrot.slane %v605_v29, %v9661_v3  ;;  %v503_v9 = vcombine.high %v399_v27, %v399_v27  ;;  %v9749_v5 = vmul.f32 %v9658_v61, %v9663_v8 }
  0x30   :  { %v9752_v43 = vmul.f32 %v355_v46, %v9702_v40  ;;  %v9755_v63 = vmul.f32 %v355_v46, %v9717_v52  ;;  %v9759_v50 = vmul.f32 %v9742_v49, %v9702_v40  ;;  %v622_v13 = vrot.slane %v606_v47, %v9661_v3 }
  0x31   :  { %v629_v17 = vrot.slane %v607_v44, %v9661_v3  ;;  %v636_v29 = vrot.slane %v608_v62, %v9661_v3  ;;  %v510_v37 = vrot.slane %v399_v27, %v9661_v3  ;;  %v517_v34 = vrot.slane %v503_v9, %v9661_v3 }
  0x32   :  { %12668 = vst [vmem:[#allocation19_spill] sm:$0xff] %v9759_v50  ;;  %v637_v23 = vcombine.low %v615_v51, %v622_v13  ;;  %v559_v22 = vrot.slane %v400_v54, %v9661_v3  ;;  %v454_v46 = vcombine.high %v9698_v30, %v9698_v30  ;;  %v469_v52 = vcombine.high %v461_v18, %v461_v18 }
  0x33   :  { %v638_v21 = vcombine.low %v629_v17, %v636_v29  ;;  %v518_v49 = vcombine.high %v510_v37, %v510_v37  ;;  %v519_v50 = vcombine.high %v517_v34, %v517_v34  ;;  %v526_v47 = vrot.slane %v510_v37, %v9661_v3 }
  0x34   :  { %v645_v44 = vrot.slane %v637_v23, %v9661_v3  ;;  %v533_v62 = vrot.slane %v517_v34, %v9661_v3  ;;  %v567_v40 = vcombine.high %v559_v22, %v559_v22  ;;  %v575_v27 = vrot.slane %v559_v22, %v9661_v3 }
  0x35   :  { %v652_v51 = vrot.slane %v638_v21, %v9661_v3  ;;  %v540_v9 = vrot.slane %v518_v49, %v9661_v3  ;;  %v547_v13 = vrot.slane %v519_v50, %v9661_v3  ;;  %v468_v30 = vrot.slane %v454_v46, %v9661_v3 }
  0x36   :  { %v589_v18 = vrot.slane %v567_v40, %v9661_v3  ;;  %v491_v17 = vrot.slane %v469_v52, %v9661_v3  ;;  %v499_v29 = vcombine.high %v477_v36, %v477_v36  ;;  %v552_v37 = vcombine.high %v400_v54, %v400_v54 }
  0x37   :  { %v653_v23 = vcombine.low %v645_v44, %v652_v51  ;;  %v8920_v8 = vcombine.high %v526_v47, %v540_v9  ;;  %v704_v34 = vcombine.low %v533_v62, %v547_v13  ;;  %v8921_v20 = vcombine.high %v533_v62, %v547_v13 }
  0x38   :  { %v706_v57 = vcombine.low %v575_v27, %v589_v18  ;;  %v470_v22 = vcombine.high %v468_v30, %v468_v30  ;;  %v484_v21 = vrot.slane %v468_v30, %v9661_v3  ;;  %v501_v14 = vcombine.high %v491_v17, %v491_v17 }
  0x39   :  { %v9781_v49 = vsel %vm796_vm1, %v653_v23, 0.0  ;;  %v713_v50 = vrot.slane %v8920_v8, %v9661_v3  ;;  %v720_v40 = vrot.slane %v704_v34, %v9661_v3  ;;  %v727_v52 = vrot.slane %v8921_v20, %v9661_v3 }
  0x3a   :  { %v734_v36 = vrot.slane %v706_v57, %v9661_v3  ;;  %v498_v54 = vrot.slane %v470_v22, %v9661_v3  ;;  %v500_v46 = vcombine.high %v484_v21, %v484_v21  ;;  %v654_v47 = vcombine.low %v491_v17, %v499_v29 }
  0x3b   :  { %v735_v44 = vcombine.low %v713_v50, %v720_v40  ;;  %v655_v62 = vcombine.low %v501_v14, %v484_v21  ;;  %v566_v51 = vrot.slane %v552_v37, %v9661_v3  ;;  %v8922_v13 = vcombine.high %v575_v27, %v589_v18 }
  0x3c   :  { %v736_v30 = vcombine.low %v727_v52, %v734_v36  ;;  %v502_v23 = vcombine.high %v498_v54, %v498_v54  ;;  %v656_v12 = vcombine.low %v498_v54, %v500_v46  ;;  %v664_v8 = vrot.slane %v654_v47, %v9661_v3 }
  0x3d   :  { %v743_v34 = vrot.slane %v735_v44, %v9661_v3  ;;  %v671_v20 = vrot.slane %v655_v62, %v9661_v3  ;;  %v568_v45 = vcombine.high %v566_v51, %v566_v51  ;;  %v582_v57 = vrot.slane %v566_v51, %v9661_v3 }
  0x3e   :  { %v750_v22 = vrot.slane %v736_v30, %v9661_v3  ;;  %v657_v17 = vcombine.low %v502_v23, %v540_v9  ;;  %v678_v14 = vrot.slane %v656_v12, %v9661_v3  ;;  %v761_v29 = vrot.slane %v8922_v13, %v9661_v3 }
  0x3f   :  { %v686_v27 = vcombine.low %v664_v8, %v671_v20  ;;  %v596_v18 = vrot.slane %v568_v45, %v9661_v3  ;;  %v899_v37 = vcombine.high %v9733_v33, %v9733_v33  ;;  %v906_v21 = vrot.slane %v9733_v33, %v9661_v3 }
  0x40   :  { %v751_v50 = vcombine.low %v743_v34, %v750_v22  ;;  %v685_v40 = vrot.slane %v657_v17, %v9661_v3  ;;  %v955_v9 = vrot.slane %v9749_v5, %v9661_v3  ;;  %v948_v12 = vcombine.high %v9749_v5, %v9749_v5 }
  0x41   :  { %v694_v52 = vrot.slane %v686_v27, %v9661_v3  ;;  %v753_v36 = vcombine.low %v582_v57, %v596_v18  ;;  %v8923_v45 = vcombine.high %v582_v57, %v596_v18  ;;  %v913_v54 = vrot.slane %v899_v37, %v9661_v3 }
  0x42   :  { %v803_v46 = vsel %vm796_vm1, %v751_v50, 0.0  ;;  %v687_v47 = vcombine.low %v678_v14, %v685_v40  ;;  %v914_v33 = vcombine.high %v906_v21, %v906_v21  ;;  %v922_v44 = vrot.slane %v906_v21, %v9661_v3 }
  0x43   :  { %v768_v62 = vrot.slane %v753_v36, %v9661_v3  ;;  %v775_v51 = vrot.slane %v8923_v45, %v9661_v3  ;;  %v915_v13 = vcombine.high %v913_v54, %v913_v54  ;;  %v929_v30 = vrot.slane %v913_v54, %v9661_v3 }
  0x44   :  { %v701_v5 = vrot.slane %v687_v47, %v9661_v3  ;;  %v936_v23 = vrot.slane %v914_v33, %v9661_v3  ;;  %v944_v8 = vcombine.high %v922_v44, %v922_v44  ;;  %v971_v34 = vrot.slane %v955_v9, %v9661_v3 }
  0x45   :  { %v776_v20 = vcombine.low %v761_v29, %v768_v62  ;;  %v790_v57 = vrot.slane %v775_v51, %v9661_v3  ;;  %v943_v22 = vrot.slane %v915_v13, %v9661_v3  ;;  %v945_v17 = vcombine.high %v929_v30, %v929_v30 }
  0x46   :  { %v702_v14 = vcombine.low %v694_v52, %v701_v5  ;;  %v946_v27 = vcombine.high %v936_v23, %v936_v23  ;;  %v1099_v18 = vcombine.low %v936_v23, %v944_v8  ;;  %v962_v37 = vrot.slane %v948_v12, %v9661_v3 }
  0x47   :  { %v783_v21 = vrot.slane %v776_v20, %v9661_v3  ;;  %v947_v50 = vcombine.high %v943_v22, %v943_v22  ;;  %v1101_v40 = vcombine.low %v943_v22, %v945_v17  ;;  %v963_v36 = vcombine.high %v955_v9, %v955_v9 }
  0x48   :  { %v800_v45 = vsel %vm796_vm1, %v702_v14, 0.0  ;;  %v1100_v54 = vcombine.low %v946_v27, %v929_v30  ;;  %v1109_v29 = vrot.slane %v1099_v18, %v9661_v3  ;;  %v964_v47 = vcombine.high %v962_v37, %v962_v37 }
  0x49   :  { %v791_v33 = vcombine.low %v783_v21, %v790_v57  ;;  %v1102_v44 = vcombine.low %v947_v50, %v971_v34  ;;  %v1123_v62 = vrot.slane %v1101_v40, %v9661_v3  ;;  %v978_v52 = vrot.slane %v962_v37, %v9661_v3 }
  0x4a   :  { %v1116_v51 = vrot.slane %v1100_v54, %v9661_v3  ;;  %v985_v12 = vrot.slane %v963_v36, %v9661_v3  ;;  %v992_v13 = vrot.slane %v964_v47, %v9661_v3  ;;  %v993_v5 = vcombine.high %v971_v34, %v971_v34 }
  0x4b   :  { %v807_v9 = vsel %vm806_vm2, %v791_v33, 0.0  ;;  %v1130_v30 = vrot.slane %v1102_v44, %v9661_v3  ;;  %v994_v23 = vcombine.high %v978_v52, %v978_v52  ;;  %v1004_v8 = vrot.slane %v9752_v43, %v9661_v3 }
  0x4c   :  { %v1131_v20 = vcombine.low %v1109_v29, %v1116_v51  ;;  %v995_v57 = vcombine.high %v985_v12, %v985_v12  ;;  %v996_v22 = vcombine.high %v992_v13, %v992_v13  ;;  %v1148_v17 = vcombine.low %v985_v12, %v993_v5 }
  0x4d   :  { %798 = vadd.xlane.f32.xlu0 %v9781_v49  ;;  %v1132_v14 = vcombine.low %v1123_v62, %v1130_v30  ;;  %v1012_v27 = vcombine.high %v1004_v8, %v1004_v8  ;;  %v1150_v18 = vcombine.low %v992_v13, %v994_v23  ;;  %v894_v34 = vmul.f32 %v9719_v53, %v9710_v48 }
  0x4e   :  { %v1139_v37 = vrot.slane %v1131_v20, %v9661_v3  ;;  %v1149_v21 = vcombine.low %v995_v57, %v978_v52  ;;  %v1158_v50 = vrot.slane %v1148_v17, %v9661_v3  ;;  %v997_v40 = vcombine.high %v9752_v43, %v9752_v43 }
  0x4f   :  { %v1146_v49 = vrot.slane %v1132_v14, %v9661_v3  ;;  %v1034_v36 = vrot.slane %v1012_v27, %v9661_v3  ;;  %v1172_v54 = vrot.slane %v1150_v18, %v9661_v3  ;;  %v1020_v29 = vrot.slane %v1004_v8, %v9661_v3 }
  0x50   :  { %v1165_v47 = vrot.slane %v1149_v21, %v9661_v3  ;;  %v1011_v33 = vrot.slane %v997_v40, %v9661_v3  ;;  %v1053_v44 = vrot.slane %v894_v34, %v9661_v3  ;;  %v1046_v62 = vcombine.high %v894_v34, %v894_v34 }
  0x51   :  { %804 = vadd.xlane.f32.xlu0 %v803_v46  ;;  %v1147_v52 = vcombine.low %v1139_v37, %v1146_v49  ;;  %v1151_v51 = vcombine.low %v996_v22, %v1034_v36  ;;  %v8924_v43 = vcombine.high %v1020_v29, %v1034_v36  ;;  %v1382_v12 = vmul.f32 %v9658_v61, %v9665_v11 }
  0x52   :  { %801 = vadd.xlane.f32.xlu1 %v800_v45  ;;  %v1180_v13 = vcombine.low %v1158_v50, %v1165_v47  ;;  %v1013_v5 = vcombine.high %v1011_v33, %v1011_v33  ;;  %v1027_v30 = vrot.slane %v1011_v33, %v9661_v3  ;;  %v1061_v23 = vcombine.high %v1053_v44, %v1053_v44 }
  0x53   :  { %v1290_v46 = vsel %vm796_vm1, %v1147_v52, 0.0  ;;  %v1179_v8 = vrot.slane %v1151_v51, %v9661_v3  ;;  %v1069_v20 = vrot.slane %v1053_v44, %v9661_v3  ;;  %v1207_v57 = vrot.slane %v8924_v43, %v9661_v3 }
  0x54   :  { %v1188_v45 = vrot.slane %v1180_v13, %v9661_v3  ;;  %v1041_v22 = vrot.slane %v1013_v5, %v9661_v3  ;;  %v1083_v61 = vrot.slane %v1061_v23, %v9661_v3  ;;  %v1060_v17 = vrot.slane %v1046_v62, %v9661_v3 }
  0x55   :  { %808 = vadd.xlane.f32.xlu0 %v807_v9  ;;  %v1181_v14 = vcombine.low %v1172_v54, %v1179_v8  ;;  %v1438_v27 = vcombine.high %v1382_v12, %v1382_v12  ;;  %v1445_v18 = vrot.slane %v1382_v12, %v9661_v3  ;;  %v9859_v34 = vrot.slane %v9755_v63, %v9661_v3 }
  0x56   :  { %1291 = vadd.xlane.f32.xlu1 %v1290_v46  ;;  %v1198_v37 = vcombine.low %v1027_v30, %v1041_v22  ;;  %v8925_v21 = vcombine.high %v1027_v30, %v1041_v22  ;;  %v1200_v9 = vcombine.low %v1069_v20, %v1083_v61  ;;  %v1062_v50 = vcombine.high %v1060_v17, %v1060_v17 }
  0x57   :  { %v1195_v40 = vrot.slane %v1181_v14, %v9661_v3  ;;  %v1076_v49 = vrot.slane %v1060_v17, %v9661_v3  ;;  %v8926_v36 = vcombine.high %v1069_v20, %v1083_v61  ;;  %v1452_v29 = vrot.slane %v1438_v27, %v9661_v3 }
  0x58   :  { %v1214_v54 = vrot.slane %v1198_v37, %v9661_v3  ;;  %v1221_v47 = vrot.slane %v8925_v21, %v9661_v3  ;;  %v1228_v33 = vrot.slane %v1200_v9, %v9661_v3  ;;  %v1090_v44 = vrot.slane %v1062_v50, %v9661_v3 }
  0x59   :  { %v1196_v62 = vcombine.low %v1188_v45, %v1195_v40  ;;  %v1255_v52 = vrot.slane %v8926_v36, %v9661_v3  ;;  %v1453_v51 = vcombine.high %v1445_v18, %v1445_v18  ;;  %v1454_v43 = vcombine.high %v1452_v29, %v1452_v29 }
  0x5a   :  { %v1229_v12 = vcombine.low %v1207_v57, %v1214_v54  ;;  %v1230_v13 = vcombine.low %v1221_v47, %v1228_v33  ;;  %v1247_v5 = vcombine.low %v1076_v49, %v1090_v44  ;;  %v8927_v30 = vcombine.high %v1076_v49, %v1090_v44 }
  0x5b   :  { %v1293_v23 = vsel %vm796_vm1, %v1196_v62, 0.0  ;;  %v1461_v46 = vrot.slane %v1445_v18, %v9661_v3  ;;  %v1468_v8 = vrot.slane %v1452_v29, %v9661_v3  ;;  %v1475_v20 = vrot.slane %v1453_v51, %v9661_v3 }
  0x5c   :  { %1294 = vadd.xlane.f32.xlu0 %v1293_v23  ;;  %v1237_v22 = vrot.slane %v1229_v12, %v9661_v3  ;;  %v1244_v45 = vrot.slane %v1230_v13, %v9661_v3  ;;  %v1262_v61 = vrot.slane %v1247_v5, %v9661_v3  ;;  %v1269_v57 = vrot.slane %v8927_v30, %v9661_v3 }
  0x5d   :  { %v1482_v17 = vrot.slane %v1454_v43, %v9661_v3  ;;  %v1483_v14 = vcombine.high %v1461_v46, %v1461_v46  ;;  %v1484_v27 = vcombine.high %v1468_v8, %v1468_v8  ;;  %v1485_v37 = vcombine.high %v1475_v20, %v1475_v20 }
  0x5e   :  { %v1245_v21 = vcombine.low %v1237_v22, %v1244_v45  ;;  %v1270_v18 = vcombine.low %v1255_v52, %v1262_v61  ;;  %v1284_v9 = vrot.slane %v1269_v57, %v9661_v3  ;;  %v1502_v50 = vcombine.high %v9859_v34, %v9859_v34 }
  0x5f   :  { %v1486_v40 = vcombine.high %v1482_v17, %v1482_v17  ;;  %v1638_v49 = vcombine.low %v1475_v20, %v1483_v14  ;;  %v1639_v36 = vcombine.low %v1485_v37, %v1468_v8  ;;  %v1640_v29 = vcombine.low %v1482_v17, %v1484_v27 }
  0x60   :  { %v1296_v54 = vsel %vm796_vm1, %v1245_v21, 0.0  ;;  %v1277_v47 = vrot.slane %v1270_v18, %v9661_v3  ;;  %v1524_v33 = vrot.slane %v1502_v50, %v9661_v3  ;;  %v1389_v52 = vcombine.high %v9735_v58, %v9735_v58 }
  0x61   :  { %1297 = vadd.xlane.f32.xlu1 %v1296_v54  ;;  %v1648_v44 = vrot.slane %v1638_v49, %v9661_v3  ;;  %v1655_v62 = vrot.slane %v1639_v36, %v9661_v3  ;;  %v1662_v12 = vrot.slane %v1640_v29, %v9661_v3  ;;  %v9891_v13 = vmul.f32 %v9719_v53, %v9731_v19 }
  0x62   :  { %v1285_v51 = vcombine.low %v1277_v47, %v1284_v9  ;;  %v1641_v43 = vcombine.low %v1486_v40, %v1524_v33  ;;  %v1396_v30 = vrot.slane %v9735_v58, %v9661_v3  ;;  %v1403_v23 = vrot.slane %v1389_v52, %v9661_v3 }
  0x63   :  { %v1670_v5 = vcombine.low %v1648_v44, %v1655_v62  ;;  %v1543_v22 = vrot.slane %v9891_v13, %v9661_v3  ;;  %v1487_v45 = vcombine.high %v9755_v63, %v9755_v63 }
  0x64   :  { %v1299_v8 = vsel %vm806_vm2, %v1285_v51, 0.0  ;;  %v1669_v20 = vrot.slane %v1641_v43, %v9661_v3  ;;  %v1404_v61 = vcombine.high %v1396_v30, %v1396_v30  ;;  %v1405_v53 = vcombine.high %v1403_v23, %v1403_v23 }
  0x65   :  { %1300 = vadd.xlane.f32.xlu0 %v1299_v8  ;;  %v1678_v17 = vrot.slane %v1670_v5, %v9661_v3  ;;  %v1412_v58 = vrot.slane %v1396_v30, %v9661_v3  ;;  %v1419_v14 = vrot.slane %v1403_v23, %v9661_v3  ;;  %v1551_v18 = vcombine.high %v1543_v22, %v1543_v22 }
  0x66   :  { %v1671_v57 = vcombine.low %v1662_v12, %v1669_v20  ;;  %v1426_v27 = vrot.slane %v1404_v61, %v9661_v3  ;;  %v1433_v37 = vrot.slane %v1405_v53, %v9661_v3  ;;  %v1501_v9 = vrot.slane %v1487_v45, %v9661_v3 }
  0x67   :  { %v1434_v63 = vcombine.high %v1412_v58, %v1412_v58  ;;  %v1435_v50 = vcombine.high %v1419_v14, %v1419_v14  ;;  %v9912_v62 = vrot.slane %v1543_v22, %v9661_v3  ;;  %v9915_v52 = vrot.slane %v1551_v18, %v9661_v3 }
  0x68   :  { %v1685_v21 = vrot.slane %v1671_v57, %v9661_v3  ;;  %v1436_v40 = vcombine.high %v1426_v27, %v1426_v27  ;;  %v1437_v49 = vcombine.high %v1433_v37, %v1433_v37  ;;  %v1503_v51 = vcombine.high %v1501_v9, %v1501_v9 }
  0x69   :  { %v1589_v29 = vcombine.low %v1426_v27, %v1434_v63  ;;  %v1591_v47 = vcombine.low %v1433_v37, %v1435_v50  ;;  %v1510_v23 = vrot.slane %v9859_v34, %v9661_v3  ;;  %v1690_v45 = vcombine.low %v9912_v62, %v9915_v52 }
  0x6a   :  { %v9909_v36 = vcombine.low %v1678_v17, %v1685_v21  ;;  %v1590_v54 = vcombine.low %v1436_v40, %v1419_v14  ;;  %v1592_v44 = vcombine.low %v1437_v49, %v1461_v46  ;;  %v1517_v46 = vrot.slane %v1501_v9, %v9661_v3 }
  0x6b   :  { %v1599_v43 = vrot.slane %v1589_v29, %v9661_v3  ;;  %v1613_v5 = vrot.slane %v1591_v47, %v9661_v3  ;;  %v1531_v22 = vrot.slane %v1503_v51, %v9661_v3  ;;  %v8928_v61 = vcombine.high %v1510_v23, %v1524_v33 }
  0x6c   :  { %v1606_v12 = vrot.slane %v1590_v54, %v9661_v3  ;;  %v1620_v30 = vrot.slane %v1592_v44, %v9661_v3  ;;  %v1718_v34 = vrot.slane %v1690_v45, %v9661_v3 }
  0x6d   :  { %v1688_v17 = vcombine.low %v1517_v46, %v1531_v22  ;;  %v8929_v58 = vcombine.high %v1517_v46, %v1531_v22  ;;  %v1697_v14 = vrot.slane %v8928_v61, %v9661_v3 }
  0x6e   :  { %v1621_v8 = vcombine.low %v1599_v43, %v1606_v12  ;;  %v1622_v20 = vcombine.low %v1613_v5, %v1620_v30 }
  0x6f   :  { %v1704_v18 = vrot.slane %v1688_v17, %v9661_v3  ;;  %v1711_v9 = vrot.slane %v8929_v58, %v9661_v3 }
  0x70   :  { %v1629_v53 = vrot.slane %v1621_v8, %v9661_v3  ;;  %v1636_v57 = vrot.slane %v1622_v20, %v9661_v3 }
  0x71   :  { %v1719_v63 = vcombine.low %v1697_v14, %v1704_v18  ;;  %v1720_v33 = vcombine.low %v1711_v9, %v1718_v34 }
  0x72   :  { %v9931_v21 = vcombine.low %v1629_v53, %v1636_v57 }
  0x73   :  { %v1727_v49 = vrot.slane %v1719_v63, %v9661_v3  ;;  %v1734_v29 = vrot.slane %v1720_v33, %v9661_v3 }
  0x74   :  { %v108_v27 = vpop.permute.xlu1 %107  ;;  %v104_v37 = vpop.permute.xlu0 %103 }
  0x75   :  { %v9937_v54 = vcombine.low %v1727_v49, %v1734_v29  ;;  %v141_v12 = vsub.f32 %v9464_v0, %v108_v27  ;;  %v139_v23 = vsub.f32 %v9469_v1, %v104_v37 }
  0x77   :  { %v291_v20 = vmul.f32 0.5, %v141_v12  ;;  %v289_v53 = vmul.f32 0.5, %v139_v23 }
  0x78   :  { %v110_v50 = vpop.permute.xlu1 %109  ;;  %v106_v40 = vpop.permute.xlu0 %105 }
  0x79   :  { %v140_v46 = vsub.f32 %v9486_v6, %v106_v40  ;;  %v142_v8 = vsub.f32 %v9474_v2, %v110_v50  ;;  %9025 = vtanh.f32 %v291_v20 }
  0x7a   :  { %9027 = vtanh.f32 %v289_v53 }
  0x7b   :  { %v290_v57 = vmul.f32 0.5, %v140_v46  ;;  %v292_v17 = vmul.f32 0.5, %v142_v8 }
  0x7c   :  { %v114_v47 = vpop.permute.xlu1 %113  ;;  %v112_v44 = vpop.permute.xlu0 %111 }
  0x7d   :  { %v144_v22 = vsub.f32 %v9491_v7, %v114_v47  ;;  %v143_v58 = vsub.f32 %v9498_v10, %v112_v44  ;;  %9029 = vtanh.f32 %v290_v57 }
  0x7e   :  { %9031 = vtanh.f32 %v292_v17 }
  0x7f   :  { %v294_v0 = vmul.f32 0.5, %v144_v22  ;;  %v293_v7 = vmul.f32 0.5, %v143_v58 }
  0x80   :  { %v118_v51 = vpop.permute.xlu1 %117  ;;  %v116_v43 = vpop.permute.xlu0 %115 }
  0x81   :  { %v146_v14 = vsub.f32 %v9507_v15, %v118_v51  ;;  %9033 = vtanh.f32 %v294_v0  ;;  %v145_v10 = vsub.f32 %v9512_v16, %v116_v43 }
  0x83   :  { %v296_v18 = vmul.f32 0.5, %v146_v14  ;;  %v295_v40 = vmul.f32 0.5, %v145_v10 }
  0x84   :  { %v122_v5 = vpop.permute.xlu1 %121  ;;  %v120_v30 = vpop.permute.xlu0 %119 }
  0x85   :  { %v147_v49 = vsub.f32 %v9537_v32, %v120_v30 }
  0x86   :  { %v9026_v32 = vpop.eup %9025 }
  0x87   :  { %v9028_v8 = vpop.eup %9027 }
  0x88   :  { %v126_v45 = vpop.permute.xlu1 %125  ;;  %v124_v61 = vpop.permute.xlu0 %123 }
  0x89   :  { %v150_v51 = vsub.f32 %v9553_v38, %v126_v45 }
  0x8a   :  { %v9030_v20 = vpop.eup %9029 }
  0x8b   :  { %v300_v22 = vmul.f32 0.5, %v150_v51  ;;  %v9032_v53 = vpop.eup %9031 }
  0x8c   :  { %v208_v34 = vpop.permute.xlu1 %207  ;;  %v206_v1 = vpop.permute.xlu0 %205 }
  0x8d   :  { %v242_v6 = vsub.f32 %v9547_v35, %v208_v34  ;;  %v241_v2 = vsub.f32 %v9564_v41, %v206_v1  ;;  %v148_v35 = vsub.f32 %v9530_v28, %v122_v5  ;;  %v297_v28 = vmul.f32 0.5, %v147_v49 }
  0x8e   :  { %v149_v5 = vsub.f32 %v9558_v39, %v124_v61  ;;  %v9034_v61 = vpop.eup %9033 }
  0x8f   :  { %v362_v27 = vmul.f32 0.5, %v242_v6  ;;  %v361_v37 = vmul.f32 0.5, %v241_v2 }
  0x90   :  { %v212_v9 = vpop.permute.xlu1 %211  ;;  %v210_v63 = vpop.permute.xlu0 %209  ;;  %v299_v57 = vmul.f32 0.5, %v149_v5 }
  0x91   :  { %9035 = vtanh.f32 %v362_v27  ;;  %v244_v15 = vsub.f32 %v9636_v31, %v212_v9  ;;  %v243_v33 = vsub.f32 %v9583_v55, %v210_v63  ;;  %v298_v31 = vmul.f32 0.5, %v148_v35 }
  0x92   :  { %9037 = vtanh.f32 %v361_v37  ;;  %v1536_v35 = vcombine.high %v9891_v13, %v9891_v13 }
  0x93   :  { %9039 = vtanh.f32 %v293_v7  ;;  %v364_v41 = vmul.f32 0.5, %v244_v15  ;;  %v363_v50 = vmul.f32 0.5, %v243_v33  ;;  %v9965_v7 = vmul.f32 %v9028_v8, %v9028_v8 }
  0x94   :  { %9041 = vtanh.f32 %v296_v18  ;;  %v216_v29 = vpop.permute.xlu1 %215  ;;  %v214_v47 = vpop.permute.xlu0 %213  ;;  %v316_v15 = vmul.f32 %v9032_v53, %v9032_v53 }
  0x95   :  { %9043 = vtanh.f32 %v364_v41  ;;  %v246_v16 = vsub.f32 %v9648_v42, %v216_v29  ;;  %v245_v44 = vsub.f32 %v9590_v59, %v214_v47  ;;  %v315_v29 = vmul.f32 %v9026_v32, %v9026_v32 }
  0x96   :  { %9045 = vtanh.f32 %v363_v50  ;;  %v9977_v50 = vmul.f32 %v9034_v61, %v9034_v61 }
  0x97   :  { %v366_v43 = vmul.f32 0.5, %v246_v16  ;;  %v365_v12 = vmul.f32 0.5, %v245_v44  ;;  %9047 = vtanh.f32 %v295_v40 }
  0x98   :  { %v220_v23 = vpop.permute.xlu1 %219  ;;  %v218_v46 = vpop.permute.xlu0 %217 }
  0x99   :  { %9049 = vtanh.f32 %v366_v43  ;;  %v248_v30 = vsub.f32 %v9595_v60, %v220_v23  ;;  %v247_v42 = vsub.f32 %v9606_v4, %v218_v46  ;;  %v9961_v4 = vmul.f32 %v9030_v20, %v9030_v20 }
  0x9a   :  { %9051 = vtanh.f32 %v365_v12  ;;  %v1550_v46 = vrot.slane %v1536_v35, %v9661_v3 }
  0x9b   :  { %9053 = vtanh.f32 %v298_v31  ;;  %v368_v38 = vmul.f32 0.5, %v248_v30  ;;  %v367_v45 = vmul.f32 0.5, %v247_v42 }
  0x9c   :  { %9055 = vtanh.f32 %v297_v28  ;;  %v224_v17 = vpop.permute.xlu1 %223  ;;  %v222_v39 = vpop.permute.xlu0 %221 }
  0x9d   :  { %9057 = vtanh.f32 %v368_v38  ;;  %v250_v58 = vsub.f32 %v9689_v24, %v224_v17  ;;  %v249_v60 = vsub.f32 %v9694_v25, %v222_v39 }
  0x9e   :  { %v9036_v0 = vpop.eup %9035  ;;  %9059 = vtanh.f32 %v367_v45 }
  0x9f   :  { %v9038_v14 = vpop.eup %9037  ;;  %9061 = vtanh.f32 %v300_v22  ;;  %v9963_v34 = vmul.f32 %v9036_v0, %v9036_v0  ;;  %v370_v1 = vmul.f32 0.5, %v250_v58  ;;  %v369_v6 = vmul.f32 0.5, %v249_v60 }
  0xa0   :  { %v9040_v2 = vpop.eup %9039  ;;  %9063 = vtanh.f32 %v299_v57  ;;  %v9967_v27 = vmul.f32 %v9038_v14, %v9038_v14  ;;  %v228_v37 = vpop.permute.xlu1 %227  ;;  %v1552_v57 = vcombine.high %v1550_v46, %v1550_v46 }
  0xa1   :  { %v226_v24 = vpop.permute.xlu0 %225  ;;  %v9042_v18 = vpop.eup %9041  ;;  %9065 = vtanh.f32 %v370_v1  ;;  %v252_v25 = vsub.f32 %v9724_v56, %v228_v37  ;;  %v602_v9 = vmul.f32 %v9963_v34, %v9961_v4  ;;  %v9982_v47 = vmul.f32 %v9040_v2, %v9040_v2 }
  0xa2   :  { %v251_v10 = vsub.f32 %v9626_v26, %v226_v24  ;;  %v9044_v63 = vpop.eup %9043  ;;  %9067 = vtanh.f32 %v369_v6  ;;  %v601_v33 = vmul.f32 %v9967_v27, %v9965_v7  ;;  %v1096_v13 = vmul.f32 %v9963_v34, %v316_v15 }
  0xa3   :  { %v9046_v41 = vpop.eup %9045  ;;  %v9979_v40 = vmul.f32 %v9044_v63, %v9044_v63  ;;  %v372_v56 = vmul.f32 0.5, %v252_v25  ;;  %828 = vrot.lane.b32.xlu0 %v602_v9, %s9424_s22  ;;  %v1566_v1 = vrot.slane %v1550_v46, %v9661_v3  ;;  %v1580_v25 = vrot.slane %v1552_v57, %v9661_v3 }
  0xa4   :  { %v371_v49 = vmul.f32 0.5, %v251_v10  ;;  %v9984_v16 = vmul.f32 %v9046_v41, %v9046_v41  ;;  %826 = vrot.lane.b32.xlu1 %v601_v33, %s9424_s22  ;;  %v9048_v44 = vpop.eup %9047  ;;  %v10029_v10 = vmul.f32 %v9042_v18, %v9042_v18 }
  0xa5   :  { %9069 = vtanh.f32 %v372_v56  ;;  %v9989_v31 = vmul.f32 %v9979_v40, %v316_v15  ;;  %v9993_v51 = vmul.f32 %v9979_v40, %v9977_v50  ;;  %v10022_v39 = vmul.f32 %v9048_v44, %v9048_v44 }
  0xa6   :  { %v9050_v43 = vpop.eup %9049  ;;  %9071 = vtanh.f32 %v371_v49  ;;  %v9996_v12 = vmul.f32 %v9984_v16, %v315_v29  ;;  %v10000_v28 = vmul.f32 %v9984_v16, %v9982_v47 }
  0xa7   :  { %v9052_v5 = vpop.eup %9051  ;;  %v10002_v23 = vmul.f32 %v9050_v43, %v9050_v43  ;;  %1319 = vrot.lane.b32.xlu0 %v1096_v13, %s9424_s22  ;;  %v8930_v43 = vcombine.high %v9912_v62, %v9915_v52  ;;  %v8931_v62 = vcombine.high %v1566_v1, %v1580_v25 }
  0xa8   :  { %v9054_v32 = vpop.eup %9053  ;;  %v10006_v30 = vmul.f32 %v9052_v5, %v9052_v5  ;;  %v1737_v5 = vcombine.low %v1566_v1, %v1580_v25  ;;  %v1783_v1 = vsel %vm796_vm1, %v9909_v36, 0.0  ;;  %v1585_v36 = vmul.f32 %v9967_v27, %v9982_v47 }
  0xa9   :  { %v9056_v42 = vpop.eup %9055  ;;  %v10009_v8 = vmul.f32 %v10002_v23, %v316_v15  ;;  %v10013_v20 = vmul.f32 %v10002_v23, %v9977_v50  ;;  %v322_v2 = vmul.f32 %v9054_v32, %v9054_v32  ;;  %v1745_v52 = vrot.slane %v8930_v43, %v9661_v3 }
  0xaa   :  { %v9058_v22 = vpop.eup %9057  ;;  %v10016_v38 = vmul.f32 %v10006_v30, %v315_v29  ;;  %v10020_v45 = vmul.f32 %v10006_v30, %v9982_v47  ;;  %v321_v9 = vmul.f32 %v9056_v42, %v9056_v42  ;;  %v9395_v47 = vld [vmem:[%s12607_s1 + $0x18] sm:$0xff] }
  0xab   :  { %12669 = vst [vmem:[#allocation20_spill] sm:$0xff] %v10009_v8  ;;  %12670 = vst [vmem:[#allocation21_spill] sm:$0xff] %v10013_v20  ;;  %v9060_v53 = vpop.eup %9059  ;;  %v392_v0 = vmul.f32 %v9058_v22, %v9058_v22  ;;  %v1095_v22 = vmul.f32 %v9967_v27, %v315_v29 }
  0xac   :  { %12671 = vst [vmem:[#allocation22_spill] sm:$0xff] %v10020_v45  ;;  %v9062_v17 = vpop.eup %9061  ;;  %v391_v61 = vmul.f32 %v9060_v53, %v9060_v53 }
  0xad   :  { %v9064_v58 = vpop.eup %9063  ;;  %v324_v37 = vmul.f32 %v9062_v17, %v9062_v17  ;;  %v604_v56 = vmul.f32 %v392_v0, %v10029_v10  ;;  %v1752_v17 = vrot.slane %v1737_v5, %v9661_v3  ;;  %v1098_v29 = vmul.f32 %v392_v0, %v322_v2 }
  0xae   :  { %v9066_v60 = vpop.eup %9065  ;;  %v603_v14 = vmul.f32 %v391_v61, %v10022_v39  ;;  %v323_v63 = vmul.f32 %v9064_v58, %v9064_v58  ;;  %v1097_v58 = vmul.f32 %v391_v61, %v321_v9 }
  0xaf   :  { %v9068_v6 = vpop.eup %9067  ;;  %v10026_v24 = vmul.f32 %v9066_v60, %v9066_v60  ;;  %v1759_v60 = vrot.slane %v8931_v62, %v9661_v3  ;;  %v1588_v5 = vmul.f32 %v392_v0, %v324_v37  ;;  %v9396_v0 = vld [vmem:[%s12607_s1 + $0x40] sm:$0xff] }
  0xb0   :  { %v10031_v15 = vmul.f32 %v9068_v6, %v9068_v6  ;;  %830 = vrot.lane.b32.xlu1 %v603_v14, %s9424_s22  ;;  %v1760_v14 = vcombine.low %v1745_v52, %v1752_v17  ;;  %v1587_v43 = vmul.f32 %v391_v61, %v323_v63  ;;  %v167_v61 = vrot.slane %v9395_v47, 7  ;;  %v9397_v52 = vld [vmem:[%s12607_s1 + $0x48] sm:$0xff] }
  0xb1   :  { %v10035_v33 = vmul.f32 %v10026_v24, %v322_v2  ;;  %v10038_v35 = vmul.f32 %v10026_v24, %v324_v37  ;;  %v176_v17 = vrot.slane %v9397_v52, 7 }
  0xb2   :  { %v9070_v41 = vpop.eup %9069  ;;  %v10042_v49 = vmul.f32 %v10031_v15, %v321_v9  ;;  %v10045_v18 = vmul.f32 %v10031_v15, %v323_v63  ;;  %v1767_v6 = vrot.slane %v1760_v14, %v9661_v3 }
  0xb3   :  { %v9072_v44 = vpop.eup %9071  ;;  %v10047_v13 = vmul.f32 %v9070_v41, %v9070_v41  ;;  %v1774_v41 = vrot.slane %v1759_v60, %v9661_v3  ;;  %v12681_v60 = vrot.slane %v9583_v55, 7 }
  0xb4   :  { %v10051_v46 = vmul.f32 %v9072_v44, %v9072_v44  ;;  %832 = vrot.lane.b32.xlu1 %v604_v56, %s9424_s22  ;;  %v1786_v44 = vsel %vm796_vm1, %v9937_v54, 0.0 }
  0xb5   :  { %v10055_v32 = vmul.f32 %v10047_v13, %v322_v2  ;;  %v10058_v42 = vmul.f32 %v10047_v13, %v324_v37  ;;  %v1775_v25 = vcombine.low %v1767_v6, %v1774_v41  ;;  %v1780_v2 = vsel %vm796_vm1, %v9931_v21, 0.0 }
  0xb6   :  { %v10062_v53 = vmul.f32 %v10051_v46, %v321_v9  ;;  %v10065_v57 = vmul.f32 %v10051_v46, %v323_v63  ;;  %v1586_v9 = vmul.f32 %v9963_v34, %v9977_v50  ;;  %v175_v37 = vrot.slane %v9396_v0, 7 }
  0xb7   :  { %12672 = vst [vmem:[#allocation23_spill] sm:$0xff] %v10058_v42  ;;  %v1789_v56 = vsel %vm806_vm2, %v1775_v25, 0.0  ;;  %v168_v14 = vsel %vm60_vm0, %v12681_v60, %v167_v61 }
  0xb8   :  { %12673 = vst [vmem:[#allocation24_spill] sm:$0xff] %v10065_v57  ;;  %1317 = vrot.lane.b32.xlu1 %v1095_v22, %s9424_s22  ;;  %v177_v6 = vsel %vm60_vm0, %v175_v37, %v176_v17  ;;  %v12684_v17 = vld [vmem:[#allocation8_spill] sm:$0xff] }
  0xb9   :  { %v202_v25 = vsub.f32 %v9397_v52, %v177_v6  ;;  %v12683_v52 = vld [vmem:[#allocation5_spill] sm:$0xff] }
  0xbc   :  { %1321 = vrot.lane.b32.xlu1 %v1097_v58, %s9424_s22 }
  0xc0   :  { %1323 = vrot.lane.b32.xlu1 %v1098_v29, %s9424_s22  ;;  %v201_v29 = vsub.f32 %v9396_v0, %v175_v37 }
  0xc6   :  { %1784 = vadd.xlane.f32.xlu0 %v1783_v1  ;;  %v196_v1 = vsub.f32 %v9395_v47, %v168_v14 }
  0xca   :  { %1790 = vadd.xlane.f32.xlu0 %v1789_v56  ;;  %v333_v56 = vmul.f32 0.5, %v201_v29 }
  0xcc   :  { %9073 = vtanh.f32 %v333_v56 }
  0xd6   :  { %v10090_v34 = vpop.xlane.xlu0 %798 }
  0xd7   :  { %12674 = vst [vmem:[#allocation25_spill] sm:$0xff] %v10090_v34 }
  0xd9   :  { %v9074_v14 = vpop.eup %9073 }
  0xda   :  { %v10094_v21 = vpop.xlane.xlu0 %804 }
  0xdb   :  { %v10092_v50 = vpop.xlane.xlu1 %801  ;;  %12676 = vst [vmem:[#allocation27_spill] sm:$0xff] %v10094_v21 }
  0xdc   :  { %12675 = vst [vmem:[#allocation26_spill] sm:$0xff] %v10092_v50 }
  0xde   :  { %v10098_v54 = vpop.xlane.xlu0 %808 }
  0xdf   :  { %v10096_v22 = vpop.xlane.xlu1 %1291  ;;  %12678 = vst [vmem:[#allocation29_spill] sm:$0xff] %v10098_v54 }
  0xe0   :  { %1809 = vrot.lane.b32.xlu0 %v1586_v9, %s9424_s22  ;;  %12677 = vst [vmem:[#allocation28_spill] sm:$0xff] %v10096_v22 }
  0xe4   :  { %1781 = vadd.xlane.f32.xlu1 %v1780_v2  ;;  %v328_v2 = vmul.f32 0.5, %v196_v1 }
  0xe5   :  { %v10102_v27 = vpop.xlane.xlu0 %1294 }
  0xe6   :  { %12680 = vst [vmem:[#allocation31_spill] sm:$0xff] %v10102_v27  ;;  %9075 = vtanh.f32 %v328_v2 }
  0xe8   :  { %1787 = vadd.xlane.f32.xlu1 %v1786_v44  ;;  %v334_v44 = vmul.f32 0.5, %v202_v25  ;;  %v10128_v25 = vmul.f32 %v9074_v14, %v9074_v14 }
  0xea   :  { %v10100_v62 = vpop.xlane.xlu1 %1297  ;;  %9077 = vtanh.f32 %v334_v44 }
  0xeb   :  { %12679 = vst [vmem:[#allocation30_spill] sm:$0xff] %v10100_v62 }
  0xee   :  { %v10118_v41 = vpop.xlane.xlu0 %1300 }
  0xef   :  { %12682 = vst [vmem:[#allocation32_spill] sm:$0xff] %v10118_v41 }
  0xf3   :  { %v9076_v1 = vpop.eup %9075 }
  0xf9   :  { %1807 = vrot.lane.b32.xlu1 %v1585_v36, %s9424_s22 }
  0xfd   :  { %1811 = vrot.lane.b32.xlu1 %v1587_v43, %s9424_s22 }
 0x101   :  { %1813 = vrot.lane.b32.xlu1 %v1588_v5, %s9424_s22 }
 0x115   :  { %v829_v9 = vpop.permute.xlu0 %828 }
 0x116   :  { %v827_v63 = vpop.permute.xlu1 %826  ;;  %v842_v55 = vsel %vm838_vm3, %v829_v9, 0.0  ;;  %v9078_v9 = vpop.eup %9077 }
 0x117   :  { %v839_v58 = vsel %vm838_vm3, %v827_v63, 0.0 }
 0x118   :  { %840 = vadd.xlane.f32.xlu0 %v839_v58  ;;  %v1871_v58 = vmul.f32 %v12684_v17, %v12683_v52  ;;  %v12687_v17 = vld [vmem:[#allocation10_spill] sm:$0xff] }
 0x119   :  { %v1320_v5 = vpop.permute.xlu0 %1319 }
 0x11a   :  { %v1332_v47 = vsel %vm838_vm3, %v1320_v5, 0.0  ;;  %v1879_v6 = vcombine.high %v1871_v58, %v1871_v58  ;;  %v1886_v44 = vrot.slane %v1871_v58, %v9661_v3  ;;  %v12685_v5 = vld [vmem:[#allocation9_spill] sm:$0xff] }
 0x11c   :  { %v1902_v58 = vrot.slane %v1886_v44, %v9661_v3 }
 0x11e   :  { %v1924_v62 = vcombine.high %v1902_v58, %v1902_v58 }
 0x122   :  { %v831_v36 = vpop.permute.xlu1 %830 }
 0x123   :  { %v845_v43 = vsel %vm838_vm3, %v831_v36, 0.0  ;;  %v10132_v36 = vmul.f32 %v9076_v1, %v9076_v1 }
 0x124   :  { %846 = vadd.xlane.f32.xlu0 %v845_v43  ;;  %v1893_v43 = vrot.slane %v1879_v6, %v9661_v3 }
 0x125   :  { %843 = vadd.xlane.f32.xlu1 %v842_v55  ;;  %v10135_v55 = vmul.f32 %v9078_v9, %v9078_v9 }
 0x126   :  { %v833_v61 = vpop.permute.xlu1 %832  ;;  %v1909_v6 = vrot.slane %v1893_v43, %v9661_v3 }
 0x127   :  { %v848_v0 = vsel %vm838_vm3, %v833_v61, 0.0  ;;  %v1873_v61 = vmul.f32 %v10128_v25, %v12685_v5 }
 0x128   :  { %849 = vadd.xlane.f32.xlu0 %v848_v0  ;;  %v1894_v0 = vcombine.high %v1886_v44, %v1886_v44  ;;  %v1925_v21 = vcombine.high %v1909_v6, %v1909_v6 }
 0x129   :  { %1333 = vadd.xlane.f32.xlu1 %v1332_v47  ;;  %v12686_v47 = vld [vmem:[#allocation6_spill] sm:$0xff]  ;;  %v1977_v14 = vcombine.high %v1873_v61, %v1873_v61  ;;  %v1984_v9 = vrot.slane %v1873_v61, %v9661_v3 }
 0x12a   :  { %v1318_v37 = vpop.permute.xlu1 %1317 }
 0x12b   :  { %v1329_v63 = vsel %vm838_vm3, %v1318_v37, 0.0  ;;  %v1872_v37 = vmul.f32 %v10132_v36, %v12686_v47  ;;  %v2000_v61 = vrot.slane %v1984_v9, %v9661_v3 }
 0x12c   :  { %1330 = vadd.xlane.f32.xlu0 %v1329_v63  ;;  %v1895_v63 = vcombine.high %v1893_v43, %v1893_v43 }
 0x12e   :  { %v1322_v60 = vpop.permute.xlu1 %1321  ;;  %v1923_v1 = vrot.slane %v1895_v63, %v9661_v3 }
 0x12f   :  { %v1335_v29 = vsel %vm838_vm3, %v1322_v60, 0.0  ;;  %v10143_v60 = vmul.f32 %v10135_v55, %v12687_v17 }
 0x130   :  { %1336 = vadd.xlane.f32.xlu0 %v1335_v29  ;;  %v1916_v29 = vrot.slane %v1894_v0, %v9661_v3  ;;  %v1927_v27 = vcombine.high %v1923_v1, %v1923_v1  ;;  %v1992_v0 = vcombine.high %v1984_v9, %v1984_v9  ;;  %v2081_v34 = vcombine.low %v1923_v1, %v1925_v21 }
 0x131   :  { %v2033_v41 = vrot.slane %v10143_v60, %v9661_v3 }
 0x132   :  { %v1324_v56 = vpop.permute.xlu1 %1323  ;;  %v1926_v54 = vcombine.high %v1916_v29, %v1916_v29  ;;  %v2079_v50 = vcombine.low %v1916_v29, %v1924_v62  ;;  %v2014_v57 = vrot.slane %v1992_v0, %v9661_v3  ;;  %v2103_v21 = vrot.slane %v2081_v34, %v9661_v3 }
 0x133   :  { %v1338_v2 = vsel %vm838_vm3, %v1324_v56, 0.0  ;;  %v1935_v56 = vrot.slane %v1872_v37, %v9661_v3  ;;  %v2041_v43 = vcombine.high %v2033_v41, %v2033_v41  ;;  %v10160_v45 = vrot.slane %v2033_v41, %v9661_v3 }
 0x134   :  { %1339 = vadd.xlane.f32.xlu0 %v1338_v2  ;;  %v1991_v2 = vrot.slane %v1977_v14, %v9661_v3  ;;  %v2080_v63 = vcombine.low %v1926_v54, %v1909_v6  ;;  %v2089_v8 = vrot.slane %v2079_v50, %v9661_v3 }
 0x135   :  { %v1951_v44 = vrot.slane %v1935_v56, %v9661_v3  ;;  %v10163_v20 = vrot.slane %v2041_v43, %v9661_v3 }
 0x136   :  { %v1993_v22 = vcombine.high %v1991_v2, %v1991_v2  ;;  %v2007_v14 = vrot.slane %v1991_v2, %v9661_v3  ;;  %v2096_v54 = vrot.slane %v2080_v63, %v9661_v3 }
 0x137   :  { %v2082_v42 = vcombine.low %v1927_v27, %v1951_v44  ;;  %v8932_v27 = vcombine.high %v2000_v61, %v2014_v57 }
 0x138   :  { %v2021_v58 = vrot.slane %v1993_v22, %v9661_v3  ;;  %v2180_v22 = vcombine.low %v10160_v45, %v10163_v20  ;;  %v2111_v1 = vcombine.low %v2089_v8, %v2096_v54 }
 0x139   :  { %v2110_v62 = vrot.slane %v2082_v42, %v9661_v3  ;;  %v2187_v9 = vrot.slane %v8932_v27, %v9661_v3  ;;  %v1928_v27 = vcombine.high %v1872_v37, %v1872_v37 }
 0x13a   :  { %v2178_v29 = vcombine.low %v2007_v14, %v2021_v58  ;;  %v8933_v6 = vcombine.high %v2007_v14, %v2021_v58  ;;  %v2208_v0 = vrot.slane %v2180_v22, %v9661_v3  ;;  %v2119_v42 = vrot.slane %v2111_v1, %v9661_v3 }
 0x13b   :  { %v2112_v41 = vcombine.low %v2103_v21, %v2110_v62  ;;  %v1942_v22 = vrot.slane %v1928_v27, %v9661_v3 }
 0x13c   :  { %v2194_v2 = vrot.slane %v2178_v29, %v9661_v3  ;;  %v2201_v50 = vrot.slane %v8933_v6, %v9661_v3 }
 0x13d   :  { %v2126_v34 = vrot.slane %v2112_v41, %v9661_v3  ;;  %v1943_v41 = vcombine.high %v1935_v56, %v1935_v56 }
 0x13e   :  { %v2209_v63 = vcombine.low %v2187_v9, %v2194_v2  ;;  %v2210_v61 = vcombine.low %v2201_v50, %v2208_v0  ;;  %v1944_v9 = vcombine.high %v1942_v22, %v1942_v22  ;;  %v2026_v2 = vcombine.high %v10143_v60, %v10143_v60 }
 0x13f   :  { %v2127_v8 = vcombine.low %v2119_v42, %v2126_v34  ;;  %v1965_v50 = vrot.slane %v1943_v41, %v9661_v3  ;;  %v1958_v0 = vrot.slane %v1942_v22, %v9661_v3  ;;  %v1973_v34 = vcombine.high %v1951_v44, %v1951_v44 }
 0x140   :  { %v2217_v58 = vrot.slane %v2209_v63, %v9661_v3  ;;  %v2224_v54 = vrot.slane %v2210_v61, %v9661_v3  ;;  %v1972_v37 = vrot.slane %v1944_v9, %v9661_v3  ;;  %v2040_v42 = vrot.slane %v2026_v2, %v9661_v3 }
 0x141   :  { %v2270_v29 = vsel %vm796_vm1, %v2127_v8, 0.0  ;;  %v1975_v63 = vcombine.high %v1965_v50, %v1965_v50  ;;  %v1974_v61 = vcombine.high %v1958_v0, %v1958_v0 }
 0x142   :  { %v2225_v6 = vcombine.low %v2217_v58, %v2224_v54  ;;  %v1976_v8 = vcombine.high %v1972_v37, %v1972_v37  ;;  %v2042_v58 = vcombine.high %v2040_v42, %v2040_v42  ;;  %v2128_v54 = vcombine.low %v1965_v50, %v1973_v34 }
 0x143   :  { %v2129_v56 = vcombine.low %v1975_v63, %v1958_v0  ;;  %v2056_v60 = vrot.slane %v2040_v42, %v9661_v3  ;;  %v2077_v50 = vmul.f32 %v10031_v15, %v10022_v39 }
 0x144   :  { %v2276_v1 = vsel %vm796_vm1, %v2225_v6, 0.0  ;;  %v2070_v27 = vrot.slane %v2042_v58, %v9661_v3  ;;  %v2075_v6 = vmul.f32 %v9984_v16, %v9965_v7  ;;  %v2138_v22 = vrot.slane %v2128_v54, %v9661_v3 }
 0x145   :  { %v2145_v44 = vrot.slane %v2129_v56, %v9661_v3 }
 0x146   :  { %v2227_v9 = vcombine.low %v2056_v60, %v2070_v27 }
 0x147   :  { %v2160_v16 = vcombine.low %v2138_v22, %v2145_v44 }
 0x148   :  { %v2242_v34 = vrot.slane %v2227_v9, %v9661_v3 }
 0x14f   :  { %v10175_v43 = vpop.xlane.xlu0 %1784 }
 0x153   :  { %v10179_v14 = vpop.xlane.xlu0 %1790 }
 0x154   :  { %12688 = vst [vmem:[#allocation5_spill] sm:$0xff] %v10179_v14 }
 0x157   :  { %v1810_v21 = vpop.permute.xlu0 %1809 }
 0x158   :  { %v1822_v62 = vsel %vm838_vm3, %v1810_v21, 0.0  ;;  %v2130_v21 = vcombine.low %v1972_v37, %v1974_v61  ;;  %v8935_v37 = vcombine.high %v2056_v60, %v2070_v27  ;;  %v2168_v61 = vrot.slane %v2160_v16, %v9661_v3 }
 0x159   :  { %1823 = vadd.xlane.f32.xlu1 %v1822_v62  ;;  %v2131_v62 = vcombine.low %v1976_v8, %v2014_v57  ;;  %v8934_v57 = vcombine.high %v10160_v45, %v10163_v20  ;;  %v2078_v45 = vmul.f32 %v10026_v24, %v10029_v10 }
 0x15a   :  { %v2249_v8 = vrot.slane %v8935_v37, %v9661_v3 }
 0x15b   :  { %v2159_v41 = vrot.slane %v2131_v62, %v9661_v3  ;;  %v2235_v42 = vrot.slane %v8934_v57, %v9661_v3 }
 0x15c   :  { %v2264_v60 = vrot.slane %v2249_v8, %v9661_v3 }
 0x15d   :  { %2271 = vadd.xlane.f32.xlu1 %v2270_v29  ;;  %v2250_v58 = vcombine.low %v2235_v42, %v2242_v34  ;;  %v2364_v42 = vmul.f32 %v10135_v55, %v9710_v48 }
 0x15f   :  { %v2257_v62 = vrot.slane %v2250_v58, %v9661_v3 }
 0x161   :  { %2277 = vadd.xlane.f32.xlu1 %v2276_v1  ;;  %v2152_v1 = vrot.slane %v2130_v21, %v9661_v3  ;;  %v2265_v22 = vcombine.low %v2257_v62, %v2264_v60 }
 0x163   :  { %v2161_v0 = vcombine.low %v2152_v1, %v2159_v41  ;;  %v2279_v44 = vsel %vm806_vm2, %v2265_v22, 0.0  ;;  %v2076_v1 = vmul.f32 %v9979_v40, %v9961_v4  ;;  %v12690_v41 = vld [vmem:[#allocation7_spill] sm:$0xff] }
 0x164   :  { %v2362_v57 = vmul.f32 %v10132_v36, %v12690_v41 }
 0x165   :  { %v2175_v15 = vrot.slane %v2161_v0, %v9661_v3 }
 0x166   :  { %v2418_v9 = vcombine.high %v2362_v57, %v2362_v57  ;;  %v2425_v0 = vrot.slane %v2362_v57, %v9661_v3 }
 0x167   :  { %v2176_v21 = vcombine.low %v2168_v61, %v2175_v15 }
 0x168   :  { %v2432_v37 = vrot.slane %v2418_v9, %v9661_v3  ;;  %v2433_v40 = vcombine.high %v2425_v0, %v2425_v0  ;;  %v10246_v61 = vrot.slane %v2425_v0, %v9661_v3 }
 0x16a   :  { %v2448_v15 = vrot.slane %v2432_v37, %v9661_v3  ;;  %v2455_v8 = vrot.slane %v2433_v40, %v9661_v3  ;;  %v2463_v60 = vcombine.high %v10246_v61, %v10246_v61 }
 0x16c   :  { %v2618_v0 = vcombine.low %v2455_v8, %v2463_v60 }
 0x16d   :  { %v10195_v29 = vpop.xlane.xlu1 %1781 }
 0x171   :  { %v10205_v2 = vpop.xlane.xlu1 %1787 }
 0x172   :  { %12689 = vst [vmem:[#allocation8_spill] sm:$0xff] %v10205_v2  ;;  %2297 = vrot.lane.b32.xlu1 %v2075_v6, %s9424_s22  ;;  %v2273_v6 = vsel %vm796_vm1, %v2176_v21, 0.0 }
 0x175   :  { %v1808_v63 = vpop.permute.xlu1 %1807 }
 0x176   :  { %2301 = vrot.lane.b32.xlu1 %v2077_v50, %s9424_s22  ;;  %v1819_v20 = vsel %vm838_vm3, %v1808_v63, 0.0  ;;  %v12691_v50 = vld [vmem:[#allocation14_spill] sm:$0xff]  ;;  %v2434_v63 = vcombine.high %v2432_v37, %v2432_v37 }
 0x177   :  { %1820 = vadd.xlane.f32.xlu0 %v1819_v20  ;;  %v10233_v16 = vmul.f32 %v10128_v25, %v12691_v50 }
 0x178   :  { %v2462_v58 = vrot.slane %v2434_v63, %v9661_v3 }
 0x179   :  { %v1812_v54 = vpop.permute.xlu1 %1811  ;;  %v10243_v20 = vrot.slane %v10233_v16, %v9661_v3 }
 0x17a   :  { %2303 = vrot.lane.b32.xlu1 %v2078_v45, %s9424_s22  ;;  %v1825_v56 = vsel %vm838_vm3, %v1812_v54, 0.0  ;;  %v2516_v45 = vcombine.high %v2364_v42, %v2364_v42  ;;  %v2466_v22 = vcombine.high %v2462_v58, %v2462_v58 }
 0x17b   :  { %1826 = vadd.xlane.f32.xlu0 %v1825_v56  ;;  %v2482_v54 = vcombine.high %v10243_v20, %v10243_v20  ;;  %v2523_v56 = vrot.slane %v2364_v42, %v9661_v3 }
 0x17c   :  { %v2530_v21 = vrot.slane %v2516_v45, %v9661_v3 }
 0x17d   :  { %v1814_v27 = vpop.permute.xlu1 %1813  ;;  %v10270_v63 = vrot.slane %v2523_v56, %v9661_v3 }
 0x17e   :  { %v1828_v24 = vsel %vm838_vm3, %v1814_v27, 0.0  ;;  %v2532_v57 = vcombine.high %v2530_v21, %v2530_v21  ;;  %v2546_v45 = vrot.slane %v2530_v21, %v9661_v3 }
 0x17f   :  { %1829 = vadd.xlane.f32.xlu0 %v1828_v24  ;;  %v2464_v24 = vcombine.high %v2448_v15, %v2448_v15 }
 0x181   :  { %v2620_v42 = vcombine.low %v2462_v58, %v2464_v24 }
 0x183   :  { %2274 = vadd.xlane.f32.xlu0 %v2273_v6  ;;  %v2465_v6 = vcombine.high %v2455_v8, %v2455_v8 }
 0x185   :  { %v2619_v37 = vcombine.low %v2465_v6, %v2448_v15  ;;  %v2642_v15 = vrot.slane %v2620_v42, %v9661_v3 }
 0x187   :  { %2280 = vadd.xlane.f32.xlu0 %v2279_v44  ;;  %v10262_v44 = vrot.slane %v2482_v54, %v9661_v3  ;;  %v2560_v54 = vrot.slane %v2532_v57, %v9661_v3  ;;  %v2635_v8 = vrot.slane %v2619_v37, %v9661_v3 }
 0x189   :  { %v2621_v40 = vcombine.low %v2466_v22, %v10262_v44  ;;  %v2717_v60 = vcombine.low %v2546_v45, %v2560_v54 }
 0x18b   :  { %v2649_v58 = vrot.slane %v2621_v40, %v9661_v3 }
 0x18d   :  { %v2651_v22 = vcombine.low %v2642_v15, %v2649_v58 }
 0x19d   :  { %2299 = vrot.lane.b32.xlu0 %v2076_v1, %s9424_s22  ;;  %v2531_v1 = vcombine.high %v2523_v56, %v2523_v56 }
 0x1a1   :  { %v10259_v27 = vpop.xlane.xlu0 %840 }
 0x1ad   :  { %v10266_v50 = vpop.xlane.xlu0 %846 }
 0x1ae   :  { %v10239_v34 = vpop.xlane.xlu1 %843 }
 0x1b1   :  { %v10285_v21 = vpop.xlane.xlu0 %849 }
 0x1b2   :  { %v10255_v62 = vpop.xlane.xlu1 %1333  ;;  %12695 = vst [vmem:[#allocation7_spill] sm:$0xff] %v10285_v21 }
 0x1b3   :  { %12692 = vst [vmem:[#allocation9_spill] sm:$0xff] %v10255_v62  ;;  %v10274_v62 = vrot.slane %v2531_v1, %v9661_v3  ;;  %v8939_v1 = vcombine.high %v2546_v45, %v2560_v54 }
 0x1b5   :  { %v8938_v56 = vcombine.high %v10270_v63, %v10274_v62  ;;  %v10294_v2 = vpop.xlane.xlu0 %1330 }
 0x1b7   :  { %v2725_v57 = vrot.slane %v8938_v56, %v9661_v3 }
 0x1e2   :  { %v10264_v9 = vpop.xlane.xlu1 %1823 }
 0x1e3   :  { %12693 = vst [vmem:[#allocation6_spill] sm:$0xff] %v10264_v9  ;;  %v2628_v9 = vrot.slane %v2618_v0, %v9661_v3  ;;  %v2732_v0 = vrot.slane %v2717_v60, %v9661_v3 }
 0x1e5   :  { %v2650_v6 = vcombine.low %v2628_v9, %v2635_v8  ;;  %v2739_v9 = vrot.slane %v8939_v1, %v9661_v3  ;;  %v2740_v45 = vcombine.low %v2725_v57, %v2732_v0 }
 0x1e6   :  { %v10277_v14 = vpop.xlane.xlu1 %2271 }
 0x1e7   :  { %12694 = vst [vmem:[#allocation10_spill] sm:$0xff] %v10277_v14  ;;  %v12697_v14 = vld [vmem:[#allocation11_spill] sm:$0xff]  ;;  %v2658_v21 = vrot.slane %v2650_v6, %v9661_v3  ;;  %v2747_v60 = vrot.slane %v2740_v45, %v9661_v3  ;;  %v10305_v6 = vpop.xlane.xlu0 %1336 }
 0x1e8   :  { %v2369_v42 = vcombine.high %v12697_v14, %v12697_v14  ;;  %12698 = vst [vmem:[#allocation11_spill] sm:$0xff] %v10294_v2  ;;  %v2376_v8 = vrot.slane %v12697_v14, %v9661_v3  ;;  %12699 = vst [vmem:[#allocation33_spill] sm:$0xff] %v10305_v6  ;;  %v2467_v14 = vcombine.high %v10233_v16, %v10233_v16 }
 0x1ea   :  { %v10287_v24 = vpop.xlane.xlu1 %2277  ;;  %v2383_v15 = vrot.slane %v2369_v42, %v9661_v3 }
 0x1eb   :  { %12696 = vst [vmem:[#allocation14_spill] sm:$0xff] %v10287_v24  ;;  %v2665_v24 = vrot.slane %v2651_v22, %v9661_v3 }
 0x1ec   :  { %v2385_v1 = vcombine.high %v2383_v15, %v2383_v15 }
 0x1ed   :  { %v2666_v56 = vcombine.low %v2658_v21, %v2665_v24  ;;  %v2392_v21 = vrot.slane %v2376_v8, %v9661_v3  ;;  %v2399_v24 = vrot.slane %v2383_v15, %v9661_v3 }
 0x1ee   :  { %v2298_v37 = vpop.permute.xlu1 %2297  ;;  %v2413_v45 = vrot.slane %v2385_v1, %v9661_v3 }
 0x1ef   :  { %v2309_v40 = vsel %vm838_vm3, %v2298_v37, 0.0  ;;  %v2754_v37 = vrot.slane %v2739_v9, %v9661_v3  ;;  %v2763_v0 = vsel %vm796_vm1, %v2666_v56, 0.0  ;;  %v2414_v16 = vcombine.high %v2392_v21, %v2392_v21 }
 0x1f0   :  { %2310 = vadd.xlane.f32.xlu0 %v2309_v40  ;;  %v2384_v40 = vcombine.high %v2376_v8, %v2376_v8  ;;  %v2417_v56 = vcombine.high %v2413_v45, %v2413_v45 }
 0x1f1   :  { %v2755_v42 = vcombine.low %v2747_v60, %v2754_v37 }
 0x1f2   :  { %v2302_v54 = vpop.permute.xlu1 %2301  ;;  %v2406_v9 = vrot.slane %v2384_v40, %v9661_v3  ;;  %v2572_v1 = vcombine.low %v2417_v56, %v10246_v61 }
 0x1f3   :  { %v2315_v58 = vsel %vm838_vm3, %v2302_v54, 0.0  ;;  %v2481_v54 = vrot.slane %v2467_v14, %v9661_v3  ;;  %v2490_v14 = vrot.slane %v10243_v20, %v9661_v3  ;;  %v2670_v20 = vcombine.low %v10270_v63, %v10274_v62 }
 0x1f4   :  { %2316 = vadd.xlane.f32.xlu0 %v2315_v58  ;;  %v10316_v58 = vpop.xlane.xlu0 %1339  ;;  %v2416_v6 = vcombine.high %v2406_v9, %v2406_v9  ;;  %v2569_v8 = vcombine.low %v2406_v9, %v2414_v16 }
 0x1f5   :  { %12700 = vst [vmem:[#allocation34_spill] sm:$0xff] %v10316_v58  ;;  %v2483_v60 = vcombine.high %v2481_v54, %v2481_v54 }
 0x1f6   :  { %v2304_v22 = vpop.permute.xlu1 %2303  ;;  %v2570_v15 = vcombine.low %v2416_v6, %v2399_v24  ;;  %v2579_v58 = vrot.slane %v2569_v8, %v9661_v3  ;;  %v2600_v6 = vrot.slane %v2572_v1, %v9661_v3  ;;  %v2698_v8 = vrot.slane %v2670_v20, %v9661_v3 }
 0x1f7   :  { %v2318_v57 = vsel %vm838_vm3, %v2304_v22, 0.0  ;;  %v2769_v22 = vsel %vm806_vm2, %v2755_v42, 0.0  ;;  %v2511_v42 = vrot.slane %v2483_v60, %v9661_v3 }
 0x1f8   :  { %2319 = vadd.xlane.f32.xlu0 %v2318_v57  ;;  %v2415_v57 = vcombine.high %v2399_v24, %v2399_v24  ;;  %v2586_v2 = vrot.slane %v2570_v15, %v9661_v3  ;;  %v8936_v24 = vcombine.high %v2490_v14, %v10262_v44 }
 0x1fa   :  { %v2571_v40 = vcombine.low %v2413_v45, %v2415_v57  ;;  %v2677_v57 = vrot.slane %v8936_v24, %v9661_v3 }
 0x1fc   :  { %2764 = vadd.xlane.f32.xlu0 %v2763_v0  ;;  %v2497_v0 = vrot.slane %v2481_v54, %v9661_v3  ;;  %v2601_v54 = vcombine.low %v2579_v58, %v2586_v2 }
 0x1fe   :  { %v2668_v61 = vcombine.low %v2497_v0, %v2511_v42  ;;  %v8937_v9 = vcombine.high %v2497_v0, %v2511_v42  ;;  %v2609_v44 = vrot.slane %v2601_v54, %v9661_v3  ;;  %v12703_v54 = vld [vmem:[#allocation17_spill] sm:$0xff] }
 0x200   :  { %v10319_v37 = vpop.xlane.xlu0 %1820  ;;  %2770 = vadd.xlane.f32.xlu0 %v2769_v22  ;;  %v2593_v22 = vrot.slane %v2571_v40, %v9661_v3  ;;  %v2684_v56 = vrot.slane %v2668_v61, %v9661_v3  ;;  %v2691_v60 = vrot.slane %v8937_v9, %v9661_v3  ;;  %v12702_v61 = vld [vmem:[#allocation12_spill] sm:$0xff] }
 0x201   :  { %v2859_v9 = vcombine.high %v12702_v61, %v12702_v61 }
 0x202   :  { %v2602_v16 = vcombine.low %v2593_v22, %v2600_v6  ;;  %v2699_v1 = vcombine.low %v2677_v57, %v2684_v56  ;;  %v2700_v62 = vcombine.low %v2691_v60, %v2698_v8 }
 0x203   :  { %v2873_v20 = vrot.slane %v2859_v9, %v9661_v3 }
 0x204   :  { %v10326_v21 = vpop.xlane.xlu0 %1826  ;;  %v2616_v40 = vrot.slane %v2602_v16, %v9661_v3  ;;  %v2707_v58 = vrot.slane %v2699_v1, %v9661_v3  ;;  %v2714_v14 = vrot.slane %v2700_v62, %v9661_v3  ;;  %v2853_v16 = vmul.f32 %v10128_v25, %v12703_v54 }
 0x206   :  { %v2617_v2 = vcombine.low %v2609_v44, %v2616_v40  ;;  %v2715_v6 = vcombine.low %v2707_v58, %v2714_v14  ;;  %v2957_v56 = vcombine.high %v2853_v16, %v2853_v16  ;;  %v2889_v44 = vrot.slane %v2873_v20, %v9661_v3 }
 0x208   :  { %v10335_v45 = vpop.xlane.xlu0 %1829  ;;  %v2760_v22 = vsel %vm796_vm1, %v2617_v2, 0.0  ;;  %v2766_v24 = vsel %vm796_vm1, %v2715_v6, 0.0  ;;  %v2971_v1 = vrot.slane %v2957_v56, %v9661_v3  ;;  %v2905_v58 = vcombine.high %v2889_v44, %v2889_v44 }
 0x20c   :  { %v10341_v15 = vpop.xlane.xlu0 %2274 }
 0x210   :  { %v10345_v63 = vpop.xlane.xlu0 %2280 }
 0x211   :  { %12701 = vst [vmem:[#allocation35_spill] sm:$0xff] %v10345_v63 }
 0x214   :  { %v2300_v0 = vpop.permute.xlu0 %2299 }
 0x215   :  { %v2312_v42 = vsel %vm838_vm3, %v2300_v0, 0.0 }
 0x216   :  { %2313 = vadd.xlane.f32.xlu1 %v2312_v42  ;;  %2789 = vrot.lane.b32.xlu0 %v9989_v31, %s9424_s22  ;;  %v2866_v31 = vrot.slane %v12702_v61, %v9661_v3 }
 0x218   :  { %v2874_v57 = vcombine.high %v2866_v31, %v2866_v31  ;;  %v2882_v60 = vrot.slane %v2866_v31, %v9661_v3 }
 0x21a   :  { %2761 = vadd.xlane.f32.xlu1 %v2760_v22  ;;  %v2896_v8 = vrot.slane %v2874_v57, %v9661_v3  ;;  %v2904_v62 = vcombine.high %v2882_v60, %v2882_v60  ;;  %v2973_v22 = vcombine.high %v2971_v1, %v2971_v1  ;;  %v2987_v57 = vrot.slane %v2971_v1, %v9661_v3 }
 0x21c   :  { %v2906_v2 = vcombine.high %v2896_v8, %v2896_v8  ;;  %v3059_v61 = vcombine.low %v2896_v8, %v2904_v62  ;;  %v3001_v56 = vrot.slane %v2973_v22, %v9661_v3 }
 0x21e   :  { %2767 = vadd.xlane.f32.xlu1 %v2766_v24  ;;  %v3060_v9 = vcombine.low %v2906_v2, %v2889_v44  ;;  %v3069_v8 = vrot.slane %v3059_v61, %v9661_v3  ;;  %v3158_v62 = vcombine.low %v2987_v57, %v3001_v56  ;;  %v8941_v2 = vcombine.high %v2987_v57, %v3001_v56 }
 0x220   :  { %v3076_v44 = vrot.slane %v3060_v9, %v9661_v3  ;;  %v3181_v61 = vrot.slane %v8941_v2, %v9661_v3 }
 0x22f   :  { %2787 = vrot.lane.b32.xlu1 %v9996_v12, %s9424_s22  ;;  %v10369_v12 = vmul.f32 %v10132_v36, %v9665_v11  ;;  %v2964_v36 = vrot.slane %v2853_v16, %v9661_v3 }
 0x231   :  { %v2915_v25 = vrot.slane %v10369_v12, %v9661_v3  ;;  %v2972_v42 = vcombine.high %v2964_v36, %v2964_v36  ;;  %v2980_v16 = vrot.slane %v2964_v36, %v9661_v3 }
 0x233   :  { %2791 = vrot.lane.b32.xlu1 %v10042_v49, %s9424_s22  ;;  %v2875_v49 = vcombine.high %v2873_v20, %v2873_v20  ;;  %v10386_v0 = vrot.slane %v2915_v25, %v9661_v3 }
 0x235   :  { %v2903_v40 = vrot.slane %v2875_v49, %v9661_v3  ;;  %v2994_v49 = vrot.slane %v2972_v42, %v9661_v3 }
 0x237   :  { %2793 = vrot.lane.b32.xlu1 %v10035_v33, %s9424_s22  ;;  %v10373_v33 = vmul.f32 %v10135_v55, %v9731_v19  ;;  %v2907_v14 = vcombine.high %v2903_v40, %v2903_v40  ;;  %v3061_v31 = vcombine.low %v2903_v40, %v2905_v58  ;;  %v8940_v1 = vcombine.high %v2980_v16, %v2994_v49 }
 0x239   :  { %v3013_v55 = vrot.slane %v10373_v33, %v9661_v3  ;;  %v3062_v20 = vcombine.low %v2907_v14, %v10386_v0  ;;  %v3083_v40 = vrot.slane %v3061_v31, %v9661_v3  ;;  %v3091_v14 = vcombine.low %v3069_v8, %v3076_v44 }
 0x23a   :  { %v3167_v22 = vrot.slane %v8940_v1, %v9661_v3 }
 0x23b   :  { %v3021_v6 = vcombine.high %v3013_v55, %v3013_v55  ;;  %v10396_v60 = vrot.slane %v3013_v55, %v9661_v3  ;;  %v3090_v36 = vrot.slane %v3062_v20, %v9661_v3  ;;  %v3099_v20 = vrot.slane %v3091_v14, %v9661_v3 }
 0x23d   :  { %v10399_v63 = vrot.slane %v3021_v6, %v9661_v3  ;;  %v3092_v42 = vcombine.low %v3083_v40, %v3090_v36  ;;  %v3174_v6 = vrot.slane %v3158_v62, %v9661_v3  ;;  %v2908_v62 = vcombine.high %v10369_v12, %v10369_v12 }
 0x23f   :  { %v3160_v55 = vcombine.low %v10396_v60, %v10399_v63  ;;  %v3106_v16 = vrot.slane %v3092_v42, %v9661_v3  ;;  %v3189_v57 = vcombine.low %v3167_v22, %v3174_v6  ;;  %v2922_v14 = vrot.slane %v2908_v62, %v9661_v3 }
 0x240   :  { %v2923_v22 = vcombine.high %v2915_v25, %v2915_v25 }
 0x241   :  { %v3188_v9 = vrot.slane %v3160_v55, %v9661_v3  ;;  %v3107_v8 = vcombine.low %v3099_v20, %v3106_v16  ;;  %v3197_v44 = vrot.slane %v3189_v57, %v9661_v3  ;;  %v2924_v6 = vcombine.high %v2922_v14, %v2922_v14 }
 0x242   :  { %v2938_v20 = vrot.slane %v2922_v14, %v9661_v3  ;;  %v2953_v57 = vcombine.high %v10386_v0, %v10386_v0 }
 0x243   :  { %v3190_v56 = vcombine.low %v3181_v61, %v3188_v9  ;;  %v3250_v2 = vsel %vm796_vm1, %v3107_v8, 0.0  ;;  %v3006_v61 = vcombine.high %v10373_v33, %v10373_v33  ;;  %v2945_v9 = vrot.slane %v2923_v22, %v9661_v3 }
 0x244   :  { %v2952_v12 = vrot.slane %v2924_v6, %v9661_v3  ;;  %v2954_v25 = vcombine.high %v2938_v20, %v2938_v20 }
 0x245   :  { %v3204_v40 = vrot.slane %v3190_v56, %v9661_v3  ;;  %v3020_v16 = vrot.slane %v3006_v61, %v9661_v3  ;;  %v2955_v56 = vcombine.high %v2945_v9, %v2945_v9 }
 0x246   :  { %v3110_v62 = vcombine.low %v2952_v12, %v2954_v25 }
 0x247   :  { %v3205_v55 = vcombine.low %v3197_v44, %v3204_v40  ;;  %v2956_v44 = vcombine.high %v2952_v12, %v2952_v12  ;;  %v3022_v40 = vcombine.high %v3020_v16, %v3020_v16 }
 0x248   :  { %v3132_v6 = vrot.slane %v3110_v62, %v9661_v3 }
 0x249   :  { %v3256_v42 = vsel %vm796_vm1, %v3205_v55, 0.0  ;;  %v3036_v55 = vrot.slane %v3020_v16, %v9661_v3  ;;  %v3050_v14 = vrot.slane %v3022_v40, %v9661_v3 }
 0x279   :  { %v10388_v24 = vpop.xlane.xlu0 %2310 }
 0x27a   :  { %12704 = vst [vmem:[#allocation12_spill] sm:$0xff] %v10388_v24 }
 0x27d   :  { %v10401_v24 = vpop.xlane.xlu0 %2316 }
 0x27e   :  { %12705 = vst [vmem:[#allocation17_spill] sm:$0xff] %v10401_v24 }
 0x281   :  { %v10409_v58 = vpop.xlane.xlu0 %2319 }
 0x285   :  { %v10415_v31 = vpop.xlane.xlu0 %2764 }
 0x289   :  { %v10419_v24 = vpop.xlane.xlu0 %2770 }
 0x28d   :  { %v2790_v36 = vpop.permute.xlu0 %2789 }
 0x28e   :  { %v2802_v1 = vsel %vm838_vm3, %v2790_v36, 0.0  ;;  %v3108_v36 = vcombine.low %v2945_v9, %v2953_v57  ;;  %v8942_v9 = vcombine.high %v10396_v60, %v10399_v63  ;;  %v8943_v57 = vcombine.high %v3036_v55, %v3050_v14 }
 0x28f   :  { %2803 = vadd.xlane.f32.xlu1 %v2802_v1  ;;  %v3109_v1 = vcombine.low %v2955_v56, %v2938_v20  ;;  %v3207_v20 = vcombine.low %v3036_v55, %v3050_v14 }
 0x290   :  { %v3215_v56 = vrot.slane %v8942_v9, %v9661_v3  ;;  %v12706_v9 = vrot.slane %v9590_v59, 7 }
 0x291   :  { %v3125_v0 = vrot.slane %v3109_v1, %v9661_v3  ;;  %v3222_v25 = vrot.slane %v3207_v20, %v9661_v3 }
 0x293   :  { %3251 = vadd.xlane.f32.xlu1 %v3250_v2  ;;  %v3111_v2 = vcombine.low %v2956_v44, %v2994_v49 }
 0x295   :  { %v3139_v61 = vrot.slane %v3111_v2, %v9661_v3 }
 0x297   :  { %3257 = vadd.xlane.f32.xlu1 %v3256_v42  ;;  %v3118_v42 = vrot.slane %v3108_v36, %v9661_v3  ;;  %v3141_v16 = vcombine.low %v3132_v6, %v3139_v61  ;;  %v3230_v36 = vcombine.low %v3215_v56, %v3222_v25  ;;  %v12707_v56 = vrot.slane %v9626_v26, 7 }
 0x299   :  { %v3140_v49 = vcombine.low %v3118_v42, %v3125_v0  ;;  %v3155_v60 = vrot.slane %v3141_v16, %v9661_v3 }
 0x29b   :  { %v3148_v63 = vrot.slane %v3140_v49, %v9661_v3 }
 0x29d   :  { %v3156_v2 = vcombine.low %v3148_v63, %v3155_v60 }
 0x29f   :  { %v10437_v8 = vpop.xlane.xlu1 %2313  ;;  %v3253_v42 = vsel %vm796_vm1, %v3156_v2, 0.0 }
 0x2a3   :  { %v10439_v33 = vpop.xlane.xlu1 %2761 }
 0x2a7   :  { %v10445_v22 = vpop.xlane.xlu1 %2767 }
 0x2a8   :  { %3277 = vrot.lane.b32.xlu1 %v10000_v28, %s9424_s22  ;;  %v3229_v28 = vrot.slane %v8943_v57, %v9661_v3 }
 0x2aa   :  { %v3244_v55 = vrot.slane %v3229_v28, %v9661_v3 }
 0x2ab   :  { %v2788_v12 = vpop.permute.xlu1 %2787 }
 0x2ac   :  { %3281 = vrot.lane.b32.xlu1 %v10045_v18, %s9424_s22  ;;  %v2799_v44 = vsel %vm838_vm3, %v2788_v12, 0.0  ;;  %v3237_v18 = vrot.slane %v3230_v36, %v9661_v3  ;;  %v9399_v12 = vld [vmem:[%s12607_s1 + $0x58] sm:$0xff] }
 0x2ad   :  { %2800 = vadd.xlane.f32.xlu0 %v2799_v44  ;;  %v179_v16 = vrot.slane %v9399_v12, 7 }
 0x2ae   :  { %v3245_v0 = vcombine.low %v3237_v18, %v3244_v55 }
 0x2af   :  { %v2792_v40 = vpop.permute.xlu1 %2791 }
 0x2b0   :  { %3283 = vrot.lane.b32.xlu1 %v10038_v35, %s9424_s22  ;;  %v2805_v1 = vsel %vm838_vm3, %v2792_v40, 0.0  ;;  %v3259_v6 = vsel %vm806_vm2, %v3245_v0, 0.0  ;;  %v9398_v35 = vld [vmem:[%s12607_s1 + $0x28] sm:$0xff] }
 0x2b1   :  { %2806 = vadd.xlane.f32.xlu0 %v2805_v1  ;;  %v170_v61 = vrot.slane %v9398_v35, 7  ;;  %v12708_v1 = vld [vmem:[#allocation18_spill] sm:$0xff] }
 0x2b3   :  { %v2794_v62 = vpop.permute.xlu1 %2793  ;;  %v171_v20 = vsel %vm60_vm0, %v12706_v9, %v170_v61 }
 0x2b4   :  { %v2808_v14 = vsel %vm838_vm3, %v2794_v62, 0.0  ;;  %v198_v49 = vsub.f32 %v9398_v35, %v171_v20  ;;  %v10491_v62 = vmul.f32 %v12708_v1, %v12685_v5 }
 0x2b5   :  { %2809 = vadd.xlane.f32.xlu0 %v2808_v14 }
 0x2b6   :  { %v330_v57 = vmul.f32 0.5, %v198_v49 }
 0x2b8   :  { %9079 = vtanh.f32 %v330_v57 }
 0x2b9   :  { %3254 = vadd.xlane.f32.xlu0 %v3253_v42 }
 0x2bd   :  { %3260 = vadd.xlane.f32.xlu0 %v3259_v6 }
 0x2c5   :  { %v9080_v40 = vpop.eup %9079 }
 0x2c6   :  { %v10483_v63 = vmul.f32 %v9080_v40, %v9080_v40 }
 0x2c8   :  { %v3342_v59 = vmul.f32 %v10483_v63, %v12686_v47  ;;  %v10499_v47 = vrot.slane %v10491_v62, %v9661_v3 }
 0x2ca   :  { %v3398_v28 = vcombine.high %v3342_v59, %v3342_v59  ;;  %v3405_v26 = vrot.slane %v3342_v59, %v9661_v3  ;;  %v3462_v61 = vcombine.high %v10499_v47, %v10499_v47 }
 0x2cc   :  { %v3412_v2 = vrot.slane %v3398_v28, %v9661_v3  ;;  %v3413_v55 = vcombine.high %v3405_v26, %v3405_v26  ;;  %v10502_v0 = vrot.slane %v3405_v26, %v9661_v3  ;;  %v10514_v57 = vrot.slane %v3462_v61, %v9661_v3 }
 0x2ce   :  { %v3414_v14 = vcombine.high %v3412_v2, %v3412_v2  ;;  %v3428_v5 = vrot.slane %v3412_v2, %v9661_v3  ;;  %v3435_v6 = vrot.slane %v3413_v55, %v9661_v3  ;;  %v3443_v20 = vcombine.high %v10502_v0, %v10502_v0 }
 0x2d0   :  { %v3442_v35 = vrot.slane %v3414_v14, %v9661_v3  ;;  %v3444_v49 = vcombine.high %v3428_v5, %v3428_v5 }
 0x2d2   :  { %v3600_v59 = vcombine.low %v3442_v35, %v3444_v49 }
 0x2d3   :  { %3279 = vrot.lane.b32.xlu0 %v9993_v51, %s9424_s22  ;;  %v180_v51 = vsel %vm60_vm0, %v12707_v56, %v179_v16  ;;  %v3446_v16 = vcombine.high %v3442_v35, %v3442_v35 }
 0x2d4   :  { %v204_v25 = vsub.f32 %v9399_v12, %v180_v51  ;;  %v3445_v12 = vcombine.high %v3435_v6, %v3435_v6 }
 0x2d6   :  { %v336_v44 = vmul.f32 0.5, %v204_v25  ;;  %v3599_v40 = vcombine.low %v3445_v12, %v3428_v5  ;;  %v3622_v5 = vrot.slane %v3600_v59, %v9661_v3 }
 0x2d8   :  { %9081 = vtanh.f32 %v336_v44  ;;  %v3598_v44 = vcombine.low %v3435_v6, %v3443_v20 }
 0x2da   :  { %v3608_v14 = vrot.slane %v3598_v44, %v9661_v3 }
 0x2e5   :  { %v9082_v60 = vpop.eup %9081 }
 0x2e6   :  { %v10487_v36 = vmul.f32 %v9082_v60, %v9082_v60  ;;  %v3601_v60 = vcombine.low %v3446_v16, %v10514_v57 }
 0x2e8   :  { %v3344_v18 = vmul.f32 %v10487_v36, %v12687_v17  ;;  %v3629_v6 = vrot.slane %v3601_v60, %v9661_v3 }
 0x2ea   :  { %v3496_v42 = vcombine.high %v3344_v18, %v3344_v18  ;;  %v3503_v17 = vrot.slane %v3344_v18, %v9661_v3  ;;  %v3631_v12 = vcombine.low %v3622_v5, %v3629_v6 }
 0x2ec   :  { %v3510_v9 = vrot.slane %v3496_v42, %v9661_v3  ;;  %v3511_v56 = vcombine.high %v3503_v17, %v3503_v17  ;;  %v10520_v28 = vrot.slane %v3503_v17, %v9661_v3  ;;  %v3615_v42 = vrot.slane %v3599_v40, %v9661_v3 }
 0x2ee   :  { %v3512_v51 = vcombine.high %v3510_v9, %v3510_v9  ;;  %v3526_v26 = vrot.slane %v3510_v9, %v9661_v3  ;;  %v10524_v2 = vrot.slane %v3511_v56, %v9661_v3  ;;  %v12712_v9 = vld [vmem:[#allocation13_spill] sm:$0xff]  ;;  %v3630_v49 = vcombine.low %v3608_v14, %v3615_v42 }
 0x2ef   :  { %v3341_v20 = vmul.f32 %v12712_v9, %v12683_v52 }
 0x2f0   :  { %v3540_v18 = vrot.slane %v3512_v51, %v9661_v3  ;;  %v8946_v35 = vcombine.high %v10520_v28, %v10524_v2  ;;  %v3638_v60 = vrot.slane %v3630_v49, %v9661_v3 }
 0x2f1   :  { %v3349_v59 = vcombine.high %v3341_v20, %v3341_v20 }
 0x2f2   :  { %v3697_v61 = vcombine.low %v3526_v26, %v3540_v18  ;;  %v8947_v16 = vcombine.high %v3526_v26, %v3540_v18  ;;  %v3705_v56 = vrot.slane %v8946_v35, %v9661_v3  ;;  %v3356_v26 = vrot.slane %v3341_v20, %v9661_v3 }
 0x2f3   :  { %v3363_v18 = vrot.slane %v3349_v59, %v9661_v3 }
 0x2f4   :  { %v3712_v51 = vrot.slane %v3697_v61, %v9661_v3  ;;  %v3364_v9 = vcombine.high %v3356_v26, %v3356_v26 }
 0x2f5   :  { %v3365_v49 = vcombine.high %v3363_v18, %v3363_v18 }
 0x318   :  { %v10516_v25 = vpop.xlane.xlu1 %2803 }
 0x319   :  { %12709 = vst [vmem:[#allocation18_spill] sm:$0xff] %v10516_v25  ;;  %v3645_v25 = vrot.slane %v3631_v12, %v9661_v3  ;;  %v3447_v12 = vcombine.high %v10491_v62, %v10491_v62 }
 0x31b   :  { %v3646_v42 = vcombine.low %v3638_v60, %v3645_v25  ;;  %v3379_v25 = vrot.slane %v3363_v18, %v9661_v3 }
 0x31c   :  { %v10527_v55 = vpop.xlane.xlu1 %3251 }
 0x31d   :  { %12710 = vst [vmem:[#allocation36_spill] sm:$0xff] %v10527_v55  ;;  %v3720_v55 = vcombine.low %v3705_v56, %v3712_v51  ;;  %v3372_v56 = vrot.slane %v3356_v26, %v9661_v3  ;;  %v3461_v51 = vrot.slane %v3447_v12, %v9661_v3  ;;  %v3395_v59 = vcombine.high %v3379_v25, %v3379_v25 }
 0x31f   :  { %v3727_v5 = vrot.slane %v3720_v55, %v9661_v3  ;;  %v3386_v55 = vrot.slane %v3364_v9, %v9661_v3 }
 0x320   :  { %v10535_v17 = vpop.xlane.xlu1 %3257 }
 0x321   :  { %12711 = vst [vmem:[#allocation37_spill] sm:$0xff] %v10535_v17  ;;  %v3719_v17 = vrot.slane %v8947_v16, %v9661_v3  ;;  %v3743_v16 = vsel %vm796_vm1, %v3646_v42, 0.0  ;;  %v3396_v60 = vcombine.high %v3386_v55, %v3386_v55 }
 0x323   :  { %v3734_v6 = vrot.slane %v3719_v17, %v9661_v3  ;;  %v3393_v17 = vrot.slane %v3365_v49, %v9661_v3  ;;  %v3550_v42 = vcombine.low %v3396_v60, %v3379_v25 }
 0x324   :  { %v3278_v44 = vpop.permute.xlu1 %3277 }
 0x325   :  { %v3289_v40 = vsel %vm838_vm3, %v3278_v44, 0.0  ;;  %v3735_v20 = vcombine.low %v3727_v5, %v3734_v6  ;;  %v3397_v62 = vcombine.high %v3393_v17, %v3393_v17  ;;  %v3551_v18 = vcombine.low %v3393_v17, %v3395_v59 }
 0x326   :  { %3290 = vadd.xlane.f32.xlu0 %v3289_v40  ;;  %v3394_v40 = vcombine.high %v3372_v56, %v3372_v56  ;;  %v3566_v12 = vrot.slane %v3550_v42, %v9661_v3  ;;  %v3546_v42 = vmul.f32 %v10002_v23, %v9961_v4  ;;  %v3545_v4 = vmul.f32 %v10006_v30, %v9965_v7 }
 0x327   :  { %v3749_v44 = vsel %vm806_vm2, %v3735_v20, 0.0  ;;  %v3552_v5 = vcombine.low %v3397_v62, %v10502_v0  ;;  %v3547_v23 = vmul.f32 %v10051_v46, %v10022_v39  ;;  %v10616_v46 = vmul.f32 %v10487_v36, %v9710_v48 }
 0x328   :  { %v3282_v52 = vpop.permute.xlu1 %3281  ;;  %v3549_v26 = vcombine.low %v3386_v55, %v3394_v40  ;;  %v3650_v55 = vcombine.low %v10520_v28, %v10524_v2 }
 0x329   :  { %v3295_v14 = vsel %vm838_vm3, %v3282_v52, 0.0  ;;  %v3580_v20 = vrot.slane %v3552_v5, %v9661_v3 }
 0x32a   :  { %3296 = vadd.xlane.f32.xlu0 %v3295_v14  ;;  %v3463_v14 = vcombine.high %v3461_v51, %v3461_v51  ;;  %v3559_v49 = vrot.slane %v3549_v26, %v9661_v3  ;;  %v3678_v60 = vrot.slane %v3650_v55, %v9661_v3  ;;  %v10612_v55 = vmul.f32 %v10483_v63, %v12690_v41 }
 0x32c   :  { %v3284_v35 = vpop.permute.xlu1 %3283  ;;  %v3491_v9 = vrot.slane %v3463_v14, %v9661_v3  ;;  %v3581_v17 = vcombine.low %v3559_v49, %v3566_v12  ;;  %v3895_v41 = vrot.slane %v10612_v55, %v9661_v3 }
 0x32d   :  { %v3298_v61 = vsel %vm838_vm3, %v3284_v35, 0.0  ;;  %v3470_v35 = vrot.slane %v10499_v47, %v9661_v3 }
 0x32e   :  { %3299 = vadd.xlane.f32.xlu0 %v3298_v61  ;;  %v3477_v61 = vrot.slane %v3461_v51, %v9661_v3 }
 0x32f   :  { %v8944_v56 = vcombine.high %v3470_v35, %v10514_v57  ;;  %v3589_v57 = vrot.slane %v3581_v17, %v9661_v3 }
 0x330   :  { %v3648_v0 = vcombine.low %v3477_v61, %v3491_v9  ;;  %v8945_v25 = vcombine.high %v3477_v61, %v3491_v9 }
 0x332   :  { %3744 = vadd.xlane.f32.xlu0 %v3743_v16  ;;  %v3573_v16 = vrot.slane %v3551_v18, %v9661_v3  ;;  %v3664_v40 = vrot.slane %v3648_v0, %v9661_v3  ;;  %v3671_v59 = vrot.slane %v8945_v25, %v9661_v3 }
 0x334   :  { %v3582_v51 = vcombine.low %v3573_v16, %v3580_v20  ;;  %v3680_v28 = vcombine.low %v3671_v59, %v3678_v60  ;;  %v3548_v20 = vmul.f32 %v10047_v13, %v10029_v10  ;;  %v12715_v10 = vld [vmem:[#allocation19_spill] sm:$0xff]  ;;  %v3993_v60 = vrot.slane %v10616_v46, %v9661_v3 }
 0x335   :  { %v3937_v13 = vcombine.high %v12715_v10, %v12715_v10  ;;  %v3944_v59 = vrot.slane %v12715_v10, %v9661_v3 }
 0x336   :  { %v10560_v52 = vpop.xlane.xlu0 %2800  ;;  %3750 = vadd.xlane.f32.xlu0 %v3749_v44  ;;  %v3657_v44 = vrot.slane %v8944_v56, %v9661_v3  ;;  %v3596_v14 = vrot.slane %v3582_v51, %v9661_v3  ;;  %v3694_v35 = vrot.slane %v3680_v28, %v9661_v3  ;;  %v12714_v56 = vld [vmem:[#allocation15_spill] sm:$0xff] }
 0x337   :  { %v3839_v0 = vcombine.high %v12714_v56, %v12714_v56  ;;  %v3846_v25 = vrot.slane %v12714_v56, %v9661_v3  ;;  %v3951_v48 = vrot.slane %v3937_v13, %v9661_v3 }
 0x338   :  { %v3679_v26 = vcombine.low %v3657_v44, %v3664_v40  ;;  %v3597_v18 = vcombine.low %v3589_v57, %v3596_v14 }
 0x339   :  { %v3853_v7 = vrot.slane %v3839_v0, %v9661_v3  ;;  %v3854_v30 = vcombine.high %v3846_v25, %v3846_v25  ;;  %v3862_v17 = vrot.slane %v3846_v25, %v9661_v3  ;;  %v10642_v0 = vrot.slane %v3993_v60, %v9661_v3 }
 0x33a   :  { %v10563_v6 = vpop.xlane.xlu0 %2806  ;;  %v3687_v5 = vrot.slane %v3679_v26, %v9661_v3  ;;  %v3740_v49 = vsel %vm796_vm1, %v3597_v18, 0.0  ;;  %v3952_v18 = vcombine.high %v3944_v59, %v3944_v59 }
 0x33b   :  { %v3855_v39 = vcombine.high %v3853_v7, %v3853_v7  ;;  %v3876_v51 = vrot.slane %v3854_v30, %v9661_v3  ;;  %v3869_v44 = vrot.slane %v3853_v7, %v9661_v3  ;;  %v3884_v57 = vcombine.high %v3862_v17, %v3862_v17 }
 0x33c   :  { %v3695_v12 = vcombine.low %v3687_v5, %v3694_v35  ;;  %v3953_v5 = vcombine.high %v3951_v48, %v3951_v48  ;;  %v4001_v35 = vcombine.high %v3993_v60, %v3993_v60 }
 0x33d   :  { %v3883_v40 = vrot.slane %v3855_v39, %v9661_v3  ;;  %v3886_v14 = vcombine.high %v3876_v51, %v3876_v51  ;;  %v3885_v26 = vcombine.high %v3869_v44, %v3869_v44 }
 0x33e   :  { %v10576_v47 = vpop.xlane.xlu0 %2809  ;;  %v3746_v16 = vsel %vm796_vm1, %v3695_v12, 0.0  ;;  %v3981_v56 = vrot.slane %v3953_v5, %v9661_v3  ;;  %v10645_v25 = vrot.slane %v4001_v35, %v9661_v3 }
 0x33f   :  { %12713 = vst [vmem:[#allocation13_spill] sm:$0xff] %v10576_v47  ;;  %v3887_v28 = vcombine.high %v3883_v40, %v3883_v40  ;;  %v4041_v12 = vcombine.low %v3883_v40, %v3885_v26 }
 0x340   :  { %v4140_v40 = vcombine.low %v10642_v0, %v10645_v25 }
 0x341   :  { %v4063_v10 = vrot.slane %v4041_v12, %v9661_v3 }
 0x342   :  { %v10582_v62 = vpop.xlane.xlu0 %3254 }
 0x346   :  { %v10586_v2 = vpop.xlane.xlu0 %3260 }
 0x34a   :  { %v3280_v61 = vpop.permute.xlu0 %3279 }
 0x34b   :  { %v3292_v9 = vsel %vm838_vm3, %v3280_v61, 0.0 }
 0x34c   :  { %3769 = vrot.lane.b32.xlu0 %v3546_v42, %s9424_s22  ;;  %3293 = vadd.xlane.f32.xlu1 %v3292_v9  ;;  %v10632_v42 = vrot.slane %v3895_v41, %v9661_v3  ;;  %v4039_v9 = vcombine.low %v3876_v51, %v3884_v57 }
 0x34e   :  { %v4049_v30 = vrot.slane %v4039_v9, %v9661_v3 }
 0x350   :  { %3741 = vadd.xlane.f32.xlu1 %v3740_v49  ;;  %v4040_v49 = vcombine.low %v3886_v14, %v3869_v44 }
 0x352   :  { %v4056_v39 = vrot.slane %v4040_v49, %v9661_v3 }
 0x354   :  { %3747 = vadd.xlane.f32.xlu1 %v3746_v16  ;;  %v4042_v16 = vcombine.low %v3887_v28, %v10632_v42  ;;  %v4168_v28 = vrot.slane %v4140_v40, %v9661_v3 }
 0x356   :  { %v4070_v13 = vrot.slane %v4042_v16, %v9661_v3 }
 0x358   :  { %v4072_v60 = vcombine.low %v4063_v10, %v4070_v13  ;;  %v3888_v13 = vcombine.high %v10612_v55, %v10612_v55  ;;  %v3933_v55 = vcombine.high %v10632_v42, %v10632_v42 }
 0x35a   :  { %v4086_v35 = vrot.slane %v4072_v60, %v9661_v3 }
 0x365   :  { %3767 = vrot.lane.b32.xlu1 %v3545_v4, %s9424_s22  ;;  %v3960_v4 = vrot.slane %v3944_v59, %v9661_v3 }
 0x369   :  { %3771 = vrot.lane.b32.xlu1 %v3547_v23, %s9424_s22  ;;  %v3967_v23 = vrot.slane %v3951_v48, %v9661_v3  ;;  %v4071_v48 = vcombine.low %v4049_v30, %v4056_v39 }
 0x36b   :  { %v4138_v51 = vcombine.low %v3967_v23, %v3981_v56  ;;  %v8949_v44 = vcombine.high %v3967_v23, %v3981_v56  ;;  %v4079_v5 = vrot.slane %v4071_v48, %v9661_v3  ;;  %v3986_v48 = vcombine.high %v10616_v46, %v10616_v46 }
 0x36d   :  { %3773 = vrot.lane.b32.xlu1 %v3548_v20, %s9424_s22  ;;  %v3974_v20 = vrot.slane %v3952_v18, %v9661_v3  ;;  %v4154_v14 = vrot.slane %v4138_v51, %v9661_v3  ;;  %v4161_v26 = vrot.slane %v8949_v44, %v9661_v3  ;;  %v4087_v16 = vcombine.low %v4079_v5, %v4086_v35 }
 0x36e   :  { %v3902_v51 = vrot.slane %v3888_v13, %v9661_v3  ;;  %v3903_v44 = vcombine.high %v3895_v41, %v3895_v41 }
 0x36f   :  { %v8948_v17 = vcombine.high %v3960_v4, %v3974_v20  ;;  %v4170_v49 = vcombine.low %v4161_v26, %v4168_v28  ;;  %v4230_v39 = vsel %vm796_vm1, %v4087_v16, 0.0  ;;  %v4000_v26 = vrot.slane %v3986_v48, %v9661_v3 }
 0x370   :  { %v3904_v40 = vcombine.high %v3902_v51, %v3902_v51  ;;  %v3925_v60 = vrot.slane %v3903_v44, %v9661_v3 }
 0x371   :  { %v4147_v57 = vrot.slane %v8948_v17, %v9661_v3  ;;  %v4184_v23 = vrot.slane %v4170_v49, %v9661_v3 }
 0x372   :  { %v3935_v28 = vcombine.high %v3925_v60, %v3925_v60  ;;  %v4088_v49 = vcombine.low %v3925_v60, %v3933_v55 }
 0x373   :  { %v4169_v9 = vcombine.low %v4147_v57, %v4154_v14  ;;  %v3918_v57 = vrot.slane %v3902_v51, %v9661_v3  ;;  %v3932_v14 = vrot.slane %v3904_v40, %v9661_v3 }
 0x375   :  { %v4177_v4 = vrot.slane %v4169_v9, %v9661_v3  ;;  %v3934_v35 = vcombine.high %v3918_v57, %v3918_v57  ;;  %v3936_v41 = vcombine.high %v3932_v14, %v3932_v14  ;;  %v4002_v9 = vcombine.high %v4000_v26, %v4000_v26 }
 0x376   :  { %v4089_v16 = vcombine.low %v3935_v28, %v3918_v57 }
 0x377   :  { %v4185_v10 = vcombine.low %v4177_v4, %v4184_v23  ;;  %v4090_v4 = vcombine.low %v3932_v14, %v3934_v35  ;;  %v4091_v23 = vcombine.low %v3936_v41, %v3974_v20  ;;  %v8950_v20 = vcombine.high %v10642_v0, %v10645_v25 }
 0x378   :  { %v4105_v42 = vrot.slane %v4089_v16, %v9661_v3 }
 0x379   :  { %v4236_v17 = vsel %vm796_vm1, %v4185_v10, 0.0  ;;  %v4112_v13 = vrot.slane %v4090_v4, %v9661_v3  ;;  %v4195_v57 = vrot.slane %v8950_v20, %v9661_v3  ;;  %v4324_v20 = vmul.f32 %v10487_v36, %v9731_v19 }
 0x37b   :  { %v4483_v19 = vrot.slane %v4324_v20, %v9661_v3 }
 0x3af   :  { %v10634_v61 = vpop.xlane.xlu0 %3290 }
 0x3b3   :  { %v10647_v7 = vpop.xlane.xlu0 %3296 }
 0x3b7   :  { %v10655_v59 = vpop.xlane.xlu0 %3299 }
 0x3b8   :  { %12716 = vst [vmem:[#allocation15_spill] sm:$0xff] %v10655_v59 }
 0x3bb   :  { %v10661_v18 = vpop.xlane.xlu0 %3744 }
 0x3bf   :  { %v10665_v12 = vpop.xlane.xlu0 %3750 }
 0x3c0   :  { %12717 = vst [vmem:[#allocation19_spill] sm:$0xff] %v10665_v12 }
 0x3c3   :  { %v3770_v56 = vpop.permute.xlu0 %3769 }
 0x3c4   :  { %v3782_v30 = vsel %vm838_vm3, %v3770_v56, 0.0  ;;  %v4016_v56 = vrot.slane %v4000_v26, %v9661_v3 }
 0x3c5   :  { %3783 = vadd.xlane.f32.xlu1 %v3782_v30  ;;  %v4030_v30 = vrot.slane %v4002_v9, %v9661_v3 }
 0x3c7   :  { %v4187_v51 = vcombine.low %v4016_v56, %v4030_v30  ;;  %v8951_v60 = vcombine.high %v4016_v56, %v4030_v30  ;;  %v12719_v56 = vld [vmem:[#allocation20_spill] sm:$0xff]  ;;  %v4322_v30 = vmul.f32 %v10483_v63, %v9665_v11 }
 0x3c9   :  { %4231 = vadd.xlane.f32.xlu1 %v4230_v39  ;;  %v4098_v39 = vrot.slane %v4088_v49, %v9661_v3  ;;  %v4202_v14 = vrot.slane %v4187_v51, %v9661_v3  ;;  %v4209_v55 = vrot.slane %v8951_v60, %v9661_v3 }
 0x3cb   :  { %v4120_v44 = vcombine.low %v4098_v39, %v4105_v42  ;;  %v4224_v49 = vrot.slane %v4209_v55, %v9661_v3  ;;  %v4378_v39 = vcombine.high %v4322_v30, %v4322_v30  ;;  %v10721_v42 = vmul.f32 %v12708_v1, %v12703_v54 }
 0x3cd   :  { %4237 = vadd.xlane.f32.xlu1 %v4236_v17  ;;  %v4119_v17 = vrot.slane %v4091_v23, %v9661_v3  ;;  %v4128_v0 = vrot.slane %v4120_v44, %v9661_v3 }
 0x3cf   :  { %v4121_v48 = vcombine.low %v4112_v13, %v4119_v17  ;;  %v4385_v13 = vrot.slane %v4322_v30, %v9661_v3  ;;  %v4392_v17 = vrot.slane %v4378_v39, %v9661_v3 }
 0x3d1   :  { %v4135_v25 = vrot.slane %v4121_v48, %v9661_v3  ;;  %v4393_v51 = vcombine.high %v4385_v13, %v4385_v13  ;;  %v4394_v44 = vcombine.high %v4392_v17, %v4392_v17  ;;  %v4476_v48 = vcombine.high %v4324_v20, %v4324_v20 }
 0x3d2   :  { %v10732_v11 = vrot.slane %v4385_v13, %v9661_v3  ;;  %v4408_v54 = vrot.slane %v4392_v17, %v9661_v3 }
 0x3d3   :  { %v4136_v41 = vcombine.low %v4128_v0, %v4135_v25  ;;  %v4415_v63 = vrot.slane %v4393_v51, %v9661_v3  ;;  %v4422_v1 = vrot.slane %v4394_v44, %v9661_v3  ;;  %v4490_v36 = vrot.slane %v4476_v48, %v9661_v3 }
 0x3d4   :  { %v4491_v25 = vcombine.high %v4483_v19, %v4483_v19 }
 0x3d5   :  { %v10683_v5 = vpop.xlane.xlu1 %3293  ;;  %v4492_v55 = vcombine.high %v4490_v36, %v4490_v36 }
 0x3d9   :  { %v10685_v46 = vpop.xlane.xlu1 %3741 }
 0x3dd   :  { %v10691_v10 = vpop.xlane.xlu1 %3747 }
 0x3de   :  { %12718 = vst [vmem:[#allocation38_spill] sm:$0xff] %v10691_v10  ;;  %4257 = vrot.lane.b32.xlu1 %v10016_v38, %s9424_s22 }
 0x3e1   :  { %v3768_v40 = vpop.permute.xlu1 %3767 }
 0x3e2   :  { %4261 = vrot.lane.b32.xlu1 %v10062_v53, %s9424_s22  ;;  %v3779_v38 = vsel %vm838_vm3, %v3768_v40, 0.0  ;;  %v4210_v53 = vcombine.low %v4195_v57, %v4202_v14  ;;  %v10729_v40 = vrot.slane %v10721_v42, %v9661_v3  ;;  %v4423_v57 = vcombine.high %v10732_v11, %v10732_v11 }
 0x3e3   :  { %3780 = vadd.xlane.f32.xlu0 %v3779_v38  ;;  %v4424_v14 = vcombine.high %v4408_v54, %v4408_v54  ;;  %v4425_v38 = vcombine.high %v4415_v63, %v4415_v63 }
 0x3e4   :  { %v4217_v9 = vrot.slane %v4210_v53, %v9661_v3  ;;  %v4442_v60 = vcombine.high %v10729_v40, %v10729_v40 }
 0x3e5   :  { %v3772_v26 = vpop.permute.xlu1 %3771 }
 0x3e6   :  { %4263 = vrot.lane.b32.xlu1 %v10055_v32, %s9424_s22  ;;  %v3785_v28 = vsel %vm838_vm3, %v3772_v26, 0.0  ;;  %v4233_v32 = vsel %vm796_vm1, %v4136_v41, 0.0  ;;  %v4225_v4 = vcombine.low %v4217_v9, %v4224_v49  ;;  %v4426_v26 = vcombine.high %v4422_v1, %v4422_v1 }
 0x3e7   :  { %3786 = vadd.xlane.f32.xlu0 %v3785_v28  ;;  %v10744_v0 = vrot.slane %v4442_v60, %v9661_v3  ;;  %v4578_v28 = vcombine.low %v4415_v63, %v4423_v57  ;;  %v4580_v41 = vcombine.low %v4422_v1, %v4424_v14  ;;  %v10750_v49 = vrot.slane %v4483_v19, %v9661_v3 }
 0x3e8   :  { %v4239_v23 = vsel %vm806_vm2, %v4225_v4, 0.0  ;;  %v4520_v4 = vrot.slane %v4492_v55, %v9661_v3 }
 0x3e9   :  { %v3774_v35 = vpop.permute.xlu1 %3773  ;;  %v4581_v9 = vcombine.low %v4426_v26, %v10744_v0  ;;  %v4602_v39 = vrot.slane %v4580_v41, %v9661_v3 }
 0x3ea   :  { %v3788_v16 = vsel %vm838_vm3, %v3774_v35, 0.0  ;;  %v4579_v35 = vcombine.low %v4425_v38, %v4408_v54 }
 0x3eb   :  { %3789 = vadd.xlane.f32.xlu0 %v3788_v16  ;;  %v4506_v16 = vrot.slane %v4490_v36, %v9661_v3  ;;  %v4609_v13 = vrot.slane %v4581_v9, %v9661_v3  ;;  %v12723_v36 = vld [vmem:[#allocation16_spill] sm:$0xff] }
 0x3ec   :  { %v4595_v30 = vrot.slane %v4579_v35, %v9661_v3  ;;  %v4329_v57 = vcombine.high %v12723_v36, %v12723_v36  ;;  %v4336_v35 = vrot.slane %v12723_v36, %v9661_v3 }
 0x3ed   :  { %v4677_v20 = vcombine.low %v4506_v16, %v4520_v4  ;;  %v4611_v48 = vcombine.low %v4602_v39, %v4609_v13  ;;  %v8955_v54 = vcombine.high %v4506_v16, %v4520_v4 }
 0x3ee   :  { %v4343_v41 = vrot.slane %v4329_v57, %v9661_v3  ;;  %v4344_v39 = vcombine.high %v4336_v35, %v4336_v35 }
 0x3ef   :  { %4234 = vadd.xlane.f32.xlu0 %v4233_v32  ;;  %v10754_v32 = vrot.slane %v4491_v25, %v9661_v3  ;;  %v4692_v1 = vrot.slane %v4677_v20, %v9661_v3  ;;  %v4625_v38 = vrot.slane %v4611_v48, %v9661_v3  ;;  %v4699_v26 = vrot.slane %v8955_v54, %v9661_v3 }
 0x3f0   :  { %v4345_v13 = vcombine.high %v4343_v41, %v4343_v41  ;;  %v4352_v48 = vrot.slane %v4336_v35, %v9661_v3  ;;  %v4359_v54 = vrot.slane %v4343_v41, %v9661_v3 }
 0x3f1   :  { %v8954_v17 = vcombine.high %v10750_v49, %v10754_v32  ;;  %v4714_v4 = vrot.slane %v4699_v26, %v9661_v3 }
 0x3f2   :  { %v4374_v36 = vcombine.high %v4352_v48, %v4352_v48  ;;  %v4375_v57 = vcombine.high %v4359_v54, %v4359_v54 }
 0x3f3   :  { %4240 = vadd.xlane.f32.xlu0 %v4239_v23  ;;  %v4685_v63 = vrot.slane %v8954_v17, %v9661_v3 }
 0x3f5   :  { %v4700_v25 = vcombine.low %v4685_v63, %v4692_v1  ;;  %v4366_v63 = vrot.slane %v4344_v39, %v9661_v3  ;;  %v4373_v1 = vrot.slane %v4345_v13, %v9661_v3 }
 0x3f7   :  { %v4707_v16 = vrot.slane %v4700_v25, %v9661_v3  ;;  %v4529_v25 = vcombine.low %v4366_v63, %v4374_v36 }
 0x3f9   :  { %v4715_v20 = vcombine.low %v4707_v16, %v4714_v4 }
 0x409   :  { %4259 = vrot.lane.b32.xlu0 %v12719_v56, %s9424_s22  ;;  %v4588_v56 = vrot.slane %v4578_v28, %v9661_v3 }
 0x40b   :  { %v4610_v44 = vcombine.low %v4588_v56, %v4595_v30 }
 0x40d   :  { %v4618_v14 = vrot.slane %v4610_v44, %v9661_v3  ;;  %v4427_v44 = vcombine.high %v10721_v42, %v10721_v42 }
 0x40f   :  { %v4626_v9 = vcombine.low %v4618_v14, %v4625_v38  ;;  %v4376_v14 = vcombine.high %v4366_v63, %v4366_v63  ;;  %v4377_v38 = vcombine.high %v4373_v1, %v4373_v1 }
 0x411   :  { %v4723_v17 = vsel %vm796_vm1, %v4626_v9, 0.0  ;;  %v4532_v35 = vcombine.low %v4377_v38, %v10732_v11  ;;  %v4450_v9 = vrot.slane %v10729_v40, %v9661_v3 }
 0x413   :  { %v4560_v13 = vrot.slane %v4532_v35, %v9661_v3 }
 0x44e   :  { %v10746_v53 = vpop.xlane.xlu1 %3783 }
 0x44f   :  { %12720 = vst [vmem:[#allocation20_spill] sm:$0xff] %v10746_v53 }
 0x452   :  { %v10757_v23 = vpop.xlane.xlu1 %4231 }
 0x453   :  { %12721 = vst [vmem:[#allocation39_spill] sm:$0xff] %v10757_v23 }
 0x456   :  { %v10765_v51 = vpop.xlane.xlu1 %4237 }
 0x457   :  { %12722 = vst [vmem:[#allocation40_spill] sm:$0xff] %v10765_v51 }
 0x45a   :  { %v4258_v60 = vpop.permute.xlu1 %4257 }
 0x45b   :  { %v4269_v19 = vsel %vm838_vm3, %v4258_v60, 0.0  ;;  %v4729_v60 = vsel %vm806_vm2, %v4715_v20, 0.0 }
 0x45c   :  { %4270 = vadd.xlane.f32.xlu0 %v4269_v19  ;;  %v4441_v19 = vrot.slane %v4427_v44, %v9661_v3  ;;  %v4630_v44 = vcombine.low %v10750_v49, %v10754_v32 }
 0x45e   :  { %v4262_v55 = vpop.permute.xlu1 %4261  ;;  %v4443_v42 = vcombine.high %v4441_v19, %v4441_v19  ;;  %v4457_v16 = vrot.slane %v4441_v19, %v9661_v3  ;;  %v4658_v19 = vrot.slane %v4630_v44, %v9661_v3  ;;  %v10855_v44 = vld [vmem:[%s12609_s3 + $0x28] sm:$0xff] }
 0x45f   :  { %v4275_v28 = vsel %vm838_vm3, %v4262_v55, 0.0  ;;  %v4530_v55 = vcombine.low %v4376_v14, %v4359_v54 }
 0x460   :  { %4276 = vadd.xlane.f32.xlu0 %v4275_v28  ;;  %v4531_v28 = vcombine.low %v4373_v1, %v4375_v57  ;;  %v4471_v4 = vrot.slane %v4443_v42, %v9661_v3 }
 0x462   :  { %v4264_v56 = vpop.permute.xlu1 %4263  ;;  %v4553_v39 = vrot.slane %v4531_v28, %v9661_v3  ;;  %v4628_v11 = vcombine.low %v4457_v16, %v4471_v4  ;;  %v8953_v20 = vcombine.high %v4457_v16, %v4471_v4  ;;  %v12729_v28 = vld [vmem:[#allocation21_spill] sm:$0xff] }
 0x463   :  { %v4278_v30 = vsel %vm838_vm3, %v4264_v56, 0.0  ;;  %v4539_v56 = vrot.slane %v4529_v25, %v9661_v3 }
 0x464   :  { %4279 = vadd.xlane.f32.xlu0 %v4278_v30  ;;  %v4546_v30 = vrot.slane %v4530_v55, %v9661_v3  ;;  %v4562_v54 = vcombine.low %v4553_v39, %v4560_v13  ;;  %v4644_v1 = vrot.slane %v4628_v11, %v9661_v3  ;;  %v12732_v39 = vld [vmem:[#allocation23_spill] sm:$0xff]  ;;  %v10845_v11 = vld [vmem:[%s12609_s3 + $0x8] sm:$0xff] }
 0x465   :  { %v10835_v13 = vld [vmem:[%s12608_s2 + $0x10] sm:$0xff] }
 0x466   :  { %v4561_v48 = vcombine.low %v4539_v56, %v4546_v30  ;;  %v4576_v57 = vrot.slane %v4562_v54, %v9661_v3  ;;  %v12730_v56 = vld [vmem:[#allocation22_spill] sm:$0xff]  ;;  %v12731_v30 = vld [vmem:[#allocation24_spill] sm:$0xff]  ;;  %v4831_v54 = vrot.slane %v10835_v13, 7 }
 0x468   :  { %4724 = vadd.xlane.f32.xlu0 %v4723_v17  ;;  %v8952_v17 = vcombine.high %v4450_v9, %v10744_v0  ;;  %v4569_v0 = vrot.slane %v4561_v48, %v9661_v3  ;;  %v10860_v48 = vld [vmem:[%s12608_s2 + $0x20] sm:$0xff] }
 0x46a   :  { %v4637_v63 = vrot.slane %v8952_v17, %v9661_v3  ;;  %v4577_v38 = vcombine.low %v4569_v0, %v4576_v57  ;;  %v10840_v17 = vld [vmem:[%s12608_s2 + $0x28] sm:$0xff]  ;;  %v10874_v0 = vld [vmem:[%s12609_s3 + $0x20] sm:$0xff]  ;;  %v4882_v57 = vrot.slane %v10855_v44, 7 }
 0x46c   :  { %4730 = vadd.xlane.f32.xlu0 %v4729_v60  ;;  %v10791_v26 = vpop.xlane.xlu0 %3780  ;;  %v4651_v60 = vrot.slane %v8953_v20, %v9661_v3  ;;  %v4659_v14 = vcombine.low %v4637_v63, %v4644_v1  ;;  %v4720_v9 = vsel %vm796_vm1, %v4577_v38, 0.0  ;;  %v10850_v20 = vld [vmem:[%s12608_s2 + $0x8] sm:$0xff]  ;;  %v4834_v63 = vrot.slane %v10840_v17, 7 }
 0x46d   :  { %12724 = vst [vmem:[#allocation16_spill] sm:$0xff] %v10791_v26  ;;  %v4878_v1 = vrot.slane %v10845_v11, 7  ;;  %v4881_v38 = vrot.slane %v10874_v0, 7 }
 0x46e   :  { %v4660_v49 = vcombine.low %v4651_v60, %v4658_v19  ;;  %v4667_v42 = vrot.slane %v4659_v14, %v9661_v3  ;;  %v4830_v60 = vrot.slane %v10850_v20, 7  ;;  %v10869_v19 = vld [vmem:[%s12609_s3 + $0x10] sm:$0xff]  ;;  %v4833_v14 = vrot.slane %v10860_v48, 7 }
 0x470   :  { %v10794_v41 = vpop.xlane.xlu0 %3786  ;;  %v4674_v25 = vrot.slane %v4660_v49, %v9661_v3  ;;  %v4879_v49 = vrot.slane %v10869_v19, 7 }
 0x471   :  { %12725 = vst [vmem:[#allocation41_spill] sm:$0xff] %v10794_v41 }
 0x472   :  { %v4675_v16 = vcombine.low %v4667_v42, %v4674_v25  ;;  %v4843_v42 = vsub.f32 %v10835_v13, %v4831_v54  ;;  %v4846_v25 = vsub.f32 %v10840_v17, %v4834_v63 }
 0x474   :  { %v10807_v40 = vpop.xlane.xlu0 %3789  ;;  %v4726_v4 = vsel %vm796_vm1, %v4675_v16, 0.0  ;;  %v4921_v16 = vmul.f32 0.5, %v4843_v42 }
 0x475   :  { %12726 = vst [vmem:[#allocation42_spill] sm:$0xff] %v10807_v40 }
 0x476   :  { %9083 = vtanh.f32 %v4921_v16 }
 0x478   :  { %v10813_v36 = vpop.xlane.xlu0 %4234 }
 0x479   :  { %12727 = vst [vmem:[#allocation43_spill] sm:$0xff] %v10813_v36 }
 0x47c   :  { %v10817_v32 = vpop.xlane.xlu0 %4240 }
 0x47d   :  { %12728 = vst [vmem:[#allocation44_spill] sm:$0xff] %v10817_v32  ;;  %v4893_v32 = vsub.f32 %v10874_v0, %v4881_v38 }
 0x480   :  { %v4260_v55 = vpop.permute.xlu0 %4259 }
 0x481   :  { %v4272_v35 = vsel %vm838_vm3, %v4260_v55, 0.0  ;;  %v4890_v55 = vsub.f32 %v10845_v11, %v4878_v1 }
 0x482   :  { %4749 = vrot.lane.b32.xlu0 %v12729_v28, %s9424_s22  ;;  %4273 = vadd.xlane.f32.xlu1 %v4272_v35  ;;  %v4842_v28 = vsub.f32 %v10850_v20, %v4830_v60  ;;  %v4894_v35 = vsub.f32 %v10855_v44, %v4882_v57  ;;  %v4959_v60 = vmul.f32 0.5, %v4893_v32 }
 0x483   :  { %v9084_v57 = vpop.eup %9083 }
 0x484   :  { %v4960_v54 = vmul.f32 0.5, %v4894_v35 }
 0x486   :  { %4721 = vadd.xlane.f32.xlu1 %v4720_v9  ;;  %v4845_v9 = vsub.f32 %v10860_v48, %v4833_v14 }
 0x488   :  { %v4923_v63 = vmul.f32 0.5, %v4845_v9 }
 0x48a   :  { %4727 = vadd.xlane.f32.xlu1 %v4726_v4  ;;  %v4924_v4 = vmul.f32 0.5, %v4846_v25 }
 0x48c   :  { %9085 = vtanh.f32 %v4924_v4 }
 0x499   :  { %v9086_v14 = vpop.eup %9085 }
 0x49a   :  { %v10894_v9 = vmul.f32 %v9086_v14, %v9086_v14 }
 0x49b   :  { %4747 = vrot.lane.b32.xlu1 %v12730_v56, %s9424_s22  ;;  %v4956_v56 = vmul.f32 0.5, %v4890_v55 }
 0x49d   :  { %9087 = vtanh.f32 %v4956_v56 }
 0x49f   :  { %4751 = vrot.lane.b32.xlu1 %v12731_v30, %s9424_s22  ;;  %v4891_v30 = vsub.f32 %v10869_v19, %v4879_v49  ;;  %v10888_v49 = vmul.f32 %v9084_v57, %v9084_v57 }
 0x4a1   :  { %v4957_v1 = vmul.f32 0.5, %v4891_v30 }
 0x4a3   :  { %4753 = vrot.lane.b32.xlu1 %v12732_v39, %s9424_s22  ;;  %v4920_v39 = vmul.f32 0.5, %v4842_v28 }
 0x4a5   :  { %9089 = vtanh.f32 %v4920_v39 }
 0x4a6   :  { %9091 = vtanh.f32 %v4960_v54 }
 0x4a7   :  { %9093 = vtanh.f32 %v4923_v63 }
 0x4a8   :  { %9095 = vtanh.f32 %v4957_v1 }
 0x4a9   :  { %9097 = vtanh.f32 %v4959_v60 }
 0x4aa   :  { %v9088_v42 = vpop.eup %9087 }
 0x4ab   :  { %v10890_v55 = vmul.f32 %v9088_v42, %v9088_v42 }
 0x4ad   :  { %12733 = vst [vmem:[#allocation21_spill] sm:$0xff] %v10890_v55  ;;  %v10898_v32 = vmul.f32 %v10890_v55, %v10888_v49 }
 0x4af   :  { %12734 = vst [vmem:[#allocation22_spill] sm:$0xff] %v10898_v32 }
 0x4b2   :  { %v9090_v25 = vpop.eup %9089 }
 0x4b3   :  { %v9092_v38 = vpop.eup %9091  ;;  %v10892_v28 = vmul.f32 %v9090_v25, %v9090_v25 }
 0x4b4   :  { %v9094_v35 = vpop.eup %9093  ;;  %v10900_v16 = vmul.f32 %v9092_v38, %v9092_v38 }
 0x4b5   :  { %v9096_v4 = vpop.eup %9095  ;;  %v10906_v30 = vmul.f32 %v10890_v55, %v10892_v28  ;;  %v10908_v39 = vmul.f32 %v9094_v35, %v9094_v35 }
 0x4b6   :  { %12735 = vst [vmem:[#allocation24_spill] sm:$0xff] %v10900_v16  ;;  %v9098_v54 = vpop.eup %9097  ;;  %v10912_v63 = vmul.f32 %v10900_v16, %v10894_v9  ;;  %v10914_v1 = vmul.f32 %v9096_v4, %v9096_v4 }
 0x4b7   :  { %12737 = vst [vmem:[#allocation45_spill] sm:$0xff] %v10906_v30  ;;  %v10918_v60 = vmul.f32 %v10900_v16, %v10908_v39  ;;  %v10920_v57 = vmul.f32 %v9098_v54, %v9098_v54  ;;  %v10964_v30 = vld [vmem:[%s12608_s2] sm:$0xff] }
 0x4b8   :  { %12738 = vst [vmem:[#allocation46_spill] sm:$0xff] %v10912_v63  ;;  %12739 = vst [vmem:[#allocation47_spill] sm:$0xff] %v10914_v1  ;;  %v10924_v14 = vmul.f32 %v10914_v1, %v10892_v28  ;;  %v10928_v42 = vmul.f32 %v10914_v1, %v10888_v49  ;;  %v10956_v1 = vld [vmem:[%s12609_s3 + $0x18] sm:$0xff] }
 0x4b9   :  { %12740 = vst [vmem:[#allocation48_spill] sm:$0xff] %v10918_v60  ;;  %12741 = vst [vmem:[#allocation49_spill] sm:$0xff] %v10920_v57  ;;  %v10934_v38 = vmul.f32 %v10920_v57, %v10908_v39  ;;  %v10938_v35 = vmul.f32 %v10920_v57, %v10894_v9 }
 0x4ba   :  { %12742 = vst [vmem:[#allocation50_spill] sm:$0xff] %v10924_v14  ;;  %12743 = vst [vmem:[#allocation51_spill] sm:$0xff] %v10928_v42  ;;  %v10950_v42 = vld [vmem:[%s12608_s2 + $0x18] sm:$0xff] }
 0x4bb   :  { %12745 = vst [vmem:[#allocation53_spill] sm:$0xff] %v10934_v38  ;;  %12746 = vst [vmem:[#allocation54_spill] sm:$0xff] %v10938_v35  ;;  %v4832_v16 = vrot.slane %v10950_v42, 7  ;;  %v4880_v35 = vrot.slane %v10956_v1, 7 }
 0x4bd   :  { %v4844_v32 = vsub.f32 %v10950_v42, %v4832_v16  ;;  %v4892_v38 = vsub.f32 %v10956_v1, %v4880_v35 }
 0x4e5   :  { %v10902_v56 = vpop.xlane.xlu0 %4270 }
 0x4e6   :  { %12736 = vst [vmem:[#allocation23_spill] sm:$0xff] %v10902_v56 }
 0x4e9   :  { %v10930_v25 = vpop.xlane.xlu0 %4276 }
 0x4ea   :  { %12744 = vst [vmem:[#allocation52_spill] sm:$0xff] %v10930_v25 }
 0x4ed   :  { %v10940_v4 = vpop.xlane.xlu0 %4279 }
 0x4ee   :  { %12747 = vst [vmem:[#allocation55_spill] sm:$0xff] %v10940_v4 }
 0x4f1   :  { %v10942_v54 = vpop.xlane.xlu0 %4724 }
 0x4f2   :  { %12748 = vst [vmem:[#allocation56_spill] sm:$0xff] %v10942_v54 }
 0x4f5   :  { %v10944_v63 = vpop.xlane.xlu0 %4730 }
 0x4f6   :  { %12749 = vst [vmem:[#allocation57_spill] sm:$0xff] %v10944_v63 }
 0x4f9   :  { %v4750_v60 = vpop.permute.xlu0 %4749 }
 0x4fa   :  { %v4762_v14 = vsel %vm838_vm3, %v4750_v60, 0.0  ;;  %v4922_v60 = vmul.f32 0.5, %v4844_v32 }
 0x4fb   :  { %4763 = vadd.xlane.f32.xlu1 %v4762_v14  ;;  %v4958_v14 = vmul.f32 0.5, %v4892_v38 }
 0x4fc   :  { %9099 = vtanh.f32 %v4922_v60  ;;  %v10981_v60 = vld [vmem:[%s12609_s3] sm:$0xff] }
 0x4fd   :  { %9101 = vtanh.f32 %v4958_v14  ;;  %v4829_v14 = vrot.slane %v10964_v30, 7 }
 0x509   :  { %v9100_v32 = vpop.eup %9099 }
 0x50a   :  { %v9102_v35 = vpop.eup %9101  ;;  %v10986_v63 = vmul.f32 %v9100_v32, %v9100_v32 }
 0x50b   :  { %v10968_v57 = vpop.xlane.xlu1 %4273  ;;  %v10988_v4 = vmul.f32 %v9102_v35, %v9102_v35 }
 0x50c   :  { %4847 = vrot.lane.b32.xlu1 %v10964_v30, %s9422_s27  ;;  %12750 = vst [vmem:[#allocation58_spill] sm:$0xff] %v10968_v57  ;;  %12753 = vst [vmem:[#allocation61_spill] sm:$0xff] %v10986_v63 }
 0x50d   :  { %v4992_v51 = vmul.f32 %v10988_v4, %v10986_v63 }
 0x50f   :  { %v10972_v16 = vpop.xlane.xlu1 %4721 }
 0x510   :  { %4851 = vrot.lane.b32.xlu1 %v10835_v13, %s9422_s27  ;;  %12751 = vst [vmem:[#allocation59_spill] sm:$0xff] %v10972_v16  ;;  %v4841_v16 = vsub.f32 %v10964_v30, %v4829_v14  ;;  %v5051_v14 = vrot.slane %v4992_v51, %v9661_v3 }
 0x512   :  { %v5067_v63 = vrot.slane %v5051_v14, %v9661_v3 }
 0x513   :  { %v10976_v38 = vpop.xlane.xlu1 %4727 }
 0x514   :  { %4853 = vrot.lane.b32.xlu1 %v10950_v42, %s9422_s27  ;;  %12752 = vst [vmem:[#allocation60_spill] sm:$0xff] %v10976_v38  ;;  %v4877_v38 = vrot.slane %v10981_v60, 7 }
 0x516   :  { %v4889_v32 = vsub.f32 %v10981_v60, %v4877_v38 }
 0x517   :  { %v4748_v55 = vpop.permute.xlu1 %4747 }
 0x518   :  { %4857 = vrot.lane.b32.xlu1 %v10840_v17, %s9422_s27  ;;  %v4759_v54 = vsel %vm838_vm3, %v4748_v55, 0.0  ;;  %v4919_v55 = vmul.f32 0.5, %v4841_v16  ;;  %v4955_v56 = vmul.f32 0.5, %v4889_v32 }
 0x519   :  { %4760 = vadd.xlane.f32.xlu0 %v4759_v54  ;;  %v5044_v54 = vcombine.high %v4992_v51, %v4992_v51 }
 0x51a   :  { %9103 = vtanh.f32 %v4919_v55 }
 0x51b   :  { %v4752_v25 = vpop.permute.xlu1 %4751  ;;  %9105 = vtanh.f32 %v4955_v56 }
 0x51c   :  { %4897 = vrot.lane.b32.xlu1 %v10845_v11, %s9422_s27  ;;  %v4765_v57 = vsel %vm838_vm3, %v4752_v25, 0.0  ;;  %v5058_v25 = vrot.slane %v5044_v54, %v9661_v3 }
 0x51d   :  { %4766 = vadd.xlane.f32.xlu0 %v4765_v57  ;;  %v5059_v57 = vcombine.high %v5051_v14, %v5051_v14 }
 0x51e   :  { %v5060_v38 = vcombine.high %v5058_v25, %v5058_v25  ;;  %v5074_v16 = vrot.slane %v5058_v25, %v9661_v3 }
 0x51f   :  { %v4754_v35 = vpop.permute.xlu1 %4753  ;;  %v5081_v32 = vrot.slane %v5059_v57, %v9661_v3 }
 0x520   :  { %4901 = vrot.lane.b32.xlu1 %v10956_v1, %s9422_s27  ;;  %v4768_v36 = vsel %vm838_vm3, %v4754_v35, 0.0  ;;  %v5088_v35 = vrot.slane %v5060_v38, %v9661_v3 }
 0x521   :  { %4769 = vadd.xlane.f32.xlu0 %v4768_v36  ;;  %v8956_v36 = vcombine.high %v5067_v63, %v5081_v32 }
 0x522   :  { %v5145_v23 = vcombine.low %v5074_v16, %v5088_v35  ;;  %v8957_v55 = vcombine.high %v5074_v16, %v5088_v35 }
 0x523   :  { %v5153_v51 = vrot.slane %v8956_v36, %v9661_v3 }
 0x524   :  { %4905 = vrot.lane.b32.xlu1 %v10855_v44, %s9422_s27  ;;  %v5160_v54 = vrot.slane %v5145_v23, %v9661_v3  ;;  %v5167_v14 = vrot.slane %v8957_v55, %v9661_v3 }
 0x526   :  { %v5168_v25 = vcombine.low %v5153_v51, %v5160_v54  ;;  %v5182_v38 = vrot.slane %v5167_v14, %v9661_v3 }
 0x527   :  { %v9104_v40 = vpop.eup %9103 }
 0x528   :  { %v9106_v41 = vpop.eup %9105  ;;  %v11012_v56 = vmul.f32 %v9104_v40, %v9104_v40  ;;  %v5175_v57 = vrot.slane %v5168_v25, %v9661_v3 }
 0x529   :  { %v11014_v12 = vmul.f32 %v9106_v41, %v9106_v41 }
 0x52a   :  { %12754 = vst [vmem:[#allocation62_spill] sm:$0xff] %v11012_v56  ;;  %v5183_v40 = vcombine.low %v5175_v57, %v5182_v38 }
 0x52b   :  { %v4991_v63 = vmul.f32 %v11014_v12, %v11012_v56 }
 0x52c   :  { %v5191_v35 = vsel %vm5190_vm4, %v5183_v40, 0.0 }
 0x52d   :  { %v4995_v23 = vcombine.high %v4991_v63, %v4991_v63  ;;  %v5002_v41 = vrot.slane %v4991_v63, %v9661_v3 }
 0x52f   :  { %v5009_v16 = vrot.slane %v4995_v23, %v9661_v3  ;;  %v5010_v36 = vcombine.high %v5002_v41, %v5002_v41  ;;  %v5018_v51 = vrot.slane %v5002_v41, %v9661_v3 }
 0x531   :  { %v5011_v55 = vcombine.high %v5009_v16, %v5009_v16  ;;  %v5025_v54 = vrot.slane %v5009_v16, %v9661_v3  ;;  %v5032_v14 = vrot.slane %v5010_v36, %v9661_v3  ;;  %v5040_v63 = vcombine.high %v5018_v51, %v5018_v51 }
 0x533   :  { %v5039_v25 = vrot.slane %v5011_v55, %v9661_v3  ;;  %v5041_v57 = vcombine.high %v5025_v54, %v5025_v54  ;;  %v5042_v38 = vcombine.high %v5032_v14, %v5032_v14  ;;  %v5095_v40 = vcombine.low %v5032_v14, %v5040_v63 }
 0x535   :  { %v5043_v23 = vcombine.high %v5039_v25, %v5039_v25  ;;  %v5096_v56 = vcombine.low %v5042_v38, %v5025_v54  ;;  %v5097_v59 = vcombine.low %v5039_v25, %v5041_v57 }
 0x537   :  { %4849 = vrot.lane.b32.xlu0 %v10850_v20, %s9422_s27  ;;  %v5098_v53 = vcombine.low %v5043_v23, %v5081_v32  ;;  %v5112_v26 = vrot.slane %v5096_v56, %v9661_v3  ;;  %v5119_v41 = vrot.slane %v5097_v59, %v9661_v3 }
 0x539   :  { %v5126_v16 = vrot.slane %v5098_v53, %v9661_v3 }
 0x53b   :  { %4855 = vrot.lane.b32.xlu0 %v10860_v48, %s9422_s27  ;;  %v5128_v36 = vcombine.low %v5119_v41, %v5126_v16 }
 0x53d   :  { %v5142_v51 = vrot.slane %v5128_v36, %v9661_v3 }
 0x53f   :  { %4895 = vrot.lane.b32.xlu0 %v10981_v60, %s9422_s27 }
 0x543   :  { %4899 = vrot.lane.b32.xlu0 %v10869_v19, %s9422_s27 }
 0x547   :  { %4903 = vrot.lane.b32.xlu0 %v10874_v0, %s9422_s27 }
 0x548   :  { %5192 = vadd.xlane.f32.xlu1 %v5191_v35  ;;  %v5105_v35 = vrot.slane %v5095_v40, %v9661_v3 }
 0x54a   :  { %v5127_v10 = vcombine.low %v5105_v35, %v5112_v26 }
 0x54c   :  { %v5135_v55 = vrot.slane %v5127_v10, %v9661_v3 }
 0x54e   :  { %v5143_v47 = vcombine.low %v5135_v55, %v5142_v51 }
 0x550   :  { %v5187_v54 = vsel %vm5186_vm5, %v5143_v47, 0.0 }
 0x566   :  { %5188 = vadd.xlane.f32.xlu0 %v5187_v54 }
 0x584   :  { %v11045_v32 = vpop.xlane.xlu1 %4763 }
 0x588   :  { %v4848_v14 = vpop.permute.xlu1 %4847 }
 0x589   :  { %v4865_v56 = vsub.f32 %v10964_v30, %v4848_v14 }
 0x58b   :  { %v4937_v26 = vmul.f32 0.5, %v4865_v56 }
 0x58c   :  { %v4852_v25 = vpop.permute.xlu1 %4851 }
 0x58d   :  { %v4867_v53 = vsub.f32 %v10835_v13, %v4852_v25  ;;  %9107 = vtanh.f32 %v4937_v26 }
 0x58f   :  { %v4939_v57 = vmul.f32 0.5, %v4867_v53 }
 0x590   :  { %v4854_v59 = vpop.permute.xlu1 %4853 }
 0x591   :  { %v4868_v63 = vsub.f32 %v10950_v42, %v4854_v59  ;;  %9109 = vtanh.f32 %v4939_v57 }
 0x593   :  { %v4940_v38 = vmul.f32 0.5, %v4868_v63 }
 0x594   :  { %v4858_v10 = vpop.permute.xlu1 %4857 }
 0x595   :  { %v4870_v23 = vsub.f32 %v10840_v17, %v4858_v10  ;;  %9111 = vtanh.f32 %v4940_v38 }
 0x597   :  { %v4942_v41 = vmul.f32 0.5, %v4870_v23  ;;  %v5256_v23 = vmul.f32 %v11014_v12, %v10892_v28 }
 0x598   :  { %v4898_v47 = vpop.permute.xlu1 %4897 }
 0x599   :  { %v4914_v40 = vsub.f32 %v10845_v11, %v4898_v47 }
 0x59a   :  { %v9108_v17 = vpop.eup %9107 }
 0x59b   :  { %v4974_v35 = vmul.f32 0.5, %v4914_v40  ;;  %v11058_v25 = vmul.f32 %v9108_v17, %v9108_v17 }
 0x59c   :  { %v4902_v30 = vpop.permute.xlu1 %4901 }
 0x59d   :  { %9113 = vtanh.f32 %v4974_v35  ;;  %v4916_v13 = vsub.f32 %v10956_v1, %v4902_v30 }
 0x59e   :  { %9115 = vtanh.f32 %v4942_v41  ;;  %v9110_v54 = vpop.eup %9109 }
 0x59f   :  { %v4976_v16 = vmul.f32 0.5, %v4916_v13  ;;  %v11060_v56 = vmul.f32 %v9110_v54, %v9110_v54 }
 0x5a0   :  { %v4906_v42 = vpop.permute.xlu1 %4905 }
 0x5a1   :  { %9117 = vtanh.f32 %v4976_v16  ;;  %v4918_v36 = vsub.f32 %v10855_v44, %v4906_v42  ;;  %v11088_v16 = vmul.f32 %v10988_v4, %v10908_v39 }
 0x5a2   :  { %v11054_v51 = vpop.xlane.xlu0 %4760  ;;  %v9112_v14 = vpop.eup %9111 }
 0x5a3   :  { %v4978_v55 = vmul.f32 0.5, %v4918_v36  ;;  %v11064_v26 = vmul.f32 %v9112_v14, %v9112_v14  ;;  %v5260_v36 = vcombine.high %v5256_v23, %v5256_v23  ;;  %v11101_v39 = vrot.slane %v11088_v16, %v9661_v3 }
 0x5a5   :  { %9119 = vtanh.f32 %v4978_v55  ;;  %v5274_v14 = vrot.slane %v5260_v36, %v9661_v3 }
 0x5a6   :  { %v11056_v11 = vpop.xlane.xlu0 %4766 }
 0x5a7   :  { %12755 = vst [vmem:[#allocation63_spill] sm:$0xff] %v11056_v11 }
 0x5aa   :  { %v9114_v1 = vpop.eup %9113  ;;  %v11066_v44 = vpop.xlane.xlu0 %4769 }
 0x5ab   :  { %v11062_v59 = vmul.f32 %v9114_v1, %v9114_v1  ;;  %v9116_v53 = vpop.eup %9115  ;;  %12756 = vst [vmem:[#allocation64_spill] sm:$0xff] %v11066_v44 }
 0x5ac   :  { %v11080_v47 = vmul.f32 %v9116_v53, %v9116_v53 }
 0x5ad   :  { %v11070_v63 = vmul.f32 %v11062_v59, %v11058_v25  ;;  %v11074_v10 = vmul.f32 %v11062_v59, %v11060_v56 }
 0x5ae   :  { %v9118_v57 = vpop.eup %9117  ;;  %v4850_v40 = vpop.permute.xlu0 %4849 }
 0x5af   :  { %12757 = vst [vmem:[#allocation65_spill] sm:$0xff] %v11070_v63  ;;  %12758 = vst [vmem:[#allocation66_spill] sm:$0xff] %v11074_v10  ;;  %v11076_v38 = vmul.f32 %v9118_v57, %v9118_v57  ;;  %v4866_v30 = vsub.f32 %v10850_v20, %v4850_v40  ;;  %v5267_v20 = vrot.slane %v5256_v23, %v9661_v3 }
 0x5b0   :  { %v5276_v40 = vcombine.high %v5274_v14, %v5274_v14 }
 0x5b1   :  { %v5094_v35 = vmul.f32 %v11076_v38, %v11064_v26  ;;  %v4938_v42 = vmul.f32 0.5, %v4866_v30  ;;  %v5275_v53 = vcombine.high %v5267_v20, %v5267_v20  ;;  %v5290_v30 = vrot.slane %v5274_v14, %v9661_v3 }
 0x5b2   :  { %v9120_v41 = vpop.eup %9119  ;;  %v4856_v55 = vpop.permute.xlu0 %4855  ;;  %v5304_v23 = vrot.slane %v5276_v40, %v9661_v3 }
 0x5b3   :  { %v4990_v13 = vmul.f32 %v9120_v41, %v9120_v41  ;;  %5207 = vrot.lane.b32.xlu1 %v5094_v35, %s9424_s22  ;;  %9121 = vtanh.f32 %v4938_v42  ;;  %v4869_v54 = vsub.f32 %v10860_v48, %v4856_v55  ;;  %v5283_v41 = vrot.slane %v5267_v20, %v9661_v3 }
 0x5b4   :  { %v5297_v48 = vrot.slane %v5275_v53, %v9661_v3  ;;  %v5324_v42 = vcombine.high %v11101_v39, %v11101_v39  ;;  %v5308_v10 = vcombine.high %v5304_v23, %v5304_v23 }
 0x5b5   :  { %v11091_v28 = vmul.f32 %v4990_v13, %v11064_v26  ;;  %v11094_v17 = vmul.f32 %v4990_v13, %v11080_v47  ;;  %v4941_v1 = vmul.f32 0.5, %v4869_v54  ;;  %v5305_v55 = vcombine.high %v5283_v41, %v5283_v41 }
 0x5b6   :  { %v4896_v57 = vpop.permute.xlu0 %4895 }
 0x5b7   :  { %12759 = vst [vmem:[#allocation67_spill] sm:$0xff] %v11091_v28  ;;  %12760 = vst [vmem:[#allocation68_spill] sm:$0xff] %v11094_v17  ;;  %9123 = vtanh.f32 %v4941_v1  ;;  %v4913_v35 = vsub.f32 %v10981_v60, %v4896_v57  ;;  %v5306_v17 = vcombine.high %v5290_v30, %v5290_v30  ;;  %v5307_v28 = vcombine.high %v5297_v48, %v5297_v48 }
 0x5b8   :  { %v11111_v1 = vrot.slane %v5324_v42, %v9661_v3  ;;  %v5360_v20 = vcombine.low %v5297_v48, %v5305_v55 }
 0x5b9   :  { %v4973_v36 = vmul.f32 0.5, %v4913_v35  ;;  %v5361_v14 = vcombine.low %v5307_v28, %v5290_v30  ;;  %v5362_v53 = vcombine.low %v5304_v23, %v5306_v17 }
 0x5ba   :  { %v4900_v54 = vpop.permute.xlu0 %4899  ;;  %v5363_v57 = vcombine.low %v5308_v10, %v11111_v1  ;;  %v5370_v35 = vrot.slane %v5360_v20, %v9661_v3 }
 0x5bb   :  { %9125 = vtanh.f32 %v4973_v36  ;;  %v4915_v60 = vsub.f32 %v10869_v19, %v4900_v54  ;;  %v5377_v41 = vrot.slane %v5361_v14, %v9661_v3  ;;  %v5384_v11 = vrot.slane %v5362_v53, %v9661_v3 }
 0x5bc   :  { %v5391_v42 = vrot.slane %v5363_v57, %v9661_v3 }
 0x5bd   :  { %v4975_v40 = vmul.f32 0.5, %v4915_v60  ;;  %v5392_v19 = vcombine.low %v5370_v35, %v5377_v41 }
 0x5be   :  { %v4904_v63 = vpop.permute.xlu0 %4903  ;;  %v5393_v17 = vcombine.low %v5384_v11, %v5391_v42 }
 0x5bf   :  { %v4917_v44 = vsub.f32 %v10874_v0, %v4904_v63  ;;  %9127 = vtanh.f32 %v4975_v40  ;;  %v5400_v10 = vrot.slane %v5392_v19, %v9661_v3  ;;  %v5309_v19 = vcombine.high %v11088_v16, %v11088_v16 }
 0x5c0   :  { %v9122_v36 = vpop.eup %9121  ;;  %v5407_v30 = vrot.slane %v5393_v17, %v9661_v3 }
 0x5c1   :  { %v4950_v48 = vmul.f32 %v9122_v36, %v9122_v36  ;;  %v4977_v28 = vmul.f32 0.5, %v4917_v44 }
 0x5c2   :  { %v11127_v63 = vcombine.low %v5400_v10, %v5407_v30  ;;  %v11164_v10 = vmul.f32 %v10988_v4, %v10894_v9  ;;  %v5332_v4 = vrot.slane %v11101_v39, %v9661_v3 }
 0x5c3   :  { %9129 = vtanh.f32 %v4977_v28  ;;  %v11123_v55 = vmul.f32 %v11062_v59, %v4950_v48  ;;  %v5518_v28 = vmul.f32 %v11014_v12, %v10888_v49 }
 0x5c4   :  { %v9124_v23 = vpop.eup %9123  ;;  %v11170_v12 = vrot.slane %v11164_v10, %v9661_v3 }
 0x5c5   :  { %v11125_v0 = vmul.f32 %v9124_v23, %v9124_v23  ;;  %v5522_v30 = vcombine.high %v5518_v28, %v5518_v28  ;;  %v5529_v23 = vrot.slane %v5518_v28, %v9661_v3 }
 0x5c7   :  { %v11130_v54 = vmul.f32 %v4990_v13, %v11125_v0  ;;  %v5545_v49 = vrot.slane %v5529_v23, %v9661_v3 }
 0x5c8   :  { %v9126_v60 = vpop.eup %9125 }
 0x5c9   :  { %12761 = vst [vmem:[#allocation69_spill] sm:$0xff] %v11130_v54  ;;  %v11132_v20 = vmul.f32 %v9126_v60, %v9126_v60  ;;  %v5536_v60 = vrot.slane %v5522_v30, %v9661_v3  ;;  %v5567_v28 = vcombine.high %v5545_v49, %v5545_v49  ;;  %v8958_v54 = vcombine.high %v5332_v4, %v11111_v1 }
 0x5cb   :  { %v5093_v11 = vmul.f32 %v11132_v20, %v11058_v25  ;;  %v5538_v16 = vcombine.high %v5536_v60, %v5536_v60  ;;  %v5418_v1 = vrot.slane %v8958_v54, %v9661_v3 }
 0x5cc   :  { %v9128_v44 = vpop.eup %9127 }
 0x5cd   :  { %v4987_v14 = vmul.f32 %v9128_v44, %v9128_v44  ;;  %5205 = vrot.lane.b32.xlu0 %v5093_v11, %s9424_s22  ;;  %v5537_v44 = vcombine.high %v5529_v23, %v5529_v23  ;;  %v5566_v9 = vrot.slane %v5538_v16, %v9661_v3 }
 0x5cf   :  { %v11138_v59 = vmul.f32 %v4987_v14, %v11058_v25  ;;  %v11140_v57 = vmul.f32 %v4987_v14, %v4950_v48  ;;  %v11143_v40 = vmul.f32 %v4987_v14, %v11060_v56  ;;  %v5552_v14 = vrot.slane %v5536_v60, %v9661_v3 }
 0x5d0   :  { %v9130_v53 = vpop.eup %9129  ;;  %v5570_v23 = vcombine.high %v5566_v9, %v5566_v9 }
 0x5d1   :  { %12762 = vst [vmem:[#allocation70_spill] sm:$0xff] %v11138_v59  ;;  %12763 = vst [vmem:[#allocation71_spill] sm:$0xff] %v11140_v57  ;;  %v4989_v13 = vmul.f32 %v9130_v53, %v9130_v53  ;;  %v11154_v36 = vpop.xlane.xlu1 %5192  ;;  %v5559_v53 = vrot.slane %v5537_v44, %v9661_v3 }
 0x5d2   :  { %12764 = vst [vmem:[#allocation72_spill] sm:$0xff] %v11143_v40 }
 0x5d3   :  { %v11146_v35 = vmul.f32 %v4989_v13, %v11064_v26  ;;  %v11149_v41 = vmul.f32 %v4989_v13, %v11125_v0  ;;  %v11152_v42 = vmul.f32 %v4989_v13, %v11080_v47  ;;  %v5323_v26 = vrot.slane %v5309_v19, %v9661_v3 }
 0x5d4   :  { %v5586_v19 = vcombine.high %v11170_v12, %v11170_v12  ;;  %v5569_v30 = vcombine.high %v5559_v53, %v5559_v53  ;;  %v5622_v44 = vcombine.low %v5559_v53, %v5567_v28 }
 0x5d5   :  { %12765 = vst [vmem:[#allocation73_spill] sm:$0xff] %v11152_v42  ;;  %v5325_v11 = vcombine.high %v5323_v26, %v5323_v26  ;;  %v5339_v13 = vrot.slane %v5323_v26, %v9661_v3 }
 0x5d6   :  { %v11183_v60 = vrot.slane %v5586_v19, %v9661_v3  ;;  %v5623_v40 = vcombine.low %v5569_v30, %v5552_v14  ;;  %v5632_v57 = vrot.slane %v5622_v44, %v9661_v3  ;;  %v12767_v44 = vld [vmem:[#allocation26_spill] sm:$0xff] }
 0x5d8   :  { %v5625_v26 = vcombine.low %v5570_v23, %v11183_v60  ;;  %v5639_v49 = vrot.slane %v5623_v40, %v9661_v3  ;;  %v12766_v23 = vld [vmem:[#allocation25_spill] sm:$0xff] }
 0x5da   :  { %v5653_v42 = vrot.slane %v5625_v26, %v9661_v3  ;;  %v5654_v53 = vcombine.low %v5632_v57, %v5639_v49  ;;  %v810_v57 = vadd.f32 %v12767_v44, %v12766_v23  ;;  %v12771_v49 = vld [vmem:[#allocation29_spill] sm:$0xff]  ;;  %v851_v23 = vadd.f32 %v10239_v34, %v10259_v27 }
 0x5dc   :  { %v5662_v19 = vrot.slane %v5654_v53, %v9661_v3  ;;  %v813_v53 = vsel %vm812_vm7, %v12771_v49, 0.0 }
 0x5ef   :  { %v11200_v30 = vpop.xlane.xlu0 %5188 }
 0x625   :  { %v5208_v25 = vpop.permute.xlu1 %5207 }
 0x626   :  { %v5215_v17 = vsel %vm5211_vm6, %v5208_v25, 0.0  ;;  %v5353_v25 = vrot.slane %v5325_v11, %v9661_v3  ;;  %v5358_v11 = vmul.f32 %v11132_v20, %v4950_v48 }
 0x627   :  { %5216 = vadd.xlane.f32.xlu1 %v5215_v17  ;;  %v5568_v17 = vcombine.high %v5552_v14, %v5552_v14 }
 0x628   :  { %v5410_v39 = vcombine.low %v5339_v13, %v5353_v25 }
 0x629   :  { %v5624_v16 = vcombine.low %v5566_v9, %v5568_v17  ;;  %v8959_v9 = vcombine.high %v5339_v13, %v5353_v25 }
 0x62a   :  { %v5425_v4 = vrot.slane %v5410_v39, %v9661_v3  ;;  %v12770_v39 = vld [vmem:[#allocation27_spill] sm:$0xff] }
 0x62b   :  { %v5646_v59 = vrot.slane %v5624_v16, %v9661_v3  ;;  %v5432_v40 = vrot.slane %v8959_v9, %v9661_v3  ;;  %v811_v26 = vadd.f32 %v810_v57, %v12770_v39 }
 0x62c   :  { %v5433_v17 = vcombine.low %v5418_v1, %v5425_v4  ;;  %v12773_v1 = vld [vmem:[#allocation32_spill] sm:$0xff] }
 0x62d   :  { %v5655_v14 = vcombine.low %v5646_v59, %v5653_v42  ;;  %v12768_v59 = vld [vmem:[#allocation28_spill] sm:$0xff]  ;;  %v12769_v42 = vld [vmem:[#allocation31_spill] sm:$0xff]  ;;  %v5447_v25 = vrot.slane %v5432_v40, %v9661_v3  ;;  %v1304_v4 = vsel %vm812_vm7, %v12773_v1, 0.0 }
 0x62e   :  { %v1302_v13 = vadd.f32 %v12769_v42, %v12768_v59  ;;  %v5440_v54 = vrot.slane %v5433_v17, %v9661_v3  ;;  %v814_v17 = vadd.f32 %v813_v53, %v811_v26  ;;  %v1792_v59 = vadd.f32 %v10175_v43, %v10195_v29  ;;  %v12777_v53 = vld [vmem:[#allocation11_spill] sm:$0xff] }
 0x62f   :  { %v5669_v48 = vrot.slane %v5655_v14, %v9661_v3  ;;  %v12772_v14 = vld [vmem:[#allocation30_spill] sm:$0xff] }
 0x630   :  { %v1303_v9 = vadd.f32 %v1302_v13, %v12772_v14  ;;  %v815_v57 = vrot.slane %v814_v17, 4  ;;  %v852_v13 = vadd.f32 %v851_v23, %v10266_v50  ;;  %v12778_v14 = vld [vmem:[#allocation9_spill] sm:$0xff] }
 0x631   :  { %v11197_v28 = vcombine.low %v5662_v19, %v5669_v48  ;;  %v5451_v19 = vsel %vm5186_vm5, %v11127_v63, 0.0  ;;  %v5448_v48 = vcombine.low %v5440_v54, %v5447_v25  ;;  %v12775_v25 = vld [vmem:[#allocation5_spill] sm:$0xff] }
 0x632   :  { %v1305_v40 = vadd.f32 %v1304_v4, %v1303_v9  ;;  %v816_v63 = vadd.f32 %v815_v57, %v814_v17  ;;  %v1794_v26 = vsel %vm812_vm7, %v12775_v25, 0.0  ;;  %v1341_v9 = vadd.f32 %v12778_v14, %v12777_v53  ;;  %v12779_v4 = vld [vmem:[#allocation33_spill] sm:$0xff] }
 0x633   :  { %v5454_v44 = vsel %vm5190_vm4, %v5448_v48, 0.0  ;;  %v12780_v48 = vld [vmem:[#allocation34_spill] sm:$0xff]  ;;  %v5359_v53 = vmul.f32 %v11076_v38, %v11125_v0 }
 0x634   :  { %v1306_v42 = vrot.slane %v1305_v40, 4  ;;  %v817_v49 = vrot.slane %v816_v63, 2  ;;  %v1342_v50 = vadd.f32 %v1341_v9, %v12779_v4 }
 0x636   :  { %v1307_v54 = vadd.f32 %v1306_v42, %v1305_v40  ;;  %v1343_v23 = vadd.f32 %v1342_v50, %v12780_v48 }
 0x638   :  { %5468 = vrot.lane.b32.xlu1 %v5358_v11, %s9424_s22  ;;  %v1308_v1 = vrot.slane %v1307_v54, 2 }
 0x63a   :  { %v1309_v17 = vadd.f32 %v1308_v1, %v1307_v54 }
 0x63c   :  { %v1310_v42 = vrot.slane %v1309_v17, 1 }
 0x63f   :  { %v5206_v16 = vpop.permute.xlu0 %5205 }
 0x640   :  { %v5212_v11 = vsel %vm5211_vm6, %v5206_v16, 0.0  ;;  %v12774_v16 = vld [vmem:[#allocation8_spill] sm:$0xff] }
 0x641   :  { %5213 = vadd.xlane.f32.xlu0 %v5212_v11  ;;  %v1793_v39 = vadd.f32 %v1792_v59, %v12774_v16  ;;  %v12776_v11 = vld [vmem:[#allocation7_spill] sm:$0xff]  ;;  %v1344_v59 = vrot.slane %v1343_v23, 4 }
 0x642   :  { %v853_v34 = vadd.f32 %v852_v13, %v12776_v11 }
 0x643   :  { %v1795_v27 = vadd.f32 %v1794_v26, %v1793_v39  ;;  %v1345_v25 = vadd.f32 %v1344_v59, %v1343_v23  ;;  %v1311_v26 = vadd.f32 %v1310_v42, %v1309_v17  ;;  %v12784_v42 = vld [vmem:[#allocation35_spill] sm:$0xff] }
 0x644   :  { %v854_v43 = vrot.slane %v853_v34, 4 }
 0x645   :  { %5452 = vadd.xlane.f32.xlu0 %v5451_v19  ;;  %v1796_v29 = vrot.slane %v1795_v27, 4  ;;  %v818_v19 = vadd.f32 %v817_v49, %v816_v63  ;;  %v1346_v49 = vrot.slane %v1345_v25, 2  ;;  %v1312_v54 = vmul.f32 0.0020833334, %v1311_v26 }
 0x646   :  { %v855_v40 = vadd.f32 %v854_v43, %v853_v34  ;;  %v12781_v43 = vld [vmem:[#allocation6_spill] sm:$0xff] }
 0x647   :  { %v819_v57 = vrot.slane %v818_v19, 1  ;;  %v1347_v9 = vadd.f32 %v1346_v49, %v1345_v25  ;;  %vm1353_vm9 = vcmp.eq.f32.partialorder %v1312_v54, inf  ;;  %vm1355_vm11 = vcmp.eq.f32.partialorder %v1312_v54, 0.0 }
 0x648   :  { %v856_v13 = vrot.slane %v855_v40, 2 }
 0x649   :  { %5455 = vadd.xlane.f32.xlu0 %v5454_v44  ;;  %v1797_v44 = vadd.f32 %v1796_v29, %v1795_v27  ;;  %v820_v39 = vadd.f32 %v819_v57, %v818_v19  ;;  %v1831_v29 = vadd.f32 %v12781_v43, %v10319_v37  ;;  %v12782_v19 = vld [vmem:[#allocation10_spill] sm:$0xff]  ;;  %v1348_v48 = vrot.slane %v1347_v9, 1 }
 0x64a   :  { %v857_v11 = vadd.f32 %v856_v13, %v855_v40  ;;  %v2282_v0 = vadd.f32 %v10341_v15, %v12782_v19  ;;  %v2284_v13 = vsel %vm812_vm7, %v12784_v42, 0.0 }
 0x64b   :  { %v1798_v16 = vrot.slane %v1797_v44, 2  ;;  %v821_v63 = vmul.f32 0.0020833334, %v820_v39  ;;  %v1832_v50 = vadd.f32 %v1831_v29, %v10326_v21  ;;  %v1349_v59 = vadd.f32 %v1348_v48, %v1347_v9  ;;  %v12785_v21 = vld [vmem:[#allocation12_spill] sm:$0xff] }
 0x64c   :  { %v858_v34 = vrot.slane %v857_v11, 1  ;;  %v2321_v15 = vadd.f32 %v10437_v8, %v12785_v21  ;;  %v1356_v29 = vand.u32 2147483648, %v1312_v54 }
 0x64d   :  { %v1799_v14 = vadd.f32 %v1798_v16, %v1797_v44  ;;  %9131 = vrsqrt.f32 %v821_v63  ;;  %v1833_v17 = vadd.f32 %v1832_v50, %v10335_v45  ;;  %v12783_v44 = vld [vmem:[#allocation14_spill] sm:$0xff]  ;;  %v11243_v39 = vmul.f32 0.0020833334, %v1349_v59 }
 0x64e   :  { %9133 = vrsqrt.f32 %v1312_v54  ;;  %v859_v1 = vadd.f32 %v858_v34, %v857_v11  ;;  %v2283_v57 = vadd.f32 %v2282_v0, %v12783_v44  ;;  %vm863_vm8 = vcmp.eq.f32.partialorder %v821_v63, inf }
 0x64f   :  { %v1800_v27 = vrot.slane %v1799_v14, 1  ;;  %v1834_v16 = vrot.slane %v1833_v17, 4  ;;  %v866_v9 = vand.u32 2147483648, %v821_v63  ;;  %vm865_vm10 = vcmp.eq.f32.partialorder %v821_v63, 0.0 }
 0x650   :  { %v860_v23 = vmul.f32 0.0020833334, %v859_v1  ;;  %v2285_v37 = vadd.f32 %v2284_v13, %v2283_v57  ;;  %vm1368_vm0 = vcmp.eq.f32.partialorder %v11243_v39, inf  ;;  %vm1370_vm1 = vcmp.eq.f32.partialorder %v11243_v39, 0.0 }
 0x651   :  { %v1801_v4 = vadd.f32 %v1800_v27, %v1799_v14  ;;  %v1835_v26 = vadd.f32 %v1834_v16, %v1833_v17  ;;  %v12786_v14 = vld [vmem:[#allocation17_spill] sm:$0xff] }
 0x652   :  { %9135 = vrsqrt.f32 %v860_v23  ;;  %v2286_v45 = vrot.slane %v2285_v37, 4  ;;  %v2322_v49 = vadd.f32 %v2321_v15, %v12786_v14  ;;  %vm878_vm12 = vcmp.eq.f32.partialorder %v860_v23, inf }
 0x653   :  { %v1802_v40 = vmul.f32 0.0020833334, %v1801_v4  ;;  %v1836_v27 = vrot.slane %v1835_v26, 2  ;;  %v881_v15 = vand.u32 2147483648, %v860_v23  ;;  %vm880_vm14 = vcmp.eq.f32.partialorder %v860_v23, 0.0 }
 0x654   :  { %v2287_v1 = vadd.f32 %v2286_v45, %v2285_v37  ;;  %v2323_v8 = vadd.f32 %v2322_v49, %v10409_v58 }
 0x655   :  { %9137 = vrsqrt.f32 %v1802_v40  ;;  %v1837_v50 = vadd.f32 %v1836_v27, %v1835_v26  ;;  %vm1843_vm13 = vcmp.eq.f32.partialorder %v1802_v40, inf  ;;  %vm1845_vm15 = vcmp.eq.f32.partialorder %v1802_v40, 0.0 }
 0x656   :  { %9139 = vrsqrt.f32 %v11243_v39  ;;  %v2288_v17 = vrot.slane %v2287_v1, 2  ;;  %v2324_v57 = vrot.slane %v2323_v8, 4 }
 0x657   :  { %v1838_v42 = vrot.slane %v1837_v50, 1 }
 0x658   :  { %v2325_v58 = vadd.f32 %v2324_v57, %v2323_v8  ;;  %v3301_v57 = vadd.f32 %v10683_v5, %v10634_v61  ;;  %v12789_v61 = vld [vmem:[#allocation37_spill] sm:$0xff] }
 0x659   :  { %v1839_v37 = vadd.f32 %v1838_v42, %v1837_v50 }
 0x65a   :  { %v9132_v25 = vpop.eup %9131 }
 0x65b   :  { %v9134_v11 = vpop.eup %9133  ;;  %v11261_v49 = vmul.f32 0.0020833334, %v1839_v37 }
 0x65c   :  { %v1352_v34 = vmul.f32 %v9134_v11, %v1312_v54 }
 0x65e   :  { %v1354_v4 = vsel %vm1353_vm9, %v1312_v54, %v1352_v34  ;;  %v2772_v34 = vadd.f32 %v10415_v31, %v10439_v33 }
 0x65f   :  { %5470 = vrot.lane.b32.xlu0 %v5359_v53, %s9424_s22  ;;  %v862_v53 = vmul.f32 %v9132_v25, %v821_v63  ;;  %v9136_v19 = vpop.eup %9135  ;;  %v11252_v44 = vsel %vm1355_vm11, %v1356_v29, %v1354_v4  ;;  %v1846_v25 = vand.u32 2147483648, %v1802_v40  ;;  %v2774_v29 = vsel %vm812_vm7, %v10419_v24, 0.0 }
 0x660   :  { %v877_v59 = vmul.f32 %v9136_v19, %v860_v23  ;;  %vm1360_vm3 = vcmp.eq.f32.partialorder %v11252_v44, inf  ;;  %v1363_v42 = vand.u32 2147483648, %v11252_v44  ;;  %vm1362_vm9 = vcmp.eq.f32.partialorder %v11252_v44, 0.0 }
 0x661   :  { %v864_v43 = vsel %vm863_vm8, %v821_v63, %v862_v53  ;;  %v2289_v63 = vadd.f32 %v2288_v17, %v2287_v1  ;;  %v2326_v53 = vrot.slane %v2325_v58, 2  ;;  %v1371_v1 = vand.u32 2147483648, %v11243_v39  ;;  %v12787_v17 = vld [vmem:[#allocation36_spill] sm:$0xff] }
 0x662   :  { %v9138_v0 = vpop.eup %9137  ;;  %v11250_v48 = vsel %vm865_vm10, %v866_v9, %v864_v43  ;;  %v879_v16 = vsel %vm878_vm12, %v860_v23, %v877_v59  ;;  %v2773_v9 = vadd.f32 %v2772_v34, %v10445_v22  ;;  %v3262_v24 = vadd.f32 %v10582_v62, %v12787_v17 }
 0x663   :  { %9141 = vrsqrt.f32 %v11250_v48  ;;  %v1842_v13 = vmul.f32 %v9138_v0, %v1802_v40  ;;  %v9140_v54 = vpop.eup %9139  ;;  %v2290_v26 = vrot.slane %v2289_v63, 1  ;;  %v11256_v11 = vsel %vm880_vm14, %v881_v15, %v879_v16 }
 0x664   :  { %9143 = vrsqrt.f32 %v11252_v44  ;;  %v1367_v45 = vmul.f32 %v9140_v54, %v11243_v39  ;;  %v2775_v50 = vadd.f32 %v2774_v29, %v2773_v9  ;;  %vm870_vm2 = vcmp.eq.f32.partialorder %v11250_v48, inf  ;;  %v12794_v29 = vld [vmem:[#allocation15_spill] sm:$0xff] }
 0x665   :  { %v1844_v21 = vsel %vm1843_vm13, %v1802_v40, %v1842_v13  ;;  %9145 = vrsqrt.f32 %v11256_v11  ;;  %v2291_v27 = vadd.f32 %v2290_v26, %v2289_v63  ;;  %v2327_v40 = vadd.f32 %v2326_v53, %v2325_v58  ;;  %v12788_v58 = vld [vmem:[#allocation18_spill] sm:$0xff] }
 0x666   :  { %v11259_v14 = vsel %vm1845_vm15, %v1846_v25, %v1844_v21  ;;  %v1369_v23 = vsel %vm1368_vm0, %v11243_v39, %v1367_v45  ;;  %v2776_v0 = vrot.slane %v2775_v50, 4  ;;  %vm872_vm8 = vcmp.eq.f32.partialorder %v11250_v48, 0.0 }
 0x667   :  { %9147 = vrsqrt.f32 %v11259_v14  ;;  %v11273_v31 = vsel %vm1370_vm1, %v1371_v1, %v1369_v23  ;;  %v11275_v33 = vmul.f32 0.0020833334, %v2291_v27  ;;  %v2328_v4 = vrot.slane %v2327_v40, 1  ;;  %v12790_v23 = vld [vmem:[#allocation13_spill] sm:$0xff] }
 0x668   :  { %9149 = vrsqrt.f32 %v11261_v49  ;;  %v873_v59 = vand.u32 2147483648, %v11250_v48  ;;  %v2811_v54 = vadd.f32 %v12788_v58, %v10560_v52  ;;  %v2777_v37 = vadd.f32 %v2776_v0, %v2775_v50  ;;  %v12795_v50 = vld [vmem:[#allocation19_spill] sm:$0xff] }
 0x669   :  { %9151 = vrsqrt.f32 %v11273_v31  ;;  %v2329_v39 = vadd.f32 %v2328_v4, %v2327_v40  ;;  %v3263_v5 = vadd.f32 %v3262_v24, %v12789_v61  ;;  %v3264_v25 = vsel %vm812_vm7, %v10586_v2, 0.0  ;;  %v12791_v40 = vld [vmem:[#allocation38_spill] sm:$0xff]  ;;  %v12798_v61 = vld [vmem:[#allocation39_spill] sm:$0xff] }
 0x66a   :  { %9153 = vrsqrt.f32 %v11275_v33  ;;  %v2812_v15 = vadd.f32 %v2811_v54, %v10563_v6  ;;  %v3302_v26 = vadd.f32 %v3301_v57, %v10647_v7  ;;  %v1853_v34 = vand.u32 2147483648, %v11259_v14 }
 0x66b   :  { %v11297_v62 = vmul.f32 0.0020833334, %v2329_v39  ;;  %v2778_v7 = vrot.slane %v2777_v37, 2  ;;  %v3265_v1 = vadd.f32 %v3264_v25, %v3263_v5  ;;  %vm885_vm10 = vcmp.eq.f32.partialorder %v11256_v11, inf  ;;  %v12799_v5 = vld [vmem:[#allocation43_spill] sm:$0xff] }
 0x66c   :  { %v2813_v6 = vadd.f32 %v2812_v15, %v12790_v23  ;;  %vm887_vm11 = vcmp.eq.f32.partialorder %v11256_v11, 0.0  ;;  %v888_v4 = vand.u32 2147483648, %v11256_v11  ;;  %vm1375_vm12 = vcmp.eq.f32.partialorder %v11273_v31, inf }
 0x66d   :  { %9155 = vrsqrt.f32 %v11297_v62  ;;  %vm1858_vm13 = vcmp.eq.f32.partialorder %v11261_v49, inf  ;;  %vm1377_vm14 = vcmp.eq.f32.partialorder %v11273_v31, 0.0  ;;  %vm1850_vm15 = vcmp.eq.f32.partialorder %v11259_v14, inf }
 0x66e   :  { %v2814_v24 = vrot.slane %v2813_v6, 4  ;;  %vm1860_vm0 = vcmp.eq.f32.partialorder %v11261_v49, 0.0  ;;  %vm2333_vm1 = vcmp.eq.f32.partialorder %v11275_v33, inf }
 0x670   :  { %v9142_v43 = vpop.eup %9141  ;;  %v2815_v23 = vadd.f32 %v2814_v24, %v2813_v6  ;;  %v12805_v24 = vld [vmem:[#allocation59_spill] sm:$0xff] }
 0x671   :  { %v9144_v8 = vpop.eup %9143  ;;  %v869_v22 = vmul.f32 %v9142_v43, %v11250_v48 }
 0x672   :  { %v1359_v19 = vmul.f32 %v9144_v8, %v11252_v44  ;;  %v9146_v16 = vpop.eup %9145  ;;  %v3303_v8 = vadd.f32 %v3302_v26, %v12794_v29  ;;  %v12800_v26 = vld [vmem:[#allocation23_spill] sm:$0xff]  ;;  %v12802_v29 = vld [vmem:[#allocation40_spill] sm:$0xff] }
 0x673   :  { %v871_v13 = vsel %vm870_vm2, %v11250_v48, %v869_v22  ;;  %v884_v27 = vmul.f32 %v9146_v16, %v11256_v11  ;;  %v3754_v22 = vsel %vm812_vm7, %v12795_v50, 0.0  ;;  %vm1852_vm2 = vcmp.eq.f32.partialorder %v11259_v14, 0.0 }
 0x674   :  { %v1361_v63 = vsel %vm1360_vm3, %v11252_v44, %v1359_v19  ;;  %v9148_v21 = vpop.eup %9147  ;;  %v3752_v44 = vadd.f32 %v10661_v18, %v10685_v46  ;;  %v874_v52 = vsel %vm872_vm8, %v873_v59, %v871_v13  ;;  %v12792_v18 = vld [vmem:[#allocation16_spill] sm:$0xff]  ;;  %v12796_v19 = vld [vmem:[#allocation41_spill] sm:$0xff]  ;;  %v3266_v13 = vrot.slane %v3265_v1, 4 }
 0x675   :  { %v9150_v45 = vpop.eup %9149  ;;  %v11308_v53 = vsel %vm1362_vm9, %v1363_v42, %v1361_v63  ;;  %v11315_v2 = vmul.f32 %v9148_v21, %v11259_v14  ;;  %v12793_v46 = vld [vmem:[#allocation20_spill] sm:$0xff]  ;;  %v886_v17 = vsel %vm885_vm10, %v11256_v11, %v884_v27  ;;  %v2779_v42 = vadd.f32 %v2778_v7, %v2777_v37  ;;  %v12797_v63 = vld [vmem:[#allocation42_spill] sm:$0xff] }
 0x676   :  { %v3753_v9 = vadd.f32 %v3752_v44, %v12791_v40  ;;  %v3791_v43 = vadd.f32 %v12793_v46, %v12792_v18  ;;  %v1857_v48 = vmul.f32 %v9150_v45, %v11261_v49  ;;  %v9152_v0 = vpop.eup %9151  ;;  %v3304_v16 = vrot.slane %v3303_v8, 4  ;;  %v12801_v44 = vld [vmem:[#allocation58_spill] sm:$0xff] }
 0x677   :  { %v9154_v59 = vpop.eup %9153  ;;  %v4242_v21 = vadd.f32 %v12799_v5, %v12798_v61  ;;  %v889_v15 = vsel %vm887_vm11, %v888_v4, %v886_v17  ;;  %v1374_v25 = vmul.f32 %v9152_v0, %v11273_v31  ;;  %v1861_v37 = vand.u32 2147483648, %v11261_v49 }
 0x678   :  { %v3792_v39 = vadd.f32 %v3791_v43, %v12796_v19  ;;  %v3755_v57 = vadd.f32 %v3754_v22, %v3753_v9  ;;  %v1859_v54 = vsel %vm1858_vm13, %v11261_v49, %v1857_v48  ;;  %v4281_v45 = vadd.f32 %v12801_v44, %v12800_v26  ;;  %v12803_v49 = vld [vmem:[#allocation44_spill] sm:$0xff] }
 0x679   :  { %v2332_v27 = vmul.f32 %v9154_v59, %v11275_v33  ;;  %v11345_v9 = vsel %vm1860_vm0, %v1861_v37, %v1859_v54  ;;  %v2780_v7 = vrot.slane %v2779_v42, 1  ;;  %v3267_v18 = vadd.f32 %v3266_v13, %v3265_v1  ;;  %v12804_v22 = vld [vmem:[#allocation52_spill] sm:$0xff] }
 0x67a   :  { %v3793_v58 = vadd.f32 %v3792_v39, %v12797_v63  ;;  %v3756_v40 = vrot.slane %v3755_v57, 4  ;;  %v890_v11 = vadd.f32 %v889_v15, %v874_v52  ;;  %v1378_v43 = vand.u32 2147483648, %v11273_v31  ;;  %v12806_v59 = vld [vmem:[#allocation56_spill] sm:$0xff]  ;;  %v9156_v5 = vpop.eup %9155 }
 0x67b   :  { %v3305_v48 = vadd.f32 %v3304_v16, %v3303_v8  ;;  %v4243_v4 = vadd.f32 %v4242_v21, %v12802_v29  ;;  %v1376_v50 = vsel %vm1375_vm12, %v11273_v31, %v1374_v25  ;;  %v4244_v6 = vsel %vm812_vm7, %v12803_v49, 0.0  ;;  %v12810_v49 = vld [vmem:[#allocation63_spill] sm:$0xff] }
 0x67c   :  { %v3794_v46 = vrot.slane %v3793_v58, 4  ;;  %v4282_v19 = vadd.f32 %v4281_v45, %v12804_v22  ;;  %9157 = vrsqrt.f32 %v11345_v9  ;;  %v2334_v52 = vsel %vm2333_vm1, %v11275_v33, %v2332_v27 }
 0x67d   :  { %v2816_v1 = vrot.slane %v2815_v23, 2  ;;  %v3757_v39 = vadd.f32 %v3756_v40, %v3755_v57  ;;  %v2781_v8 = vadd.f32 %v2780_v7, %v2779_v42  ;;  %v3268_v0 = vrot.slane %v3267_v18, 2  ;;  %v12807_v57 = vld [vmem:[#allocation55_spill] sm:$0xff]  ;;  %v12808_v42 = vld [vmem:[#allocation60_spill] sm:$0xff] }
 0x67e   :  { %v3795_v17 = vadd.f32 %v3794_v46, %v3793_v58  ;;  %v4732_v13 = vadd.f32 %v12806_v59, %v12805_v24  ;;  %v1379_v63 = vsel %vm1377_vm14, %v1378_v43, %v1376_v50  ;;  %v2336_v54 = vand.u32 2147483648, %v11275_v33  ;;  %v12809_v46 = vld [vmem:[#allocation57_spill] sm:$0xff] }
 0x67f   :  { %v3306_v16 = vrot.slane %v3305_v48, 2  ;;  %v4245_v61 = vadd.f32 %v4244_v6, %v4243_v4  ;;  %v1365_v21 = vadd.f32 %v11308_v53, %v890_v11  ;;  %vm2335_vm3 = vcmp.eq.f32.partialorder %v11275_v33, 0.0 }
 0x680   :  { %v4283_v15 = vadd.f32 %v4282_v19, %v12807_v57  ;;  %v4733_v25 = vadd.f32 %v4732_v13, %v12808_v42  ;;  %v1851_v58 = vsel %vm1850_vm15, %v11259_v14, %v11315_v2  ;;  %v11372_v31 = vsel %vm2335_vm3, %v2336_v54, %v2334_v52 }
 0x681   :  { %v2817_v37 = vadd.f32 %v2816_v1, %v2815_v23  ;;  %v3758_v26 = vrot.slane %v3757_v39, 2  ;;  %v1380_v44 = vadd.f32 %v1379_v63, %v1365_v21  ;;  %v11374_v45 = vmul.f32 0.0020833334, %v2781_v8 }
 0x682   :  { %v3269_v27 = vadd.f32 %v3268_v0, %v3267_v18  ;;  %v3796_v53 = vrot.slane %v3795_v17, 2  ;;  %v2347_v33 = vmul.f32 %v9156_v5, %v11297_v62  ;;  %v3307_v40 = vadd.f32 %v3306_v16, %v3305_v48 }
 0x683   :  { %v4246_v7 = vrot.slane %v4245_v61, 4  ;;  %v4734_v11 = vsel %vm812_vm7, %v12809_v46, 0.0  ;;  %9159 = vrsqrt.f32 %v11372_v31  ;;  %v4284_v43 = vrot.slane %v4283_v15, 4 }
 0x684   :  { %v4735_v2 = vadd.f32 %v4734_v11, %v4733_v25  ;;  %v4771_v23 = vadd.f32 %v11045_v32, %v11054_v51  ;;  %vm2348_vm8 = vcmp.eq.f32.partialorder %v11297_v62, inf  ;;  %v2818_v29 = vrot.slane %v2817_v37, 1 }
 0x685   :  { %v3759_v4 = vadd.f32 %v3758_v26, %v3757_v39  ;;  %v5194_v18 = vsel %vm812_vm7, %v11154_v36, 0.0  ;;  %9161 = vrsqrt.f32 %v11374_v45  ;;  %v3270_v48 = vrot.slane %v3269_v27, 1  ;;  %v12811_v36 = vld [vmem:[#allocation64_spill] sm:$0xff] }
 0x686   :  { %v3797_v50 = vadd.f32 %v3796_v53, %v3795_v17  ;;  %v4772_v6 = vadd.f32 %v4771_v23, %v12810_v49  ;;  %v1854_v32 = vsel %vm1852_vm2, %v1853_v34, %v1851_v58  ;;  %v2349_v51 = vsel %vm2348_vm8, %v11297_v62, %v2347_v33 }
 0x687   :  { %v3308_v19 = vrot.slane %v3307_v40, 1  ;;  %v4247_v52 = vadd.f32 %v4246_v7, %v4245_v61  ;;  %v4285_v1 = vadd.f32 %v4284_v43, %v4283_v15  ;;  %v4736_v39 = vrot.slane %v4735_v2, 4  ;;  %v12813_v7 = vld [vmem:[#allocation21_spill] sm:$0xff] }
 0x688   :  { %v4773_v8 = vadd.f32 %v4772_v6, %v12811_v36  ;;  %v5195_v0 = vadd.f32 %v5194_v18, %v11200_v30  ;;  %v11396_v17 = vadd.f32 %v1854_v32, %v1380_v44  ;;  %v2351_v24 = vand.u32 2147483648, %v11297_v62  ;;  %v12814_v32 = vld [vmem:[#allocation61_spill] sm:$0xff] }
 0x689   :  { %v2819_v59 = vadd.f32 %v2818_v29, %v2817_v37  ;;  %v3760_v13 = vrot.slane %v3759_v4, 1  ;;  %v9158_v63 = vpop.eup %9157  ;;  %vm1865_vm9 = vcmp.eq.f32.partialorder %v11345_v9, inf  ;;  %vm2350_vm10 = vcmp.eq.f32.partialorder %v11297_v62, 0.0 }
 0x68a   :  { %v3271_v14 = vadd.f32 %v3270_v48, %v3269_v27  ;;  %v3798_v34 = vrot.slane %v3797_v50, 1  ;;  %v11401_v16 = vsel %vm2350_vm10, %v2351_v24, %v2349_v51  ;;  %v3309_v61 = vadd.f32 %v3308_v19, %v3307_v40  ;;  %v12812_v40 = vld [vmem:[#allocation62_spill] sm:$0xff]  ;;  %v12815_v51 = vld [vmem:[#allocation49_spill] sm:$0xff] }
 0x68b   :  { %v4248_v5 = vrot.slane %v4247_v52, 2  ;;  %v4286_v21 = vrot.slane %v4285_v1, 2  ;;  %v4737_v57 = vadd.f32 %v4736_v39, %v4735_v2  ;;  %v4774_v15 = vrot.slane %v4773_v8, 4 }
 0x68c   :  { %v5196_v42 = vrot.slane %v5195_v0, 4  ;;  %vm1867_vm11 = vcmp.eq.f32.partialorder %v11345_v9, 0.0  ;;  %v11405_v25 = vmul.f32 0.0020833334, %v2819_v59  ;;  %v3761_v58 = vadd.f32 %v3760_v13, %v3759_v4 }
 0x68d   :  { %v5713_v62 = vsel %vm5186_vm5, %v11197_v28, 0.0  ;;  %v1864_v37 = vmul.f32 %v9158_v63, %v11345_v9  ;;  %v11410_v26 = vmul.f32 0.0020833334, %v3271_v14  ;;  %v3799_v44 = vadd.f32 %v3798_v34, %v3797_v50 }
 0x68e   :  { %v5571_v27 = vcombine.high %v11164_v10, %v11164_v10  ;;  %9163 = vrsqrt.f32 %v11401_v16  ;;  %v11415_v53 = vmul.f32 0.0020833334, %v3309_v61  ;;  %v4249_v33 = vadd.f32 %v4248_v5, %v4247_v52 }
 0x68f   :  { %v5780_v46 = vmul.f32 %v12813_v7, %v12812_v40  ;;  %v4287_v11 = vadd.f32 %v4286_v21, %v4285_v1  ;;  %v4738_v43 = vrot.slane %v4737_v57, 2  ;;  %v4775_v2 = vadd.f32 %v4774_v15, %v4773_v8 }
 0x690   :  { %v5197_v28 = vadd.f32 %v5196_v42, %v5195_v0  ;;  %v9160_v23 = vpop.eup %9159  ;;  %v1868_v29 = vand.u32 2147483648, %v11345_v9  ;;  %v2343_v4 = vand.u32 2147483648, %v11372_v31  ;;  %9165 = vrsqrt.f32 %v11405_v25 }
 0x691   :  { %v11422_v10 = vmul.f32 0.0020833334, %v3761_v58  ;;  %v1866_v18 = vsel %vm1865_vm9, %v11345_v9, %v1864_v37  ;;  %9167 = vrsqrt.f32 %v11410_v26  ;;  %v11428_v48 = vmul.f32 0.0020833334, %v3799_v44 }
 0x692   :  { %v5585_v50 = vrot.slane %v5571_v27, %v9661_v3  ;;  %v9162_v49 = vpop.eup %9161  ;;  %9169 = vrsqrt.f32 %v11415_v53  ;;  %v4250_v6 = vrot.slane %v4249_v33, 1  ;;  %v11434_v19 = vmul.f32 %v12815_v51, %v12814_v32 }
 0x693   :  { %v5784_v52 = vcombine.high %v5780_v46, %v5780_v46  ;;  %v4288_v1 = vrot.slane %v4287_v11, 1  ;;  %v4739_v39 = vadd.f32 %v4738_v43, %v4737_v57  ;;  %v4776_v36 = vrot.slane %v4775_v2, 2 }
 0x694   :  { %v5198_v8 = vrot.slane %v5197_v28, 2  ;;  %v11438_v0 = vsel %vm1867_vm11, %v1868_v29, %v1866_v18  ;;  %9171 = vrsqrt.f32 %v11422_v10  ;;  %v5791_v24 = vrot.slane %v5780_v46, %v9661_v3 }
 0x695   :  { %v5798_v59 = vrot.slane %v5784_v52, %v9661_v3  ;;  %v11444_v13 = vmul.f32 %v9160_v23, %v11372_v31  ;;  %v2822_v63 = vmul.f32 %v9162_v49, %v11374_v45  ;;  %9173 = vrsqrt.f32 %v11428_v48 }
 0x696   :  { %v5587_v14 = vcombine.high %v5585_v50, %v5585_v50  ;;  %v4251_v34 = vadd.f32 %v4250_v6, %v4249_v33  ;;  %v11450_v9 = vrot.slane %v11434_v19, %v9661_v3  ;;  %v4289_v5 = vadd.f32 %v4288_v1, %v4287_v11 }
 0x697   :  { %v5800_v61 = vcombine.high %v5798_v59, %v5798_v59  ;;  %v4777_v21 = vadd.f32 %v4776_v36, %v4775_v2  ;;  %v5199_v57 = vadd.f32 %v5198_v8, %v5197_v28  ;;  %v5807_v15 = vrot.slane %v5791_v24, %v9661_v3 }
 0x698   :  { %v5814_v42 = vrot.slane %v5798_v59, %v9661_v3  ;;  %v5594_v37 = vrot.slane %v11170_v12, %v9661_v3  ;;  %v11459_v44 = vrot.slane %v5585_v50, %v9661_v3  ;;  %v11462_v27 = vrot.slane %v5587_v14, %v9661_v3 }
 0x699   :  { %v5848_v33 = vcombine.high %v11450_v9, %v11450_v9  ;;  %v5829_v7 = vcombine.high %v5807_v15, %v5807_v15  ;;  %vm2340_vm12 = vcmp.eq.f32.partialorder %v11372_v31, inf  ;;  %v11469_v28 = vmul.f32 0.0020833334, %v4251_v34 }
 0x69a   :  { %v5830_v46 = vcombine.high %v5814_v42, %v5814_v42  ;;  %v11471_v12 = vmul.f32 0.0020833334, %v4289_v5  ;;  %v4778_v23 = vrot.slane %v4777_v21, 1  ;;  %v5200_v52 = vrot.slane %v5199_v57, 1 }
 0x69b   :  { %v11466_v2 = vpop.eup %9163  ;;  %v11474_v29 = vrot.slane %v5848_v33, %v9661_v3  ;;  %v5620_v1 = vmul.f32 %v11132_v20, %v11060_v56  ;;  %v8960_v36 = vcombine.high %v5594_v37, %v11183_v60  ;;  %v5672_v59 = vcombine.low %v11459_v44, %v11462_v27 }
 0x69c   :  { %vm2823_vm13 = vcmp.eq.f32.partialorder %v11374_v45, inf  ;;  %v4779_v56 = vadd.f32 %v4778_v23, %v4777_v21  ;;  %9175 = vrsqrt.f32 %v11469_v28  ;;  %vm2342_vm14 = vcmp.eq.f32.partialorder %v11372_v31, 0.0 }
 0x69d   :  { %v9166_v51 = vpop.eup %9165  ;;  %v2824_v60 = vsel %vm2823_vm13, %v11374_v45, %v2822_v63  ;;  %9177 = vrsqrt.f32 %v11471_v12  ;;  %v8961_v63 = vcombine.high %v11459_v44, %v11462_v27  ;;  %v5680_v21 = vrot.slane %v8960_v36, %v9661_v3 }
 0x69e   :  { %v2837_v5 = vmul.f32 %v9166_v51, %v11405_v25  ;;  %v5687_v33 = vrot.slane %v5672_v59, %v9661_v3  ;;  %vm2825_vm15 = vcmp.eq.f32.partialorder %v11374_v45, 0.0  ;;  %v2341_v44 = vsel %vm2340_vm12, %v11372_v31, %v11444_v13 }
 0x69f   :  { %vm2838_vm0 = vcmp.eq.f32.partialorder %v11405_v25, inf  ;;  %vm3313_vm1 = vcmp.eq.f32.partialorder %v11410_v26, inf  ;;  %vm2840_vm2 = vcmp.eq.f32.partialorder %v11405_v25, 0.0  ;;  %vm3315_vm3 = vcmp.eq.f32.partialorder %v11410_v26, 0.0 }
 0x6a0   :  { %v5695_v13 = vcombine.low %v5680_v21, %v5687_v33  ;;  %vm3328_vm8 = vcmp.eq.f32.partialorder %v11415_v53, inf  ;;  %vm3330_vm9 = vcmp.eq.f32.partialorder %v11415_v53, 0.0  ;;  %vm3803_vm10 = vcmp.eq.f32.partialorder %v11422_v10, inf }
 0x6a1   :  { %vm3805_vm11 = vcmp.eq.f32.partialorder %v11422_v10, 0.0  ;;  %vm3818_vm12 = vcmp.eq.f32.partialorder %v11428_v48, inf  ;;  %vm2355_vm13 = vcmp.eq.f32.partialorder %v11401_v16, inf }
 0x6a2   :  { %v5702_v59 = vrot.slane %v5695_v13, %v9661_v3 }
 0x6b0   :  { %v11387_v22 = vpop.xlane.xlu1 %5216 }
 0x6b4   :  { %v5469_v54 = vpop.permute.xlu1 %5468 }
 0x6b5   :  { %v5474_v30 = vsel %vm5211_vm6, %v5469_v54, 0.0  ;;  %v5799_v54 = vcombine.high %v5791_v24, %v5791_v24  ;;  %v9168_v24 = vpop.eup %9167 }
 0x6b6   :  { %5475 = vadd.xlane.f32.xlu1 %v5474_v30  ;;  %v4740_v30 = vrot.slane %v4739_v39, 1  ;;  %v3312_v23 = vmul.f32 %v9168_v24, %v11410_v26 }
 0x6b7   :  { %v5821_v58 = vrot.slane %v5799_v54, %v9661_v3  ;;  %v9170_v54 = vpop.eup %9169 }
 0x6b8   :  { %v4741_v18 = vadd.f32 %v4740_v30, %v4739_v39  ;;  %v9172_v15 = vpop.eup %9171 }
 0x6b9   :  { %v5831_v11 = vcombine.high %v5821_v58, %v5821_v58  ;;  %v5884_v50 = vcombine.low %v5821_v58, %v5829_v7  ;;  %v5201_v58 = vadd.f32 %v5200_v52, %v5199_v57  ;;  %v9174_v37 = vpop.eup %9173  ;;  %v11506_v57 = vmul.f32 0.0020833334, %v4779_v56 }
 0x6ba   :  { %5714 = vadd.xlane.f32.xlu1 %v5713_v62  ;;  %v5828_v62 = vrot.slane %v5800_v61, %v9661_v3  ;;  %v2826_v61 = vand.u32 2147483648, %v11374_v45  ;;  %v3314_v52 = vsel %vm3313_vm1, %v11410_v26, %v3312_v23  ;;  %v3802_v56 = vmul.f32 %v9172_v15, %v11422_v10 }
 0x6bb   :  { %v5885_v49 = vcombine.low %v5831_v11, %v5814_v42  ;;  %v5894_v14 = vrot.slane %v5884_v50, %v9661_v3  ;;  %v11493_v42 = vmul.f32 0.0020833334, %v4741_v18  ;;  %v11519_v45 = vmul.f32 0.008928572, %v5201_v58 }
 0x6bc   :  { %v5832_v43 = vcombine.high %v5828_v62, %v5828_v62  ;;  %v5886_v6 = vcombine.low %v5828_v62, %v5830_v46  ;;  %v11503_v46 = vadd.f32 %v11438_v0, %v11396_v17  ;;  %v11513_v27 = vsel %vm2825_vm15, %v2826_v61, %v2824_v60 }
 0x6bd   :  { %v5901_v39 = vrot.slane %v5885_v49, %v9661_v3  ;;  %9179 = vrsqrt.f32 %v11493_v42  ;;  %v2839_v0 = vsel %vm2838_vm0, %v11405_v25, %v2837_v5  ;;  %v5694_v49 = vrot.slane %v8961_v63, %v9661_v3  ;;  %v9176_v5 = vpop.eup %9175 }
 0x6be   :  { %v5887_v8 = vcombine.low %v5832_v43, %v11474_v29  ;;  %v5908_v34 = vrot.slane %v5886_v6, %v9661_v3  ;;  %v2841_v6 = vand.u32 2147483648, %v11405_v25  ;;  %9181 = vrsqrt.f32 %v11506_v57 }
 0x6bf   :  { %v5916_v30 = vcombine.low %v5894_v14, %v5901_v39  ;;  %9183 = vrsqrt.f32 %v11513_v27  ;;  %v5709_v14 = vrot.slane %v5694_v49, %v9661_v3  ;;  %v11544_v25 = vsel %vm2342_vm14, %v2343_v4, %v2341_v44 }
 0x6c0   :  { %v5915_v20 = vrot.slane %v5887_v8, %v9661_v3  ;;  %v11532_v36 = vsel %vm2840_vm2, %v2841_v6, %v2839_v0  ;;  %v3316_v8 = vand.u32 2147483648, %v11410_v26  ;;  %9185 = vrsqrt.f32 %v11519_v45 }
 0x6c1   :  { %v5924_v7 = vrot.slane %v5916_v30, %v9661_v3  ;;  %v2354_v39 = vmul.f32 %v11466_v2, %v11401_v16  ;;  %v3331_v61 = vand.u32 2147483648, %v11415_v53  ;;  %9187 = vrsqrt.f32 %v11532_v36  ;;  %v9178_v2 = vpop.eup %9177 }
 0x6c2   :  { %v5917_v62 = vcombine.low %v5908_v34, %v5915_v20  ;;  %v11548_v34 = vsel %vm3315_vm3, %v3316_v8, %v3314_v52  ;;  %v3817_v31 = vmul.f32 %v9174_v37, %v11428_v48  ;;  %v3806_v15 = vand.u32 2147483648, %v11422_v10 }
 0x6c3   :  { %9189 = vrsqrt.f32 %v11548_v34  ;;  %v3821_v23 = vand.u32 2147483648, %v11428_v48  ;;  %vm3820_vm14 = vcmp.eq.f32.partialorder %v11428_v48, 0.0  ;;  %vm4293_vm15 = vcmp.eq.f32.partialorder %v11469_v28, inf }
 0x6c4   :  { %v5931_v43 = vrot.slane %v5917_v62, %v9661_v3  ;;  %v5710_v62 = vcombine.low %v5702_v59, %v5709_v14  ;;  %vm2357_vm0 = vcmp.eq.f32.partialorder %v11401_v16, 0.0  ;;  %vm2830_vm1 = vcmp.eq.f32.partialorder %v11513_v27, inf }
 0x6c5   :  { %vm4308_vm2 = vcmp.eq.f32.partialorder %v11471_v12, inf  ;;  %v4296_v59 = vand.u32 2147483648, %v11469_v28  ;;  %vm4295_vm3 = vcmp.eq.f32.partialorder %v11469_v28, 0.0 }
 0x6c6   :  { %v11521_v17 = vcombine.low %v5924_v7, %v5931_v43  ;;  %v3819_v7 = vsel %vm3818_vm12, %v11428_v48, %v3817_v31  ;;  %vm4785_vm12 = vcmp.eq.f32.partialorder %v11493_v42, 0.0 }
 0x6ca   :  { %v5214_v11 = vpop.xlane.xlu0 %5213  ;;  %v9180_v44 = vpop.eup %9179 }
 0x6cb   :  { %5730 = vrot.lane.b32.xlu1 %v5620_v1, %s9424_s22  ;;  %v5218_v18 = vadd.f32 %v11387_v22, %v5214_v11  ;;  %v3327_v22 = vmul.f32 %v9170_v54, %v11415_v53  ;;  %v4292_v11 = vmul.f32 %v9176_v5, %v11469_v28  ;;  %v9182_v6 = vpop.eup %9181  ;;  %v4782_v48 = vmul.f32 %v9180_v44, %v11493_v42 }
 0x6cc   :  { %v9184_v52 = vpop.eup %9183 }
 0x6cd   :  { %v5219_v50 = vrot.slane %v5218_v18, 4  ;;  %v3329_v26 = vsel %vm3328_vm8, %v11415_v53, %v3327_v22  ;;  %v3804_v53 = vsel %vm3803_vm10, %v11422_v10, %v3802_v56  ;;  %v2358_v22 = vand.u32 2147483648, %v11401_v16  ;;  %v9186_v8 = vpop.eup %9185 }
 0x6ce   :  { %v5453_v51 = vpop.xlane.xlu0 %5452  ;;  %v11558_v30 = vsel %vm3330_vm9, %v3331_v61, %v3329_v26  ;;  %v11577_v49 = vsel %vm3805_vm11, %v3806_v15, %v3804_v53  ;;  %v4294_v10 = vsel %vm4293_vm15, %v11469_v28, %v4292_v11  ;;  %v4311_v26 = vand.u32 2147483648, %v11471_v12  ;;  %v9188_v5 = vpop.eup %9187 }
 0x6cf   :  { %v5220_v1 = vadd.f32 %v5219_v50, %v5218_v18  ;;  %9191 = vrsqrt.f32 %v11558_v30  ;;  %v4307_v18 = vmul.f32 %v9178_v2, %v11471_v12  ;;  %v5716_v50 = vsel %vm5190_vm4, %v5710_v62, 0.0 }
 0x6d0   :  { %v11600_v56 = vsel %vm4295_vm3, %v4296_v59, %v4294_v10  ;;  %vm4310_vm8 = vcmp.eq.f32.partialorder %v11471_v12, 0.0  ;;  %vm4783_vm9 = vcmp.eq.f32.partialorder %v11493_v42, inf  ;;  %v2829_v31 = vmul.f32 %v9184_v52, %v11513_v27  ;;  %v9190_v2 = vpop.eup %9189 }
 0x6d1   :  { %v5221_v24 = vrot.slane %v5220_v1, 2  ;;  %v4309_v14 = vsel %vm4308_vm2, %v11471_v12, %v4307_v18  ;;  %vm4798_vm10 = vcmp.eq.f32.partialorder %v11506_v57, inf  ;;  %vm5228_vm11 = vcmp.eq.f32.partialorder %v11519_v45, inf }
 0x6d2   :  { %v5456_v54 = vpop.xlane.xlu0 %5455  ;;  %v4801_v15 = vand.u32 2147483648, %v11506_v57  ;;  %v2833_v11 = vand.u32 2147483648, %v11513_v27  ;;  %vm2832_vm15 = vcmp.eq.f32.partialorder %v11513_v27, 0.0  ;;  %vm2847_vm3 = vcmp.eq.f32.partialorder %v11532_v36, 0.0 }
 0x6d3   :  { %v5222_v20 = vadd.f32 %v5221_v24, %v5220_v1  ;;  %v5457_v60 = vsel %vm812_vm7, %v5456_v54, 0.0  ;;  %v2356_v24 = vsel %vm2355_vm13, %v11401_v16, %v2354_v39  ;;  %v4797_v54 = vmul.f32 %v9182_v6, %v11506_v57 }
 0x6d4   :  { %v5458_v4 = vadd.f32 %v5457_v60, %v5453_v51  ;;  %v11581_v51 = vsel %vm3820_vm14, %v3821_v23, %v3819_v7  ;;  %v11604_v39 = vsel %vm4310_vm8, %v4311_v26, %v4309_v14  ;;  %v5227_v60 = vmul.f32 %v9186_v8, %v11519_v45 }
 0x6d5   :  { %v5223_v58 = vrot.slane %v5222_v20, 1  ;;  %v4799_v12 = vsel %vm4798_vm10, %v11506_v57, %v4797_v54  ;;  %vm4800_vm13 = vcmp.eq.f32.partialorder %v11506_v57, 0.0  ;;  %vm5230_vm14 = vcmp.eq.f32.partialorder %v11519_v45, 0.0 }
 0x6d6   :  { %v5459_v63 = vrot.slane %v5458_v4, 4  ;;  %v5471_v21 = vpop.permute.xlu0 %5470  ;;  %v2359_v53 = vsel %vm2357_vm0, %v2358_v22, %v2356_v24  ;;  %v11632_v7 = vsel %vm4800_vm13, %v4801_v15, %v4799_v12  ;;  %v2345_v57 = vadd.f32 %v11544_v25, %v11503_v46 }
 0x6d7   :  { %v5224_v37 = vadd.f32 %v5223_v58, %v5222_v20  ;;  %v5477_v33 = vsel %vm5211_vm6, %v5471_v21, 0.0  ;;  %v4784_v20 = vsel %vm4783_vm9, %v11493_v42, %v4782_v48  ;;  %v5229_v21 = vsel %vm5228_vm11, %v11519_v45, %v5227_v60 }
 0x6d8   :  { %v5460_v43 = vadd.f32 %v5459_v63, %v5458_v4  ;;  %5478 = vadd.xlane.f32.xlu0 %v5477_v33  ;;  %v4786_v4 = vand.u32 2147483648, %v11493_v42  ;;  %v5231_v63 = vand.u32 2147483648, %v11519_v45  ;;  %v2844_v33 = vmul.f32 %v9188_v5, %v11532_v36 }
 0x6d9   :  { %v11571_v0 = vmul.f32 0.008928572, %v5224_v37  ;;  %v2831_v37 = vsel %vm2830_vm1, %v11513_v27, %v2829_v31  ;;  %v3319_v16 = vmul.f32 %v9190_v2, %v11548_v34  ;;  %v2360_v23 = vadd.f32 %v2359_v53, %v2345_v57 }
 0x6da   :  { %v5461_v13 = vrot.slane %v5460_v43, 2  ;;  %v11618_v62 = vsel %vm4785_vm12, %v4786_v4, %v4784_v20  ;;  %v11640_v45 = vsel %vm5230_vm14, %v5231_v63, %v5229_v21  ;;  %v2834_v44 = vsel %vm2832_vm15, %v2833_v11, %v2831_v37 }
 0x6db   :  { %9193 = vrsqrt.f32 %v11571_v0  ;;  %vm2845_vm0 = vcmp.eq.f32.partialorder %v11532_v36, inf  ;;  %v2848_v46 = vand.u32 2147483648, %v11532_v36  ;;  %vm3320_vm1 = vcmp.eq.f32.partialorder %v11548_v34, inf }
 0x6dc   :  { %v5462_v1 = vadd.f32 %v5461_v13, %v5460_v43  ;;  %5717 = vadd.xlane.f32.xlu0 %v5716_v50  ;;  %9195 = vrsqrt.f32 %v11577_v49  ;;  %v9192_v42 = vpop.eup %9191  ;;  %v2846_v18 = vsel %vm2845_vm0, %v11532_v36, %v2844_v33  ;;  %vm5243_vm2 = vcmp.eq.f32.partialorder %v11571_v0, inf }
 0x6dd   :  { %9197 = vrsqrt.f32 %v11581_v51  ;;  %v3334_v25 = vmul.f32 %v9192_v42, %v11558_v30  ;;  %v5246_v13 = vand.u32 2147483648, %v11571_v0  ;;  %v3321_v6 = vsel %vm3320_vm1, %v11548_v34, %v3319_v16 }
 0x6de   :  { %v5463_v61 = vrot.slane %v5462_v1, 1  ;;  %9199 = vrsqrt.f32 %v11600_v56  ;;  %vm5245_vm8 = vcmp.eq.f32.partialorder %v11571_v0, 0.0  ;;  %v2849_v10 = vsel %vm2847_vm3, %v2848_v46, %v2846_v18 }
 0x6df   :  { %9201 = vrsqrt.f32 %v11604_v39  ;;  %v3323_v48 = vand.u32 2147483648, %v11548_v34  ;;  %vm3335_vm9 = vcmp.eq.f32.partialorder %v11558_v30, inf  ;;  %v2835_v8 = vadd.f32 %v2834_v44, %v2360_v23 }
 0x6e0   :  { %v5464_v28 = vadd.f32 %v5463_v61, %v5462_v1  ;;  %vm3322_vm10 = vcmp.eq.f32.partialorder %v11548_v34, 0.0  ;;  %v3336_v24 = vsel %vm3335_vm9, %v11558_v30, %v3334_v25  ;;  %v3338_v59 = vand.u32 2147483648, %v11558_v30 }
 0x6e1   :  { %v3324_v36 = vsel %vm3322_vm10, %v3323_v48, %v3321_v6  ;;  %v2850_v26 = vadd.f32 %v2849_v10, %v2835_v8  ;;  %vm3337_vm11 = vcmp.eq.f32.partialorder %v11558_v30, 0.0  ;;  %v5621_v34 = vmul.f32 %v11076_v38, %v11080_v47 }
 0x6e2   :  { %v11615_v58 = vmul.f32 0.008928572, %v5464_v28  ;;  %v3339_v61 = vsel %vm3337_vm11, %v3338_v59, %v3336_v24  ;;  %vm3810_vm12 = vcmp.eq.f32.partialorder %v11577_v49, inf  ;;  %vm3812_vm13 = vcmp.eq.f32.partialorder %v11577_v49, 0.0 }
 0x6e3   :  { %v3325_v28 = vadd.f32 %v3324_v36, %v2850_v26  ;;  %v3813_v31 = vand.u32 2147483648, %v11577_v49  ;;  %vm3825_vm14 = vcmp.eq.f32.partialorder %v11581_v51, inf  ;;  %v3828_v53 = vand.u32 2147483648, %v11581_v51 }
 0x6e4   :  { %9203 = vrsqrt.f32 %v11615_v58  ;;  %vm5490_vm15 = vcmp.eq.f32.partialorder %v11615_v58, inf  ;;  %v5493_v38 = vand.u32 2147483648, %v11615_v58  ;;  %vm5492_vm0 = vcmp.eq.f32.partialorder %v11615_v58, 0.0 }
 0x6e5   :  { %9205 = vrsqrt.f32 %v11618_v62  ;;  %v3340_v12 = vadd.f32 %v3339_v61, %v3325_v28  ;;  %vm4300_vm1 = vcmp.eq.f32.partialorder %v11600_v56, inf  ;;  %vm4315_vm3 = vcmp.eq.f32.partialorder %v11604_v39, inf }
 0x6e6   :  { %9207 = vrsqrt.f32 %v11632_v7  ;;  %vm4790_vm9 = vcmp.eq.f32.partialorder %v11618_v62, inf  ;;  %vm4317_vm10 = vcmp.eq.f32.partialorder %v11604_v39, 0.0  ;;  %vm4805_vm11 = vcmp.eq.f32.partialorder %v11632_v7, inf }
 0x6e7   :  { %9209 = vrsqrt.f32 %v11640_v45  ;;  %v5238_v10 = vand.u32 2147483648, %v11640_v45 }
 0x6e8   :  { %v9194_v43 = vpop.eup %9193 }
 0x6e9   :  { %v5242_v50 = vmul.f32 %v9194_v43, %v11571_v0  ;;  %v9196_v27 = vpop.eup %9195 }
 0x6ea   :  { %v9198_v52 = vpop.eup %9197 }
 0x6eb   :  { %v5244_v22 = vsel %vm5243_vm2, %v11571_v0, %v5242_v50  ;;  %v3809_v0 = vmul.f32 %v9196_v27, %v11577_v49  ;;  %v9200_v14 = vpop.eup %9199  ;;  %v3824_v20 = vmul.f32 %v9198_v52, %v11581_v51  ;;  %vm3827_vm2 = vcmp.eq.f32.partialorder %v11581_v51, 0.0 }
 0x6ec   :  { %v11658_v1 = vsel %vm5245_vm8, %v5246_v13, %v5244_v22  ;;  %v9202_v54 = vpop.eup %9201  ;;  %v4299_v4 = vmul.f32 %v9200_v14, %v11600_v56  ;;  %vm4302_vm8 = vcmp.eq.f32.partialorder %v11600_v56, 0.0 }
 0x6ed   :  { %9211 = vrsqrt.f32 %v11658_v1  ;;  %v3811_v5 = vsel %vm3810_vm12, %v11577_v49, %v3809_v0  ;;  %v3826_v47 = vsel %vm3825_vm14, %v11581_v51, %v3824_v20  ;;  %v4314_v15 = vmul.f32 %v9202_v54, %v11604_v39 }
 0x6ee   :  { %v3814_v42 = vsel %vm3812_vm13, %v3813_v31, %v3811_v5  ;;  %v4301_v33 = vsel %vm4300_vm1, %v11600_v56, %v4299_v4  ;;  %v3829_v16 = vsel %vm3827_vm2, %v3828_v53, %v3826_v47  ;;  %v4318_v51 = vand.u32 2147483648, %v11604_v39 }
 0x6ef   :  { %v3815_v49 = vadd.f32 %v3814_v42, %v3340_v12  ;;  %v4316_v43 = vsel %vm4315_vm3, %v11604_v39, %v4314_v15  ;;  %vm5235_vm12 = vcmp.eq.f32.partialorder %v11640_v45, inf  ;;  %vm4792_vm13 = vcmp.eq.f32.partialorder %v11618_v62, 0.0 }
 0x6f0   :  { %v4319_v27 = vsel %vm4317_vm10, %v4318_v51, %v4316_v43  ;;  %v4808_v39 = vand.u32 2147483648, %v11632_v7  ;;  %vm4807_vm14 = vcmp.eq.f32.partialorder %v11632_v7, 0.0  ;;  %v5253_v0 = vand.u32 2147483648, %v11658_v1 }
 0x6f1   :  { %v9204_v60 = vpop.eup %9203  ;;  %v3830_v46 = vadd.f32 %v3829_v16, %v3815_v49  ;;  %vm5252_vm1 = vcmp.eq.f32.partialorder %v11658_v1, 0.0  ;;  %v5856_v16 = vrot.slane %v11450_v9, %v9661_v3 }
 0x6f2   :  { %v5489_v30 = vmul.f32 %v9204_v60, %v11615_v58  ;;  %5732 = vrot.lane.b32.xlu0 %v5621_v34, %s9424_s22  ;;  %v9206_v2 = vpop.eup %9205 }
 0x6f3   :  { %v9208_v21 = vpop.eup %9207  ;;  %v4789_v57 = vmul.f32 %v9206_v2, %v11618_v62  ;;  %v5833_v2 = vcombine.high %v11434_v19, %v11434_v19 }
 0x6f4   :  { %v5491_v63 = vsel %vm5490_vm15, %v11615_v58, %v5489_v30  ;;  %v9210_v11 = vpop.eup %9209  ;;  %v4303_v58 = vand.u32 2147483648, %v11600_v56  ;;  %v4804_v44 = vmul.f32 %v9208_v21, %v11632_v7  ;;  %v4793_v56 = vand.u32 2147483648, %v11618_v62 }
 0x6f5   :  { %v5494_v37 = vsel %vm5492_vm0, %v5493_v38, %v5491_v63  ;;  %v4791_v25 = vsel %vm4790_vm9, %v11618_v62, %v4789_v57  ;;  %v5234_v50 = vmul.f32 %v9210_v11, %v11640_v45  ;;  %vm5237_vm15 = vcmp.eq.f32.partialorder %v11640_v45, 0.0  ;;  %v12816_v38 = vld [vmem:[#allocation45_spill] sm:$0xff] }
 0x6f6   :  { %9213 = vrsqrt.f32 %v5494_v37  ;;  %v4304_v23 = vsel %vm4302_vm8, %v4303_v58, %v4301_v33  ;;  %v4806_v6 = vsel %vm4805_vm11, %v11632_v7, %v4804_v44  ;;  %v4794_v52 = vsel %vm4792_vm13, %v4793_v56, %v4791_v25 }
 0x6f7   :  { %v4305_v13 = vadd.f32 %v4304_v23, %v3830_v46  ;;  %v5236_v8 = vsel %vm5235_vm12, %v11640_v45, %v5234_v50  ;;  %v4809_v24 = vsel %vm4807_vm14, %v4808_v39, %v4806_v6  ;;  %vm5250_vm0 = vcmp.eq.f32.partialorder %v11658_v1, inf }
 0x6f8   :  { %v5239_v59 = vsel %vm5237_vm15, %v5238_v10, %v5236_v8  ;;  %vm5497_vm2 = vcmp.eq.f32.partialorder %v5494_v37, inf  ;;  %v5500_v20 = vand.u32 2147483648, %v5494_v37  ;;  %vm5499_vm3 = vcmp.eq.f32.partialorder %v5494_v37, 0.0  ;;  %v12818_v10 = vld [vmem:[#allocation65_spill] sm:$0xff] }
 0x6f9   :  { %v4320_v48 = vadd.f32 %v4319_v27, %v4305_v13  ;;  %v5847_v12 = vrot.slane %v5833_v2, %v9661_v3  ;;  %v6046_v47 = vcombine.high %v12816_v38, %v12816_v38  ;;  %v6053_v15 = vrot.slane %v12816_v38, %v9661_v3 }
 0x6fa   :  { %v9212_v18 = vpop.eup %9211  ;;  %v8962_v56 = vcombine.high %v5856_v16, %v11474_v29 }
 0x6fb   :  { %v5249_v22 = vmul.f32 %v9212_v18, %v11658_v1  ;;  %v4795_v62 = vadd.f32 %v4794_v52, %v4320_v48  ;;  %v6060_v63 = vrot.slane %v6046_v47, %v9661_v3  ;;  %v5849_v21 = vcombine.high %v5847_v12, %v5847_v12 }
 0x6fc   :  { %v6061_v42 = vcombine.high %v6053_v15, %v6053_v15  ;;  %v6069_v19 = vrot.slane %v6053_v15, %v9661_v3  ;;  %v5863_v58 = vrot.slane %v5847_v12, %v9661_v3 }
 0x6fd   :  { %v5251_v36 = vsel %vm5250_vm0, %v11658_v1, %v5249_v22  ;;  %v4810_v14 = vadd.f32 %v4809_v24, %v4795_v62  ;;  %v5975_v1 = vsel %vm5186_vm5, %v11521_v17, 0.0  ;;  %v6062_v53 = vcombine.high %v6060_v63, %v6060_v63 }
 0x6fe   :  { %v5254_v54 = vsel %vm5252_vm1, %v5253_v0, %v5251_v36  ;;  %v6076_v33 = vrot.slane %v6060_v63, %v9661_v3  ;;  %v6083_v57 = vrot.slane %v6061_v42, %v9661_v3  ;;  %v5877_v49 = vrot.slane %v5849_v21, %v9661_v3 }
 0x6ff   :  { %v5240_v61 = vadd.f32 %v5239_v59, %v4810_v14  ;;  %v6090_v11 = vrot.slane %v6062_v53, %v9661_v3  ;;  %v6091_v44 = vcombine.high %v6069_v19, %v6069_v19  ;;  %v5942_v62 = vrot.slane %v8962_v56, %v9661_v3 }
 0x700   :  { %v6092_v23 = vcombine.high %v6076_v33, %v6076_v33  ;;  %v6093_v51 = vcombine.high %v6083_v57, %v6083_v57  ;;  %v5934_v13 = vcombine.low %v5863_v58, %v5877_v49  ;;  %v8963_v24 = vcombine.high %v5863_v58, %v5877_v49 }
 0x701   :  { %v5255_v34 = vadd.f32 %v5254_v54, %v5240_v61  ;;  %v6094_v18 = vcombine.high %v6090_v11, %v6090_v11  ;;  %v6146_v25 = vcombine.low %v6083_v57, %v6091_v44 }
 0x702   :  { %v6147_v50 = vcombine.low %v6093_v51, %v6076_v33  ;;  %v6148_v27 = vcombine.low %v6090_v11, %v6092_v23  ;;  %v5949_v29 = vrot.slane %v5934_v13, %v9661_v3  ;;  %v5956_v14 = vrot.slane %v8963_v24, %v9661_v3 }
 0x703   :  { %v9214_v26 = vpop.eup %9213  ;;  %v6156_v6 = vrot.slane %v6146_v25, %v9661_v3 }
 0x704   :  { %v5496_v7 = vmul.f32 %v9214_v26, %v5494_v37  ;;  %v6163_v22 = vrot.slane %v6147_v50, %v9661_v3  ;;  %v6170_v52 = vrot.slane %v6148_v27, %v9661_v3  ;;  %v5957_v26 = vcombine.low %v5942_v62, %v5949_v29 }
 0x706   :  { %v5498_v45 = vsel %vm5497_vm2, %v5494_v37, %v5496_v7  ;;  %v12817_v37 = vld [vmem:[#allocation53_spill] sm:$0xff]  ;;  %v6178_v48 = vcombine.low %v6156_v6, %v6163_v22 }
 0x707   :  { %v5501_v60 = vsel %vm5499_vm3, %v5500_v20, %v5498_v45  ;;  %v11730_v17 = vrot.slane %v12817_v37, %v9661_v3  ;;  %v5964_v20 = vrot.slane %v5957_v26, %v9661_v3  ;;  %v12819_v26 = vld [vmem:[#allocation22_spill] sm:$0xff] }
 0x708   :  { %v11715_v28 = vadd.f32 %v5501_v60, %v5255_v34  ;;  %v6186_v36 = vrot.slane %v6178_v48, %v9661_v3  ;;  %v5971_v34 = vrot.slane %v5956_v14, %v9661_v3 }
 0x709   :  { %v6110_v43 = vcombine.high %v11730_v17, %v11730_v17 }
 0x70a   :  { %v5972_v2 = vcombine.low %v5964_v20, %v5971_v34 }
 0x70b   :  { %v11743_v46 = vrot.slane %v6110_v43, %v9661_v3 }
 0x70c   :  { %v5978_v21 = vsel %vm5190_vm4, %v5972_v2, 0.0  ;;  %v6118_v2 = vrot.slane %v11730_v17, %v9661_v3 }
 0x70d   :  { %v6149_v9 = vcombine.low %v6094_v18, %v11743_v46 }
 0x70f   :  { %v6177_v39 = vrot.slane %v6149_v9, %v9661_v3 }
 0x711   :  { %v6179_v8 = vcombine.low %v6170_v52, %v6177_v39 }
 0x713   :  { %v6193_v59 = vrot.slane %v6179_v8, %v9661_v3 }
 0x715   :  { %v11757_v0 = vcombine.low %v6186_v36, %v6193_v59 }
 0x717   :  { %v6237_v59 = vsel %vm5186_vm5, %v11757_v0, 0.0 }
 0x73f   :  { %v5476_v5 = vpop.xlane.xlu1 %5475 }
 0x743   :  { %v5715_v31 = vpop.xlane.xlu1 %5714 }
 0x747   :  { %v5731_v4 = vpop.permute.xlu1 %5730 }
 0x748   :  { %v5736_v30 = vsel %vm5211_vm6, %v5731_v4, 0.0 }
 0x749   :  { %5737 = vadd.xlane.f32.xlu1 %v5736_v30 }
 0x74d   :  { %5976 = vadd.xlane.f32.xlu1 %v5975_v1 }
 0x75e   :  { %5992 = vrot.lane.b32.xlu1 %v12818_v10, %s9424_s22 }
 0x761   :  { %v5479_v54 = vpop.xlane.xlu0 %5478 }
 0x762   :  { %v5480_v61 = vadd.f32 %v5479_v54, %v5476_v5  ;;  %v6308_v54 = vcombine.high %v12819_v26, %v12819_v26 }
 0x764   :  { %v5481_v7 = vrot.slane %v5480_v61, 4 }
 0x765   :  { %v5718_v45 = vpop.xlane.xlu0 %5717 }
 0x766   :  { %v5482_v60 = vadd.f32 %v5481_v7, %v5480_v61  ;;  %v5719_v4 = vsel %vm812_vm7, %v5718_v45, 0.0  ;;  %v6315_v61 = vrot.slane %v12819_v26, %v9661_v3  ;;  %v6322_v7 = vrot.slane %v6308_v54, %v9661_v3 }
 0x767   :  { %v5720_v30 = vadd.f32 %v5719_v4, %v5715_v31 }
 0x768   :  { %v5483_v1 = vrot.slane %v5482_v60, 2  ;;  %v6323_v34 = vcombine.high %v6315_v61, %v6315_v61  ;;  %v6324_v45 = vcombine.high %v6322_v7, %v6322_v7  ;;  %v6338_v4 = vrot.slane %v6322_v7, %v9661_v3 }
 0x769   :  { %v5721_v12 = vrot.slane %v5720_v30, 4  ;;  %v5733_v38 = vpop.permute.xlu0 %5732 }
 0x76a   :  { %v5484_v47 = vadd.f32 %v5483_v1, %v5482_v60  ;;  %v5739_v15 = vsel %vm5211_vm6, %v5733_v38, 0.0  ;;  %v12820_v60 = vld [vmem:[#allocation54_spill] sm:$0xff]  ;;  %v6352_v1 = vrot.slane %v6324_v45, %v9661_v3 }
 0x76b   :  { %v5722_v63 = vadd.f32 %v5721_v12, %v5720_v30  ;;  %5740 = vadd.xlane.f32.xlu0 %v5739_v15  ;;  %v11783_v0 = vrot.slane %v12820_v60, %v9661_v3  ;;  %v6345_v30 = vrot.slane %v6323_v34, %v9661_v3 }
 0x76c   :  { %v5485_v5 = vrot.slane %v5484_v47, 1 }
 0x76d   :  { %v5723_v42 = vrot.slane %v5722_v63, 2 }
 0x76e   :  { %v5486_v53 = vadd.f32 %v5485_v5, %v5484_v47  ;;  %v6372_v47 = vcombine.high %v11783_v0, %v11783_v0  ;;  %v6355_v5 = vcombine.high %v6345_v30, %v6345_v30 }
 0x76f   :  { %v5724_v19 = vadd.f32 %v5723_v42, %v5722_v63  ;;  %5979 = vadd.xlane.f32.xlu0 %v5978_v21  ;;  %v6354_v63 = vcombine.high %v6338_v4, %v6338_v4  ;;  %v6356_v21 = vcombine.high %v6352_v1, %v6352_v1 }
 0x770   :  { %v5487_v33 = vmul.f32 0.008928572, %v5486_v53  ;;  %v11796_v42 = vrot.slane %v6372_v47, %v9661_v3 }
 0x771   :  { %v5725_v57 = vrot.slane %v5724_v19, 1 }
 0x772   :  { %9215 = vrsqrt.f32 %v5487_v33  ;;  %vm5505_vm8 = vcmp.eq.f32.partialorder %v5487_v33, inf  ;;  %v5508_v49 = vand.u32 2147483648, %v5487_v33  ;;  %vm5507_vm9 = vcmp.eq.f32.partialorder %v5487_v33, 0.0 }
 0x773   :  { %v5726_v31 = vadd.f32 %v5725_v57, %v5724_v19  ;;  %v6409_v19 = vcombine.low %v6355_v5, %v6338_v4  ;;  %v8964_v57 = vcombine.high %v6118_v2, %v11743_v46  ;;  %v6411_v17 = vcombine.low %v6356_v21, %v11796_v42 }
 0x775   :  { %v5727_v11 = vmul.f32 0.008928572, %v5726_v31 }
 0x777   :  { %9217 = vrsqrt.f32 %v5727_v11  ;;  %vm5752_vm10 = vcmp.eq.f32.partialorder %v5727_v11, inf  ;;  %v5755_v18 = vand.u32 2147483648, %v5727_v11  ;;  %vm5754_vm11 = vcmp.eq.f32.partialorder %v5727_v11, 0.0 }
 0x77f   :  { %v9216_v16 = vpop.eup %9215 }
 0x780   :  { %v5504_v58 = vmul.f32 %v9216_v16, %v5487_v33  ;;  %v6425_v16 = vrot.slane %v6409_v19, %v9661_v3 }
 0x782   :  { %v5506_v43 = vsel %vm5505_vm8, %v5487_v33, %v5504_v58  ;;  %v6410_v33 = vcombine.low %v6352_v1, %v6354_v63 }
 0x783   :  { %v5509_v44 = vsel %vm5507_vm9, %v5508_v49, %v5506_v43  ;;  %v6439_v49 = vrot.slane %v6411_v17, %v9661_v3 }
 0x784   :  { %v9218_v23 = vpop.eup %9217  ;;  %9219 = vrsqrt.f32 %v5509_v44  ;;  %vm5512_vm12 = vcmp.eq.f32.partialorder %v5509_v44, inf  ;;  %v5515_v9 = vand.u32 2147483648, %v5509_v44  ;;  %vm5514_vm13 = vcmp.eq.f32.partialorder %v5509_v44, 0.0 }
 0x785   :  { %v5751_v51 = vmul.f32 %v9218_v23, %v5727_v11  ;;  %5994 = vrot.lane.b32.xlu0 %v11146_v35, %s9424_s22  ;;  %v6432_v58 = vrot.slane %v6410_v33, %v9661_v3 }
 0x787   :  { %v5753_v25 = vsel %vm5752_vm10, %v5727_v11, %v5751_v51  ;;  %v6204_v51 = vrot.slane %v8964_v57, %v9661_v3 }
 0x788   :  { %v5756_v50 = vsel %vm5754_vm11, %v5755_v18, %v5753_v25 }
 0x789   :  { %9221 = vrsqrt.f32 %v5756_v50  ;;  %vm5759_vm14 = vcmp.eq.f32.partialorder %v5756_v50, inf  ;;  %v5762_v10 = vand.u32 2147483648, %v5756_v50  ;;  %vm5761_vm15 = vcmp.eq.f32.partialorder %v5756_v50, 0.0 }
 0x791   :  { %v9220_v27 = vpop.eup %9219 }
 0x792   :  { %v5511_v56 = vmul.f32 %v9220_v27, %v5509_v44 }
 0x794   :  { %v5513_v13 = vsel %vm5512_vm12, %v5509_v44, %v5511_v56  ;;  %v6441_v44 = vcombine.low %v6432_v58, %v6439_v49 }
 0x795   :  { %v5516_v6 = vsel %vm5514_vm13, %v5515_v9, %v5513_v13 }
 0x796   :  { %v9222_v22 = vpop.eup %9221  ;;  %v5517_v52 = vadd.f32 %v5516_v6, %v11715_v28  ;;  %v6095_v28 = vcombine.high %v12817_v37, %v12817_v37  ;;  %v6331_v37 = vrot.slane %v6315_v61, %v9661_v3  ;;  %v6455_v25 = vrot.slane %v6441_v44, %v9661_v3 }
 0x797   :  { %v5758_v39 = vmul.f32 %v9222_v22, %v5756_v50 }
 0x798   :  { %v6109_v14 = vrot.slane %v6095_v28, %v9661_v3  ;;  %v6353_v15 = vcombine.high %v6331_v37, %v6331_v37 }
 0x799   :  { %v5760_v35 = vsel %vm5759_vm14, %v5756_v50, %v5758_v39 }
 0x79a   :  { %v5763_v48 = vsel %vm5761_vm15, %v5762_v10, %v5760_v35  ;;  %v6111_v20 = vcombine.high %v6109_v14, %v6109_v14  ;;  %v6125_v12 = vrot.slane %v6109_v14, %v9661_v3  ;;  %v6408_v53 = vcombine.low %v6345_v30, %v6353_v15 }
 0x79b   :  { %v11768_v8 = vadd.f32 %v5763_v48, %v5517_v52 }
 0x79c   :  { %v6139_v38 = vrot.slane %v6111_v20, %v9661_v3  ;;  %v6418_v11 = vrot.slane %v6408_v53, %v9661_v3 }
 0x79e   :  { %v6196_v31 = vcombine.low %v6125_v12, %v6139_v38  ;;  %v6440_v43 = vcombine.low %v6418_v11, %v6425_v16  ;;  %v8965_v23 = vcombine.high %v6125_v12, %v6139_v38 }
 0x7a0   :  { %v6211_v46 = vrot.slane %v6196_v31, %v9661_v3  ;;  %v6448_v18 = vrot.slane %v6440_v43, %v9661_v3  ;;  %v6218_v27 = vrot.slane %v8965_v23, %v9661_v3 }
 0x7a2   :  { %v11810_v50 = vcombine.low %v6448_v18, %v6455_v25  ;;  %v6219_v56 = vcombine.low %v6204_v51, %v6211_v46  ;;  %v6233_v22 = vrot.slane %v6218_v27, %v9661_v3  ;;  %v12821_v18 = vld [vmem:[#allocation47_spill] sm:$0xff] }
 0x7a3   :  { %v6566_v25 = vmul.f32 %v12821_v18, %v12812_v40 }
 0x7a4   :  { %v6499_v46 = vsel %vm5186_vm5, %v11810_v50, 0.0 }
 0x7d2   :  { %v5738_v24 = vpop.xlane.xlu1 %5737 }
 0x7d6   :  { %v5977_v62 = vpop.xlane.xlu1 %5976 }
 0x7da   :  { %v5993_v29 = vpop.permute.xlu1 %5992 }
 0x7db   :  { %v5998_v36 = vsel %vm5211_vm6, %v5993_v29, 0.0 }
 0x7dc   :  { %5999 = vadd.xlane.f32.xlu1 %v5998_v36 }
 0x7e0   :  { %6238 = vadd.xlane.f32.xlu1 %v6237_v59 }
 0x7f1   :  { %6254 = vrot.lane.b32.xlu1 %v11123_v55, %s9424_s22  ;;  %v6226_v55 = vrot.slane %v6219_v56, %v9661_v3  ;;  %v12822_v56 = vld [vmem:[#allocation24_spill] sm:$0xff] }
 0x7f3   :  { %v6234_v29 = vcombine.low %v6226_v55, %v6233_v22 }
 0x7f4   :  { %v5741_v9 = vpop.xlane.xlu0 %5740 }
 0x7f5   :  { %v5742_v13 = vadd.f32 %v5741_v9, %v5738_v24  ;;  %v6240_v54 = vsel %vm5190_vm4, %v6234_v29, 0.0  ;;  %v11833_v9 = vmul.f32 %v12822_v56, %v12814_v32 }
 0x7f7   :  { %v5743_v6 = vrot.slane %v5742_v13, 4 }
 0x7f8   :  { %v5980_v52 = vpop.xlane.xlu0 %5979 }
 0x7f9   :  { %v5744_v39 = vadd.f32 %v5743_v6, %v5742_v13  ;;  %v5981_v10 = vsel %vm812_vm7, %v5980_v52, 0.0  ;;  %v6570_v13 = vcombine.high %v6566_v25, %v6566_v25  ;;  %v6577_v6 = vrot.slane %v6566_v25, %v9661_v3 }
 0x7fa   :  { %v5982_v35 = vadd.f32 %v5981_v10, %v5977_v62 }
 0x7fb   :  { %v5745_v48 = vrot.slane %v5744_v39, 2  ;;  %v6584_v55 = vrot.slane %v6570_v13, %v9661_v3  ;;  %v6585_v50 = vcombine.high %v6577_v6, %v6577_v6  ;;  %v6593_v40 = vrot.slane %v6577_v6, %v9661_v3 }
 0x7fc   :  { %v5983_v36 = vrot.slane %v5982_v35, 4  ;;  %v5995_v59 = vpop.permute.xlu0 %5994 }
 0x7fd   :  { %v5746_v28 = vadd.f32 %v5745_v48, %v5744_v39  ;;  %v6001_v14 = vsel %vm5211_vm6, %v5995_v59, 0.0  ;;  %v6586_v52 = vcombine.high %v6584_v55, %v6584_v55  ;;  %v6600_v39 = vrot.slane %v6584_v55, %v9661_v3 }
 0x7fe   :  { %v5984_v26 = vadd.f32 %v5983_v36, %v5982_v35  ;;  %6002 = vadd.xlane.f32.xlu0 %v6001_v14  ;;  %v6607_v10 = vrot.slane %v6585_v50, %v9661_v3  ;;  %v6380_v35 = vrot.slane %v11783_v0, %v9661_v3  ;;  %v6615_v59 = vcombine.high %v6593_v40, %v6593_v40 }
 0x7ff   :  { %v5747_v24 = vrot.slane %v5746_v28, 1  ;;  %v6614_v32 = vrot.slane %v6586_v52, %v9661_v3 }
 0x800   :  { %v5985_v61 = vrot.slane %v5984_v26, 2  ;;  %v6617_v14 = vcombine.high %v6607_v10, %v6607_v10 }
 0x801   :  { %v5748_v7 = vadd.f32 %v5747_v24, %v5746_v28  ;;  %v6616_v28 = vcombine.high %v6600_v39, %v6600_v39 }
 0x802   :  { %v5986_v20 = vadd.f32 %v5985_v61, %v5984_v26  ;;  %6241 = vadd.xlane.f32.xlu0 %v6240_v54  ;;  %v6618_v26 = vcombine.high %v6614_v32, %v6614_v32  ;;  %v6670_v54 = vcombine.low %v6607_v10, %v6615_v59  ;;  %v6671_v61 = vcombine.low %v6617_v14, %v6600_v39 }
 0x803   :  { %v5749_v34 = vmul.f32 0.008928572, %v5748_v7  ;;  %v6672_v7 = vcombine.low %v6614_v32, %v6616_v28 }
 0x804   :  { %v5987_v45 = vrot.slane %v5986_v20, 1 }
 0x805   :  { %9223 = vrsqrt.f32 %v5749_v34  ;;  %vm5767_vm0 = vcmp.eq.f32.partialorder %v5749_v34, inf  ;;  %v5770_v1 = vand.u32 2147483648, %v5749_v34  ;;  %vm5769_vm1 = vcmp.eq.f32.partialorder %v5749_v34, 0.0 }
 0x806   :  { %v5988_v62 = vadd.f32 %v5987_v45, %v5986_v20  ;;  %v8966_v20 = vcombine.high %v6380_v35, %v11796_v42  ;;  %v6680_v45 = vrot.slane %v6670_v54, %v9661_v3 }
 0x808   :  { %v5989_v37 = vmul.f32 0.008928572, %v5988_v62  ;;  %v6687_v62 = vrot.slane %v6671_v61, %v9661_v3 }
 0x80a   :  { %9225 = vrsqrt.f32 %v5989_v37  ;;  %vm6014_vm2 = vcmp.eq.f32.partialorder %v5989_v37, inf  ;;  %v6017_v15 = vand.u32 2147483648, %v5989_v37  ;;  %vm6016_vm3 = vcmp.eq.f32.partialorder %v5989_v37, 0.0 }
 0x812   :  { %v9224_v4 = vpop.eup %9223 }
 0x813   :  { %v5766_v30 = vmul.f32 %v9224_v4, %v5749_v34 }
 0x815   :  { %v5768_v2 = vsel %vm5767_vm0, %v5749_v34, %v5766_v30  ;;  %v12823_v30 = vld [vmem:[#allocation66_spill] sm:$0xff] }
 0x816   :  { %v5771_v12 = vsel %vm5769_vm1, %v5770_v1, %v5768_v2  ;;  %v6702_v1 = vcombine.low %v6680_v45, %v6687_v62 }
 0x817   :  { %v9226_v38 = vpop.eup %9225  ;;  %9227 = vrsqrt.f32 %v5771_v12  ;;  %vm5774_vm8 = vcmp.eq.f32.partialorder %v5771_v12, inf  ;;  %v5777_v19 = vand.u32 2147483648, %v5771_v12  ;;  %vm5776_vm9 = vcmp.eq.f32.partialorder %v5771_v12, 0.0 }
 0x818   :  { %v6013_v47 = vmul.f32 %v9226_v38, %v5989_v37  ;;  %6256 = vrot.lane.b32.xlu0 %v11149_v41, %s9424_s22  ;;  %v6466_v38 = vrot.slane %v8966_v20, %v9661_v3 }
 0x81a   :  { %v6015_v63 = vsel %vm6014_vm2, %v5989_v37, %v6013_v47  ;;  %v6694_v37 = vrot.slane %v6672_v7, %v9661_v3  ;;  %v6710_v47 = vrot.slane %v6702_v1, %v9661_v3 }
 0x81b   :  { %v6018_v5 = vsel %vm6016_vm3, %v6017_v15, %v6015_v63 }
 0x81c   :  { %9229 = vrsqrt.f32 %v6018_v5  ;;  %vm6021_vm10 = vcmp.eq.f32.partialorder %v6018_v5, inf  ;;  %v6024_v16 = vand.u32 2147483648, %v6018_v5  ;;  %vm6023_vm11 = vcmp.eq.f32.partialorder %v6018_v5, 0.0 }
 0x824   :  { %v9228_v21 = vpop.eup %9227 }
 0x825   :  { %v5773_v53 = vmul.f32 %v9228_v21, %v5771_v12 }
 0x827   :  { %v5775_v33 = vsel %vm5774_vm8, %v5771_v12, %v5773_v53 }
 0x828   :  { %v5778_v57 = vsel %vm5776_vm9, %v5777_v19, %v5775_v33 }
 0x829   :  { %v9230_v17 = vpop.eup %9229  ;;  %v5779_v31 = vadd.f32 %v5778_v57, %v11768_v8  ;;  %v6357_v8 = vcombine.high %v12820_v60, %v12820_v60  ;;  %v11839_v60 = vrot.slane %v11833_v9, %v9661_v3 }
 0x82a   :  { %v6020_v11 = vmul.f32 %v9230_v17, %v6018_v5 }
 0x82b   :  { %v6371_v27 = vrot.slane %v6357_v8, %v9661_v3  ;;  %v6634_v36 = vcombine.high %v11839_v60, %v11839_v60 }
 0x82c   :  { %v6022_v41 = vsel %vm6021_vm10, %v6018_v5, %v6020_v11 }
 0x82d   :  { %v6025_v58 = vsel %vm6023_vm11, %v6024_v16, %v6022_v41  ;;  %v6373_v22 = vcombine.high %v6371_v27, %v6371_v27  ;;  %v6387_v48 = vrot.slane %v6371_v27, %v9661_v3  ;;  %v11852_v24 = vrot.slane %v6634_v36, %v9661_v3 }
 0x82e   :  { %v11821_v49 = vadd.f32 %v6025_v58, %v5779_v31 }
 0x82f   :  { %v6401_v29 = vrot.slane %v6373_v22, %v9661_v3  ;;  %v6673_v0 = vcombine.low %v6618_v26, %v11852_v24 }
 0x831   :  { %v6458_v34 = vcombine.low %v6387_v48, %v6401_v29  ;;  %v6701_v4 = vrot.slane %v6673_v0, %v9661_v3  ;;  %v8967_v12 = vcombine.high %v6387_v48, %v6401_v29  ;;  %v12824_v29 = vld [vmem:[#allocation73_spill] sm:$0xff] }
 0x833   :  { %v6703_v2 = vcombine.low %v6694_v37, %v6701_v4  ;;  %v6473_v42 = vrot.slane %v6458_v34, %v9661_v3  ;;  %v6480_v5 = vrot.slane %v8967_v12, %v9661_v3 }
 0x835   :  { %v6717_v15 = vrot.slane %v6703_v2, %v9661_v3  ;;  %v6481_v21 = vcombine.low %v6466_v38, %v6473_v42  ;;  %v6495_v17 = vrot.slane %v6480_v5, %v9661_v3 }
 0x837   :  { %v11866_v63 = vcombine.low %v6710_v47, %v6717_v15  ;;  %v6488_v57 = vrot.slane %v6481_v21, %v9661_v3  ;;  %v12825_v47 = vld [vmem:[#allocation50_spill] sm:$0xff] }
 0x838   :  { %v6832_v15 = vcombine.high %v12825_v47, %v12825_v47  ;;  %v6839_v5 = vrot.slane %v12825_v47, %v9661_v3 }
 0x839   :  { %v6761_v38 = vsel %vm5186_vm5, %v11866_v63, 0.0 }
 0x83a   :  { %v6846_v21 = vrot.slane %v6832_v15, %v9661_v3 }
 0x865   :  { %v6000_v43 = vpop.xlane.xlu1 %5999 }
 0x869   :  { %v6239_v44 = vpop.xlane.xlu1 %6238 }
 0x86d   :  { %v6255_v23 = vpop.permute.xlu1 %6254 }
 0x86e   :  { %v6260_v51 = vsel %vm5211_vm6, %v6255_v23, 0.0  ;;  %v6496_v23 = vcombine.low %v6488_v57, %v6495_v17  ;;  %v12826_v57 = vld [vmem:[#allocation48_spill] sm:$0xff]  ;;  %v6862_v17 = vrot.slane %v6846_v21, %v9661_v3 }
 0x86f   :  { %6261 = vadd.xlane.f32.xlu1 %v6260_v51  ;;  %v11892_v63 = vrot.slane %v12826_v57, %v9661_v3 }
 0x870   :  { %v6502_v27 = vsel %vm5190_vm4, %v6496_v23, 0.0 }
 0x871   :  { %v6896_v23 = vcombine.high %v11892_v63, %v11892_v63 }
 0x873   :  { %6500 = vadd.xlane.f32.xlu1 %v6499_v46 }
 0x884   :  { %6516 = vrot.lane.b32.xlu1 %v12823_v30, %s9424_s22 }
 0x887   :  { %v6003_v53 = vpop.xlane.xlu0 %6002 }
 0x888   :  { %v6004_v19 = vadd.f32 %v6003_v53, %v6000_v43 }
 0x88a   :  { %v6005_v33 = vrot.slane %v6004_v19, 4 }
 0x88b   :  { %v6242_v31 = vpop.xlane.xlu0 %6241 }
 0x88c   :  { %v6006_v11 = vadd.f32 %v6005_v33, %v6004_v19  ;;  %v6243_v16 = vsel %vm812_vm7, %v6242_v31, 0.0  ;;  %v6847_v19 = vcombine.high %v6839_v5, %v6839_v5  ;;  %v6848_v33 = vcombine.high %v6846_v21, %v6846_v21 }
 0x88d   :  { %v6244_v41 = vadd.f32 %v6243_v16, %v6239_v44  ;;  %v6642_v16 = vrot.slane %v11839_v60, %v9661_v3 }
 0x88e   :  { %v6007_v58 = vrot.slane %v6006_v11, 2  ;;  %v6869_v31 = vrot.slane %v6847_v19, %v9661_v3 }
 0x88f   :  { %v6245_v51 = vrot.slane %v6244_v41, 4  ;;  %v6257_v46 = vpop.permute.xlu0 %6256 }
 0x890   :  { %v6008_v8 = vadd.f32 %v6007_v58, %v6006_v11  ;;  %v6263_v18 = vsel %vm5211_vm6, %v6257_v46, 0.0  ;;  %v6876_v11 = vrot.slane %v6848_v33, %v9661_v3  ;;  %v6878_v46 = vcombine.high %v6862_v17, %v6862_v17 }
 0x891   :  { %v6246_v25 = vadd.f32 %v6245_v51, %v6244_v41  ;;  %6264 = vadd.xlane.f32.xlu0 %v6263_v18 }
 0x892   :  { %v6009_v43 = vrot.slane %v6008_v8, 1  ;;  %v6880_v18 = vcombine.high %v6876_v11, %v6876_v11 }
 0x893   :  { %v6247_v56 = vrot.slane %v6246_v25, 2 }
 0x894   :  { %v6010_v13 = vadd.f32 %v6009_v43, %v6008_v8  ;;  %v6879_v8 = vcombine.high %v6869_v31, %v6869_v31 }
 0x895   :  { %v6248_v6 = vadd.f32 %v6247_v56, %v6246_v25  ;;  %6503 = vadd.xlane.f32.xlu0 %v6502_v27  ;;  %v11905_v25 = vrot.slane %v6896_v23, %v9661_v3  ;;  %v6934_v56 = vcombine.low %v6876_v11, %v6878_v46 }
 0x896   :  { %v6011_v55 = vmul.f32 0.008928572, %v6010_v13  ;;  %v6933_v27 = vcombine.low %v6879_v8, %v6862_v17  ;;  %v8968_v13 = vcombine.high %v6642_v16, %v11852_v24 }
 0x897   :  { %v6249_v22 = vrot.slane %v6248_v6, 1  ;;  %v6935_v60 = vcombine.low %v6880_v18, %v11905_v25 }
 0x898   :  { %9231 = vrsqrt.f32 %v6011_v55  ;;  %vm6029_vm12 = vcmp.eq.f32.partialorder %v6011_v55, inf  ;;  %v6032_v39 = vand.u32 2147483648, %v6011_v55  ;;  %vm6031_vm13 = vcmp.eq.f32.partialorder %v6011_v55, 0.0 }
 0x899   :  { %v6250_v44 = vadd.f32 %v6249_v22, %v6248_v6  ;;  %v6949_v22 = vrot.slane %v6933_v27, %v9661_v3 }
 0x89b   :  { %v6251_v50 = vmul.f32 0.008928572, %v6250_v44  ;;  %v6956_v44 = vrot.slane %v6934_v56, %v9661_v3 }
 0x89d   :  { %9233 = vrsqrt.f32 %v6251_v50  ;;  %vm6276_vm14 = vcmp.eq.f32.partialorder %v6251_v50, inf  ;;  %v6279_v36 = vand.u32 2147483648, %v6251_v50  ;;  %vm6278_vm15 = vcmp.eq.f32.partialorder %v6251_v50, 0.0 }
 0x8a5   :  { %v9232_v52 = vpop.eup %9231 }
 0x8a6   :  { %v6028_v40 = vmul.f32 %v9232_v52, %v6011_v55  ;;  %v12827_v52 = vld [vmem:[#allocation70_spill] sm:$0xff] }
 0x8a8   :  { %v6030_v10 = vsel %vm6029_vm12, %v6011_v55, %v6028_v40 }
 0x8a9   :  { %v6033_v32 = vsel %vm6031_vm13, %v6032_v39, %v6030_v10 }
 0x8aa   :  { %v9234_v35 = vpop.eup %9233  ;;  %9235 = vrsqrt.f32 %v6033_v32  ;;  %vm6036_vm0 = vcmp.eq.f32.partialorder %v6033_v32, inf  ;;  %v6039_v54 = vand.u32 2147483648, %v6033_v32  ;;  %vm6038_vm1 = vcmp.eq.f32.partialorder %v6033_v32, 0.0 }
 0x8ab   :  { %v6275_v48 = vmul.f32 %v9234_v35, %v6251_v50  ;;  %6518 = vrot.lane.b32.xlu0 %v12824_v29, %s9424_s22 }
 0x8ad   :  { %v6277_v59 = vsel %vm6276_vm14, %v6251_v50, %v6275_v48  ;;  %v6963_v50 = vrot.slane %v6935_v60, %v9661_v3 }
 0x8ae   :  { %v6280_v28 = vsel %vm6278_vm15, %v6279_v36, %v6277_v59 }
 0x8af   :  { %9237 = vrsqrt.f32 %v6280_v28  ;;  %vm6283_vm2 = vcmp.eq.f32.partialorder %v6280_v28, inf  ;;  %v6286_v45 = vand.u32 2147483648, %v6280_v28  ;;  %vm6285_vm3 = vcmp.eq.f32.partialorder %v6280_v28, 0.0 }
 0x8b0   :  { %v6965_v39 = vcombine.low %v6956_v44, %v6963_v50 }
 0x8b2   :  { %v6979_v48 = vrot.slane %v6965_v39, %v9661_v3 }
 0x8b7   :  { %v9236_v14 = vpop.eup %9235 }
 0x8b8   :  { %v6035_v26 = vmul.f32 %v9236_v14, %v6033_v32 }
 0x8ba   :  { %v6037_v61 = vsel %vm6036_vm0, %v6033_v32, %v6035_v26  ;;  %v6728_v32 = vrot.slane %v8968_v13, %v9661_v3 }
 0x8bb   :  { %v6040_v7 = vsel %vm6038_vm1, %v6039_v54, %v6037_v61 }
 0x8bc   :  { %v9238_v20 = vpop.eup %9237  ;;  %v6041_v0 = vadd.f32 %v6040_v7, %v11821_v49  ;;  %v6619_v49 = vcombine.high %v11833_v9, %v11833_v9  ;;  %v6855_v9 = vrot.slane %v6839_v5, %v9661_v3 }
 0x8bd   :  { %v6282_v34 = vmul.f32 %v9238_v20, %v6280_v28 }
 0x8be   :  { %v6633_v42 = vrot.slane %v6619_v49, %v9661_v3  ;;  %v6877_v51 = vcombine.high %v6855_v9, %v6855_v9 }
 0x8bf   :  { %v6284_v62 = vsel %vm6283_vm2, %v6280_v28, %v6282_v34 }
 0x8c0   :  { %v6287_v37 = vsel %vm6285_vm3, %v6286_v45, %v6284_v62  ;;  %v6635_v53 = vcombine.high %v6633_v42, %v6633_v42  ;;  %v6649_v41 = vrot.slane %v6633_v42, %v9661_v3  ;;  %v6932_v43 = vcombine.low %v6869_v31, %v6877_v51 }
 0x8c1   :  { %v11877_v4 = vadd.f32 %v6287_v37, %v6041_v0 }
 0x8c2   :  { %v6663_v58 = vrot.slane %v6635_v53, %v9661_v3  ;;  %v6942_v55 = vrot.slane %v6932_v43, %v9661_v3 }
 0x8c4   :  { %v6720_v6 = vcombine.low %v6649_v41, %v6663_v58  ;;  %v6964_v40 = vcombine.low %v6942_v55, %v6949_v22  ;;  %v8969_v10 = vcombine.high %v6649_v41, %v6663_v58  ;;  %v12828_v58 = vld [vmem:[#allocation67_spill] sm:$0xff] }
 0x8c6   :  { %v6735_v24 = vrot.slane %v6720_v6, %v9661_v3  ;;  %v6972_v35 = vrot.slane %v6964_v40, %v9661_v3  ;;  %v6742_v36 = vrot.slane %v8969_v10, %v9661_v3 }
 0x8c8   :  { %v11919_v29 = vcombine.low %v6972_v35, %v6979_v48  ;;  %v6743_v59 = vcombine.low %v6728_v32, %v6735_v24  ;;  %v6757_v61 = vrot.slane %v6742_v36, %v9661_v3  ;;  %v12829_v35 = vld [vmem:[#allocation51_spill] sm:$0xff] }
 0x8c9   :  { %v7094_v48 = vcombine.high %v12829_v35, %v12829_v35  ;;  %v7101_v36 = vrot.slane %v12829_v35, %v9661_v3 }
 0x8ca   :  { %v6750_v54 = vrot.slane %v6743_v59, %v9661_v3  ;;  %v7023_v32 = vsel %vm5186_vm5, %v11919_v29, 0.0 }
 0x8cb   :  { %v7108_v59 = vrot.slane %v7094_v48, %v9661_v3 }
 0x8cc   :  { %v6758_v62 = vcombine.low %v6750_v54, %v6757_v61  ;;  %v12830_v54 = vld [vmem:[#allocation46_spill] sm:$0xff] }
 0x8cd   :  { %v11945_v29 = vrot.slane %v12830_v54, %v9661_v3  ;;  %v7124_v61 = vrot.slane %v7108_v59, %v9661_v3 }
 0x8ce   :  { %v6764_v42 = vsel %vm5190_vm4, %v6758_v62, 0.0 }
 0x8cf   :  { %v7158_v62 = vcombine.high %v11945_v29, %v11945_v29 }
 0x8f8   :  { %v6262_v30 = vpop.xlane.xlu1 %6261 }
 0x8fc   :  { %v6501_v1 = vpop.xlane.xlu1 %6500 }
 0x900   :  { %v6517_v2 = vpop.permute.xlu1 %6516 }
 0x901   :  { %v6522_v12 = vsel %vm5211_vm6, %v6517_v2, 0.0 }
 0x902   :  { %6523 = vadd.xlane.f32.xlu1 %v6522_v12 }
 0x906   :  { %6762 = vadd.xlane.f32.xlu1 %v6761_v38 }
 0x917   :  { %6778 = vrot.lane.b32.xlu1 %v12827_v52, %s9424_s22 }
 0x91a   :  { %v6265_v28 = vpop.xlane.xlu0 %6264 }
 0x91b   :  { %v6266_v14 = vadd.f32 %v6265_v28, %v6262_v30 }
 0x91d   :  { %v6267_v26 = vrot.slane %v6266_v14, 4 }
 0x91e   :  { %v6504_v7 = vpop.xlane.xlu0 %6503 }
 0x91f   :  { %v6268_v20 = vadd.f32 %v6267_v26, %v6266_v14  ;;  %v6505_v0 = vsel %vm812_vm7, %v6504_v7, 0.0  ;;  %v7109_v14 = vcombine.high %v7101_v36, %v7101_v36  ;;  %v7110_v26 = vcombine.high %v7108_v59, %v7108_v59 }
 0x920   :  { %v6506_v34 = vadd.f32 %v6505_v0, %v6501_v1  ;;  %v6904_v0 = vrot.slane %v11892_v63, %v9661_v3 }
 0x921   :  { %v6269_v45 = vrot.slane %v6268_v20, 2  ;;  %v7131_v7 = vrot.slane %v7109_v14, %v9661_v3 }
 0x922   :  { %v6507_v37 = vrot.slane %v6506_v34, 4  ;;  %v6519_v2 = vpop.permute.xlu0 %6518 }
 0x923   :  { %v6270_v12 = vadd.f32 %v6269_v45, %v6268_v20  ;;  %v6525_v38 = vsel %vm5211_vm6, %v6519_v2, 0.0  ;;  %v7138_v20 = vrot.slane %v7110_v26, %v9661_v3  ;;  %v7140_v2 = vcombine.high %v7124_v61, %v7124_v61 }
 0x924   :  { %v6508_v49 = vadd.f32 %v6507_v37, %v6506_v34  ;;  %6526 = vadd.xlane.f32.xlu0 %v6525_v38 }
 0x925   :  { %v6271_v30 = vrot.slane %v6270_v12, 1  ;;  %v7142_v38 = vcombine.high %v7138_v20, %v7138_v20 }
 0x926   :  { %v6509_v47 = vrot.slane %v6508_v49, 2 }
 0x927   :  { %v6272_v15 = vadd.f32 %v6271_v30, %v6270_v12  ;;  %v7141_v12 = vcombine.high %v7131_v7, %v7131_v7 }
 0x928   :  { %v6510_v5 = vadd.f32 %v6509_v47, %v6508_v49  ;;  %6765 = vadd.xlane.f32.xlu0 %v6764_v42  ;;  %v11958_v49 = vrot.slane %v7158_v62, %v9661_v3  ;;  %v7196_v47 = vcombine.low %v7138_v20, %v7140_v2 }
 0x929   :  { %v6273_v21 = vmul.f32 0.008928572, %v6272_v15  ;;  %v7195_v42 = vcombine.low %v7141_v12, %v7124_v61  ;;  %v8970_v15 = vcombine.high %v6904_v0, %v11905_v25 }
 0x92a   :  { %v6511_v53 = vrot.slane %v6510_v5, 1  ;;  %v7197_v63 = vcombine.low %v7142_v38, %v11958_v49 }
 0x92b   :  { %9239 = vrsqrt.f32 %v6273_v21  ;;  %vm6291_vm8 = vcmp.eq.f32.partialorder %v6273_v21, inf  ;;  %v6294_v17 = vand.u32 2147483648, %v6273_v21  ;;  %vm6293_vm9 = vcmp.eq.f32.partialorder %v6273_v21, 0.0 }
 0x92c   :  { %v6512_v1 = vadd.f32 %v6511_v53, %v6510_v5  ;;  %v7211_v53 = vrot.slane %v7195_v42, %v9661_v3 }
 0x92e   :  { %v6513_v19 = vmul.f32 0.008928572, %v6512_v1  ;;  %v7218_v1 = vrot.slane %v7196_v47, %v9661_v3 }
 0x930   :  { %9241 = vrsqrt.f32 %v6513_v19  ;;  %vm6538_vm10 = vcmp.eq.f32.partialorder %v6513_v19, inf  ;;  %v6541_v23 = vand.u32 2147483648, %v6513_v19  ;;  %vm6540_vm11 = vcmp.eq.f32.partialorder %v6513_v19, 0.0 }
 0x938   :  { %v9240_v33 = vpop.eup %9239 }
 0x939   :  { %v6290_v9 = vmul.f32 %v9240_v33, %v6273_v21  ;;  %v12831_v33 = vld [vmem:[#allocation71_spill] sm:$0xff] }
 0x93b   :  { %v6292_v31 = vsel %vm6291_vm8, %v6273_v21, %v6290_v9 }
 0x93c   :  { %v6295_v11 = vsel %vm6293_vm9, %v6294_v17, %v6292_v31 }
 0x93d   :  { %v9242_v16 = vpop.eup %9241  ;;  %9243 = vrsqrt.f32 %v6295_v11  ;;  %vm6298_vm12 = vcmp.eq.f32.partialorder %v6295_v11, inf  ;;  %v6301_v43 = vand.u32 2147483648, %v6295_v11  ;;  %vm6300_vm13 = vcmp.eq.f32.partialorder %v6295_v11, 0.0 }
 0x93e   :  { %v6537_v41 = vmul.f32 %v9242_v16, %v6513_v19  ;;  %6780 = vrot.lane.b32.xlu0 %v12828_v58, %s9424_s22 }
 0x940   :  { %v6539_v51 = vsel %vm6538_vm10, %v6513_v19, %v6537_v41  ;;  %v7225_v19 = vrot.slane %v7197_v63, %v9661_v3 }
 0x941   :  { %v6542_v46 = vsel %vm6540_vm11, %v6541_v23, %v6539_v51 }
 0x942   :  { %9245 = vrsqrt.f32 %v6542_v46  ;;  %vm6545_vm14 = vcmp.eq.f32.partialorder %v6542_v46, inf  ;;  %v6548_v55 = vand.u32 2147483648, %v6542_v46  ;;  %vm6547_vm15 = vcmp.eq.f32.partialorder %v6542_v46, 0.0 }
 0x943   :  { %v7227_v17 = vcombine.low %v7218_v1, %v7225_v19 }
 0x945   :  { %v7241_v41 = vrot.slane %v7227_v17, %v9661_v3 }
 0x94a   :  { %v9244_v8 = vpop.eup %9243 }
 0x94b   :  { %v6297_v18 = vmul.f32 %v9244_v8, %v6295_v11 }
 0x94d   :  { %v6299_v27 = vsel %vm6298_vm12, %v6295_v11, %v6297_v18  ;;  %v6990_v11 = vrot.slane %v8970_v15, %v9661_v3 }
 0x94e   :  { %v6302_v56 = vsel %vm6300_vm13, %v6301_v43, %v6299_v27 }
 0x94f   :  { %v9246_v13 = vpop.eup %9245  ;;  %v6303_v60 = vadd.f32 %v6302_v56, %v11877_v4  ;;  %v6881_v4 = vcombine.high %v12826_v57, %v12826_v57  ;;  %v7117_v57 = vrot.slane %v7101_v36, %v9661_v3 }
 0x950   :  { %v6544_v6 = vmul.f32 %v9246_v13, %v6542_v46 }
 0x951   :  { %v6895_v24 = vrot.slane %v6881_v4, %v9661_v3  ;;  %v7139_v37 = vcombine.high %v7117_v57, %v7117_v57 }
 0x952   :  { %v6546_v22 = vsel %vm6545_vm14, %v6542_v46, %v6544_v6 }
 0x953   :  { %v6549_v44 = vsel %vm6547_vm15, %v6548_v55, %v6546_v22  ;;  %v6897_v28 = vcombine.high %v6895_v24, %v6895_v24  ;;  %v6911_v34 = vrot.slane %v6895_v24, %v9661_v3  ;;  %v7194_v30 = vcombine.low %v7131_v7, %v7139_v37 }
 0x954   :  { %v11930_v50 = vadd.f32 %v6549_v44, %v6303_v60 }
 0x955   :  { %v6925_v45 = vrot.slane %v6897_v28, %v9661_v3  ;;  %v7204_v21 = vrot.slane %v7194_v30, %v9661_v3 }
 0x957   :  { %v6982_v5 = vcombine.low %v6911_v34, %v6925_v45  ;;  %v7226_v9 = vcombine.low %v7204_v21, %v7211_v53  ;;  %v8971_v31 = vcombine.high %v6911_v34, %v6925_v45  ;;  %v12832_v45 = vld [vmem:[#allocation69_spill] sm:$0xff] }
 0x959   :  { %v6997_v25 = vrot.slane %v6982_v5, %v9661_v3  ;;  %v7234_v16 = vrot.slane %v7226_v9, %v9661_v3  ;;  %v7004_v23 = vrot.slane %v8971_v31, %v9661_v3 }
 0x95b   :  { %v11972_v58 = vcombine.low %v7234_v16, %v7241_v41  ;;  %v7005_v51 = vcombine.low %v6990_v11, %v6997_v25  ;;  %v7019_v27 = vrot.slane %v7004_v23, %v9661_v3  ;;  %v7166_v41 = vrot.slane %v11945_v29, %v9661_v3 }
 0x95d   :  { %v7012_v43 = vrot.slane %v7005_v51, %v9661_v3  ;;  %v7285_v11 = vsel %vm5186_vm5, %v11972_v58, 0.0 }
 0x95f   :  { %v7020_v22 = vcombine.low %v7012_v43, %v7019_v27 }
 0x961   :  { %v7026_v24 = vsel %vm5190_vm4, %v7020_v22, 0.0 }
 0x98b   :  { %v6524_v52 = vpop.xlane.xlu1 %6523 }
 0x98f   :  { %v6763_v40 = vpop.xlane.xlu1 %6762 }
 0x993   :  { %v6779_v39 = vpop.permute.xlu1 %6778 }
 0x994   :  { %v6784_v10 = vsel %vm5211_vm6, %v6779_v39, 0.0 }
 0x995   :  { %6785 = vadd.xlane.f32.xlu1 %v6784_v10 }
 0x999   :  { %7024 = vadd.xlane.f32.xlu1 %v7023_v32 }
 0x9aa   :  { %7040 = vrot.lane.b32.xlu1 %v12831_v33, %s9424_s22 }
 0x9ad   :  { %v6527_v46 = vpop.xlane.xlu0 %6526 }
 0x9ae   :  { %v6528_v8 = vadd.f32 %v6527_v46, %v6524_v52  ;;  %v8972_v46 = vcombine.high %v7166_v41, %v11958_v49 }
 0x9b0   :  { %v6529_v18 = vrot.slane %v6528_v8, 4 }
 0x9b1   :  { %v6766_v56 = vpop.xlane.xlu0 %6765 }
 0x9b2   :  { %v6530_v13 = vadd.f32 %v6529_v18, %v6528_v8  ;;  %v6767_v60 = vsel %vm812_vm7, %v6766_v56, 0.0  ;;  %v12833_v18 = vld [vmem:[#allocation72_spill] sm:$0xff] }
 0x9b3   :  { %v6768_v6 = vadd.f32 %v6767_v60, %v6763_v40 }
 0x9b4   :  { %v6531_v55 = vrot.slane %v6530_v13, 2 }
 0x9b5   :  { %v6769_v44 = vrot.slane %v6768_v6, 4  ;;  %v6781_v39 = vpop.permute.xlu0 %6780 }
 0x9b6   :  { %v6532_v10 = vadd.f32 %v6531_v55, %v6530_v13  ;;  %v6787_v32 = vsel %vm5211_vm6, %v6781_v39, 0.0 }
 0x9b7   :  { %v6770_v4 = vadd.f32 %v6769_v44, %v6768_v6  ;;  %6788 = vadd.xlane.f32.xlu0 %v6787_v32 }
 0x9b8   :  { %v6533_v52 = vrot.slane %v6532_v10, 1 }
 0x9b9   :  { %v6771_v35 = vrot.slane %v6770_v4, 2 }
 0x9ba   :  { %v6534_v48 = vadd.f32 %v6533_v52, %v6532_v10 }
 0x9bb   :  { %v6772_v36 = vadd.f32 %v6771_v35, %v6770_v4  ;;  %7027 = vadd.xlane.f32.xlu0 %v7026_v24 }
 0x9bc   :  { %v6535_v59 = vmul.f32 0.008928572, %v6534_v48 }
 0x9bd   :  { %v6773_v28 = vrot.slane %v6772_v36, 1 }
 0x9be   :  { %9247 = vrsqrt.f32 %v6535_v59  ;;  %vm6553_vm0 = vcmp.eq.f32.partialorder %v6535_v59, inf  ;;  %v6556_v61 = vand.u32 2147483648, %v6535_v59  ;;  %vm6555_vm1 = vcmp.eq.f32.partialorder %v6535_v59, 0.0 }
 0x9bf   :  { %v6774_v40 = vadd.f32 %v6773_v28, %v6772_v36 }
 0x9c1   :  { %v6775_v14 = vmul.f32 0.008928572, %v6774_v40 }
 0x9c3   :  { %9249 = vrsqrt.f32 %v6775_v14  ;;  %vm6800_vm2 = vcmp.eq.f32.partialorder %v6775_v14, inf  ;;  %v6803_v62 = vand.u32 2147483648, %v6775_v14  ;;  %vm6802_vm3 = vcmp.eq.f32.partialorder %v6775_v14, 0.0 }
 0x9cb   :  { %v9248_v26 = vpop.eup %9247 }
 0x9cc   :  { %v6552_v57 = vmul.f32 %v9248_v26, %v6535_v59 }
 0x9ce   :  { %v6554_v7 = vsel %vm6553_vm0, %v6535_v59, %v6552_v57 }
 0x9cf   :  { %v6557_v20 = vsel %vm6555_vm1, %v6556_v61, %v6554_v7 }
 0x9d0   :  { %v9250_v0 = vpop.eup %9249  ;;  %9251 = vrsqrt.f32 %v6557_v20  ;;  %vm6560_vm8 = vcmp.eq.f32.partialorder %v6557_v20, inf  ;;  %v6563_v30 = vand.u32 2147483648, %v6557_v20  ;;  %vm6562_vm9 = vcmp.eq.f32.partialorder %v6557_v20, 0.0 }
 0x9d1   :  { %v6799_v34 = vmul.f32 %v9250_v0, %v6775_v14  ;;  %7042 = vrot.lane.b32.xlu0 %v12832_v45, %s9424_s22 }
 0x9d3   :  { %v6801_v37 = vsel %vm6800_vm2, %v6775_v14, %v6799_v34 }
 0x9d4   :  { %v6804_v2 = vsel %vm6802_vm3, %v6803_v62, %v6801_v37 }
 0x9d5   :  { %9253 = vrsqrt.f32 %v6804_v2  ;;  %vm6807_vm10 = vcmp.eq.f32.partialorder %v6804_v2, inf  ;;  %v6810_v21 = vand.u32 2147483648, %v6804_v2  ;;  %vm6809_vm11 = vcmp.eq.f32.partialorder %v6804_v2, 0.0 }
 0x9dd   :  { %v9252_v12 = vpop.eup %9251 }
 0x9de   :  { %v6559_v38 = vmul.f32 %v9252_v12, %v6557_v20  ;;  %v12834_v12 = vld [vmem:[#allocation68_spill] sm:$0xff] }
 0x9e0   :  { %v6561_v42 = vsel %vm6560_vm8, %v6557_v20, %v6559_v38 }
 0x9e1   :  { %v6564_v47 = vsel %vm6562_vm9, %v6563_v30, %v6561_v42 }
 0x9e2   :  { %v9254_v15 = vpop.eup %9253  ;;  %v6565_v63 = vadd.f32 %v6564_v47, %v11930_v50  ;;  %v7143_v50 = vcombine.high %v12830_v54, %v12830_v54  ;;  %v7252_v54 = vrot.slane %v8972_v46, %v9661_v3  ;;  %v12036_v46 = vld [vmem:[%s12610_s4 + $0x10] sm:$0xf] }
 0x9e3   :  { %v6806_v5 = vmul.f32 %v9254_v15, %v6804_v2 }
 0x9e4   :  { %v7157_v25 = vrot.slane %v7143_v50, %v9661_v3 }
 0x9e5   :  { %v6808_v53 = vsel %vm6807_vm10, %v6804_v2, %v6806_v5 }
 0x9e6   :  { %v6811_v1 = vsel %vm6809_vm11, %v6810_v21, %v6808_v53  ;;  %v7159_v16 = vcombine.high %v7157_v25, %v7157_v25  ;;  %v7173_v23 = vrot.slane %v7157_v25, %v9661_v3 }
 0x9e7   :  { %v11983_v19 = vadd.f32 %v6811_v1, %v6565_v63 }
 0x9e8   :  { %v7187_v51 = vrot.slane %v7159_v16, %v9661_v3 }
 0x9ea   :  { %v7244_v8 = vcombine.low %v7173_v23, %v7187_v51  ;;  %v8973_v58 = vcombine.high %v7173_v23, %v7187_v51  ;;  %v12015_v23 = vld [vmem:[%s12610_s4] sm:$0xf]  ;;  %v12029_v51 = vld [vmem:[%s12611_s5 + $0xc] sm:$0xf] }
 0x9ec   :  { %v7259_v43 = vrot.slane %v7244_v8, %v9661_v3  ;;  %v7266_v27 = vrot.slane %v8973_v58, %v9661_v3  ;;  %v7370_v58 = vrot.slane %v12015_v23, 7 }
 0x9ee   :  { %v7267_v56 = vcombine.low %v7252_v54, %v7259_v43  ;;  %v7281_v55 = vrot.slane %v7266_v27, %v9661_v3  ;;  %v12045_v43 = vld [vmem:[%s12610_s4 + $0x14] sm:$0xf] }
 0x9f0   :  { %v7274_v6 = vrot.slane %v7267_v56, %v9661_v3 }
 0x9f2   :  { %v7282_v32 = vcombine.low %v7274_v6, %v7281_v55 }
 0x9f4   :  { %v7288_v59 = vsel %vm5190_vm4, %v7282_v32, 0.0  ;;  %v12067_v32 = vld [vmem:[%s12610_s4 + $0x4] sm:$0xf] }
 0xa1e   :  { %v6786_v33 = vpop.xlane.xlu1 %6785 }
 0xa22   :  { %v7025_v9 = vpop.xlane.xlu1 %7024 }
 0xa26   :  { %v7041_v17 = vpop.permute.xlu1 %7040 }
 0xa27   :  { %v7046_v31 = vsel %vm5211_vm6, %v7041_v17, 0.0 }
 0xa28   :  { %7047 = vadd.xlane.f32.xlu1 %v7046_v31 }
 0xa2c   :  { %7286 = vadd.xlane.f32.xlu1 %v7285_v11 }
 0xa3d   :  { %7302 = vrot.lane.b32.xlu1 %v12833_v18, %s9424_s22 }
 0xa40   :  { %v6789_v13 = vpop.xlane.xlu0 %6788 }
 0xa41   :  { %v6790_v29 = vadd.f32 %v6789_v13, %v6786_v33 }
 0xa43   :  { %v6791_v60 = vrot.slane %v6790_v29, 4 }
 0xa44   :  { %v7028_v49 = vpop.xlane.xlu0 %7027 }
 0xa45   :  { %v6792_v22 = vadd.f32 %v6791_v60, %v6790_v29  ;;  %v7029_v44 = vsel %vm812_vm7, %v7028_v49, 0.0  ;;  %v7382_v60 = vsub.f32 %v12015_v23, %v7370_v58  ;;  %v7421_v49 = vrot.slane %v12029_v51, 7 }
 0xa46   :  { %v7030_v39 = vadd.f32 %v7029_v44, %v7025_v9  ;;  %v12061_v44 = vld [vmem:[%s12611_s5 + $0x10] sm:$0xf] }
 0xa47   :  { %v6793_v10 = vrot.slane %v6792_v22, 2 }
 0xa48   :  { %v7031_v4 = vrot.slane %v7030_v39, 4  ;;  %v7043_v52 = vpop.permute.xlu0 %7042 }
 0xa49   :  { %v6794_v24 = vadd.f32 %v6793_v10, %v6792_v22  ;;  %v7049_v35 = vsel %vm5211_vm6, %v7043_v52, 0.0  ;;  %v12056_v22 = vld [vmem:[%s12610_s4 + $0xc] sm:$0xf] }
 0xa4a   :  { %v7032_v48 = vadd.f32 %v7031_v4, %v7030_v39  ;;  %7050 = vadd.xlane.f32.xlu0 %v7049_v35  ;;  %v7373_v10 = vrot.slane %v12056_v22, 7 }
 0xa4b   :  { %v6795_v36 = vrot.slane %v6794_v24, 1 }
 0xa4c   :  { %v7033_v28 = vrot.slane %v7032_v48, 2 }
 0xa4d   :  { %v6796_v40 = vadd.f32 %v6795_v36, %v6794_v24  ;;  %v7371_v24 = vrot.slane %v12067_v32, 7  ;;  %v7460_v36 = vmul.f32 0.5, %v7382_v60 }
 0xa4e   :  { %v7034_v14 = vadd.f32 %v7033_v28, %v7032_v48  ;;  %7289 = vadd.xlane.f32.xlu0 %v7288_v59 }
 0xa4f   :  { %v6797_v26 = vmul.f32 0.008928572, %v6796_v40  ;;  %v7433_v40 = vsub.f32 %v12029_v51, %v7421_v49 }
 0xa50   :  { %v7035_v57 = vrot.slane %v7034_v14, 1 }
 0xa51   :  { %9255 = vrsqrt.f32 %v6797_v26  ;;  %vm6815_vm5 = vcmp.eq.f32.partialorder %v6797_v26, inf  ;;  %v6818_v34 = vand.u32 2147483648, %v6797_v26  ;;  %vm6817_vm12 = vcmp.eq.f32.partialorder %v6797_v26, 0.0 }
 0xa52   :  { %v7036_v61 = vadd.f32 %v7035_v57, %v7034_v14  ;;  %v12077_v14 = vld [vmem:[%s12611_s5 + $0x14] sm:$0xf]  ;;  %v7385_v57 = vsub.f32 %v12056_v22, %v7373_v10  ;;  %v12118_v10 = vld [vmem:[%s12611_s5 + $0x4] sm:$0xf] }
 0xa54   :  { %v7037_v7 = vmul.f32 0.008928572, %v7036_v61 }
 0xa56   :  { %9257 = vrsqrt.f32 %v7037_v7  ;;  %vm7062_vm4 = vcmp.eq.f32.partialorder %v7037_v7, inf  ;;  %v7065_v38 = vand.u32 2147483648, %v7037_v7  ;;  %vm7064_vm13 = vcmp.eq.f32.partialorder %v7037_v7, 0.0 }
 0xa5e   :  { %v9256_v20 = vpop.eup %9255 }
 0xa5f   :  { %v6814_v0 = vmul.f32 %v9256_v20, %v6797_v26  ;;  %v7383_v20 = vsub.f32 %v12067_v32, %v7371_v24 }
 0xa61   :  { %v6816_v45 = vsel %vm6815_vm5, %v6797_v26, %v6814_v0 }
 0xa62   :  { %v6819_v62 = vsel %vm6817_vm12, %v6818_v34, %v6816_v45  ;;  %v7499_v45 = vmul.f32 0.5, %v7433_v40  ;;  %vm7627_vm12 = vcmask 29696  }
 0xa63   :  { %v9258_v37 = vpop.eup %9257  ;;  %9259 = vrsqrt.f32 %v6819_v62  ;;  %vm6822_vm14 = vcmp.eq.f32.partialorder %v6819_v62, inf  ;;  %v6825_v63 = vand.u32 2147483648, %v6819_v62  ;;  %vm6824_vm15 = vcmp.eq.f32.partialorder %v6819_v62, 0.0 }
 0xa64   :  { %v7061_v2 = vmul.f32 %v9258_v37, %v7037_v7  ;;  %7304 = vrot.lane.b32.xlu0 %v12834_v12, %s9424_s22  ;;  %v7463_v37 = vmul.f32 0.5, %v7385_v57 }
 0xa66   :  { %v7063_v30 = vsel %vm7062_vm4, %v7037_v7, %v7061_v2  ;;  %v7374_v7 = vrot.slane %v12036_v46, 7 }
 0xa67   :  { %v7066_v42 = vsel %vm7064_vm13, %v7065_v38, %v7063_v30  ;;  %v7461_v38 = vmul.f32 0.5, %v7383_v20 }
 0xa68   :  { %9261 = vrsqrt.f32 %v7066_v42  ;;  %vm7069_vm0 = vcmp.eq.f32.partialorder %v7066_v42, inf  ;;  %v7072_v9 = vand.u32 2147483648, %v7066_v42  ;;  %vm7071_vm1 = vcmp.eq.f32.partialorder %v7066_v42, 0.0 }
 0xa69   :  { %9263 = vtanh.f32 %v7460_v36  ;;  %v7386_v12 = vsub.f32 %v12036_v46, %v7374_v7 }
 0xa70   :  { %v9260_v47 = vpop.eup %9259 }
 0xa71   :  { %v6821_v15 = vmul.f32 %v9260_v47, %v6819_v62  ;;  %v7464_v47 = vmul.f32 0.5, %v7386_v12 }
 0xa73   :  { %v6823_v5 = vsel %vm6822_vm14, %v6819_v62, %v6821_v15 }
 0xa74   :  { %v6826_v21 = vsel %vm6824_vm15, %v6825_v63, %v6823_v5 }
 0xa75   :  { %v9262_v53 = vpop.eup %9261  ;;  %v6827_v1 = vadd.f32 %v6826_v21, %v11983_v19  ;;  %v12022_v19 = vld [vmem:[%s12611_s5] sm:$0xf] }
 0xa76   :  { %v7068_v33 = vmul.f32 %v9262_v53, %v7066_v42  ;;  %v7418_v54 = vrot.slane %v12022_v19, 7  ;;  %v9264_v15 = vpop.eup %9263 }
 0xa77   :  { %v12085_v21 = vmul.f32 %v9264_v15, %v9264_v15 }
 0xa78   :  { %v7070_v17 = vsel %vm7069_vm0, %v7066_v42, %v7068_v33  ;;  %v7430_v55 = vsub.f32 %v12022_v19, %v7418_v54 }
 0xa79   :  { %v7073_v31 = vsel %vm7071_vm1, %v7072_v9, %v7070_v17 }
 0xa7a   :  { %v12009_v11 = vadd.f32 %v7073_v31, %v6827_v1  ;;  %v7496_v28 = vmul.f32 0.5, %v7430_v55 }
 0xa7c   :  { %9265 = vtanh.f32 %v7496_v28 }
 0xa89   :  { %v9266_v63 = vpop.eup %9265 }
 0xa8a   :  { %v12087_v53 = vmul.f32 %v9266_v63, %v9266_v63 }
 0xab1   :  { %v7048_v50 = vpop.xlane.xlu1 %7047 }
 0xab5   :  { %v7287_v25 = vpop.xlane.xlu1 %7286 }
 0xab9   :  { %v7303_v16 = vpop.permute.xlu1 %7302 }
 0xaba   :  { %v7308_v41 = vsel %vm5211_vm6, %v7303_v16, 0.0  ;;  %v7532_v16 = vmul.f32 %v12087_v53, %v12085_v21 }
 0xabb   :  { %7309 = vadd.xlane.f32.xlu1 %v7308_v41 }
 0xabc   :  { %v7542_v60 = vrot.slane %v7532_v16, %v9661_v3 }
 0xabe   :  { %v7550_v36 = vrot.slane %v7542_v60, %v9661_v3 }
 0xac0   :  { %v7558_v20 = vcombine.high %v7550_v36, %v7550_v36 }
 0xacc   :  { %7388 = vrot.lane.b32.xlu1 %v12015_v23, %s9422_s27 }
 0xad0   :  { %7436 = vrot.lane.b32.xlu1 %v12022_v19, %s9422_s27 }
 0xad3   :  { %v7051_v8 = vpop.xlane.xlu0 %7050 }
 0xad4   :  { %7442 = vrot.lane.b32.xlu1 %v12029_v51, %s9422_s27  ;;  %v7052_v18 = vadd.f32 %v7051_v8, %v7048_v50 }
 0xad6   :  { %v7053_v27 = vrot.slane %v7052_v18, 4 }
 0xad7   :  { %v7290_v56 = vpop.xlane.xlu0 %7289 }
 0xad8   :  { %7396 = vrot.lane.b32.xlu1 %v12036_v46, %s9422_s27  ;;  %v7054_v13 = vadd.f32 %v7053_v27, %v7052_v18  ;;  %v7291_v29 = vsel %vm812_vm7, %v7290_v56, 0.0 }
 0xad9   :  { %v7292_v6 = vadd.f32 %v7291_v29, %v7287_v25 }
 0xada   :  { %v7055_v39 = vrot.slane %v7054_v13, 2 }
 0xadb   :  { %v7293_v4 = vrot.slane %v7292_v6, 4  ;;  %v7305_v52 = vpop.permute.xlu0 %7304 }
 0xadc   :  { %7398 = vrot.lane.b32.xlu1 %v12045_v43, %s9422_s27  ;;  %v7056_v35 = vadd.f32 %v7055_v39, %v7054_v13  ;;  %v7311_v48 = vsel %vm5211_vm6, %v7305_v52, 0.0  ;;  %v12104_v13 = vld [vmem:[%s12610_s4 + $0x8] sm:$0xf] }
 0xadd   :  { %v7294_v59 = vadd.f32 %v7293_v4, %v7292_v6  ;;  %7312 = vadd.xlane.f32.xlu0 %v7311_v48  ;;  %v7543_v4 = vcombine.high %v7542_v60, %v7542_v60  ;;  %v12129_v48 = vld [vmem:[%s12611_s5 + $0x8] sm:$0xf]  ;;  %s9425_s5 = smov [#allocation2]  }
 0xade   :  { %v7057_v26 = vrot.slane %v7056_v35, 1 }
 0xadf   :  { %v7295_v61 = vrot.slane %v7294_v59, 2 }
 0xae0   :  { %7444 = vrot.lane.b32.xlu1 %v12061_v44, %s9422_s27  ;;  %v7058_v0 = vadd.f32 %v7057_v26, %v7056_v35 }
 0xae1   :  { %v7296_v34 = vadd.f32 %v7295_v61, %v7294_v59  ;;  %v7557_v59 = vrot.slane %v7543_v4, %v9661_v3 }
 0xae2   :  { %v7059_v62 = vmul.f32 0.008928572, %v7058_v0 }
 0xae3   :  { %v7297_v2 = vrot.slane %v7296_v34, 1  ;;  %v7559_v0 = vcombine.high %v7557_v59, %v7557_v59  ;;  %v7586_v15 = vcombine.low %v7557_v59, %v7558_v20 }
 0xae4   :  { %7446 = vrot.lane.b32.xlu1 %v12077_v14, %s9422_s27  ;;  %9267 = vrsqrt.f32 %v7059_v62  ;;  %vm7077_vm6 = vcmp.eq.f32.partialorder %v7059_v62, inf  ;;  %v7080_v17 = vand.u32 2147483648, %v7059_v62  ;;  %vm7079_vm2 = vcmp.eq.f32.partialorder %v7059_v62, 0.0 }
 0xae5   :  { %v7298_v30 = vadd.f32 %v7297_v2, %v7296_v34  ;;  %9269 = vtanh.f32 %v7499_v45  ;;  %v7595_v16 = vrot.slane %v7586_v15, %v9661_v3 }
 0xae6   :  { %9271 = vtanh.f32 %v7463_v37 }
 0xae7   :  { %v7299_v42 = vmul.f32 0.008928572, %v7298_v30  ;;  %9273 = vtanh.f32 %v7461_v38 }
 0xae9   :  { %9275 = vrsqrt.f32 %v7299_v42  ;;  %vm7324_vm3 = vcmp.eq.f32.partialorder %v7299_v42, inf  ;;  %v7327_v56 = vand.u32 2147483648, %v7299_v42  ;;  %vm7326_vm8 = vcmp.eq.f32.partialorder %v7299_v42, 0.0 }
 0xaea   :  { %9277 = vtanh.f32 %v7464_v47 }
 0xaf1   :  { %v9268_v5 = vpop.eup %9267 }
 0xaf2   :  { %v9270_v1 = vpop.eup %9269  ;;  %v7076_v33 = vmul.f32 %v9268_v5, %v7059_v62 }
 0xaf3   :  { %v9272_v9 = vpop.eup %9271  ;;  %7394 = vrot.lane.b32.xlu0 %v12056_v22, %s9422_s27  ;;  %v12093_v8 = vmul.f32 %v9270_v1, %v9270_v1 }
 0xaf4   :  { %v9274_v31 = vpop.eup %9273  ;;  %v7078_v50 = vsel %vm7077_vm6, %v7059_v62, %v7076_v33  ;;  %v12095_v18 = vmul.f32 %v9272_v9, %v9272_v9 }
 0xaf5   :  { %v7081_v25 = vsel %vm7079_vm2, %v7080_v17, %v7078_v50  ;;  %v12097_v54 = vmul.f32 %v9274_v31, %v9274_v31 }
 0xaf6   :  { %v9276_v41 = vpop.eup %9275  ;;  %9279 = vrsqrt.f32 %v7081_v25  ;;  %v7533_v55 = vmul.f32 %v12093_v8, %v12095_v18  ;;  %vm7084_vm9 = vcmp.eq.f32.partialorder %v7081_v25, inf  ;;  %v7087_v7 = vand.u32 2147483648, %v7081_v25 }
 0xaf7   :  { %v7323_v58 = vmul.f32 %v9276_v41, %v7299_v42  ;;  %7390 = vrot.lane.b32.xlu0 %v12067_v32, %s9422_s27  ;;  %v9278_v27 = vpop.eup %9277  ;;  %v7686_v39 = vmul.f32 %v12087_v53, %v12097_v54  ;;  %vm7086_vm10 = vcmp.eq.f32.partialorder %v7081_v25, 0.0 }
 0xaf8   :  { %v12109_v49 = vmul.f32 %v9278_v27, %v9278_v27  ;;  %v7566_v52 = vrot.slane %v7533_v55, %v9661_v3 }
 0xaf9   :  { %v7325_v29 = vsel %vm7324_vm3, %v7299_v42, %v7323_v58  ;;  %v7696_v35 = vrot.slane %v7686_v39, %v9661_v3  ;;  %vm7645_vm3 = vcmask 23552  }
 0xafa   :  { %v7328_v6 = vsel %vm7326_vm8, %v7327_v56, %v7325_v29  ;;  %v7687_v24 = vmul.f32 %v12093_v8, %v12109_v49  ;;  %v7567_v28 = vcombine.high %v7566_v52, %v7566_v52  ;;  %v7574_v47 = vrot.slane %v7566_v52, %v9661_v3 }
 0xafb   :  { %9281 = vrsqrt.f32 %v7328_v6  ;;  %7392 = vrot.lane.b32.xlu0 %v12104_v13, %s9422_s27  ;;  %v7697_v26 = vcombine.high %v7696_v35, %v7696_v35  ;;  %v7704_v62 = vrot.slane %v7696_v35, %v9661_v3  ;;  %vm7331_vm11 = vcmp.eq.f32.partialorder %v7328_v6, inf }
 0xafc   :  { %v7720_v57 = vrot.slane %v7687_v24, %v9661_v3  ;;  %v7581_v45 = vrot.slane %v7567_v28, %v9661_v3  ;;  %v7334_v63 = vand.u32 2147483648, %v7328_v6  ;;  %vm7333_vm5 = vcmp.eq.f32.partialorder %v7328_v6, 0.0 }
 0xafd   :  { %v7711_v2 = vrot.slane %v7697_v26, %v9661_v3  ;;  %v7712_v1 = vcombine.high %v7704_v62, %v7704_v62 }
 0xafe   :  { %v7721_v12 = vcombine.high %v7720_v57, %v7720_v57  ;;  %v7587_v5 = vcombine.low %v7559_v0, %v7581_v45  ;;  %v7728_v41 = vrot.slane %v7720_v57, %v9661_v3 }
 0xaff   :  { %7438 = vrot.lane.b32.xlu0 %v12118_v10, %s9422_s27  ;;  %v7713_v9 = vcombine.high %v7711_v2, %v7711_v2  ;;  %v7740_v58 = vcombine.low %v7711_v2, %v7712_v1 }
 0xb00   :  { %v7735_v17 = vrot.slane %v7721_v12, %v9661_v3 }
 0xb02   :  { %v7741_v27 = vcombine.low %v7713_v9, %v7735_v17  ;;  %v8975_v60 = vcombine.high %v7728_v41, %v7735_v17 }
 0xb03   :  { %v9280_v40 = vpop.eup %9279  ;;  %7440 = vrot.lane.b32.xlu0 %v12129_v48, %s9422_s27  ;;  %s8912_s27 = sshll.u32 %s9425_s5, 4  ;;  %s8913_s27 = int_to_ptr.vmem [resolvable:$true] %s8912_s27 }
 0xb04   :  { %v7083_v61 = vmul.f32 %v9280_v40, %v7081_v25  ;;  %v7756_v55 = vrot.slane %v7741_v27, %v9661_v3  ;;  %v7763_v52 = vrot.slane %v8975_v60, %v9661_v3  ;;  %s9404_s30 = scalar_lea.vmem %s8913_s27, 32  ;;  %p9405_p1 = scmp.lt.s32.totalorder %s8913_s27, %s8913_s27 }
 0xb06   :  { %v7085_v34 = vsel %vm7084_vm9, %v7081_v25, %v7083_v61  ;;  %v8974_v25 = vcombine.high %v7574_v47, %v7581_v45  ;;  %v7778_v59 = vrot.slane %v7763_v52, %v9661_v3 }
 0xb07   :  { %v7088_v37 = vsel %vm7086_vm10, %v7087_v7, %v7085_v34 }
 0xb08   :  { %v9282_v38 = vpop.eup %9281  ;;  %v7089_v30 = vadd.f32 %v7088_v37, %v12009_v11  ;;  %v7602_v11 = vrot.slane %v7587_v5, %v9661_v3  ;;  %v7609_v56 = vrot.slane %v8974_v25, %v9661_v3 }
 0xb09   :  { %v7330_v42 = vmul.f32 %v9282_v38, %v7328_v6 }
 0xb0a   :  { %v7610_v29 = vcombine.low %v7595_v16, %v7602_v11  ;;  %v7624_v4 = vrot.slane %v7609_v56, %v9661_v3 }
 0xb0b   :  { %v7332_v33 = vsel %vm7331_vm11, %v7328_v6, %v7330_v42  ;;  %v7749_v6 = vrot.slane %v7740_v58, %v9661_v3 }
 0xb0c   :  { %v7335_v31 = vsel %vm7333_vm5, %v7334_v63, %v7332_v33  ;;  %v7617_v39 = vrot.slane %v7610_v29, %v9661_v3 }
 0xb0d   :  { %v12142_v50 = vadd.f32 %v7335_v31, %v7089_v30  ;;  %v7764_v24 = vcombine.low %v7749_v6, %v7756_v55 }
 0xb0e   :  { %v7625_v35 = vcombine.low %v7617_v39, %v7624_v4 }
 0xb0f   :  { %v7771_v36 = vrot.slane %v7764_v24, %v9661_v3 }
 0xb10   :  { %v7628_v28 = vsel %vm7627_vm12, %v7625_v35, 0.0 }
 0xb11   :  { %v7779_v40 = vcombine.low %v7771_v36, %v7778_v59 }
 0xb13   :  { %v7781_v26 = vsel %vm7627_vm12, %v7779_v40, 0.0 }
 0xb22   :  { %7629 = vadd.xlane.f32.xlu0 %v7628_v28 }
 0xb26   :  { %7782 = vadd.xlane.f32.xlu0 %v7781_v26 }
 0xb44   :  { %v7310_v57 = vpop.xlane.xlu1 %7309 }
 0xb48   :  { %v7389_v61 = vpop.permute.xlu1 %7388 }
 0xb49   :  { %v7406_v1 = vsub.f32 %v12015_v23, %v7389_v61 }
 0xb4b   :  { %v7478_v17 = vmul.f32 0.5, %v7406_v1 }
 0xb4c   :  { %v7437_v7 = vpop.permute.xlu1 %7436 }
 0xb4d   :  { %v7454_v33 = vsub.f32 %v12022_v19, %v7437_v7 }
 0xb4f   :  { %v7514_v25 = vmul.f32 0.5, %v7454_v33 }
 0xb50   :  { %v7443_v20 = vpop.permute.xlu1 %7442 }
 0xb51   :  { %v7457_v0 = vsub.f32 %v12029_v51, %v7443_v20 }
 0xb53   :  { %v7517_v45 = vmul.f32 0.5, %v7457_v0 }
 0xb54   :  { %v7397_v34 = vpop.permute.xlu1 %7396 }
 0xb55   :  { %9283 = vtanh.f32 %v7517_v45  ;;  %v7410_v2 = vsub.f32 %v12036_v46, %v7397_v34 }
 0xb57   :  { %v7482_v42 = vmul.f32 0.5, %v7410_v2 }
 0xb58   :  { %v7399_v62 = vpop.permute.xlu1 %7398 }
 0xb59   :  { %v7411_v37 = vsub.f32 %v12045_v43, %v7399_v62 }
 0xb5b   :  { %v7483_v12 = vmul.f32 0.5, %v7411_v37 }
 0xb5c   :  { %v7445_v38 = vpop.permute.xlu1 %7444 }
 0xb5d   :  { %9285 = vtanh.f32 %v7483_v12  ;;  %v7458_v30 = vsub.f32 %v12061_v44, %v7445_v38 }
 0xb5f   :  { %v7518_v47 = vmul.f32 0.5, %v7458_v30 }
 0xb60   :  { %v7447_v15 = vpop.permute.xlu1 %7446 }
 0xb61   :  { %9287 = vtanh.f32 %v7518_v47  ;;  %v7459_v63 = vsub.f32 %v12077_v14, %v7447_v15 }
 0xb62   :  { %9289 = vtanh.f32 %v7482_v42  ;;  %v9284_v5 = vpop.eup %9283 }
 0xb63   :  { %v7519_v51 = vmul.f32 0.5, %v7459_v63  ;;  %v7529_v46 = vmul.f32 %v9284_v5, %v9284_v5 }
 0xb65   :  { %9291 = vtanh.f32 %v7519_v51 }
 0xb66   :  { %v7313_v31 = vpop.xlane.xlu0 %7312  ;;  %9293 = vtanh.f32 %v7478_v17 }
 0xb67   :  { %v7314_v11 = vadd.f32 %v7313_v31, %v7310_v57  ;;  %9295 = vtanh.f32 %v7514_v25 }
 0xb69   :  { %v7315_v41 = vrot.slane %v7314_v11, 4 }
 0xb6a   :  { %v9286_v9 = vpop.eup %9285  ;;  %v7395_v56 = vpop.permute.xlu0 %7394 }
 0xb6b   :  { %v12164_v16 = vmul.f32 %v9286_v9, %v9286_v9  ;;  %v7316_v23 = vadd.f32 %v7315_v41, %v7314_v11  ;;  %v7409_v19 = vsub.f32 %v12056_v22, %v7395_v56 }
 0xb6d   :  { %v12167_v58 = vmul.f32 %v7529_v46, %v12164_v16  ;;  %v7317_v6 = vrot.slane %v7316_v23, 2  ;;  %v7481_v55 = vmul.f32 0.5, %v7409_v19 }
 0xb6e   :  { %v9288_v27 = vpop.eup %9287  ;;  %v7391_v24 = vpop.permute.xlu0 %7390 }
 0xb6f   :  { %v9290_v29 = vpop.eup %9289  ;;  %v12169_v60 = vmul.f32 %v9288_v27, %v9288_v27  ;;  %v7318_v35 = vadd.f32 %v7317_v6, %v7316_v23  ;;  %9297 = vtanh.f32 %v7481_v55  ;;  %v7407_v59 = vsub.f32 %v12067_v32, %v7391_v24 }
 0xb70   :  { %v12176_v52 = vmul.f32 %v9290_v29, %v9290_v29 }
 0xb71   :  { %v12174_v39 = vmul.f32 %v12169_v60, %v12164_v16  ;;  %v7319_v28 = vrot.slane %v7318_v35, 1  ;;  %v7479_v40 = vmul.f32 0.5, %v7407_v59 }
 0xb72   :  { %v9292_v4 = vpop.eup %9291  ;;  %v7393_v26 = vpop.permute.xlu0 %7392  ;;  %v7739_v9 = vmul.f32 %v7529_v46, %v12176_v52 }
 0xb73   :  { %v12178_v36 = vmul.f32 %v9292_v4, %v9292_v4  ;;  %v7320_v57 = vadd.f32 %v7319_v28, %v7318_v35  ;;  %9299 = vtanh.f32 %v7479_v40  ;;  %v7408_v61 = vsub.f32 %v12104_v13, %v7393_v26  ;;  %v9294_v34 = vpop.eup %9293 }
 0xb74   :  { %v9296_v45 = vpop.eup %9295  ;;  %v7490_v2 = vmul.f32 %v9294_v34, %v9294_v34 }
 0xb75   :  { %v12183_v22 = vmul.f32 %v12178_v36, %v12176_v52  ;;  %v7321_v7 = vmul.f32 0.008928572, %v7320_v57  ;;  %v7480_v20 = vmul.f32 0.5, %v7408_v61  ;;  %v7526_v12 = vmul.f32 %v9296_v45, %v9296_v45 }
 0xb76   :  { %v7439_v0 = vpop.permute.xlu0 %7438  ;;  %v8195_v61 = vmul.f32 %v12169_v60, %v12176_v52 }
 0xb77   :  { %9301 = vrsqrt.f32 %v7321_v7  ;;  %v7455_v32 = vsub.f32 %v12118_v10, %v7439_v0  ;;  %v7584_v15 = vmul.f32 %v7526_v12, %v7490_v2  ;;  %vm7339_vm4 = vcmp.eq.f32.partialorder %v7321_v7, inf }
 0xb78   :  { %9303 = vtanh.f32 %v7480_v20  ;;  %v7342_v41 = vand.u32 2147483648, %v7321_v7  ;;  %vm7341_vm13 = vcmp.eq.f32.partialorder %v7321_v7, 0.0 }
 0xb79   :  { %v7515_v62 = vmul.f32 0.5, %v7455_v32  ;;  %v8803_v32 = vmul.f32 %v12178_v36, %v12164_v16 }
 0xb7a   :  { %v7441_v37 = vpop.permute.xlu0 %7440 }
 0xb7b   :  { %v7456_v38 = vsub.f32 %v12129_v48, %v7441_v37  ;;  %9305 = vtanh.f32 %v7515_v62 }
 0xb7c   :  { %v9298_v30 = vpop.eup %9297 }
 0xb7d   :  { %v7493_v42 = vmul.f32 %v9298_v30, %v9298_v30  ;;  %v7516_v47 = vmul.f32 0.5, %v7456_v38 }
 0xb7f   :  { %9307 = vtanh.f32 %v7516_v47  ;;  %v7585_v63 = vmul.f32 %v7529_v46, %v7493_v42  ;;  %v8043_v24 = vmul.f32 %v12169_v60, %v7493_v42  ;;  %v8499_v34 = vmul.f32 %v12178_v36, %v7493_v42 }
 0xb80   :  { %v9300_v51 = vpop.eup %9299 }
 0xb81   :  { %v7491_v5 = vmul.f32 %v9300_v51, %v9300_v51  ;;  %v7641_v1 = vcombine.low %v7584_v15, %v7585_v63 }
 0xb83   :  { %7642 = vrot.lane.b32.xlu1 %v7641_v1, %s9424_s22  ;;  %v7738_v33 = vmul.f32 %v7526_v12, %v7491_v5 }
 0xb84   :  { %v9302_v17 = vpop.eup %9301 }
 0xb85   :  { %v9304_v31 = vpop.eup %9303  ;;  %v7338_v25 = vmul.f32 %v9302_v17, %v7321_v7  ;;  %v7794_v11 = vcombine.low %v7738_v33, %v7739_v9 }
 0xb86   :  { %v7492_v27 = vmul.f32 %v9304_v31, %v9304_v31 }
 0xb87   :  { %v7340_v56 = vsel %vm7339_vm4, %v7321_v7, %v7338_v25  ;;  %7795 = vrot.lane.b32.xlu0 %v7794_v11, %s9424_s22 }
 0xb88   :  { %v7343_v29 = vsel %vm7341_vm13, %v7342_v41, %v7340_v56  ;;  %v12191_v23 = vmul.f32 %v7526_v12, %v7492_v27  ;;  %v9306_v19 = vpop.eup %9305 }
 0xb89   :  { %9309 = vrsqrt.f32 %v7343_v29  ;;  %v7527_v6 = vmul.f32 %v9306_v19, %v9306_v19  ;;  %vm7346_vm14 = vcmp.eq.f32.partialorder %v7343_v29, inf  ;;  %v7349_v38 = vand.u32 2147483648, %v7343_v29 }
 0xb8a   :  { %v7946_v46 = vcombine.low %v12191_v23, %v12167_v58  ;;  %vm7348_vm15 = vcmp.eq.f32.partialorder %v7343_v29, 0.0  ;;  %v7372_v19 = vrot.slane %v12104_v13, 7 }
 0xb8b   :  { %v8042_v4 = vmul.f32 %v7527_v6, %v7490_v2  ;;  %v12196_v35 = vmul.f32 %v7527_v6, %v7492_v27  ;;  %v8194_v40 = vmul.f32 %v7527_v6, %v7491_v5  ;;  %v7375_v6 = vrot.slane %v12045_v43, 7 }
 0xb8c   :  { %v9308_v55 = vpop.eup %9307 }
 0xb8d   :  { %v7528_v59 = vmul.f32 %v9308_v55, %v9308_v55  ;;  %v8098_v28 = vcombine.low %v8042_v4, %v8043_v24  ;;  %v8402_v26 = vcombine.low %v12196_v35, %v12174_v39  ;;  %v8250_v20 = vcombine.low %v8194_v40, %v8195_v61 }
 0xb8e   :  { %v7384_v55 = vsub.f32 %v12104_v13, %v7372_v19  ;;  %v7387_v4 = vsub.f32 %v12045_v43, %v7375_v6 }
 0xb8f   :  { %v12200_v57 = vmul.f32 %v7528_v59, %v7491_v5  ;;  %8099 = vrot.lane.b32.xlu0 %v8098_v28, %s9424_s22  ;;  %v8498_v0 = vmul.f32 %v7528_v59, %v7490_v2  ;;  %v8802_v45 = vmul.f32 %v7528_v59, %v7492_v27 }
 0xb90   :  { %v7462_v24 = vmul.f32 0.5, %v7384_v55  ;;  %v7465_v61 = vmul.f32 0.5, %v7387_v4 }
 0xb91   :  { %v8706_v7 = vcombine.low %v12200_v57, %v12183_v22  ;;  %v8554_v37 = vcombine.low %v8498_v0, %v8499_v34  ;;  %v8858_v60 = vcombine.low %v8802_v45, %v8803_v32 }
 0xb93   :  { %8251 = vrot.lane.b32.xlu0 %v8250_v20, %s9424_s22 }
 0xb96   :  { %v9310_v62 = vpop.eup %9309 }
 0xb97   :  { %v7345_v12 = vmul.f32 %v9310_v62, %v7343_v29  ;;  %8555 = vrot.lane.b32.xlu0 %v8554_v37, %s9424_s22 }
 0xb99   :  { %v7347_v52 = vsel %vm7346_vm14, %v7343_v29, %v7345_v12 }
 0xb9a   :  { %v7350_v30 = vsel %vm7348_vm15, %v7349_v38, %v7347_v52 }
 0xb9b   :  { %v7351_v2 = vadd.f32 %v7350_v30, %v12142_v50  ;;  %8859 = vrot.lane.b32.xlu0 %v8858_v60, %s9424_s22 }
 0xbab   :  { %v7630_v42 = vpop.xlane.xlu0 %7629 }
 0xbac   :  { %v7631_v47 = vsel %vm812_vm7, %v7630_v42, 0.0 }
 0xbad   :  { %v7632_v15 = vrot.slane %v7631_v47, 4 }
 0xbaf   :  { %v7633_v16 = vadd.f32 %v7632_v15, %v7631_v47  ;;  %v12221_v59 = vpop.xlane.xlu0 %7782 }
 0xbb1   :  { %v7634_v36 = vrot.slane %v7633_v16, 2 }
 0xbb3   :  { %v7635_v63 = vadd.f32 %v7634_v36, %v7633_v16  ;;  %v7419_v36 = vrot.slane %v12118_v10, 7 }
 0xbb5   :  { %v7636_v51 = vrot.slane %v7635_v63, 1 }
 0xbb7   :  { %v7637_v5 = vadd.f32 %v7636_v51, %v7635_v63  ;;  %v7422_v51 = vrot.slane %v12061_v44, 7 }
 0xbb9   :  { %v7638_v1 = vmul.f32 0.041666668, %v7637_v5  ;;  %v7431_v5 = vsub.f32 %v12118_v10, %v7419_v36 }
 0xbbb   :  { %9311 = vrsqrt.f32 %v7638_v1  ;;  %vm7658_vm0 = vcmp.eq.f32.partialorder %v7638_v1, inf  ;;  %v7661_v9 = vand.u32 2147483648, %v7638_v1  ;;  %vm7660_vm1 = vcmp.eq.f32.partialorder %v7638_v1, 0.0 }
 0xbc8   :  { %v9312_v33 = vpop.eup %9311 }
 0xbc9   :  { %v7657_v17 = vmul.f32 %v9312_v33, %v7638_v1 }
 0xbcb   :  { %v7659_v31 = vsel %vm7658_vm0, %v7638_v1, %v7657_v17  ;;  %v7497_v17 = vmul.f32 0.5, %v7431_v5 }
 0xbcc   :  { %v7662_v50 = vsel %vm7660_vm1, %v7661_v9, %v7659_v31  ;;  %v7434_v9 = vsub.f32 %v12061_v44, %v7422_v51 }
 0xbcd   :  { %9313 = vrsqrt.f32 %v7662_v50  ;;  %vm7665_vm6 = vcmp.eq.f32.partialorder %v7662_v50, inf  ;;  %v7668_v11 = vand.u32 2147483648, %v7662_v50  ;;  %vm7667_vm2 = vcmp.eq.f32.partialorder %v7662_v50, 0.0 }
 0xbce   :  { %9315 = vtanh.f32 %v7462_v24  ;;  %v7500_v31 = vmul.f32 0.5, %v7434_v9 }
 0xbcf   :  { %9317 = vtanh.f32 %v7465_v61 }
 0xbd0   :  { %9319 = vtanh.f32 %v7497_v17 }
 0xbd1   :  { %9321 = vtanh.f32 %v7500_v31 }
 0xbda   :  { %v9314_v25 = vpop.eup %9313 }
 0xbdb   :  { %v7664_v41 = vmul.f32 %v9314_v25, %v7662_v50  ;;  %v9316_v34 = vpop.eup %9315 }
 0xbdc   :  { %v12225_v45 = vmul.f32 %v9316_v34, %v9316_v34  ;;  %v9318_v13 = vpop.eup %9317 }
 0xbdd   :  { %v7666_v27 = vsel %vm7665_vm6, %v7662_v50, %v7664_v41  ;;  %v12231_v43 = vmul.f32 %v9318_v13, %v9318_v13  ;;  %v7420_v50 = vrot.slane %v12129_v48, 7  ;;  %v9320_v25 = vpop.eup %9319 }
 0xbde   :  { %v7669_v56 = vsel %vm7667_vm2, %v7668_v11, %v7666_v27  ;;  %v7838_v32 = vmul.f32 %v12087_v53, %v12225_v45  ;;  %v7423_v11 = vrot.slane %v12077_v14, 7  ;;  %v7509_v27 = vmul.f32 %v9320_v25, %v9320_v25  ;;  %v9322_v10 = vpop.eup %9321 }
 0xbdf   :  { %v12215_v29 = vadd.f32 %v7669_v56, %v7351_v2  ;;  %v7839_v62 = vmul.f32 %v12093_v8, %v12231_v43  ;;  %v7432_v41 = vsub.f32 %v12129_v48, %v7420_v50  ;;  %v7512_v6 = vmul.f32 %v9322_v10, %v9322_v10 }
 0xbe0   :  { %v7848_v37 = vrot.slane %v7838_v32, %v9661_v3  ;;  %v7435_v56 = vsub.f32 %v12077_v14, %v7423_v11  ;;  %v7990_v44 = vmul.f32 %v7509_v27, %v12085_v21  ;;  %v8142_v14 = vmul.f32 %v7509_v27, %v12097_v54 }
 0xbe1   :  { %v7872_v23 = vrot.slane %v7839_v62, %v9661_v3  ;;  %v7498_v19 = vmul.f32 0.5, %v7432_v41  ;;  %v7991_v4 = vmul.f32 %v7512_v6, %v12095_v18  ;;  %v8143_v62 = vmul.f32 %v7512_v6, %v12109_v49 }
 0xbe2   :  { %v7849_v58 = vcombine.high %v7848_v37, %v7848_v37  ;;  %v7856_v53 = vrot.slane %v7848_v37, %v9661_v3  ;;  %v7501_v55 = vmul.f32 0.5, %v7435_v56  ;;  %v8000_v24 = vrot.slane %v7990_v44, %v9661_v3 }
 0xbe3   :  { %v7873_v12 = vcombine.high %v7872_v23, %v7872_v23  ;;  %v7880_v8 = vrot.slane %v7872_v23, %v9661_v3  ;;  %9323 = vtanh.f32 %v7498_v19  ;;  %v8024_v48 = vrot.slane %v7991_v4, %v9661_v3 }
 0xbe4   :  { %v7864_v39 = vcombine.high %v7856_v53, %v7856_v53  ;;  %9325 = vtanh.f32 %v7501_v55  ;;  %v8152_v37 = vrot.slane %v8142_v14, %v9661_v3 }
 0xbe5   :  { %v8025_v34 = vcombine.high %v8024_v48, %v8024_v48 }
 0xbe7   :  { %v8039_v53 = vrot.slane %v8025_v34, %v9661_v3 }
 0xbf0   :  { %v9324_v13 = vpop.eup %9323 }
 0xbf5   :  { %v7643_v28 = vpop.permute.xlu1 %7642 }
 0xbf6   :  { %v7646_v40 = vsel %vm7645_vm3, %v7643_v28, 0.0  ;;  %v7784_v28 = vsel %vm812_vm7, %v12221_v59, 0.0 }
 0xbf7   :  { %7647 = vadd.xlane.f32.xlu1 %v7646_v40  ;;  %v8001_v40 = vcombine.high %v8000_v24, %v8000_v24  ;;  %v7785_v61 = vrot.slane %v7784_v28, 4 }
 0xbf9   :  { %v7796_v20 = vpop.permute.xlu0 %7795  ;;  %v7786_v32 = vadd.f32 %v7785_v61, %v7784_v28 }
 0xbfa   :  { %v7798_v0 = vsel %vm7645_vm3, %v7796_v20, 0.0  ;;  %v8008_v20 = vrot.slane %v8000_v24, %v9661_v3 }
 0xbfb   :  { %7799 = vadd.xlane.f32.xlu1 %v7798_v0  ;;  %v8015_v0 = vrot.slane %v8001_v40, %v9661_v3 }
 0xbfc   :  { %v8016_v59 = vcombine.high %v8008_v20, %v8008_v20 }
 0xbfd   :  { %v8017_v23 = vcombine.high %v8015_v0, %v8015_v0 }
 0xc01   :  { %v8100_v16 = vpop.permute.xlu0 %8099 }
 0xc02   :  { %v8102_v63 = vsel %vm7645_vm3, %v8100_v16, 0.0 }
 0xc05   :  { %v8252_v1 = vpop.permute.xlu0 %8251 }
 0xc06   :  { %v8254_v33 = vsel %vm7645_vm3, %v8252_v1, 0.0 }
 0xc0c   :  { %7947 = vrot.lane.b32.xlu1 %v7946_v46, %s9424_s22  ;;  %v7863_v46 = vrot.slane %v7849_v58, %v9661_v3  ;;  %v8294_v58 = vmul.f32 %v7509_v27, %v12225_v45 }
 0xc0e   :  { %v7865_v35 = vcombine.high %v7863_v46, %v7863_v46  ;;  %v7892_v38 = vcombine.low %v7863_v46, %v7864_v39  ;;  %v7510_v46 = vmul.f32 %v9324_v13, %v9324_v13  ;;  %v7787_v39 = vrot.slane %v7786_v32, 2 }
 0xc10   :  { %8403 = vrot.lane.b32.xlu1 %v8402_v26, %s9424_s22  ;;  %v7887_v26 = vrot.slane %v7873_v12, %v9661_v3  ;;  %v7901_v22 = vrot.slane %v7892_v38, %v9661_v3  ;;  %v9326_v12 = vpop.eup %9325  ;;  %v8045_v38 = vcombine.low %v8017_v23, %v8039_v53  ;;  %v8598_v1 = vmul.f32 %v7510_v46, %v12097_v54 }
 0xc11   :  { %v8750_v44 = vmul.f32 %v7510_v46, %v12225_v45 }
 0xc12   :  { %v7893_v60 = vcombine.low %v7865_v35, %v7887_v26  ;;  %v8976_v52 = vcombine.high %v7880_v8, %v7887_v26  ;;  %v8153_v35 = vcombine.high %v8152_v37, %v8152_v37  ;;  %v8176_v26 = vrot.slane %v8143_v62, %v9661_v3 }
 0xc13   :  { %v8044_v8 = vcombine.low %v8015_v0, %v8016_v59  ;;  %v8060_v16 = vrot.slane %v8045_v38, %v9661_v3 }
 0xc14   :  { %8707 = vrot.lane.b32.xlu1 %v8706_v7, %s9424_s22  ;;  %v7908_v57 = vrot.slane %v7893_v60, %v9661_v3  ;;  %v7915_v7 = vrot.slane %v8976_v52, %v9661_v3  ;;  %v8295_v60 = vmul.f32 %v7512_v6, %v12231_v43  ;;  %v8304_v52 = vrot.slane %v8294_v58, %v9661_v3  ;;  %s9400_s22 = scalar_lea.vmem %s8913_s27, 16 }
 0xc15   :  { %v8184_v19 = vrot.slane %v8176_v26, %v9661_v3  ;;  %v8608_v6 = vrot.slane %v8598_v1, %v9661_v3  ;;  %v8760_v58 = vrot.slane %v8750_v44, %v9661_v3  ;;  %p9401_p0 = scmp.ne.s32.totalorder %s8913_s27, %s9400_s22  ;;  %p9406_p2 = scmp.lt.s32.totalorder %s9404_s30, %s9400_s22 }
 0xc16   :  { %v7916_v30 = vcombine.low %v7901_v22, %v7908_v57  ;;  %v7930_v42 = vrot.slane %v7915_v7, %v9661_v3  ;;  %v7513_v22 = vmul.f32 %v9326_v12, %v9326_v12  ;;  %v8446_v57 = vmul.f32 %v7510_v46, %v12085_v21 }
 0xc17   :  { %v8032_v7 = vrot.slane %v8024_v48, %v9661_v3  ;;  %v8305_v36 = vcombine.high %v8304_v52, %v8304_v52  ;;  %v8312_v25 = vrot.slane %v8304_v52, %v9661_v3  ;;  %v8609_v13 = vcombine.high %v8608_v6, %v8608_v6  ;;  %p9407_p3 = por %p9406_p2, %p9405_p1 }
 0xc18   :  { %v7923_v2 = vrot.slane %v7916_v30, %v9661_v3  ;;  %v7788_v30 = vadd.f32 %v7787_v39, %v7786_v32  ;;  %v8447_v5 = vmul.f32 %v7513_v22, %v12095_v18  ;;  %v8456_v21 = vrot.slane %v8446_v57, %v9661_v3 }
 0xc19   :  { %v8977_v51 = vcombine.high %v8032_v7, %v8039_v53  ;;  %v8319_v11 = vrot.slane %v8305_v36, %v9661_v3  ;;  %v8599_v54 = vmul.f32 %v7513_v22, %v12109_v49  ;;  %v8320_v28 = vcombine.high %v8312_v25, %v8312_v25  ;;  %p9408_p4 = pnand %p9407_p3, %p9401_p0 }
 0xc1a   :  { %v7931_v47 = vcombine.low %v7923_v2, %v7930_v42  ;;  %v8160_v2 = vrot.slane %v8152_v37, %v9661_v3  ;;  %v8167_v42 = vrot.slane %v8153_v35, %v9661_v3  ;;  %v8457_v10 = vcombine.high %v8456_v21, %v8456_v21 }
 0xc1b   :  { %v8067_v27 = vrot.slane %v8977_v51, %v9661_v3  ;;  %v8480_v18 = vrot.slane %v8447_v5, %v9661_v3  ;;  %v8321_v40 = vcombine.high %v8319_v11, %v8319_v11  ;;  %v8464_v14 = vrot.slane %v8456_v21, %v9661_v3 }
 0xc1c   :  { %v7933_v15 = vsel %vm7627_vm12, %v7931_v47, 0.0  ;;  %v8177_v47 = vcombine.high %v8176_v26, %v8176_v26  ;;  %v8168_v9 = vcombine.high %v8160_v2, %v8160_v2  ;;  %v8169_v17 = vcombine.high %v8167_v42, %v8167_v42 }
 0xc1d   :  { %v8082_v61 = vrot.slane %v8067_v27, %v9661_v3  ;;  %v8471_v20 = vrot.slane %v8457_v10, %v9661_v3  ;;  %v8481_v0 = vcombine.high %v8480_v18, %v8480_v18  ;;  %v12310_v45 = vrot.slane %v8599_v54, %v9661_v3 }
 0xc1e   :  { %v8191_v31 = vrot.slane %v8177_v47, %v9661_v3  ;;  %v8196_v55 = vcombine.low %v8167_v42, %v8168_v9  ;;  %v8751_v37 = vmul.f32 %v7513_v22, %v12231_v43  ;;  %v8348_v23 = vcombine.low %v8319_v11, %v8320_v28 }
 0xc1f   :  { %v8472_v12 = vcombine.high %v8464_v14, %v8464_v14  ;;  %v8473_v39 = vcombine.high %v8471_v20, %v8471_v20  ;;  %v8495_v35 = vrot.slane %v8481_v0, %v9661_v3  ;;  %v8616_v26 = vrot.slane %v8608_v6, %v9661_v3 }
 0xc20   :  { %v8197_v4 = vcombine.low %v8169_v17, %v8191_v31  ;;  %v8978_v34 = vcombine.high %v8184_v19, %v8191_v31  ;;  %v8205_v32 = vrot.slane %v8196_v55, %v9661_v3  ;;  %v8633_v43 = vcombine.high %v12310_v45, %v12310_v45 }
 0xc21   :  { %v8761_v52 = vcombine.high %v8760_v58, %v8760_v58  ;;  %v12325_v22 = vrot.slane %v8751_v37, %v9661_v3  ;;  %v8488_v42 = vrot.slane %v8480_v18, %v9661_v3  ;;  %v8501_v36 = vcombine.low %v8473_v39, %v8495_v35 }
 0xc22   :  { %v8212_v62 = vrot.slane %v8197_v4, %v9661_v3  ;;  %v8219_v38 = vrot.slane %v8978_v34, %v9661_v3  ;;  %v8647_v5 = vrot.slane %v8633_v43, %v9661_v3  ;;  %v8768_v21 = vrot.slane %v8760_v58, %v9661_v3 }
 0xc23   :  { %v8775_v9 = vrot.slane %v8761_v52, %v9661_v3  ;;  %v8785_v17 = vcombine.high %v12325_v22, %v12325_v22  ;;  %v8516_v19 = vrot.slane %v8501_v36, %v9661_v3  ;;  %v8792_v58 = vrot.slane %v12325_v22, %v9661_v3 }
 0xc24   :  { %v8776_v44 = vcombine.high %v8768_v21, %v8768_v21 }
 0xc25   :  { %v8799_v28 = vrot.slane %v8785_v17, %v9661_v3 }
 0xc38   :  { %7934 = vadd.xlane.f32.xlu1 %v7933_v15  ;;  %v8053_v15 = vrot.slane %v8044_v8, %v9661_v3  ;;  %v8623_v8 = vrot.slane %v8609_v13, %v9661_v3 }
 0xc3a   :  { %v8068_v50 = vcombine.low %v8053_v15, %v8060_v16  ;;  %v8500_v16 = vcombine.low %v8471_v20, %v8472_v12  ;;  %v8625_v51 = vcombine.high %v8623_v8, %v8623_v8 }
 0xc3c   :  { %8103 = vadd.xlane.f32.xlu1 %v8102_v63  ;;  %v8328_v63 = vrot.slane %v8295_v60, %v9661_v3  ;;  %v8075_v24 = vrot.slane %v8068_v50, %v9661_v3  ;;  %v8220_v60 = vcombine.low %v8205_v32, %v8212_v62  ;;  %v8509_v18 = vrot.slane %v8500_v16, %v9661_v3 }
 0xc3d   :  { %v8653_v6 = vcombine.low %v8625_v51, %v8647_v5 }
 0xc3e   :  { %v8329_v41 = vcombine.high %v8328_v63, %v8328_v63  ;;  %v8336_v59 = vrot.slane %v8328_v63, %v9661_v3  ;;  %v8083_v46 = vcombine.low %v8075_v24, %v8082_v61  ;;  %v8624_v63 = vcombine.high %v8616_v26, %v8616_v26 }
 0xc3f   :  { %v8227_v50 = vrot.slane %v8220_v60, %v9661_v3  ;;  %v8777_v24 = vcombine.high %v8775_v9, %v8775_v9  ;;  %v8524_v32 = vcombine.low %v8509_v18, %v8516_v19  ;;  %v8668_v37 = vrot.slane %v8653_v6, %v9661_v3  ;;  %v8556_v60 = vpop.permute.xlu0 %8555 }
 0xc40   :  { %8255 = vadd.xlane.f32.xlu1 %v8254_v33  ;;  %v7789_v33 = vrot.slane %v7788_v30, 1  ;;  %v8343_v48 = vrot.slane %v8329_v41, %v9661_v3  ;;  %v8085_v15 = vsel %vm7627_vm12, %v8083_v46, 0.0  ;;  %v8980_v41 = vcombine.high %v8488_v42, %v8495_v35 }
 0xc41   :  { %v8652_v54 = vcombine.low %v8623_v8, %v8624_v63  ;;  %v8804_v46 = vcombine.low %v8775_v9, %v8776_v44  ;;  %v8805_v12 = vcombine.low %v8777_v24, %v8799_v28  ;;  %v8531_v22 = vrot.slane %v8524_v32, %v9661_v3 }
 0xc42   :  { %v7790_v56 = vadd.f32 %v7789_v33, %v7788_v30  ;;  %v8349_v53 = vcombine.low %v8321_v40, %v8343_v48  ;;  %v8979_v7 = vcombine.high %v8336_v59, %v8343_v48  ;;  %v8357_v30 = vrot.slane %v8348_v23, %v9661_v3 }
 0xc43   :  { %v8234_v33 = vrot.slane %v8219_v38, %v9661_v3  ;;  %v8523_v20 = vrot.slane %v8980_v41, %v9661_v3  ;;  %v8661_v62 = vrot.slane %v8652_v54, %v9661_v3  ;;  %v8820_v42 = vrot.slane %v8805_v12, %v9661_v3 }
 0xc44   :  { %v12307_v49 = vmul.f32 0.041666668, %v7790_v56  ;;  %v8364_v2 = vrot.slane %v8349_v53, %v9661_v3  ;;  %v8371_v25 = vrot.slane %v8979_v7, %v9661_v3  ;;  %v8640_v56 = vrot.slane %v12310_v45, %v9661_v3 }
 0xc45   :  { %v8235_v48 = vcombine.low %v8227_v50, %v8234_v33  ;;  %v8538_v38 = vrot.slane %v8523_v20, %v9661_v3  ;;  %v8676_v7 = vcombine.low %v8661_v62, %v8668_v37  ;;  %v8558_v16 = vsel %vm7645_vm3, %v8556_v60, 0.0 }
 0xc46   :  { %9327 = vrsqrt.f32 %v12307_v49  ;;  %v8372_v11 = vcombine.low %v8357_v30, %v8364_v2  ;;  %v8386_v14 = vrot.slane %v8371_v25, %v9661_v3  ;;  %v8981_v45 = vcombine.high %v8640_v56, %v8647_v5  ;;  %v8860_v25 = vpop.permute.xlu0 %8859 }
 0xc47   :  { %v8237_v52 = vsel %vm7627_vm12, %v8235_v48, 0.0  ;;  %v8982_v30 = vcombine.high %v8792_v58, %v8799_v28  ;;  %v8813_v2 = vrot.slane %v8804_v46, %v9661_v3  ;;  %vm7810_vm8 = vcmp.eq.f32.partialorder %v12307_v49, inf }
 0xc48   :  { %v8379_v61 = vrot.slane %v8372_v11, %v9661_v3  ;;  %v8539_v21 = vcombine.low %v8531_v22, %v8538_v38  ;;  %vm7812_vm9 = vcmp.eq.f32.partialorder %v12307_v49, 0.0  ;;  %v7813_v50 = vand.u32 2147483648, %v12307_v49 }
 0xc49   :  { %v8827_v33 = vrot.slane %v8982_v30, %v9661_v3  ;;  %v8828_v9 = vcombine.low %v8813_v2, %v8820_v42  ;;  %v8862_v18 = vsel %vm7645_vm3, %v8860_v25, 0.0 }
 0xc4a   :  { %v8387_v35 = vcombine.low %v8379_v61, %v8386_v14  ;;  %v8541_v11 = vsel %vm7627_vm12, %v8539_v21, 0.0 }
 0xc4c   :  { %v8389_v51 = vsel %vm7627_vm12, %v8387_v35, 0.0 }
 0xc53   :  { %v9328_v59 = vpop.eup %9327 }
 0xc80   :  { %v7648_v57 = vpop.xlane.xlu1 %7647 }
 0xc81   :  { %v7649_v47 = vrot.slane %v7648_v57, 4 }
 0xc83   :  { %v7650_v1 = vadd.f32 %v7649_v47, %v7648_v57  ;;  %v8675_v57 = vrot.slane %v8981_v45, %v9661_v3 }
 0xc84   :  { %v7800_v31 = vpop.xlane.xlu1 %7799 }
 0xc85   :  { %v7651_v27 = vrot.slane %v7650_v1, 2  ;;  %v7801_v10 = vrot.slane %v7800_v31, 4  ;;  %v8690_v5 = vrot.slane %v8675_v57, %v9661_v3 }
 0xc87   :  { %v7652_v55 = vadd.f32 %v7651_v27, %v7650_v1  ;;  %v7802_v4 = vadd.f32 %v7801_v10, %v7800_v31  ;;  %v8683_v1 = vrot.slane %v8676_v7, %v9661_v3  ;;  %v8835_v27 = vrot.slane %v8828_v9, %v9661_v3 }
 0xc88   :  { %v7948_v40 = vpop.permute.xlu1 %7947  ;;  %v8842_v10 = vrot.slane %v8827_v33, %v9661_v3 }
 0xc89   :  { %v7653_v0 = vrot.slane %v7652_v55, 1  ;;  %v7803_v34 = vrot.slane %v7802_v4, 2  ;;  %v7950_v13 = vsel %vm7645_vm3, %v7948_v40, 0.0  ;;  %v8691_v41 = vcombine.low %v8683_v1, %v8690_v5 }
 0xc8a   :  { %7951 = vadd.xlane.f32.xlu0 %v7950_v13  ;;  %v8843_v54 = vcombine.low %v8835_v27, %v8842_v10 }
 0xc8b   :  { %v7654_v23 = vadd.f32 %v7653_v0, %v7652_v55  ;;  %v7804_v53 = vadd.f32 %v7803_v34, %v7802_v4  ;;  %v8693_v19 = vsel %vm7627_vm12, %v8691_v41, 0.0 }
 0xc8c   :  { %v8404_v39 = vpop.permute.xlu1 %8403  ;;  %v8845_v4 = vsel %vm7627_vm12, %v8843_v54, 0.0 }
 0xc8d   :  { %v7655_v26 = vmul.f32 0.041666668, %v7654_v23  ;;  %v7805_v8 = vrot.slane %v7804_v53, 1  ;;  %v8406_v43 = vsel %vm7645_vm3, %v8404_v39, 0.0 }
 0xc8e   :  { %8086 = vadd.xlane.f32.xlu0 %v8085_v15  ;;  %8407 = vadd.xlane.f32.xlu1 %v8406_v43  ;;  %v7809_v15 = vmul.f32 %v9328_v59, %v12307_v49 }
 0xc8f   :  { %9329 = vrsqrt.f32 %v7655_v26  ;;  %v7806_v47 = vadd.f32 %v7805_v8, %v7804_v53  ;;  %vm7673_vm10 = vcmp.eq.f32.partialorder %v7655_v26, inf  ;;  %v7676_v44 = vand.u32 2147483648, %v7655_v26 }
 0xc90   :  { %v8708_v63 = vpop.permute.xlu1 %8707  ;;  %v7811_v31 = vsel %vm7810_vm8, %v12307_v49, %v7809_v15  ;;  %vm7675_vm11 = vcmp.eq.f32.partialorder %v7655_v26, 0.0 }
 0xc91   :  { %v7807_v36 = vmul.f32 0.041666668, %v7806_v47  ;;  %v8710_v17 = vsel %vm7645_vm3, %v8708_v63, 0.0  ;;  %v7814_v56 = vsel %vm7812_vm9, %v7813_v50, %v7811_v31 }
 0xc92   :  { %8238 = vadd.xlane.f32.xlu0 %v8237_v52  ;;  %8559 = vadd.xlane.f32.xlu1 %v8558_v16  ;;  %vm7817_vm13 = vcmp.eq.f32.partialorder %v7814_v56, inf  ;;  %v7820_v13 = vand.u32 2147483648, %v7814_v56  ;;  %vm7819_vm12 = vcmp.eq.f32.partialorder %v7814_v56, 0.0 }
 0xc93   :  { %9331 = vrsqrt.f32 %v7807_v36  ;;  %vm7825_vm5 = vcmp.eq.f32.partialorder %v7807_v36, inf  ;;  %v7828_v40 = vand.u32 2147483648, %v7807_v36  ;;  %vm7827_vm4 = vcmp.eq.f32.partialorder %v7807_v36, 0.0 }
 0xc94   :  { %9333 = vrsqrt.f32 %v7814_v56 }
 0xc96   :  { %8390 = vadd.xlane.f32.xlu0 %v8389_v51  ;;  %8711 = vadd.xlane.f32.xlu1 %v8710_v17 }
 0xc9a   :  { %8542 = vadd.xlane.f32.xlu0 %v8541_v11  ;;  %8863 = vadd.xlane.f32.xlu1 %v8862_v18 }
 0xc9c   :  { %v9330_v6 = vpop.eup %9329 }
 0xc9d   :  { %v7672_v49 = vmul.f32 %v9330_v6, %v7655_v26 }
 0xc9e   :  { %8694 = vadd.xlane.f32.xlu0 %v8693_v19 }
 0xc9f   :  { %v7674_v55 = vsel %vm7673_vm10, %v7655_v26, %v7672_v49 }
 0xca0   :  { %v7677_v24 = vsel %vm7675_vm11, %v7676_v44, %v7674_v55  ;;  %v9332_v3 = vpop.eup %9331 }
 0xca1   :  { %9335 = vrsqrt.f32 %v7677_v24  ;;  %v7824_v28 = vmul.f32 %v9332_v3, %v7807_v36  ;;  %v9334_v14 = vpop.eup %9333  ;;  %vm7680_vm14 = vcmp.eq.f32.partialorder %v7677_v24, inf  ;;  %v7683_v45 = vand.u32 2147483648, %v7677_v24 }
 0xca2   :  { %8846 = vadd.xlane.f32.xlu0 %v8845_v4  ;;  %v7816_v20 = vmul.f32 %v9334_v14, %v7814_v56  ;;  %vm7682_vm15 = vcmp.eq.f32.partialorder %v7677_v24, 0.0 }
 0xca3   :  { %v7826_v48 = vsel %vm7825_vm5, %v7807_v36, %v7824_v28 }
 0xca4   :  { %v7829_v61 = vsel %vm7827_vm4, %v7828_v40, %v7826_v48  ;;  %v7818_v32 = vsel %vm7817_vm13, %v7814_v56, %v7816_v20 }
 0xca5   :  { %9337 = vrsqrt.f32 %v7829_v61  ;;  %v7821_v53 = vsel %vm7819_vm12, %v7820_v13, %v7818_v32  ;;  %vm7832_vm0 = vcmp.eq.f32.partialorder %v7829_v61, inf  ;;  %v7835_v46 = vand.u32 2147483648, %v7829_v61 }
 0xca6   :  { %vm7834_vm1 = vcmp.eq.f32.partialorder %v7829_v61, 0.0 }
 0xcae   :  { %v9336_v0 = vpop.eup %9335 }
 0xcaf   :  { %v7679_v34 = vmul.f32 %v9336_v0, %v7677_v24 }
 0xcb1   :  { %v7681_v62 = vsel %vm7680_vm14, %v7677_v24, %v7679_v34 }
 0xcb2   :  { %v7684_v37 = vsel %vm7682_vm15, %v7683_v45, %v7681_v62  ;;  %v9338_v58 = vpop.eup %9337 }
 0xcb3   :  { %v7685_v59 = vadd.f32 %v7684_v37, %v12215_v29  ;;  %v7831_v23 = vmul.f32 %v9338_v58, %v7829_v61 }
 0xcb5   :  { %v7822_v12 = vadd.f32 %v7821_v53, %v7685_v59  ;;  %v7833_v39 = vsel %vm7832_vm0, %v7829_v61, %v7831_v23 }
 0xcb6   :  { %v7836_v35 = vsel %vm7834_vm1, %v7835_v46, %v7833_v39 }
 0xcb7   :  { %v12377_v26 = vadd.f32 %v7836_v35, %v7822_v12 }
 0xcc1   :  { %v7935_v8 = vpop.xlane.xlu1 %7934 }
 0xcc2   :  { %v7936_v43 = vsel %vm812_vm7, %v7935_v8, 0.0 }
 0xcc3   :  { %v7937_v60 = vrot.slane %v7936_v43, 4 }
 0xcc5   :  { %v8104_v38 = vpop.xlane.xlu1 %8103  ;;  %v7938_v22 = vadd.f32 %v7937_v60, %v7936_v43 }
 0xcc6   :  { %v8105_v52 = vrot.slane %v8104_v38, 4 }
 0xcc7   :  { %v7939_v7 = vrot.slane %v7938_v22, 2 }
 0xcc8   :  { %v8106_v57 = vadd.f32 %v8105_v52, %v8104_v38 }
 0xcc9   :  { %v8256_v29 = vpop.xlane.xlu1 %8255  ;;  %v7940_v42 = vadd.f32 %v7939_v7, %v7938_v22 }
 0xcca   :  { %v8107_v30 = vrot.slane %v8106_v57, 2  ;;  %v8257_v2 = vrot.slane %v8256_v29, 4 }
 0xccb   :  { %v7941_v15 = vrot.slane %v7940_v42, 1 }
 0xccc   :  { %v8108_v47 = vadd.f32 %v8107_v30, %v8106_v57  ;;  %v8258_v16 = vadd.f32 %v8257_v2, %v8256_v29 }
 0xccd   :  { %v7942_v51 = vadd.f32 %v7941_v15, %v7940_v42 }
 0xcce   :  { %v8109_v36 = vrot.slane %v8108_v47, 1  ;;  %v8259_v63 = vrot.slane %v8258_v16, 2 }
 0xccf   :  { %v7943_v1 = vmul.f32 0.041666668, %v7942_v51 }
 0xcd0   :  { %v8110_v5 = vadd.f32 %v8109_v36, %v8108_v47  ;;  %v8260_v21 = vadd.f32 %v8259_v63, %v8258_v16 }
 0xcd1   :  { %9339 = vrsqrt.f32 %v7943_v1  ;;  %vm7962_vm6 = vcmp.eq.f32.partialorder %v7943_v1, inf  ;;  %v7965_v18 = vand.u32 2147483648, %v7943_v1  ;;  %vm7964_vm2 = vcmp.eq.f32.partialorder %v7943_v1, 0.0 }
 0xcd2   :  { %v8111_v33 = vmul.f32 0.041666668, %v8110_v5  ;;  %v8261_v9 = vrot.slane %v8260_v21, 1 }
 0xcd4   :  { %9341 = vrsqrt.f32 %v8111_v33  ;;  %v8262_v17 = vadd.f32 %v8261_v9, %v8260_v21  ;;  %vm8129_vm3 = vcmp.eq.f32.partialorder %v8111_v33, inf  ;;  %v8132_v24 = vand.u32 2147483648, %v8111_v33 }
 0xcd5   :  { %vm8131_vm8 = vcmp.eq.f32.partialorder %v8111_v33, 0.0 }
 0xcd6   :  { %v12380_v31 = vmul.f32 0.041666668, %v8262_v17 }
 0xcd8   :  { %9343 = vrsqrt.f32 %v12380_v31  ;;  %vm8281_vm9 = vcmp.eq.f32.partialorder %v12380_v31, inf  ;;  %vm8283_vm10 = vcmp.eq.f32.partialorder %v12380_v31, 0.0  ;;  %v8284_v2 = vand.u32 2147483648, %v12380_v31 }
 0xcde   :  { %v9340_v50 = vpop.eup %9339 }
 0xcdf   :  { %v7961_v11 = vmul.f32 %v9340_v50, %v7943_v1 }
 0xce1   :  { %v9342_v25 = vpop.eup %9341  ;;  %v7963_v19 = vsel %vm7962_vm6, %v7943_v1, %v7961_v11 }
 0xce2   :  { %v8128_v27 = vmul.f32 %v9342_v25, %v8111_v33  ;;  %v12384_v28 = vsel %vm7964_vm2, %v7965_v18, %v7963_v19 }
 0xce3   :  { %9345 = vrsqrt.f32 %v12384_v28  ;;  %vm7969_vm11 = vcmp.eq.f32.partialorder %v12384_v28, inf  ;;  %vm7971_vm4 = vcmp.eq.f32.partialorder %v12384_v28, 0.0 }
 0xce4   :  { %v8130_v49 = vsel %vm8129_vm3, %v8111_v33, %v8128_v27 }
 0xce5   :  { %v9344_v61 = vpop.eup %9343  ;;  %v12386_v14 = vsel %vm8131_vm8, %v8132_v24, %v8130_v49 }
 0xce6   :  { %v8280_v59 = vmul.f32 %v9344_v61, %v12380_v31  ;;  %9347 = vrsqrt.f32 %v12386_v14  ;;  %vm8136_vm13 = vcmp.eq.f32.partialorder %v12386_v14, inf  ;;  %vm8138_vm12 = vcmp.eq.f32.partialorder %v12386_v14, 0.0 }
 0xce8   :  { %v8282_v30 = vsel %vm8281_vm9, %v12380_v31, %v8280_v59 }
 0xcf0   :  { %v9346_v49 = vpop.eup %9345 }
 0xcf3   :  { %v9348_v61 = vpop.eup %9347 }
 0xd13   :  { %v7952_v41 = vpop.xlane.xlu0 %7951 }
 0xd14   :  { %v7953_v10 = vrot.slane %v7952_v41, 4 }
 0xd16   :  { %v7954_v56 = vadd.f32 %v7953_v10, %v7952_v41  ;;  %v12407_v10 = vsel %vm8283_vm10, %v8284_v2, %v8282_v30  ;;  %v8135_v2 = vmul.f32 %v9348_v61, %v12386_v14 }
 0xd17   :  { %v8087_v54 = vpop.xlane.xlu0 %8086  ;;  %v8408_v6 = vpop.xlane.xlu1 %8407  ;;  %vm8288_vm0 = vcmp.eq.f32.partialorder %v12407_v10, inf }
 0xd18   :  { %v7955_v44 = vrot.slane %v7954_v56, 2  ;;  %v8088_v55 = vsel %vm812_vm7, %v8087_v54, 0.0  ;;  %v8409_v4 = vrot.slane %v8408_v6, 4 }
 0xd19   :  { %v8089_v3 = vrot.slane %v8088_v55, 4 }
 0xd1a   :  { %v7956_v40 = vadd.f32 %v7955_v44, %v7954_v56  ;;  %v8410_v48 = vadd.f32 %v8409_v4, %v8408_v6 }
 0xd1b   :  { %v8090_v20 = vadd.f32 %v8089_v3, %v8088_v55  ;;  %v8239_v0 = vpop.xlane.xlu0 %8238  ;;  %v8560_v34 = vpop.xlane.xlu1 %8559 }
 0xd1c   :  { %v7957_v13 = vrot.slane %v7956_v40, 1  ;;  %v8411_v45 = vrot.slane %v8410_v48, 2  ;;  %v8240_v32 = vsel %vm812_vm7, %v8239_v0, 0.0  ;;  %v8561_v62 = vrot.slane %v8560_v34, 4 }
 0xd1d   :  { %v8091_v37 = vrot.slane %v8090_v20, 2  ;;  %v8241_v58 = vrot.slane %v8240_v32, 4 }
 0xd1e   :  { %v7958_v23 = vadd.f32 %v7957_v13, %v7956_v40  ;;  %v8412_v53 = vadd.f32 %v8411_v45, %v8410_v48  ;;  %v8562_v46 = vadd.f32 %v8561_v62, %v8560_v34  ;;  %v7968_v45 = vmul.f32 %v9346_v49, %v12384_v28 }
 0xd1f   :  { %v8092_v12 = vadd.f32 %v8091_v37, %v8090_v20  ;;  %v8242_v39 = vadd.f32 %v8241_v58, %v8240_v32  ;;  %v8391_v35 = vpop.xlane.xlu0 %8390  ;;  %v8712_v8 = vpop.xlane.xlu1 %8711 }
 0xd20   :  { %v12393_v43 = vmul.f32 0.041666668, %v7958_v23  ;;  %v8413_v38 = vrot.slane %v8412_v53, 1  ;;  %v8563_v60 = vrot.slane %v8562_v46, 2  ;;  %v8392_v52 = vsel %vm812_vm7, %v8391_v35, 0.0 }
 0xd21   :  { %v8093_v22 = vrot.slane %v8092_v12, 1  ;;  %v8243_v57 = vrot.slane %v8242_v39, 2  ;;  %v8393_v7 = vrot.slane %v8392_v52, 4  ;;  %v8713_v29 = vrot.slane %v8712_v8, 4 }
 0xd22   :  { %9349 = vrsqrt.f32 %v12393_v43  ;;  %v8414_v47 = vadd.f32 %v8413_v38, %v8412_v53  ;;  %v8564_v15 = vadd.f32 %v8563_v60, %v8562_v46  ;;  %vm7977_vm5 = vcmp.eq.f32.partialorder %v12393_v43, inf }
 0xd23   :  { %v8094_v42 = vadd.f32 %v8093_v22, %v8092_v12  ;;  %v8244_v16 = vadd.f32 %v8243_v57, %v8242_v39  ;;  %v8543_v36 = vpop.xlane.xlu0 %8542  ;;  %v8864_v63 = vpop.xlane.xlu1 %8863  ;;  %v8394_v51 = vadd.f32 %v8393_v7, %v8392_v52  ;;  %v8714_v5 = vadd.f32 %v8713_v29, %v8712_v8 }
 0xd24   :  { %v8544_v21 = vsel %vm812_vm7, %v8543_v36, 0.0  ;;  %v8865_v1 = vrot.slane %v8864_v63, 4  ;;  %v12403_v9 = vmul.f32 0.041666668, %v8414_v47  ;;  %v8565_v50 = vrot.slane %v8564_v15, 1 }
 0xd25   :  { %v12401_v33 = vmul.f32 0.041666668, %v8094_v42  ;;  %v8245_v17 = vrot.slane %v8244_v16, 1  ;;  %v8395_v25 = vrot.slane %v8394_v51, 2  ;;  %v8715_v11 = vrot.slane %v8714_v5, 2 }
 0xd26   :  { %v8545_v41 = vrot.slane %v8544_v21, 4  ;;  %v8866_v27 = vadd.f32 %v8865_v1, %v8864_v63  ;;  %v8566_v19 = vadd.f32 %v8565_v50, %v8564_v15  ;;  %v7980_v53 = vand.u32 2147483648, %v12393_v43 }
 0xd27   :  { %9351 = vrsqrt.f32 %v12401_v33  ;;  %v8695_v18 = vpop.xlane.xlu0 %8694  ;;  %v8246_v56 = vadd.f32 %v8245_v17, %v8244_v16  ;;  %v8396_v54 = vadd.f32 %v8395_v25, %v8394_v51  ;;  %v8716_v6 = vadd.f32 %v8715_v11, %v8714_v5 }
 0xd28   :  { %9353 = vrsqrt.f32 %v12403_v9  ;;  %v8546_v44 = vadd.f32 %v8545_v41, %v8544_v21  ;;  %v8867_v55 = vrot.slane %v8866_v27, 2  ;;  %v8696_v4 = vsel %vm812_vm7, %v8695_v18, 0.0 }
 0xd29   :  { %9355 = vrsqrt.f32 %v12407_v10  ;;  %v12413_v24 = vmul.f32 0.041666668, %v8246_v56  ;;  %v12415_v31 = vmul.f32 0.041666668, %v8566_v19  ;;  %v8397_v3 = vrot.slane %v8396_v54, 1 }
 0xd2a   :  { %v8717_v40 = vrot.slane %v8716_v6, 1  ;;  %v8547_v20 = vrot.slane %v8546_v44, 2  ;;  %v8868_v0 = vadd.f32 %v8867_v55, %v8866_v27  ;;  %v8697_v34 = vrot.slane %v8696_v4, 4 }
 0xd2b   :  { %v8847_v48 = vpop.xlane.xlu0 %8846  ;;  %9357 = vrsqrt.f32 %v12413_v24  ;;  %v8398_v62 = vadd.f32 %v8397_v3, %v8396_v54  ;;  %v7972_v57 = vand.u32 2147483648, %v12384_v28  ;;  %v7970_v30 = vsel %vm7969_vm11, %v12384_v28, %v7968_v45 }
 0xd2c   :  { %v8848_v13 = vsel %vm812_vm7, %v8847_v48, 0.0  ;;  %9359 = vrsqrt.f32 %v12415_v31  ;;  %v8718_v37 = vadd.f32 %v8717_v40, %v8716_v6  ;;  %v8548_v58 = vadd.f32 %v8547_v20, %v8546_v44 }
 0xd2d   :  { %v8869_v59 = vrot.slane %v8868_v0, 1  ;;  %v8698_v46 = vadd.f32 %v8697_v34, %v8696_v4  ;;  %v8849_v12 = vrot.slane %v8848_v13, 4  ;;  %v12425_v39 = vmul.f32 0.041666668, %v8398_v62 }
 0xd2e   :  { %v12427_v35 = vmul.f32 0.041666668, %v8718_v37  ;;  %v8549_v8 = vrot.slane %v8548_v58, 1  ;;  %vm7979_vm7 = vcmp.eq.f32.partialorder %v12393_v43, 0.0  ;;  %vm8114_vm14 = vcmp.eq.f32.partialorder %v12401_v33, inf }
 0xd2f   :  { %v9350_v32 = vpop.eup %9349  ;;  %v8870_v38 = vadd.f32 %v8869_v59, %v8868_v0  ;;  %v8699_v52 = vrot.slane %v8698_v46, 2  ;;  %v8850_v22 = vadd.f32 %v8849_v12, %v8848_v13  ;;  %9361 = vrsqrt.f32 %v12425_v39 }
 0xd30   :  { %v7976_v23 = vmul.f32 %v9350_v32, %v12393_v43  ;;  %v8550_v47 = vadd.f32 %v8549_v8, %v8548_v58  ;;  %v8117_v15 = vand.u32 2147483648, %v12401_v33  ;;  %vm8116_vm15 = vcmp.eq.f32.partialorder %v12401_v33, 0.0 }
 0xd31   :  { %v12444_v16 = vmul.f32 0.041666668, %v8870_v38  ;;  %v8700_v36 = vadd.f32 %v8699_v52, %v8698_v46  ;;  %v8851_v63 = vrot.slane %v8850_v22, 2  ;;  %v8139_v25 = vand.u32 2147483648, %v12386_v14 }
 0xd32   :  { %v7978_v60 = vsel %vm7977_vm5, %v12393_v43, %v7976_v23  ;;  %v12451_v21 = vmul.f32 0.041666668, %v8550_v47  ;;  %v8291_v41 = vand.u32 2147483648, %v12407_v10  ;;  %v7973_v56 = vsel %vm7971_vm4, %v7972_v57, %v7970_v30 }
 0xd33   :  { %v12432_v7 = vsel %vm7979_vm7, %v7980_v53, %v7978_v60  ;;  %v8701_v17 = vrot.slane %v8700_v36, 1  ;;  %v8852_v50 = vadd.f32 %v8851_v63, %v8850_v22  ;;  %v8137_v19 = vsel %vm8136_vm13, %v12386_v14, %v8135_v2 }
 0xd34   :  { %v9352_v29 = vpop.eup %9351  ;;  %9363 = vrsqrt.f32 %v12432_v7  ;;  %vm8433_vm1 = vcmp.eq.f32.partialorder %v12403_v9, inf  ;;  %vm8266_vm6 = vcmp.eq.f32.partialorder %v12413_v24, inf  ;;  %v8269_v44 = vand.u32 2147483648, %v12413_v24 }
 0xd35   :  { %v9354_v43 = vpop.eup %9353  ;;  %v8113_v42 = vmul.f32 %v9352_v29, %v12401_v33  ;;  %9365 = vrsqrt.f32 %v12427_v35  ;;  %v8853_v18 = vrot.slane %v8852_v50, 1  ;;  %vm8268_vm2 = vcmp.eq.f32.partialorder %v12413_v24, 0.0 }
 0xd36   :  { %v9356_v51 = vpop.eup %9355  ;;  %9367 = vrsqrt.f32 %v12444_v16  ;;  %v8432_v11 = vmul.f32 %v9354_v43, %v12403_v9  ;;  %v7974_v40 = vadd.f32 %v7973_v56, %v12377_v26  ;;  %v8436_v48 = vand.u32 2147483648, %v12403_v9 }
 0xd37   :  { %v8115_v5 = vsel %vm8114_vm14, %v12401_v33, %v8113_v42  ;;  %v8702_v33 = vadd.f32 %v8701_v17, %v8700_v36  ;;  %v8287_v49 = vmul.f32 %v9356_v51, %v12407_v10  ;;  %v8854_v28 = vadd.f32 %v8853_v18, %v8852_v50 }
 0xd38   :  { %v12454_v1 = vsel %vm8116_vm15, %v8117_v15, %v8115_v5  ;;  %v9358_v27 = vpop.eup %9357  ;;  %v8434_v4 = vsel %vm8433_vm1, %v12403_v9, %v8432_v11  ;;  %vm8435_vm3 = vcmp.eq.f32.partialorder %v12403_v9, 0.0  ;;  %v12489_v34 = vsel %vm8138_vm12, %v8139_v25, %v8137_v19 }
 0xd39   :  { %9369 = vrsqrt.f32 %v12454_v1  ;;  %v9360_v54 = vpop.eup %9359  ;;  %v8265_v6 = vmul.f32 %v9358_v27, %v12413_v24  ;;  %v12472_v55 = vmul.f32 0.041666668, %v8702_v33  ;;  %v12485_v0 = vmul.f32 0.041666668, %v8854_v28 }
 0xd3a   :  { %9371 = vrsqrt.f32 %v12451_v21  ;;  %v8584_v20 = vmul.f32 %v9360_v54, %v12415_v31  ;;  %v12491_v26 = vsel %vm8435_vm3, %v8436_v48, %v8434_v4  ;;  %vm8585_vm8 = vcmp.eq.f32.partialorder %v12415_v31, inf }
 0xd3b   :  { %v8267_v3 = vsel %vm8266_vm6, %v12413_v24, %v8265_v6  ;;  %9373 = vrsqrt.f32 %v12472_v55  ;;  %vm8587_vm9 = vcmp.eq.f32.partialorder %v12415_v31, 0.0  ;;  %v12498_v13 = vsel %vm8288_vm0, %v12407_v10, %v8287_v49 }
 0xd3c   :  { %v12479_v61 = vsel %vm8268_vm2, %v8269_v44, %v8267_v3  ;;  %v9362_v24 = vpop.eup %9361  ;;  %v8588_v45 = vand.u32 2147483648, %v12415_v31  ;;  %vm8418_vm10 = vcmp.eq.f32.partialorder %v12425_v39, inf  ;;  %v8586_v37 = vsel %vm8585_vm8, %v12415_v31, %v8584_v20 }
 0xd3d   :  { %9375 = vrsqrt.f32 %v12479_v61  ;;  %v8417_v32 = vmul.f32 %v9362_v24, %v12425_v39  ;;  %vm8420_vm11 = vcmp.eq.f32.partialorder %v12425_v39, 0.0  ;;  %v8421_v58 = vand.u32 2147483648, %v12425_v39 }
 0xd3e   :  { %9377 = vrsqrt.f32 %v12485_v0  ;;  %vm7984_vm5 = vcmp.eq.f32.partialorder %v12432_v7, inf  ;;  %vm8737_vm7 = vcmp.eq.f32.partialorder %v12427_v35, inf  ;;  %v7987_v8 = vand.u32 2147483648, %v12432_v7 }
 0xd3f   :  { %9379 = vrsqrt.f32 %v12491_v26  ;;  %v8419_v59 = vsel %vm8418_vm10, %v12425_v39, %v8417_v32  ;;  %v8740_v38 = vand.u32 2147483648, %v12427_v35  ;;  %vm7986_vm4 = vcmp.eq.f32.partialorder %v12432_v7, 0.0 }
 0xd40   :  { %v12512_v46 = vsel %vm8420_vm11, %v8421_v58, %v8419_v59  ;;  %v12522_v39 = vsel %vm8587_vm9, %v8588_v45, %v8586_v37  ;;  %vm8570_vm13 = vcmp.eq.f32.partialorder %v12451_v21, inf  ;;  %vm8572_vm14 = vcmp.eq.f32.partialorder %v12451_v21, 0.0 }
 0xd41   :  { %v9364_v9 = vpop.eup %9363  ;;  %9381 = vrsqrt.f32 %v12512_v46  ;;  %v8573_v57 = vand.u32 2147483648, %v12451_v21  ;;  %vm8121_vm12 = vcmp.eq.f32.partialorder %v12454_v1, inf  ;;  %vm8123_vm15 = vcmp.eq.f32.partialorder %v12454_v1, 0.0 }
 0xd42   :  { %v9366_v14 = vpop.eup %9365  ;;  %v7983_v62 = vmul.f32 %v9364_v9, %v12432_v7  ;;  %v8124_v31 = vand.u32 2147483648, %v12454_v1  ;;  %9383 = vrsqrt.f32 %v12522_v39  ;;  %vm8739_vm0 = vcmp.eq.f32.partialorder %v12427_v35, 0.0 }
 0xd43   :  { %v8736_v23 = vmul.f32 %v9366_v14, %v12427_v35  ;;  %v9368_v53 = vpop.eup %9367  ;;  %vm8290_vm1 = vcmp.eq.f32.partialorder %v12407_v10, 0.0  ;;  %vm8722_vm6 = vcmp.eq.f32.partialorder %v12472_v55, inf  ;;  %vm8724_vm2 = vcmp.eq.f32.partialorder %v12472_v55, 0.0 }
 0xd44   :  { %v7985_v12 = vsel %vm7984_vm5, %v12432_v7, %v7983_v62  ;;  %v8888_v29 = vmul.f32 %v9368_v53, %v12444_v16  ;;  %vm8889_vm3 = vcmp.eq.f32.partialorder %v12444_v16, inf  ;;  %v8725_v63 = vand.u32 2147483648, %v12472_v55 }
 0xd45   :  { %v7988_v52 = vsel %vm7986_vm4, %v7987_v8, %v7985_v12  ;;  %v8738_v22 = vsel %vm8737_vm7, %v12427_v35, %v8736_v23  ;;  %v8892_v25 = vand.u32 2147483648, %v12444_v16  ;;  %vm8891_vm8 = vcmp.eq.f32.partialorder %v12444_v16, 0.0 }
 0xd46   :  { %v9370_v60 = vpop.eup %9369  ;;  %v7989_v43 = vadd.f32 %v7988_v52, %v7974_v40  ;;  %v12538_v47 = vsel %vm8739_vm0, %v8740_v38, %v8738_v22  ;;  %v8890_v5 = vsel %vm8889_vm3, %v12444_v16, %v8888_v29  ;;  %vm8273_vm9 = vcmp.eq.f32.partialorder %v12479_v61, inf }
 0xd47   :  { %v8120_v30 = vmul.f32 %v9370_v60, %v12454_v1  ;;  %v9372_v7 = vpop.eup %9371  ;;  %9385 = vrsqrt.f32 %v12538_v47  ;;  %v12561_v56 = vsel %vm8891_vm8, %v8892_v25, %v8890_v5  ;;  %vm8275_vm10 = vcmp.eq.f32.partialorder %v12479_v61, 0.0 }
 0xd48   :  { %v8569_v2 = vmul.f32 %v9372_v7, %v12451_v21  ;;  %v9374_v36 = vpop.eup %9373  ;;  %vm8874_vm11 = vcmp.eq.f32.partialorder %v12485_v0, inf  ;;  %v8877_v44 = vand.u32 2147483648, %v12485_v0  ;;  %vm8876_vm5 = vcmp.eq.f32.partialorder %v12485_v0, 0.0 }
 0xd49   :  { %v8122_v42 = vsel %vm8121_vm12, %v12454_v1, %v8120_v30  ;;  %v8721_v50 = vmul.f32 %v9374_v36, %v12472_v55  ;;  %vm8425_vm7 = vcmp.eq.f32.partialorder %v12512_v46, inf  ;;  %vm8427_vm4 = vcmp.eq.f32.partialorder %v12512_v46, 0.0 }
 0xd4a   :  { %v8125_v15 = vsel %vm8123_vm15, %v8124_v31, %v8122_v42  ;;  %v8571_v35 = vsel %vm8570_vm13, %v12451_v21, %v8569_v2  ;;  %v9376_v1 = vpop.eup %9375  ;;  %v8276_v21 = vand.u32 2147483648, %v12479_v61  ;;  %vm8440_vm13 = vcmp.eq.f32.partialorder %v12491_v26, inf }
 0xd4b   :  { %v8126_v51 = vadd.f32 %v8125_v15, %v7989_v43  ;;  %v8574_v17 = vsel %vm8572_vm14, %v8573_v57, %v8571_v35  ;;  %v8272_v27 = vmul.f32 %v9376_v1, %v12479_v61  ;;  %v9378_v33 = vpop.eup %9377  ;;  %v8723_v18 = vsel %vm8722_vm6, %v12472_v55, %v8721_v50 }
 0xd4c   :  { %9387 = vrsqrt.f32 %v8574_v17  ;;  %v8873_v19 = vmul.f32 %v9378_v33, %v12485_v0  ;;  %v8726_v16 = vsel %vm8724_vm2, %v8725_v63, %v8723_v18  ;;  %v9380_v6 = vpop.eup %9379  ;;  %v8292_v55 = vsel %vm8290_vm1, %v8291_v41, %v12498_v13 }
 0xd4d   :  { %v8141_v11 = vadd.f32 %v12489_v34, %v8126_v51  ;;  %v8274_v54 = vsel %vm8273_vm9, %v12479_v61, %v8272_v27  ;;  %9389 = vrsqrt.f32 %v8726_v16  ;;  %v8439_v20 = vmul.f32 %v9380_v6, %v12491_v26 }
 0xd4e   :  { %v8277_v49 = vsel %vm8275_vm10, %v8276_v21, %v8274_v54  ;;  %v8875_v4 = vsel %vm8874_vm11, %v12485_v0, %v8873_v19  ;;  %9391 = vrsqrt.f32 %v12561_v56  ;;  %v9382_v3 = vpop.eup %9381  ;;  %v8428_v0 = vand.u32 2147483648, %v12512_v46 }
 0xd4f   :  { %v8278_v28 = vadd.f32 %v8277_v49, %v8141_v11  ;;  %v8878_v40 = vsel %vm8876_vm5, %v8877_v44, %v8875_v4  ;;  %v8424_v61 = vmul.f32 %v9382_v3, %v12512_v46  ;;  %v9384_v34 = vpop.eup %9383  ;;  %v8441_v41 = vsel %vm8440_vm13, %v12491_v26, %v8439_v20 }
 0xd50   :  { %9393 = vrsqrt.f32 %v8878_v40  ;;  %v8443_v13 = vand.u32 2147483648, %v12491_v26  ;;  %vm8442_vm14 = vcmp.eq.f32.partialorder %v12491_v26, 0.0  ;;  %v8591_v32 = vmul.f32 %v9384_v34, %v12522_v39 }
 0xd51   :  { %v8293_v48 = vadd.f32 %v8292_v55, %v8278_v28  ;;  %v8426_v24 = vsel %vm8425_vm7, %v12512_v46, %v8424_v61  ;;  %vm8577_vm12 = vcmp.eq.f32.partialorder %v8574_v17, inf  ;;  %v8580_v59 = vand.u32 2147483648, %v8574_v17 }
 0xd52   :  { %v8429_v9 = vsel %vm8427_vm4, %v8428_v0, %v8426_v24  ;;  %v8444_v62 = vsel %vm8442_vm14, %v8443_v13, %v8441_v41  ;;  %vm8592_vm15 = vcmp.eq.f32.partialorder %v12522_v39, inf  ;;  %vm8579_vm0 = vcmp.eq.f32.partialorder %v8574_v17, 0.0 }
 0xd53   :  { %v8430_v10 = vadd.f32 %v8429_v9, %v8293_v48  ;;  %v8593_v12 = vsel %vm8592_vm15, %v12522_v39, %v8591_v32  ;;  %vm8594_vm1 = vcmp.eq.f32.partialorder %v12522_v39, 0.0  ;;  %v8595_v26 = vand.u32 2147483648, %v12522_v39 }
 0xd54   :  { %v9386_v45 = vpop.eup %9385  ;;  %vm8729_vm6 = vcmp.eq.f32.partialorder %v8726_v16, inf  ;;  %v8732_v22 = vand.u32 2147483648, %v8726_v16  ;;  %vm8744_vm2 = vcmp.eq.f32.partialorder %v12538_v47, inf  ;;  %vm8731_vm3 = vcmp.eq.f32.partialorder %v8726_v16, 0.0 }
 0xd55   :  { %v8445_v37 = vadd.f32 %v8444_v62, %v8430_v10  ;;  %v8743_v23 = vmul.f32 %v9386_v45, %v12538_v47  ;;  %v8596_v29 = vsel %vm8594_vm1, %v8595_v26, %v8593_v12  ;;  %v8747_v15 = vand.u32 2147483648, %v12538_v47 }
 0xd56   :  { %vm8881_vm8 = vcmp.eq.f32.partialorder %v8878_v40, inf  ;;  %v8884_v39 = vand.u32 2147483648, %v8878_v40  ;;  %vm8746_vm9 = vcmp.eq.f32.partialorder %v12538_v47, 0.0  ;;  %vm8883_vm10 = vcmp.eq.f32.partialorder %v8878_v40, 0.0 }
 0xd57   :  { %v8745_v7 = vsel %vm8744_vm2, %v12538_v47, %v8743_v23  ;;  %vm8896_vm11 = vcmp.eq.f32.partialorder %v12561_v56, inf  ;;  %vm8898_vm5 = vcmp.eq.f32.partialorder %v12561_v56, 0.0  ;;  %vm8904_vm7 = vcmask 0  }
 0xd58   :  { %v8748_v63 = vsel %vm8746_vm9, %v8747_v15, %v8745_v7 }
 0xd59   :  { %v9388_v14 = vpop.eup %9387 }
 0xd5a   :  { %v8576_v58 = vmul.f32 %v9388_v14, %v8574_v17  ;;  %v9390_v53 = vpop.eup %9389 }
 0xd5b   :  { %v9392_v8 = vpop.eup %9391  ;;  %v8728_v60 = vmul.f32 %v9390_v53, %v8726_v16 }
 0xd5c   :  { %v8578_v46 = vsel %vm8577_vm12, %v8574_v17, %v8576_v58  ;;  %v8895_v42 = vmul.f32 %v9392_v8, %v12561_v56  ;;  %v8899_v17 = vand.u32 2147483648, %v12561_v56 }
 0xd5d   :  { %v8581_v38 = vsel %vm8579_vm0, %v8580_v59, %v8578_v46  ;;  %v9394_v57 = vpop.eup %9393  ;;  %v8730_v30 = vsel %vm8729_vm6, %v8726_v16, %v8728_v60 }
 0xd5e   :  { %v8582_v52 = vadd.f32 %v8581_v38, %v8445_v37  ;;  %v8733_v2 = vsel %vm8731_vm3, %v8732_v22, %v8730_v30  ;;  %v8880_v43 = vmul.f32 %v9394_v57, %v8878_v40  ;;  %v8897_v1 = vsel %vm8896_vm11, %v12561_v56, %v8895_v42 }
 0xd5f   :  { %v8900_v25 = vsel %vm8898_vm5, %v8899_v17, %v8897_v1 }
 0xd60   :  { %v8597_v31 = vadd.f32 %v8596_v29, %v8582_v52  ;;  %v8882_v35 = vsel %vm8881_vm8, %v8878_v40, %v8880_v43 }
 0xd61   :  { %v8885_v51 = vsel %vm8883_vm10, %v8884_v39, %v8882_v35 }
 0xd62   :  { %v8734_v36 = vadd.f32 %v8733_v2, %v8597_v31 }
 0xd64   :  { %v8749_v5 = vadd.f32 %v8748_v63, %v8734_v36 }
 0xd66   :  { %v8886_v50 = vadd.f32 %v8885_v51, %v8749_v5 }
 0xd68   :  { %v8901_v11 = vadd.f32 %v8900_v25, %v8886_v50 }
 0xd6a   :  { %v8902_v27 = vmul.f32 0.037037037, %v8901_v11 }
 0xd6c   :  { %v8903_v47 = vmul.f32 0.5, %v8902_v27 }
 0xd6e   :  { %8905 = vst.msk [vmem:[#allocation2] sm:$0x1] %vm8904_vm7, %v8903_v47 }
 0xd6f   :  { %9411 = shalt.err (!%p9408_p4)
}
 0xd70   :  { %8915 = dma.vmem_to_hbm [thread:$0]  %s8913_s27, 16, %s12612_s6, [#allocation3]  }
 0xd71   :  { %9420 = dma.done.wait [#allocation3], 16  }
 0xd72   :  { %9421 = vsyncadd [#allocation3], 4294967280 }
 0xd73   :  { %8919 = vsyncpa [#allocation3], 1 }

</bundles_post_ra>
